<compile_context>
chip_gen: v6e
topology: v6e:2x2x1
jax: 0.10.0
libtpu: 0.0.40
codegen_flags: <defaults>
</compile_context>

<pallas_src>
import math
from functools import partial

import jax
import jax.numpy as jnp
from jax.experimental import pallas as pl
from jax.experimental.pallas import tpu as pltpu

# ---------------- model configuration (small, self-consistent) ----------------
HID = 16                 # DecoderRNN hidden_size
EMB = 32                 # embed_size (== LSTM input_size; features must have this width)
VOCAB = 128              # vocab_size (multiple of 128 -> lane-dense output stores)
TCAP = 1                 # caption length -> LSTM runs T = (TCAP-1)+1 = 1 step (forced, see above)
BATCH = HID * HID        # = 256; batch must equal hidden_size**2 (or 1) for the broadcast
SEQ_ATT = HID * HID      # AttentionModel.sequence_len = hidden_size * hidden_size
MLP1 = 64                # scaled from the hard-coded 3072
MLP2 = HID               # scaled from the hard-coded 1024 (must equal hidden_size)
HID_EMB = HID            # scaled from the hard-coded 1024 (must equal T*hidden_size)
TB = 32                  # batch tile for the output grid (4 MiB output tile)


def _sigmoid(x):
    return 1.0 / (1.0 + jnp.exp(-x))


# ------------------------------- fused Pallas kernel ----------------------------
def _decoder_fused_kernel(x_ref, wih_ref, whh_ref, bias_ref,
                          w1_ref, b1_ref, w2_ref, b2_ref, w3_ref, b3_ref,
                          fcw_ref, fcb_ref,
                          out_ref,
                          lstm_sc, l_sc):
    """Fused DecoderRNN forward.

    Grid: (B // tb,) over batch tiles of the (B, S, V) result.
    Step 0 additionally computes, into VMEM scratch:
      lstm_sc : (B, T*H)  LSTM outputs (h0 = c0 = 0, gate order i,f,g,o)
      l_sc    : (S, V)    L = lstm_flat @ Wfc^T   (shared by every batch row)
    Every step computes the attention MLP + softmax for its tile of rows and
    writes out[b, s, :] = alpha[b, s] * L[s, :] + fc_b  (pure VPU broadcast-mul).
    """
    T, B, _ = x_ref.shape
    H = whh_ref.shape[0]
    tb = out_ref.shape[0]

    @pl.when(pl.program_id(0) == 0)
    def _init():
        h = jnp.zeros((B, H), jnp.float32)
        c = jnp.zeros((B, H), jnp.float32)
        hs = []
        for t in range(T):  # static trip count (T == 1 here)
            gates = (jnp.dot(x_ref[t], wih_ref[...], preferred_element_type=jnp.float32)
                     + jnp.dot(h, whh_ref[...], preferred_element_type=jnp.float32)
                     + bias_ref[...])                                  # (B, 4H)
            i_g = _sigmoid(gates[:, 0 * H:1 * H])
            f_g = _sigmoid(gates[:, 1 * H:2 * H])
            g_g = jnp.tanh(gates[:, 2 * H:3 * H])
            o_g = _sigmoid(gates[:, 3 * H:4 * H])
            c = f_g * c + i_g * g_g
            h = o_g * jnp.tanh(c)
            hs.append(h)
        lstm_flat = hs[0] if T == 1 else jnp.concatenate(hs, axis=1)    # (B, T*H)
        lstm_sc[...] = lstm_flat
        # Factored weighted-FC: one (S, T*H) x (T*H, V) matmul instead of B copies.
        l_sc[...] = jnp.dot(lstm_flat, fcw_ref[...],
                            preferred_element_type=jnp.float32)         # (S, V)

    i = pl.program_id(0)
    row0 = pl.multiple_of(i * tb, tb)
    lstm_tile = lstm_sc[pl.ds(row0, tb), :]                             # (tb, T*H)

    # attention MLP (ReLU x3) + softmax over S for this tile's rows
    h1 = jnp.maximum(jnp.dot(lstm_tile, w1_ref[...],
                             preferred_element_type=jnp.float32) + b1_ref[...], 0.0)
    h2 = jnp.maximum(jnp.dot(h1, w2_ref[...],
                             preferred_element_type=jnp.float32) + b2_ref[...], 0.0)
    att = jnp.maximum(jnp.dot(h2, w3_ref[...],
                              preferred_element_type=jnp.float32) + b3_ref[...], 0.0)
    att = att - jnp.max(att, axis=-1, keepdims=True)
    e = jnp.exp(att)
    alpha = e * pl.reciprocal(jnp.sum(e, axis=-1, keepdims=True), approx=True)  # (tb, S)

    # out[b, s, :] = alpha[b, s] * L[s, :] + fc_b   (lane-dense, V == 128)
    out_ref[...] = alpha[:, :, None] * l_sc[...][None, :, :] + fcb_ref[...]


# ------------------------------ kernel wrapper ----------------------------------
def _full_spec(a):
    nd = a.ndim
    return pl.BlockSpec(a.shape, lambda i, _nd=nd: (0,) * _nd)


@partial(jax.jit, static_argnames=("tb",))
def decoder_rnn_forward(prepped, features, captions, *, tb=TB):
    B = features.shape[0]
    # captions = captions[:, :-1]; embedding lookup; cat with features along time (glue)
    cap = captions[:, :-1]
    cap_emb = jnp.take(prepped["embedding"], cap, axis=0)               # (B, Tcap-1, E)
    inputs = jnp.concatenate([features[:, None, :], cap_emb], axis=1)   # (B, T, E)
    x = jnp.transpose(inputs, (1, 0, 2)).astype(jnp.float32)            # (T, B, E)

    T = x.shape[0]
    H = prepped["whh_t"].shape[0]
    S = prepped["w3t"].shape[1]
    V = prepped["fcw_t"].shape[1]
    assert T * H == H and B == S and B % tb == 0  # structural requirements of the module

    operands = (x, prepped["wih_t"], prepped["whh_t"], prepped["lstm_bias"],
                prepped["w1t"], prepped["b1"], prepped["w2t"], prepped["b2"],
                prepped["w3t"], prepped["b3"], prepped["fcw_t"], prepped["fcb"])

    return pl.pallas_call(
        _decoder_fused_kernel,
        out_shape=jax.ShapeDtypeStruct((B, S, V), jnp.float32),
        grid=(B // tb,),
        in_specs=[_full_spec(a) for a in operands],
        out_specs=pl.BlockSpec((tb, S, V), lambda i: (i, 0, 0)),
        scratch_shapes=[pltpu.VMEM((B, T * H), jnp.float32),
                        pltpu.VMEM((S, V), jnp.float32)],
        compiler_params=pltpu.CompilerParams(
            dimension_semantics=("arbitrary",),       # scratch init at step 0 must be seen by all steps
            vmem_limit_bytes=32 * 1024 * 1024),
    )(*operands)


# ------------------------- one-time parameter preparation -----------------------
def prepare_params(params):
    """Hoist transposes / bias fusion out of the per-call path."""
    return {
        "embedding": params["embedding"],
        "wih_t": params["w_ih"].T,                                       # (E, 4H)
        "whh_t": params["w_hh"].T,                                       # (H, 4H)
        "lstm_bias": (params["b_ih"] + params["b_hh"]).reshape(1, -1),   # (1, 4H)
        "w1t": params["att_w1"].T, "b1": params["att_b1"].reshape(1, -1),
        "w2t": params["att_w2"].T, "b2": params["att_b2"].reshape(1, -1),
        "w3t": params["att_w3"].T, "b3": params["att_b3"].reshape(1, -1),
        "fcw_t": params["fc_w"].T,                                       # (H, V)
        "fcb": params["fc_b"].reshape(1, -1),                            # (1, V)
    }


# ------------------------- plain-JAX reference (checking) ----------------------
def decoder_rnn_reference(params, features, captions):
    B = features.shape[0]
    cap = captions[:, :-1]
    cap_emb = jnp.take(params["embedding"], cap, axis=0)
    inputs = jnp.concatenate([features[:, None, :], cap_emb], axis=1)
    T = inputs.shape[1]
    H = HID
    hp = jax.lax.Precision.HIGHEST
    h = jnp.zeros((B, H), jnp.float32)
    c = jnp.zeros((B, H), jnp.float32)
    outs = []
    for t in range(T):
        gates = (jnp.dot(inputs[:, t, :], params["w_ih"].T, precision=hp) + params["b_ih"]
                 + jnp.dot(h, params["w_hh"].T, precision=hp) + params["b_hh"])
        i = _sigmoid(gates[:, :H])
        f = _sigmoid(gates[:, H:2 * H])
        g = jnp.tanh(gates[:, 2 * H:3 * H])
        o = _sigmoid(gates[:, 3 * H:4 * H])
        c = f * c + i * g
        h = o * jnp.tanh(c)
        outs.append(h)
    lstm_flat = jnp.stack(outs, axis=1).reshape(B, -1)
    a1 = jnp.maximum(jnp.dot(lstm_flat, params["att_w1"].T, precision=hp) + params["att_b1"], 0.0)
    a2 = jnp.maximum(jnp.dot(a1, params["att_w2"].T, precision=hp) + params["att_b2"], 0.0)
    att = jnp.maximum(jnp.dot(a2, params["att_w3"].T, precision=hp) + params["att_b3"], 0.0)
    att = att - jnp.max(att, axis=1, keepdims=True)
    e = jnp.exp(att)
    alpha = e / jnp.sum(e, axis=1, keepdims=True)
    alpha3 = jnp.stack([alpha] * MLP2, axis=2)               # (B, S, mlp2)
    awe = lstm_flat * alpha3                                  # same broadcast as torch
    # TODO(synk): nn.Dropout layers run as identity (eval mode); the discarded
    # att_w_encode1 = sum(att_w_encode, dim=1, keepdim=True) is dead code and skipped.
    result = jnp.dot(awe, params["fc_w"].T, precision=hp) + params["fc_b"]
    return result


# ------------------------------- param init ------------------------------------
def init_params(key):
    ks = jax.random.split(key, 12)

    def u(k, shape, a):
        return jax.random.uniform(k, shape, jnp.float32, -a, a)

    kh = 1.0 / math.sqrt(HID)
    return {
        "embedding": u(ks[0], (VOCAB, EMB), 0.1),             # init_weights: uniform(-0.1, 0.1)
        "w_ih": u(ks[1], (4 * HID, EMB), kh),
        "w_hh": u(ks[2], (4 * HID, HID), kh),
        "b_ih": u(ks[3], (4 * HID,), kh),
        "b_hh": u(ks[4], (4 * HID,), kh),
        "att_w1": u(ks[5], (MLP1, HID_EMB), 1.0 / math.sqrt(HID_EMB)),
        "att_b1": u(ks[6], (MLP1,), 1.0 / math.sqrt(HID_EMB)),
        "att_w2": u(ks[7], (MLP2, MLP1), 1.0 / math.sqrt(MLP1)),
        "att_b2": u(ks[8], (MLP2,), 1.0 / math.sqrt(MLP1)),
        "att_w3": u(ks[9], (SEQ_ATT, MLP2), 1.0 / math.sqrt(MLP2)),
        "att_b3": u(ks[10], (SEQ_ATT,), 1.0 / math.sqrt(MLP2)),
        "fc_w": u(ks[11], (VOCAB, HID), 0.1),                 # init_weights: uniform(-0.1, 0.1)
        "fc_b": jnp.zeros((VOCAB,), jnp.float32),             # init_weights: fill_(0)
    }


# ----------------------------------- main ---------------------------------------
if __name__ == "__main__":
    key = jax.random.PRNGKey(0)
    kp, kf, kc = jax.random.split(key, 3)
    params = init_params(kp)
    prepped = prepare_params(params)

    features = jax.random.normal(kf, (BATCH, EMB), jnp.float32)
    captions = jax.random.randint(kc, (BATCH, TCAP), 0, VOCAB, dtype=jnp.int32)

    out = decoder_rnn_forward(prepped, features, captions)
    out = jax.block_until_ready(out)

    ref = decoder_rnn_reference(params, features, captions)
    assert out.shape == (BATCH, SEQ_ATT, VOCAB), out.shape
    err = float(jnp.max(jnp.abs(out - ref)))
    assert jnp.allclose(out, ref, atol=2e-3, rtol=2e-2), f"max abs err {err}"

    print("KERNEL_OK")
</pallas_src>

<mosaic_0001>
module attributes {stable_mosaic.version = 11 : i64} {
  func.func @_decoder_fused_kernel(%arg0: i32, %arg1: memref<1x256x32xf32, #tpu.memory_space<vmem>>, %arg2: memref<32x64xf32, #tpu.memory_space<vmem>>, %arg3: memref<16x64xf32, #tpu.memory_space<vmem>>, %arg4: memref<1x64xf32, #tpu.memory_space<vmem>>, %arg5: memref<16x64xf32, #tpu.memory_space<vmem>>, %arg6: memref<1x64xf32, #tpu.memory_space<vmem>>, %arg7: memref<64x16xf32, #tpu.memory_space<vmem>>, %arg8: memref<1x16xf32, #tpu.memory_space<vmem>>, %arg9: memref<16x256xf32, #tpu.memory_space<vmem>>, %arg10: memref<1x256xf32, #tpu.memory_space<vmem>>, %arg11: memref<16x128xf32, #tpu.memory_space<vmem>>, %arg12: memref<1x128xf32, #tpu.memory_space<vmem>>, %arg13: memref<32x256x128xf32, #tpu.memory_space<vmem>>, %arg14: memref<256x16xf32, #tpu.memory_space<vmem>>, %arg15: memref<256x128xf32, #tpu.memory_space<vmem>>) attributes {dimension_semantics = [#tpu.dimension_semantics<arbitrary>], iteration_bounds = array<i64: 8>, scalar_prefetch = 0 : i64, scratch_operands = 2 : i64, tpu.core_type = #tpu.core_type<tc>, window_params = [{pipeline_mode = #tpu.pipeline_mode<synchronous>, transform_indices = @transform_0, window_bounds = array<i64: 1, 256, 32>}, {pipeline_mode = #tpu.pipeline_mode<synchronous>, transform_indices = @transform_1, window_bounds = array<i64: 32, 64>}, {pipeline_mode = #tpu.pipeline_mode<synchronous>, transform_indices = @transform_2, window_bounds = array<i64: 16, 64>}, {pipeline_mode = #tpu.pipeline_mode<synchronous>, transform_indices = @transform_3, window_bounds = array<i64: 1, 64>}, {pipeline_mode = #tpu.pipeline_mode<synchronous>, transform_indices = @transform_4, window_bounds = array<i64: 16, 64>}, {pipeline_mode = #tpu.pipeline_mode<synchronous>, transform_indices = @transform_5, window_bounds = array<i64: 1, 64>}, {pipeline_mode = #tpu.pipeline_mode<synchronous>, transform_indices = @transform_6, window_bounds = array<i64: 64, 16>}, {pipeline_mode = #tpu.pipeline_mode<synchronous>, transform_indices = @transform_7, window_bounds = array<i64: 1, 16>}, {pipeline_mode = #tpu.pipeline_mode<synchronous>, transform_indices = @transform_8, window_bounds = array<i64: 16, 256>}, {pipeline_mode = #tpu.pipeline_mode<synchronous>, transform_indices = @transform_9, window_bounds = array<i64: 1, 256>}, {pipeline_mode = #tpu.pipeline_mode<synchronous>, transform_indices = @transform_10, window_bounds = array<i64: 16, 128>}, {pipeline_mode = #tpu.pipeline_mode<synchronous>, transform_indices = @transform_11, window_bounds = array<i64: 1, 128>}, {transform_indices = @transform_12, window_bounds = array<i64: 32, 256, 128>}]} {
    %c0_i32 = arith.constant 0 : i32
    %0 = arith.cmpi eq, %arg0, %c0_i32 : i32
    %1 = arith.extui %0 : i1 to i32
    %c0_i32_0 = arith.constant 0 : i32
    %2 = arith.cmpi ne, %1, %c0_i32_0 : i32
    scf.if %2 {
      %cst_27 = arith.constant 0.000000e+00 : f32
      %49 = vector.broadcast %cst_27 : f32 to vector<256x16xf32>
      %cst_28 = arith.constant 0.000000e+00 : f32
      %50 = vector.broadcast %cst_28 : f32 to vector<256x16xf32>
      %c0_29 = arith.constant 0 : index
      %c0_30 = arith.constant 0 : index
      %c0_31 = arith.constant 0 : index
      %51 = vector.load %arg1[%c0_29, %c0_30, %c0_31] : memref<1x256x32xf32, #tpu.memory_space<vmem>>, vector<1x256x32xf32>
      %52 = vector.shape_cast %51 : vector<1x256x32xf32> to vector<256x32xf32>
      %c0_32 = arith.constant 0 : index
      %c0_33 = arith.constant 0 : index
      %53 = vector.load %arg2[%c0_32, %c0_33] : memref<32x64xf32, #tpu.memory_space<vmem>>, vector<32x64xf32>
      %cst_34 = arith.constant dense<0.000000e+00> : vector<256x64xf32>
      %54 = tpu.matmul %52, %53, %cst_34 {dimension_numbers = #tpu.dot_dimension_numbers<[1], [0], [0], [1], [0, 0, 1, 1], [], []>} : vector<256x32xf32>, vector<32x64xf32>, vector<256x64xf32> -> vector<256x64xf32>
      %c0_35 = arith.constant 0 : index
      %c0_36 = arith.constant 0 : index
      %55 = vector.load %arg3[%c0_35, %c0_36] : memref<16x64xf32, #tpu.memory_space<vmem>>, vector<16x64xf32>
      %cst_37 = arith.constant dense<0.000000e+00> : vector<256x64xf32>
      %56 = tpu.matmul %49, %55, %cst_37 {dimension_numbers = #tpu.dot_dimension_numbers<[1], [0], [0], [1], [0, 0, 1, 1], [], []>} : vector<256x16xf32>, vector<16x64xf32>, vector<256x64xf32> -> vector<256x64xf32>
      %57 = arith.addf %54, %56 : vector<256x64xf32>
      %c0_38 = arith.constant 0 : index
      %c0_39 = arith.constant 0 : index
      %58 = vector.load %arg4[%c0_38, %c0_39] : memref<1x64xf32, #tpu.memory_space<vmem>>, vector<1x64xf32>
      %59 = vector.broadcast %58 : vector<1x64xf32> to vector<256x64xf32>
      %60 = arith.addf %57, %59 : vector<256x64xf32>
      %61 = vector.extract_strided_slice %60 {offsets = [0, 0], sizes = [256, 16], strides = [1, 1]} : vector<256x64xf32> to vector<256x16xf32>
      %cst_40 = arith.constant 0.000000e+00 : f32
      %62 = vector.broadcast %cst_40 : f32 to vector<256x16xf32>
      %63 = arith.subf %62, %61 : vector<256x16xf32>
      %64 = math.exp %63 : vector<256x16xf32>
      %cst_41 = arith.constant 1.000000e+00 : f32
      %65 = vector.broadcast %cst_41 : f32 to vector<256x16xf32>
      %66 = arith.addf %65, %64 : vector<256x16xf32>
      %cst_42 = arith.constant 1.000000e+00 : f32
      %67 = vector.broadcast %cst_42 : f32 to vector<256x16xf32>
      %68 = arith.divf %67, %66 : vector<256x16xf32>
      %69 = vector.extract_strided_slice %60 {offsets = [0, 16], sizes = [256, 16], strides = [1, 1]} : vector<256x64xf32> to vector<256x16xf32>
      %cst_43 = arith.constant 0.000000e+00 : f32
      %70 = vector.broadcast %cst_43 : f32 to vector<256x16xf32>
      %71 = arith.subf %70, %69 : vector<256x16xf32>
      %72 = math.exp %71 : vector<256x16xf32>
      %cst_44 = arith.constant 1.000000e+00 : f32
      %73 = vector.broadcast %cst_44 : f32 to vector<256x16xf32>
      %74 = arith.addf %73, %72 : vector<256x16xf32>
      %cst_45 = arith.constant 1.000000e+00 : f32
      %75 = vector.broadcast %cst_45 : f32 to vector<256x16xf32>
      %76 = arith.divf %75, %74 : vector<256x16xf32>
      %77 = vector.extract_strided_slice %60 {offsets = [0, 32], sizes = [256, 16], strides = [1, 1]} : vector<256x64xf32> to vector<256x16xf32>
      %78 = math.tanh %77 : vector<256x16xf32>
      %79 = vector.extract_strided_slice %60 {offsets = [0, 48], sizes = [256, 16], strides = [1, 1]} : vector<256x64xf32> to vector<256x16xf32>
      %cst_46 = arith.constant 0.000000e+00 : f32
      %80 = vector.broadcast %cst_46 : f32 to vector<256x16xf32>
      %81 = arith.subf %80, %79 : vector<256x16xf32>
      %82 = math.exp %81 : vector<256x16xf32>
      %cst_47 = arith.constant 1.000000e+00 : f32
      %83 = vector.broadcast %cst_47 : f32 to vector<256x16xf32>
      %84 = arith.addf %83, %82 : vector<256x16xf32>
      %cst_48 = arith.constant 1.000000e+00 : f32
      %85 = vector.broadcast %cst_48 : f32 to vector<256x16xf32>
      %86 = arith.divf %85, %84 : vector<256x16xf32>
      %87 = arith.mulf %76, %50 : vector<256x16xf32>
      %88 = arith.mulf %68, %78 : vector<256x16xf32>
      %89 = arith.addf %87, %88 : vector<256x16xf32>
      %90 = math.tanh %89 : vector<256x16xf32>
      %91 = arith.mulf %86, %90 : vector<256x16xf32>
      %c0_49 = arith.constant 0 : index
      %c0_50 = arith.constant 0 : index
      %92 = vector.load %arg14[%c0_49, %c0_50] : memref<256x16xf32, #tpu.memory_space<vmem>>, vector<256x16xf32>
      tpu.vector_store %arg14[%c0_49, %c0_50], %91 {strides = array<i32>} : memref<256x16xf32, #tpu.memory_space<vmem>>, vector<256x16xf32>,
      %c0_51 = arith.constant 0 : index
      %c0_52 = arith.constant 0 : index
      %93 = vector.load %arg11[%c0_51, %c0_52] : memref<16x128xf32, #tpu.memory_space<vmem>>, vector<16x128xf32>
      %cst_53 = arith.constant dense<0.000000e+00> : vector<256x128xf32>
      %94 = tpu.matmul %91, %93, %cst_53 {dimension_numbers = #tpu.dot_dimension_numbers<[1], [0], [0], [1], [0, 0, 1, 1], [], []>} : vector<256x16xf32>, vector<16x128xf32>, vector<256x128xf32> -> vector<256x128xf32>
      %c0_54 = arith.constant 0 : index
      %c0_55 = arith.constant 0 : index
      %95 = vector.load %arg15[%c0_54, %c0_55] : memref<256x128xf32, #tpu.memory_space<vmem>>, vector<256x128xf32>
      tpu.vector_store %arg15[%c0_54, %c0_55], %94 {strides = array<i32>} : memref<256x128xf32, #tpu.memory_space<vmem>>, vector<256x128xf32>,
    } else {
    }
    %c32_i32 = arith.constant 32 : i32
    %3 = arith.muli %arg0, %c32_i32 : i32
    %4 = tpu.assume_multiple %3, 32 : i32
    %5 = arith.index_cast %4 : i32 to index
    %c0 = arith.constant 0 : index
    %6 = vector.load %arg14[%5, %c0] : memref<256x16xf32, #tpu.memory_space<vmem>>, vector<32x16xf32>
    %c0_1 = arith.constant 0 : index
    %c0_2 = arith.constant 0 : index
    %7 = vector.load %arg5[%c0_1, %c0_2] : memref<16x64xf32, #tpu.memory_space<vmem>>, vector<16x64xf32>
    %cst = arith.constant dense<0.000000e+00> : vector<32x64xf32>
    %8 = tpu.matmul %6, %7, %cst {dimension_numbers = #tpu.dot_dimension_numbers<[1], [0], [0], [1], [0, 0, 1, 1], [], []>} : vector<32x16xf32>, vector<16x64xf32>, vector<32x64xf32> -> vector<32x64xf32>
    %c0_3 = arith.constant 0 : index
    %c0_4 = arith.constant 0 : index
    %9 = vector.load %arg6[%c0_3, %c0_4] : memref<1x64xf32, #tpu.memory_space<vmem>>, vector<1x64xf32>
    %10 = vector.broadcast %9 : vector<1x64xf32> to vector<32x64xf32>
    %11 = arith.addf %8, %10 : vector<32x64xf32>
    %cst_5 = arith.constant 0.000000e+00 : f32
    %12 = vector.broadcast %cst_5 : f32 to vector<32x64xf32>
    %13 = arith.maximumf %11, %12 : vector<32x64xf32>
    %c0_6 = arith.constant 0 : index
    %c0_7 = arith.constant 0 : index
    %14 = vector.load %arg7[%c0_6, %c0_7] : memref<64x16xf32, #tpu.memory_space<vmem>>, vector<64x16xf32>
    %cst_8 = arith.constant dense<0.000000e+00> : vector<32x16xf32>
    %15 = tpu.matmul %13, %14, %cst_8 {dimension_numbers = #tpu.dot_dimension_numbers<[1], [0], [0], [1], [0, 0, 1, 1], [], []>} : vector<32x64xf32>, vector<64x16xf32>, vector<32x16xf32> -> vector<32x16xf32>
    %c0_9 = arith.constant 0 : index
    %c0_10 = arith.constant 0 : index
    %16 = vector.load %arg8[%c0_9, %c0_10] : memref<1x16xf32, #tpu.memory_space<vmem>>, vector<1x16xf32>
    %17 = vector.broadcast %16 : vector<1x16xf32> to vector<32x16xf32>
    %18 = arith.addf %15, %17 : vector<32x16xf32>
    %cst_11 = arith.constant 0.000000e+00 : f32
    %19 = vector.broadcast %cst_11 : f32 to vector<32x16xf32>
    %20 = arith.maximumf %18, %19 : vector<32x16xf32>
    %c0_12 = arith.constant 0 : index
    %c0_13 = arith.constant 0 : index
    %21 = vector.load %arg9[%c0_12, %c0_13] : memref<16x256xf32, #tpu.memory_space<vmem>>, vector<16x256xf32>
    %cst_14 = arith.constant dense<0.000000e+00> : vector<32x256xf32>
    %22 = tpu.matmul %20, %21, %cst_14 {dimension_numbers = #tpu.dot_dimension_numbers<[1], [0], [0], [1], [0, 0, 1, 1], [], []>} : vector<32x16xf32>, vector<16x256xf32>, vector<32x256xf32> -> vector<32x256xf32>
    %c0_15 = arith.constant 0 : index
    %c0_16 = arith.constant 0 : index
    %23 = vector.load %arg10[%c0_15, %c0_16] : memref<1x256xf32, #tpu.memory_space<vmem>>, vector<1x256xf32>
    %24 = vector.broadcast %23 : vector<1x256xf32> to vector<32x256xf32>
    %25 = arith.addf %22, %24 : vector<32x256xf32>
    %cst_17 = arith.constant 0.000000e+00 : f32
    %26 = vector.broadcast %cst_17 : f32 to vector<32x256xf32>
    %27 = arith.maximumf %25, %26 : vector<32x256xf32>
    %cst_18 = arith.constant dense<0xFF800000> : vector<32xf32>
    %28 = vector.multi_reduction <maximumf>, %27, %cst_18 [1] : vector<32x256xf32> to vector<32xf32>
    %29 = vector.shape_cast %28 : vector<32xf32> to vector<32x1xf32>
    %30 = vector.broadcast %29 : vector<32x1xf32> to vector<32x256xf32>
    %31 = arith.subf %27, %30 : vector<32x256xf32>
    %32 = math.exp %31 : vector<32x256xf32>
    %cst_19 = arith.constant dense<0.000000e+00> : vector<32xf32>
    %33 = vector.multi_reduction <add>, %32, %cst_19 [1] : vector<32x256xf32> to vector<32xf32>
    %34 = vector.shape_cast %33 : vector<32xf32> to vector<32x1xf32>
    %35 = tpu.reciprocal %34 {approx = true} : vector<32x1xf32> -> vector<32x1xf32>
    %36 = vector.broadcast %35 : vector<32x1xf32> to vector<32x256xf32>
    %37 = arith.mulf %32, %36 : vector<32x256xf32>
    %38 = vector.shape_cast %37 : vector<32x256xf32> to vector<32x256x1xf32>
    %c0_20 = arith.constant 0 : index
    %c0_21 = arith.constant 0 : index
    %39 = vector.load %arg15[%c0_20, %c0_21] : memref<256x128xf32, #tpu.memory_space<vmem>>, vector<256x128xf32>
    %40 = vector.shape_cast %39 : vector<256x128xf32> to vector<1x256x128xf32>
    %41 = vector.broadcast %38 : vector<32x256x1xf32> to vector<32x256x128xf32>
    %42 = vector.broadcast %40 : vector<1x256x128xf32> to vector<32x256x128xf32>
    %43 = arith.mulf %41, %42 : vector<32x256x128xf32>
    %c0_22 = arith.constant 0 : index
    %c0_23 = arith.constant 0 : index
    %44 = vector.load %arg12[%c0_22, %c0_23] : memref<1x128xf32, #tpu.memory_space<vmem>>, vector<1x128xf32>
    %45 = vector.shape_cast %44 : vector<1x128xf32> to vector<1x1x128xf32>
    %46 = vector.broadcast %45 : vector<1x1x128xf32> to vector<32x256x128xf32>
    %47 = arith.addf %43, %46 : vector<32x256x128xf32>
    %c0_24 = arith.constant 0 : index
    %c0_25 = arith.constant 0 : index
    %c0_26 = arith.constant 0 : index
    %48 = vector.load %arg13[%c0_24, %c0_25, %c0_26] : memref<32x256x128xf32, #tpu.memory_space<vmem>>, vector<32x256x128xf32>
    tpu.vector_store %arg13[%c0_24, %c0_25, %c0_26], %47 {strides = array<i32>} : memref<32x256x128xf32, #tpu.memory_space<vmem>>, vector<32x256x128xf32>,
    return
  }
  func.func @transform_0(%arg0: i32) -> (i32, i32, i32) {
    %c0_i32 = arith.constant 0 : i32
    %c0_i32_0 = arith.constant 0 : i32
    %c0_i32_1 = arith.constant 0 : i32
    %c0_i32_2 = arith.constant 0 : i32
    return %c0_i32, %c0_i32_0, %c0_i32_1 : i32, i32, i32
  }
  func.func @transform_1(%arg0: i32) -> (i32, i32) {
    %c0_i32 = arith.constant 0 : i32
    %c0_i32_0 = arith.constant 0 : i32
    %c0_i32_1 = arith.constant 0 : i32
    return %c0_i32, %c0_i32_0 : i32, i32
  }
  func.func @transform_2(%arg0: i32) -> (i32, i32) {
    %c0_i32 = arith.constant 0 : i32
    %c0_i32_0 = arith.constant 0 : i32
    %c0_i32_1 = arith.constant 0 : i32
    return %c0_i32, %c0_i32_0 : i32, i32
  }
  func.func @transform_3(%arg0: i32) -> (i32, i32) {
    %c0_i32 = arith.constant 0 : i32
    %c0_i32_0 = arith.constant 0 : i32
    %c0_i32_1 = arith.constant 0 : i32
    return %c0_i32, %c0_i32_0 : i32, i32
  }
  func.func @transform_4(%arg0: i32) -> (i32, i32) {
    %c0_i32 = arith.constant 0 : i32
    %c0_i32_0 = arith.constant 0 : i32
    %c0_i32_1 = arith.constant 0 : i32
    return %c0_i32, %c0_i32_0 : i32, i32
  }
  func.func @transform_5(%arg0: i32) -> (i32, i32) {
    %c0_i32 = arith.constant 0 : i32
    %c0_i32_0 = arith.constant 0 : i32
    %c0_i32_1 = arith.constant 0 : i32
    return %c0_i32, %c0_i32_0 : i32, i32
  }
  func.func @transform_6(%arg0: i32) -> (i32, i32) {
    %c0_i32 = arith.constant 0 : i32
    %c0_i32_0 = arith.constant 0 : i32
    %c0_i32_1 = arith.constant 0 : i32
    return %c0_i32, %c0_i32_0 : i32, i32
  }
  func.func @transform_7(%arg0: i32) -> (i32, i32) {
    %c0_i32 = arith.constant 0 : i32
    %c0_i32_0 = arith.constant 0 : i32
    %c0_i32_1 = arith.constant 0 : i32
    return %c0_i32, %c0_i32_0 : i32, i32
  }
  func.func @transform_8(%arg0: i32) -> (i32, i32) {
    %c0_i32 = arith.constant 0 : i32
    %c0_i32_0 = arith.constant 0 : i32
    %c0_i32_1 = arith.constant 0 : i32
    return %c0_i32, %c0_i32_0 : i32, i32
  }
  func.func @transform_9(%arg0: i32) -> (i32, i32) {
    %c0_i32 = arith.constant 0 : i32
    %c0_i32_0 = arith.constant 0 : i32
    %c0_i32_1 = arith.constant 0 : i32
    return %c0_i32, %c0_i32_0 : i32, i32
  }
  func.func @transform_10(%arg0: i32) -> (i32, i32) {
    %c0_i32 = arith.constant 0 : i32
    %c0_i32_0 = arith.constant 0 : i32
    %c0_i32_1 = arith.constant 0 : i32
    return %c0_i32, %c0_i32_0 : i32, i32
  }
  func.func @transform_11(%arg0: i32) -> (i32, i32) {
    %c0_i32 = arith.constant 0 : i32
    %c0_i32_0 = arith.constant 0 : i32
    %c0_i32_1 = arith.constant 0 : i32
    return %c0_i32, %c0_i32_0 : i32, i32
  }
  func.func @transform_12(%arg0: i32) -> (i32, i32, i32) {
    %c0_i32 = arith.constant 0 : i32
    %c0_i32_0 = arith.constant 0 : i32
    %c0_i32_1 = arith.constant 0 : i32
    return %arg0, %c0_i32, %c0_i32_0 : i32, i32, i32
  }
}

</mosaic_0001>

<bundles_post_ra>
// kernel: decoder_rnn_forward.1
= control target key start
LH: loop header
LB: loop body
LE: loop exit
PB: predicated region body
PF: predicated region fallthrough
CT: control target
= control target key end

     0   :  { %s17765_s0 = inlined_call_operand.vmem [shape: f32[1,256,32], index: 0, kind: input, shape index: {}]   ;;  %s17766_s1 = inlined_call_operand.hbm [shape: f32[32,64], index: 1, kind: input, shape index: {}]   ;;  %s17767_s2 = inlined_call_operand.hbm [shape: f32[16,64], index: 2, kind: input, shape index: {}]   ;;  %s17768_s3 = inlined_call_operand.hbm [shape: f32[1,64], index: 3, kind: input, shape index: {}]   ;;  %s17769_s4 = inlined_call_operand.hbm [shape: f32[16,64], index: 4, kind: input, shape index: {}]   ;;  %s17770_s5 = inlined_call_operand.hbm [shape: f32[1,64], index: 5, kind: input, shape index: {}]   ;;  %s17771_s6 = inlined_call_operand.vmem [shape: f32[64,16], index: 6, kind: input, shape index: {}]   ;;  %s17772_s7 = inlined_call_operand.hbm [shape: f32[1,16], index: 7, kind: input, shape index: {}]   ;;  %s17773_s8 = inlined_call_operand.hbm [shape: f32[16,256], index: 8, kind: input, shape index: {}]   ;;  %s17774_s9 = inlined_call_operand.hbm [shape: f32[1,256], index: 9, kind: input, shape index: {}]   ;;  %s17775_s10 = inlined_call_operand.hbm [shape: f32[16,128], index: 10, kind: input, shape index: {}]   ;;  %s17776_s11 = inlined_call_operand.hbm [shape: f32[1,128], index: 11, kind: input, shape index: {}]   ;;  %s17777_s12 = inlined_call_operand.hbm [shape: f32[256,256,128], index: 12, kind: output, shape index: {}]  }
   0x1   :  { %17825 = sst [smem:[#allocation65_spill]] %s17766_s1 }
   0x2   :  { %17826 = sst [smem:[#allocation66_spill]] %s17767_s2 }
   0x3   :  { %17827 = sst [smem:[#allocation67_spill]] %s17768_s3 }
   0x4   :  { %17 = vsyncpa [#allocation5], 0 }
   0x5   :  { %18 = vsyncpa [#allocation8], 0 }
   0x6   :  { %19 = vsyncpa [#allocation11], 0 }
   0x7   :  { %20 = vsyncpa [#allocation14], 0 }
   0x8   :  { %21 = vsyncpa [#allocation17], 0 }
   0x9   :  { %22 = vsyncpa [#allocation20], 0 }
   0xa   :  { %23 = vsyncpa [#allocation6], 0 }
   0xb   :  { %25 = vsyncpa [#allocation6 + $0x1], 0  ;;  %s11937_s21 = smov 0   ;;  %s11939_s22 = smov 0  }
   0xc   :  { %s11941_s23 = smov 0   ;;  %s11943_s24 = smov 0  }
   0xd LB: > { %17828 = sst [smem:[#allocation29_spill]] %s11843_s23  ;;  %s11958_s25 = sadd.s32 4294967295, %s11847_s24   ;;  %s11847_s24 = sphi %s11943_s24, %s17923_s24   ;;  %s11843_s23 = sphi %s11941_s23, %s17925_s23   ;;  %s11839_s22 = sphi %s11939_s22, %s17927_s22   ;;  %s11835_s21 = sphi %s11937_s21, %s17926_s21  }
   0xe   : > { %s10395_s26 = sadd.s32 4294967294, %s11847_s24   ;;  %s11962_s27 = sadd.s32 1, %s11847_s24  }
   0xf   : > { %17829 = sst [smem:[#allocation30_spill]] %s11962_s27  ;;  %s290_s28 = sadd.s32 1, %s11843_s23 }
  0x10   : > { %s287_s29 = ssub.s32 %s11847_s24, %s11962_s27  ;;  %p300_p0 = scmp.ne.s32.totalorder %s11843_s23, %s11839_s22 }
  0x11   : > { %p288_p1 = scmp.eq.s32.totalorder %s287_s29, 0  ;;  %p301_p2 = scmp.eq.s32.totalorder %s11958_s25, 7 }
  0x12   : > { %p306_p3 = scmp.ne.s32.totalorder %s11839_s22, %s11835_s21  ;;  %p307_p4 = scmp.eq.s32.totalorder %s10395_s26, 7 }
  0x13   : > { %s11973_s30 = scalar_select %p288_p1, %s11843_s23, %s290_s28  }
  0x14   : > { %p11975_p5 = por %p301_p2, %p300_p0  ;;  %p11979_p6 = por %p307_p4, %p306_p3 }
  0x15   : > { %17830 = sst [smem:[#allocation31_spill]] %s11973_s30  ;;  %p10396_p7 = scmp.ge.s32.totalorder %s11847_s24, 1 }
  0x16   : > { %s17831_s13 = scalar_select %p11975_p5, 1, 0 }
  0x17   : > { %s17832_s14 = scalar_select %p11979_p6, 1, 0 }
  0x18   : > { %p314_p8 = scmp.lt.s32.totalorder %s11847_s24, 9  ;;  %p17786_p10 = scmp.eq.s32.totalorder %s11958_s25, 0 }
  0x19   : > { %17833 = sst [smem:[#allocation32_spill]] %s17832_s14  ;;  %s11849_s16 = smov [#allocation7]  }
  0x1a   : > { %p11987_p11 = pnand %p10396_p7, %p314_p8  ;;  %s342_s17 = sshll.u32 %s11849_s16, 4  ;;  %s343_s17 = int_to_ptr.vmem [resolvable:$true] %s342_s17 }
  0x1b   : > { %s11850_s19 = smov [#allocation10]   ;;  %s11851_s26 = smov [#allocation13]  }
  0x1c   : > { %s17834_s15 = scalar_select %p11987_p11, 1, 0 }
  0x1d   : > { %p10869_p12 = pneg %p11987_p11  ;;  %s366_s20 = sshll.u32 %s11850_s19, 4  ;;  %s367_s20 = int_to_ptr.vmem [resolvable:$true] %s366_s20 }
  0x1e   : > { %s394_s28 = sshll.u32 %s11851_s26, 4  ;;  %s11514_s30 = scalar_lea.vmem %s343_s17, 256  ;;  %s395_s28 = int_to_ptr.vmem [resolvable:$true] %s394_s28 }
  0x1f   : > { %p11995_p13 = pnand %p17786_p10, %p10869_p12  ;;  %p11515_p1 = scmp.ne.s32.totalorder %s343_s17, %s11514_s30 }
  0x20   : > { %p11522_p4 = scmp.lt.s32.totalorder %s343_s17, %s343_s17  ;;  %p11523_p7 = scmp.lt.s32.totalorder %s11514_s30, %s11514_s30 }
  0x21   : > { %p12001_p0 = pneg %p11995_p13 }
  0x22   : > { %p11524_p8 = por %p11523_p7, %p11522_p4 }
  0x23   : > { %p11517_p2 = pnand %p11515_p1, %p12001_p0 }
  0x25   : > { %p11518_p3 = pneg %p11517_p2 }
  0x27   : > { %p11525_p12 = pnand %p11524_p8, %p11518_p3 }
  0x29   : > { %11528 = shalt.err (!%p11525_p12)
}
  0x2a   : > { %s17782_s16 = smov 128   ;;  %s17784_s19 = smov 8  }
  0x2b   : > { %s17837_s2 = sld [smem:[#allocation66_spill]]  ;;  %s11540_s27 = scalar_lea.vmem %s367_s20, 256 }
  0x2c   : > { %p11541_p1 = scmp.ne.s32.totalorder %s367_s20, %s11540_s27  ;;  %p11548_p4 = scmp.lt.s32.totalorder %s367_s20, %s367_s20 }
  0x2d   : > { %p11549_p3 = scmp.lt.s32.totalorder %s11540_s27, %s11540_s27 }
  0x2e   : > { %p11543_p2 = pnand %p11541_p1, %p12001_p0 }
  0x2f   : > { %p11550_p7 = por %p11549_p3, %p11548_p4 }
  0x30   : > { %p11544_p9 = pneg %p11543_p2 }
  0x31   : > { %10875 = dma.hbm_to_vmem [thread:$0]  (!%p11995_p13), %s17837_s2, 256, %s343_s17, [#allocation8], %s17782_s16, %s17782_s16, %s17784_s19  }
  0x32   : > { %p11551_p8 = pnand %p11550_p7, %p11544_p9 }
  0x34   : > { %11554 = shalt.err (!%p11551_p8)
}
  0x35   : > { %10881 = dma.hbm_to_vmem [thread:$0]  (!%p11995_p13), %s17769_s4, 256, %s367_s20, [#allocation11], %s17782_s16, %s17782_s16, %s17784_s19  }
  0x36   : > { %s11566_s23 = scalar_lea.vmem %s395_s28, 16  ;;  %s11573_s27 = scalar_lea.vmem %s395_s28, 32 }
  0x37   : > { %p11567_p12 = scmp.ne.s32.totalorder %s395_s28, %s11566_s23  ;;  %p11574_p4 = scmp.lt.s32.totalorder %s395_s28, %s395_s28 }
  0x38   : > { %p11575_p9 = scmp.lt.s32.totalorder %s11573_s27, %s11566_s23 }
  0x39   : > { %p11569_p1 = pnand %p11567_p12, %p12001_p0 }
  0x3a   : > { %p11576_p3 = por %p11575_p9, %p11574_p4 }
  0x3b   : > { %p11570_p2 = pneg %p11569_p1 }
  0x3d   : > { %p11577_p7 = pnand %p11576_p3, %p11570_p2 }
  0x3f   : > { %11580 = shalt.err (!%p11577_p7)
}
  0x40   : > { %10887 = dma.hbm_to_vmem [thread:$0]  (!%p11995_p13), %s17772_s7, 16, %s395_s28, [#allocation14]  }
  0x41   : > { %s11854_s14 = smov [#allocation16]   ;;  %s11855_s30 = smov [#allocation4]  }
  0x42   : > { %s418_s20 = sshll.u32 %s11854_s14, 4  ;;  %s329_s16 = sshll.u32 %s11855_s30, 4  ;;  %s419_s20 = int_to_ptr.vmem [resolvable:$true] %s418_s20  ;;  %s330_s16 = int_to_ptr.vmem [resolvable:$true] %s329_s16 }
  0x43   : > { %s11592_s19 = scalar_lea.vmem %s419_s20, 32  ;;  %p11600_p4 = scmp.lt.s32.totalorder %s419_s20, %s419_s20 }
  0x44   : > { %p11593_p8 = scmp.ne.s32.totalorder %s419_s20, %s11592_s19  ;;  %p11601_p2 = scmp.lt.s32.totalorder %s11592_s19, %s11592_s19 }
  0x46   : > { %p11595_p12 = pnand %p11593_p8, %p12001_p0  ;;  %p11602_p9 = por %p11601_p2, %p11600_p4 }
  0x48   : > { %p11596_p1 = pneg %p11595_p12 }
  0x4a   : > { %p11603_p3 = pnand %p11602_p9, %p11596_p1 }
  0x4c   : > { %11606 = shalt.err (!%p11603_p3)
}
  0x4d   : > { %10893 = dma.hbm_to_vmem [thread:$0]  (!%p11995_p13), %s17774_s9, 32, %s419_s20, [#allocation17]  }
  0x4e   : > { %s11618_s28 = scalar_lea.vmem %s330_s16, 512  ;;  %p11626_p8 = scmp.lt.s32.totalorder %s330_s16, %s330_s16 }
  0x4f   : > { %p11619_p7 = scmp.ne.s32.totalorder %s330_s16, %s11618_s28  ;;  %p11627_p12 = scmp.lt.s32.totalorder %s11618_s28, %s11618_s28 }
  0x51   : > { %p11621_p10 = pnand %p11619_p7, %p12001_p0  ;;  %p11628_p5 = por %p11627_p12, %p11626_p8 }
  0x53   : > { %p11622_p6 = pneg %p11621_p10 }
  0x55   : > { %p11629_p11 = pnand %p11628_p5, %p11622_p6 }
  0x57   : > { %11632 = shalt.err (!%p11629_p11)
}
  0x58   : > { %s17838_s19 = smov 8   ;;  %s17839_s17 = smov 128  }
  0x59   : > { %s17840_s1 = sld [smem:[#allocation65_spill]]  ;;  %s11856_s20 = smov [#allocation9]  }
  0x5a   : > { %s356_s30 = sshll.u32 %s11856_s20, 4  ;;  %s11857_s23 = smov [#allocation12]   ;;  %s357_s30 = int_to_ptr.vmem [resolvable:$true] %s356_s30 }
  0x5b   : > { %s380_s27 = sshll.u32 %s11857_s23, 4  ;;  %s11644_s2 = scalar_lea.vmem %s357_s30, 16  ;;  %s381_s27 = int_to_ptr.vmem [resolvable:$true] %s380_s27 }
  0x5c   : > { %p11645_p10 = scmp.ne.s32.totalorder %s357_s30, %s11644_s2  ;;  %s11651_s28 = scalar_lea.vmem %s357_s30, 32 }
  0x5d   : > { %p11652_p11 = scmp.lt.s32.totalorder %s357_s30, %s357_s30  ;;  %p11653_p1 = scmp.lt.s32.totalorder %s11651_s28, %s11644_s2 }
  0x5e   : > { %p11647_p5 = pnand %p11645_p10, %p12001_p0 }
  0x5f   : > { %10872 = dma.hbm_to_vmem [thread:$0]  (!%p11995_p13), %s17840_s1, 512, %s330_s16, [#allocation5], %s17839_s17, %s17839_s17, %s17838_s19  }
  0x60   : > { %p11648_p6 = pneg %p11647_p5  ;;  %p11654_p4 = por %p11653_p1, %p11652_p11 }
  0x62   : > { %p11655_p2 = pnand %p11654_p4, %p11648_p6 }
  0x64   : > { %11658 = shalt.err (!%p11655_p2)
}
  0x65   : > { %s17841_s3 = sld [smem:[#allocation67_spill]]  ;;  %s11670_s14 = scalar_lea.vmem %s381_s27, 16 }
  0x66   : > { %p11671_p9 = scmp.ne.s32.totalorder %s381_s27, %s11670_s14  ;;  %s11677_s20 = scalar_lea.vmem %s381_s27, 32 }
  0x67   : > { %p11678_p8 = scmp.lt.s32.totalorder %s381_s27, %s381_s27  ;;  %p11679_p12 = scmp.lt.s32.totalorder %s11677_s20, %s11670_s14 }
  0x68   : > { %p11673_p3 = pnand %p11671_p9, %p12001_p0 }
  0x69   : > { %p11680_p10 = por %p11679_p12, %p11678_p8 }
  0x6a   : > { %p11674_p7 = pneg %p11673_p3 }
  0x6b   : > { %10878 = dma.hbm_to_vmem [thread:$0]  (!%p11995_p13), %s17841_s3, 16, %s357_s30, [#allocation8]  }
  0x6c   : > { %p11681_p5 = pnand %p11680_p10, %p11674_p7 }
  0x6e   : > { %11684 = shalt.err (!%p11681_p5)
}
  0x6f   : > { %10884 = dma.hbm_to_vmem [thread:$0]  (!%p11995_p13), %s17770_s5, 16, %s381_s27, [#allocation11]  }
  0x70   : > { %s11858_s30 = smov [#allocation15]  }
  0x71   : > { %s404_s28 = sshll.u32 %s11858_s30, 4  ;;  %s405_s28 = int_to_ptr.vmem [resolvable:$true] %s404_s28 }
  0x72   : > { %s11696_s26 = scalar_lea.vmem %s405_s28, 512  ;;  %p11704_p4 = scmp.lt.s32.totalorder %s405_s28, %s405_s28 }
  0x73   : > { %p11697_p6 = scmp.ne.s32.totalorder %s405_s28, %s11696_s26  ;;  %p11705_p2 = scmp.lt.s32.totalorder %s11696_s26, %s11696_s26 }
  0x75   : > { %p11699_p11 = pnand %p11697_p6, %p12001_p0  ;;  %p11706_p9 = por %p11705_p2, %p11704_p4 }
  0x77   : > { %p11700_p1 = pneg %p11699_p11 }
  0x79   : > { %p11707_p3 = pnand %p11706_p9, %p11700_p1 }
  0x7b   : > { %11710 = shalt.err (!%p11707_p3)
}
  0x7c   : > { %s11859_s16 = smov 256   ;;  %s11860_s14 = smov 16  }
  0x7d   : > { %10890 = dma.hbm_to_vmem [thread:$0]  (!%p11995_p13), %s17773_s8, 512, %s405_s28, [#allocation14], %s11859_s16, %s11859_s16, %s11860_s14  }
  0x7e   : > { %s11861_s2 = smov [#allocation18]   ;;  %s11862_s30 = smov [#allocation19]  }
  0x7f   : > { %s428_s23 = sshll.u32 %s11861_s2, 4  ;;  %s442_s1 = sshll.u32 %s11862_s30, 4  ;;  %s429_s23 = int_to_ptr.vmem [resolvable:$true] %s428_s23  ;;  %s443_s1 = int_to_ptr.vmem [resolvable:$true] %s442_s1 }
  0x80   : > { %s11722_s3 = scalar_lea.vmem %s429_s23, 256  ;;  %p11730_p10 = scmp.lt.s32.totalorder %s429_s23, %s429_s23 }
  0x81   : > { %p11723_p7 = scmp.ne.s32.totalorder %s429_s23, %s11722_s3  ;;  %p11731_p5 = scmp.lt.s32.totalorder %s11722_s3, %s11722_s3 }
  0x83   : > { %p11725_p8 = pnand %p11723_p7, %p12001_p0  ;;  %p11732_p6 = por %p11731_p5, %p11730_p10 }
  0x85   : > { %p11726_p12 = pneg %p11725_p8 }
  0x87   : > { %p11733_p11 = pnand %p11732_p6, %p11726_p12 }
  0x89   : > { %11736 = shalt.err (!%p11733_p11)
}
  0x8a   : > { %10896 = dma.hbm_to_vmem [thread:$0]  (!%p11995_p13), %s17775_s10, 256, %s429_s23, [#allocation17], %s17839_s17, %s17839_s17, %s17838_s19  }
  0x8b   : > { %s11748_s16 = scalar_lea.vmem %s443_s1, 16  ;;  %s11755_s14 = scalar_lea.vmem %s443_s1, 32 }
  0x8c   : > { %p11749_p1 = scmp.ne.s32.totalorder %s443_s1, %s11748_s16  ;;  %p11756_p9 = scmp.lt.s32.totalorder %s443_s1, %s443_s1 }
  0x8d   : > { %p11757_p3 = scmp.lt.s32.totalorder %s11755_s14, %s11748_s16 }
  0x8e   : > { %p11751_p4 = pnand %p11749_p1, %p12001_p0 }
  0x8f   : > { %p11758_p7 = por %p11757_p3, %p11756_p9 }
  0x90   : > { %p11752_p2 = pneg %p11751_p4 }
  0x92   : > { %p11759_p8 = pnand %p11758_p7, %p11752_p2 }
  0x94   : > { %11762 = shalt.err (!%p11759_p8)
}
  0x95   : > { %10899 = dma.hbm_to_vmem [thread:$0]  (!%p11995_p13), %s17776_s11, 16, %s443_s1, [#allocation20]  }
  0x96   : > { %p17842_p12 = scmp.ne.s32.totalorder %s17834_s15, 0 }
  0x98   : > { %455 = sbr.rel (%p17842_p12) target bundleno = 4285 (0x10bd), region = 68 }
  0x9d   : > { %p17843_p10 = scmp.eq.s32.totalorder %s11958_s25, 0 }
  0x9f   : > { %11806 = dma.done.wait (%p17843_p10), [#allocation5], 512   ;;  %p17844_p0 = pmov %p17843_p10 }
  0xa1   : > { %11808 = vsyncadd (%p17844_p0), [#allocation5], 4294966784  ;;  %p17845_p5 = pmov %p17844_p0 }
  0xa2   : > { %p17846_p6 = pmov %p17844_p0 }
  0xa3   : > { %11810 = dma.done.wait (%p17845_p5), [#allocation8], 272  }
  0xa4   : > { %11812 = vsyncadd (%p17846_p6), [#allocation8], 4294967024  ;;  %p17847_p11 = pmov %p17844_p0 }
  0xa5   : > { %p17848_p13 = pmov %p17844_p0 }
  0xa6   : > { %11814 = dma.done.wait (%p17847_p11), [#allocation11], 272  }
  0xa7   : > { %11816 = vsyncadd (%p17848_p13), [#allocation11], 4294967024  ;;  %p17849_p1 = pmov %p17844_p0 }
  0xa8   : > { %p17850_p4 = pmov %p17844_p0 }
  0xa9   : > { %11818 = dma.done.wait (%p17849_p1), [#allocation14], 528  }
  0xaa   : > { %11820 = vsyncadd (%p17850_p4), [#allocation14], 4294966768  ;;  %p17851_p2 = pmov %p17844_p0 }
  0xab   : > { %p17852_p9 = pmov %p17844_p0 }
  0xac   : > { %11822 = dma.done.wait (%p17851_p2), [#allocation17], 288  }
  0xad   : > { %11824 = vsyncadd (%p17852_p9), [#allocation17], 4294967008  ;;  %p17853_p3 = pmov %p17844_p0 }
  0xae   : > { %p17854_p7 = pmov %p17844_p0 }
  0xaf   : > { %11826 = dma.done.wait (%p17853_p3), [#allocation20], 16  }
  0xb0   : > { %11828 = vsyncadd (%p17854_p7), [#allocation20], 4294967280  ;;  %s525_s1 = sand.u32 1, %s11839_s22   ;;  %p17855_p8 = scmp.ne.s32.totalorder %s11958_s25, 0 }
  0xb1   : > { %s10418_s15 = sshll.u32 %s525_s1, 13  ;;  %s11864_s26 = smov (!%p17855_p8), 96  }
  0xb2   : > { %s12116_s18 = scalar_lea.vmem [#allocation21], %s10418_s15  ;;  %532 = sbr.rel (%p17855_p8) target bundleno = 1184 (0x4a0), region = 112 }
  0xb3   : > { %s11865_s16 = smov (!%p17855_p8), 16   ;;  %s11866_s14 = smov (!%p17855_p8), 32  }
  0xb4   : > { %s11867_s3 = smov (!%p17855_p8), 80  }
  0xb7   : > { %v570_v0 = vld [vmem:[#allocation7 + $0x8] sm:$0xff]  ;;  %v569_v1 = vld [vmem:[#allocation7] sm:$0xff]  ;;  %v11863_v2 = vmov 0.0   ;;  %v568_v3 = vld [vmem:[#allocation4 + $0x18] sm:$0xff]  ;;  %vm800_vm0 = vcmask 261120   ;;  %vm571_vm1 = vcmask 130048  }
  0xb8   : > { %10823 = vmatprep.subr.mxu1 %v570_v0  ;;  %10659 = vmatprep.mubr.f32.mxu1 %v11863_v2  ;;  %v567_v4 = vld [vmem:[#allocation4 + $0x10] sm:$0xff]  ;;  %v566_v5 = vld [vmem:[#allocation4 + $0x8] sm:$0xff]  ;;  %v565_v6 = vld [vmem:[#allocation4] sm:$0xff] }
  0xb9   : > { %10825 = vmatpush3.msra.mxu1 %v570_v0  ;;  %10631 = vmatprep.subr.mxu0 %v570_v0  ;;  %v533_v7 = vld [vmem:[%s17765_s0] sm:$0xff]  ;;  %v534_v8 = vld [vmem:[%s17765_s0 + $0x8] sm:$0xff]  ;;  %v535_v9 = vld [vmem:[%s17765_s0 + $0x10] sm:$0xff] }
  0xba   : > { %10824 = vmatprep.subr.mxu1 %v569_v1  ;;  %10632 = vmatpush3.msra.mxu0 %v570_v0  ;;  %v536_v10 = vld [vmem:[%s17765_s0 + $0x18] sm:$0xff]  ;;  %v537_v11 = vld [vmem:[%s17765_s0 + $0x20] sm:$0xff]  ;;  %v538_v12 = vld [vmem:[%s17765_s0 + $0x28] sm:$0xff] }
  0xbb   : > { %10826 = vmatpush3.msra.mxu1 %v569_v1  ;;  %10633 = vmatprep.subr.mxu0 %v569_v1  ;;  %v539_v13 = vld [vmem:[%s17765_s0 + $0x30] sm:$0xff]  ;;  %v540_v14 = vld [vmem:[%s17765_s0 + $0x38] sm:$0xff]  ;;  %v541_v15 = vld [vmem:[%s17765_s0 + $0x40] sm:$0xff] }
  0xbc   : > { %10660 = vmatmul.mubr.f32.vlgmr.msra.gmra.mxu1 %v11863_v2  ;;  %10683 = vmatprep.subr.mxu1 %v568_v3  ;;  %v542_v16 = vld [vmem:[%s17765_s0 + $0x48] sm:$0xff]  ;;  %v543_v17 = vld [vmem:[%s17765_s0 + $0x50] sm:$0xff]  ;;  %v544_v18 = vld [vmem:[%s17765_s0 + $0x58] sm:$0xff] }
  0xbd   : > { %10684 = vmatpush3.msra.mxu1 %v568_v3  ;;  %10662 = vmatprep.mubr.f32.mxu1 %v11863_v2  ;;  %v545_v19 = vld [vmem:[%s17765_s0 + $0x60] sm:$0xff]  ;;  %v546_v20 = vld [vmem:[%s17765_s0 + $0x68] sm:$0xff]  ;;  %v547_v21 = vld [vmem:[%s17765_s0 + $0x70] sm:$0xff] }
  0xbe   : > { %10685 = vmatprep.subr.mxu1 %v567_v4  ;;  %10634 = vmatpush3.msra.mxu0 %v569_v1  ;;  %v548_v22 = vld [vmem:[%s17765_s0 + $0x78] sm:$0xff]  ;;  %v549_v23 = vld [vmem:[%s17765_s0 + $0x80] sm:$0xff]  ;;  %v550_v24 = vld [vmem:[%s17765_s0 + $0x88] sm:$0xff] }
  0xbf   : > { %10686 = vmatpush3.msra.mxu1 %v567_v4  ;;  %10635 = vmatprep.mubr.f32.mxu0 %v11863_v2  ;;  %v551_v25 = vld [vmem:[%s17765_s0 + $0x90] sm:$0xff]  ;;  %v552_v26 = vld [vmem:[%s17765_s0 + $0x98] sm:$0xff]  ;;  %v553_v27 = vld [vmem:[%s17765_s0 + $0xa0] sm:$0xff] }
  0xc0   : > { %10663 = vmatmul.mubr.f32.gmra.mxu1 %v11863_v2  ;;  %10687 = vmatprep.subr.mxu1 %v566_v5  ;;  %v554_v28 = vld [vmem:[%s17765_s0 + $0xa8] sm:$0xff]  ;;  %v555_v29 = vld [vmem:[%s17765_s0 + $0xb0] sm:$0xff]  ;;  %v556_v30 = vld [vmem:[%s17765_s0 + $0xb8] sm:$0xff] }
  0xc1   : > { %10665 = vmatprep.mubr.f32.mxu1 %v11863_v2  ;;  %10688 = vmatpush3.msra.mxu1 %v566_v5  ;;  %v557_v31 = vld [vmem:[%s17765_s0 + $0xc0] sm:$0xff]  ;;  %v558_v32 = vld [vmem:[%s17765_s0 + $0xc8] sm:$0xff]  ;;  %v559_v33 = vld [vmem:[%s17765_s0 + $0xd0] sm:$0xff] }
  0xc2   : > { %10689 = vmatprep.subr.mxu1 %v565_v6  ;;  %10636 = vmatmul.mubr.f32.vlgmr.msra.gmra.mxu0 %v11863_v2  ;;  %v560_v34 = vld [vmem:[%s17765_s0 + $0xd8] sm:$0xff]  ;;  %v561_v35 = vld [vmem:[%s17765_s0 + $0xe0] sm:$0xff]  ;;  %v562_v36 = vld [vmem:[%s17765_s0 + $0xe8] sm:$0xff] }
  0xc3   : > { %10690 = vmatpush3.msra.mxu1 %v565_v6  ;;  %10638 = vmatprep.mubr.f32.mxu0 %v11863_v2  ;;  %v563_v37 = vld [vmem:[%s17765_s0 + $0xf0] sm:$0xff]  ;;  %v564_v38 = vld [vmem:[%s17765_s0 + $0xf8] sm:$0xff] }
  0xc4   : > { %10666 = vmatmul.mubr.f32.gmra.mxu1 %v11863_v2  ;;  %v12280_v62 = vld [vmem:[#allocation9] ss:$0 sm:$0xff] }
  0xc5   : > { %10668 = vmatprep.mubr.f32.mxu1 %v11863_v2 }
  0xc6   : > { %10639 = vmatmul.mubr.f32.gmra.mxu0 %v11863_v2 }
  0xc7   : > { %10641 = vmatprep.mubr.f32.mxu0 %v11863_v2 }
  0xc8   : > { %10669 = vmatmul.mubr.f32.gmra.mxu1 %v11863_v2 }
  0xc9   : > { %10671 = vmatprep.mubr.f32.mxu1 %v11863_v2 }
  0xca   : > { %10642 = vmatmul.mubr.f32.gmra.mxu0 %v11863_v2 }
  0xcb   : > { %10644 = vmatprep.mubr.f32.mxu0 %v11863_v2 }
  0xcc   : > { %10672 = vmatmul.mubr.f32.gmra.mxu1 %v11863_v2 }
  0xcd   : > { %10674 = vmatprep.mubr.f32.mxu1 %v11863_v2 }
  0xce   : > { %10645 = vmatmul.mubr.f32.gmra.mxu0 %v11863_v2 }
  0xcf   : > { %10647 = vmatprep.mubr.f32.mxu0 %v11863_v2 }
  0xd0   : > { %10675 = vmatmul.mubr.f32.gmra.mxu1 %v11863_v2 }
  0xd1   : > { %10677 = vmatprep.mubr.f32.mxu1 %v11863_v2 }
  0xd2   : > { %10648 = vmatmul.mubr.f32.gmra.mxu0 %v11863_v2 }
  0xd3   : > { %10650 = vmatprep.mubr.f32.mxu0 %v11863_v2 }
  0xd4   : > { %10678 = vmatmul.mubr.f32.gmra.mxu1 %v11863_v2 }
  0xd5   : > { %10680 = vmatprep.mubr.f32.mxu1 %v11863_v2 }
  0xd6   : > { %10651 = vmatmul.mubr.f32.gmra.mxu0 %v11863_v2 }
  0xd7   : > { %10653 = vmatprep.mubr.f32.mxu0 %v11863_v2 }
  0xd8   : > { %10681 = vmatmul.mubr.f32.gmra.mxu1 %v11863_v2 }
  0xd9   : > { %10691 = vmatprep.mubr.msk.f32.mxu1 %vm800_vm0, %v533_v7 }
  0xda   : > { %10654 = vmatmul.mubr.f32.gmra.mxu0 %v11863_v2 }
  0xdb   : > { %10656 = vmatprep.mubr.f32.mxu0 %v11863_v2 }
  0xdc   : > { %10692 = vmatmul.mubr.msk.f32.vlgmr.msra.gmra.mxu1 %vm800_vm0, %v534_v8 }
  0xdd   : > { %10694 = vmatprep.mubr.msk.f32.mxu1 %vm800_vm0, %v535_v9 }
  0xde   : > { %10657 = vmatmul.mubr.f32.gmra.mxu0 %v11863_v2 }
  0xe0   : > { %10695 = vmatmul.mubr.msk.f32.gmra.mxu1 %vm800_vm0, %v536_v10 }
  0xe1   : > { %10697 = vmatprep.mubr.msk.f32.mxu1 %vm800_vm0, %v537_v11 }
  0xe4   : > { %10698 = vmatmul.mubr.msk.f32.gmra.mxu1 %vm800_vm0, %v538_v12 }
  0xe5   : > { %10700 = vmatprep.mubr.msk.f32.mxu1 %vm800_vm0, %v539_v13 }
  0xe8   : > { %10701 = vmatmul.mubr.msk.f32.gmra.mxu1 %vm800_vm0, %v540_v14 }
  0xe9   : > { %10703 = vmatprep.mubr.msk.f32.mxu1 %vm800_vm0, %v541_v15 }
  0xec   : > { %10704 = vmatmul.mubr.msk.f32.gmra.mxu1 %vm800_vm0, %v542_v16 }
  0xed   : > { %10706 = vmatprep.mubr.msk.f32.mxu1 %vm800_vm0, %v543_v17 }
  0xf0   : > { %10707 = vmatmul.mubr.msk.f32.gmra.mxu1 %vm800_vm0, %v544_v18 }
  0xf1   : > { %10709 = vmatprep.mubr.msk.f32.mxu1 %vm800_vm0, %v545_v19 }
  0xf4   : > { %10710 = vmatmul.mubr.msk.f32.gmra.mxu1 %vm800_vm0, %v546_v20 }
  0xf5   : > { %10712 = vmatprep.mubr.msk.f32.mxu1 %vm800_vm0, %v547_v21 }
  0xf8   : > { %10713 = vmatmul.mubr.msk.f32.gmra.mxu1 %vm800_vm0, %v548_v22 }
  0xf9   : > { %10715 = vmatprep.mubr.msk.f32.mxu1 %vm800_vm0, %v549_v23 }
  0xfc   : > { %10716 = vmatmul.mubr.msk.f32.gmra.mxu1 %vm800_vm0, %v550_v24 }
  0xfd   : > { %10718 = vmatprep.mubr.msk.f32.mxu1 %vm800_vm0, %v551_v25 }
 0x100   : > { %10719 = vmatmul.mubr.msk.f32.gmra.mxu1 %vm800_vm0, %v552_v26 }
 0x101   : > { %10721 = vmatprep.mubr.msk.f32.mxu1 %vm800_vm0, %v553_v27 }
 0x104   : > { %10722 = vmatmul.mubr.msk.f32.gmra.mxu1 %vm800_vm0, %v554_v28 }
 0x105   : > { %10724 = vmatprep.mubr.msk.f32.mxu1 %vm800_vm0, %v555_v29 }
 0x108   : > { %10725 = vmatmul.mubr.msk.f32.gmra.mxu1 %vm800_vm0, %v556_v30 }
 0x109   : > { %10727 = vmatprep.mubr.msk.f32.mxu1 %vm800_vm0, %v557_v31 }
 0x10c   : > { %10728 = vmatmul.mubr.msk.f32.gmra.mxu1 %vm800_vm0, %v558_v32 }
 0x10d   : > { %10730 = vmatprep.mubr.msk.f32.mxu1 %vm800_vm0, %v559_v33 }
 0x110   : > { %10731 = vmatmul.mubr.msk.f32.gmra.mxu1 %vm800_vm0, %v560_v34 }
 0x111   : > { %10733 = vmatprep.mubr.msk.f32.mxu1 %vm800_vm0, %v561_v35 }
 0x114   : > { %10734 = vmatmul.mubr.msk.f32.gmra.mxu1 %vm800_vm0, %v562_v36 }
 0x115   : > { %10736 = vmatprep.mubr.msk.f32.mxu1 %vm800_vm0, %v563_v37 }
 0x118   : > { %10737 = vmatmul.mubr.msk.f32.gmra.mxu1 %vm800_vm0, %v564_v38 }
 0x17c   : > { %v12248_v39 = vpop.f32.mrf.mxu1 }
 0x17e   : > { %v12250_v40 = vpop.f32.mrf.mxu1 }
 0x180   : > { %v12252_v41 = vpop.f32.mrf.mxu1 }
 0x182   : > { %v12254_v42 = vpop.f32.mrf.mxu1  ;;  %v10637_v46 = vpop.f32.mrf.mxu0 }
 0x184   : > { %v12256_v43 = vpop.f32.mrf.mxu1  ;;  %v641_v49 = vpop.f32.mrf.mxu0 }
 0x186   : > { %v12258_v44 = vpop.f32.mrf.mxu1  ;;  %v10640_v51 = vpop.f32.mrf.mxu0 }
 0x188   : > { %v12260_v45 = vpop.f32.mrf.mxu1  ;;  %v651_v54 = vpop.f32.mrf.mxu0 }
 0x18a   : > { %v12262_v47 = vpop.f32.mrf.mxu1  ;;  %v10643_v57 = vpop.f32.mrf.mxu0 }
 0x18c   : > { %v12264_v48 = vpop.f32.mrf.mxu1  ;;  %v661_v60 = vpop.f32.mrf.mxu0 }
 0x18e   : > { %v12266_v50 = vpop.f32.mrf.mxu1  ;;  %v10646_v1 = vpop.f32.mrf.mxu0 }
 0x190   : > { %v12268_v52 = vpop.f32.mrf.mxu1  ;;  %v671_v8 = vpop.f32.mrf.mxu0 }
 0x192   : > { %v12270_v53 = vpop.f32.mrf.mxu1  ;;  %v10649_v15 = vpop.f32.mrf.mxu0 }
 0x194   : > { %v12272_v55 = vpop.f32.mrf.mxu1  ;;  %v681_v22 = vpop.f32.mrf.mxu0 }
 0x196   : > { %v12274_v56 = vpop.f32.mrf.mxu1  ;;  %v10652_v30 = vpop.f32.mrf.mxu0 }
 0x198   : > { %v12276_v58 = vpop.f32.mrf.mxu1  ;;  %v691_v36 = vpop.f32.mrf.mxu0 }
 0x19a   : > { %v12278_v59 = vpop.f32.mrf.mxu1 }
 0x19c   : > { %v10693_v61 = vpop.f32.mrf.mxu1 }
 0x19d   : > { %v969_v63 = vadd.f32 %v10693_v61, %v10637_v46 }
 0x19e   : > { %v963_v0 = vpop.f32.mrf.mxu1 }
 0x19f   : > { %v12283_v2 = vadd.f32 %v12280_v62, %v969_v63  ;;  %v964_v3 = vadd.f32 %v963_v0, %v641_v49 }
 0x1a0   : > { %v10696_v4 = vpop.f32.mrf.mxu1 }
 0x1a1   : > { %10979 = vtanh.f32 %v12283_v2  ;;  %v12287_v5 = vadd.f32 %v12280_v62, %v964_v3  ;;  %v979_v6 = vadd.f32 %v10696_v4, %v10640_v51 }
 0x1a2   : > { %v973_v7 = vpop.f32.mrf.mxu1 }
 0x1a3   : > { %v12290_v9 = vadd.f32 %v12280_v62, %v979_v6  ;;  %v974_v10 = vadd.f32 %v973_v7, %v651_v54  ;;  %10981 = vtanh.f32 %v12287_v5  ;;  %v10655_v54 = vpop.f32.mrf.mxu0 }
 0x1a4   : > { %v10699_v11 = vpop.f32.mrf.mxu1 }
 0x1a5   : > { %v989_v12 = vadd.f32 %v10699_v11, %v10643_v57  ;;  %10983 = vtanh.f32 %v12290_v9  ;;  %v12295_v13 = vadd.f32 %v12280_v62, %v974_v10  ;;  %v701_v3 = vpop.f32.mrf.mxu0 }
 0x1a6   : > { %v983_v14 = vpop.f32.mrf.mxu1 }
 0x1a7   : > { %v984_v16 = vadd.f32 %v983_v14, %v661_v60  ;;  %10985 = vtanh.f32 %v12295_v13  ;;  %v12299_v17 = vadd.f32 %v12280_v62, %v989_v12  ;;  %v10658_v12 = vpop.f32.mrf.mxu0 }
 0x1a8   : > { %v10702_v18 = vpop.f32.mrf.mxu1 }
 0x1a9   : > { %v12302_v19 = vadd.f32 %v12280_v62, %v984_v16  ;;  %v999_v20 = vadd.f32 %v10702_v18, %v10646_v1 }
 0x1aa   : > { %v993_v21 = vpop.f32.mrf.mxu1 }
 0x1ab   : > { %10987 = vtanh.f32 %v12302_v19  ;;  %v12306_v23 = vadd.f32 %v12280_v62, %v999_v20  ;;  %v994_v24 = vadd.f32 %v993_v21, %v671_v8 }
 0x1ac   : > { %10989 = vtanh.f32 %v12299_v17  ;;  %v10705_v25 = vpop.f32.mrf.mxu1 }
 0x1ad   : > { %v1009_v26 = vadd.f32 %v10705_v25, %v10649_v15  ;;  %v12310_v28 = vadd.f32 %v12280_v62, %v994_v24  ;;  %10991 = vtanh.f32 %v12306_v23 }
 0x1ae   : > { %v10980_v27 = vpop.eup %10979  ;;  %v1003_v29 = vpop.f32.mrf.mxu1 }
 0x1af   : > { %v1004_v31 = vadd.f32 %v1003_v29, %v681_v22  ;;  %1451 = vrot.lane.b32.xlu0 %v10980_v27, %s11864_s26  ;;  %10993 = vtanh.f32 %v12310_v28  ;;  %v12316_v32 = vadd.f32 %v12280_v62, %v1009_v26  ;;  %v711_v22 = vpop.f32.mrf.mxu0 }
 0x1b0   : > { %v10708_v33 = vpop.f32.mrf.mxu1  ;;  %v10982_v35 = vpop.eup %10981 }
 0x1b1   : > { %v12319_v34 = vadd.f32 %v12280_v62, %v1004_v31  ;;  %v1019_v46 = vadd.f32 %v10708_v33, %v10652_v30 }
 0x1b2   : > { %v1013_v37 = vpop.f32.mrf.mxu1  ;;  %v10984_v38 = vpop.eup %10983 }
 0x1b3   : > { %10995 = vtanh.f32 %v12319_v34  ;;  %1449 = vrot.lane.b32.xlu0 %v10982_v35, %s11864_s26  ;;  %1455 = vrot.lane.b32.xlu1 %v10984_v38, %s11864_s26  ;;  %v12326_v60 = vadd.f32 %v12280_v62, %v1019_v46  ;;  %v1014_v63 = vadd.f32 %v1013_v37, %v691_v36 }
 0x1b4   : > { %10997 = vtanh.f32 %v12316_v32  ;;  %v10711_v49 = vpop.f32.mrf.mxu1  ;;  %v10986_v51 = vpop.eup %10985 }
 0x1b5   : > { %10999 = vtanh.f32 %v12326_v60  ;;  %v1029_v6 = vadd.f32 %v10711_v49, %v10655_v54  ;;  %v12332_v8 = vadd.f32 %v12280_v62, %v1014_v63 }
 0x1b6   : > { %v1023_v57 = vpop.f32.mrf.mxu1 }
 0x1b7   : > { %1453 = vrot.lane.b32.xlu1 %v10986_v51, %s11864_s26  ;;  %v12337_v15 = vadd.f32 %v12280_v62, %v1029_v6  ;;  %v1024_v16 = vadd.f32 %v1023_v57, %v701_v3  ;;  %11001 = vtanh.f32 %v12332_v8 }
 0x1b8   : > { %v10988_v61 = vpop.eup %10987  ;;  %v10714_v0 = vpop.f32.mrf.mxu1 }
 0x1b9   : > { %v10990_v1 = vpop.eup %10989  ;;  %1457 = vrot.lane.b32.xlu0 %v10988_v61, %s11864_s26  ;;  %11003 = vtanh.f32 %v12337_v15  ;;  %v12344_v25 = vadd.f32 %v12280_v62, %v1024_v16  ;;  %v1039_v26 = vadd.f32 %v10714_v0, %v10658_v12 }
 0x1ba   : > { %v1033_v4 = vpop.f32.mrf.mxu1  ;;  %v10992_v7 = vpop.eup %10991 }
 0x1bb   : > { %1459 = vrot.lane.b32.xlu1 %v10990_v1, %s11864_s26  ;;  %v1034_v29 = vadd.f32 %v1033_v4, %v711_v22  ;;  %11005 = vtanh.f32 %v12344_v25  ;;  %v12349_v31 = vadd.f32 %v12280_v62, %v1039_v26 }
 0x1bc   : > { %v10717_v10 = vpop.f32.mrf.mxu1  ;;  %v10994_v11 = vpop.eup %10993 }
 0x1bd   : > { %1461 = vrot.lane.b32.xlu0 %v10994_v11, %s11864_s26  ;;  %v1049_v35 = vadd.f32 %v10717_v10, %v12248_v39  ;;  %v12353_v37 = vadd.f32 %v12280_v62, %v1034_v29  ;;  %11007 = vtanh.f32 %v12349_v31 }
 0x1be   : > { %v1043_v14 = vpop.f32.mrf.mxu1 }
 0x1bf   : > { %1463 = vrot.lane.b32.xlu1 %v10992_v7, %s11864_s26  ;;  %v1044_v49 = vadd.f32 %v1043_v14, %v12250_v40  ;;  %v12363_v54 = vadd.f32 %v12280_v62, %v1049_v35  ;;  %11009 = vtanh.f32 %v12353_v37 }
 0x1c0   : > { %v10996_v18 = vpop.eup %10995  ;;  %v10720_v20 = vpop.f32.mrf.mxu1 }
 0x1c1   : > { %v10998_v21 = vpop.eup %10997  ;;  %1465 = vrot.lane.b32.xlu0 %v10996_v18, %s11864_s26  ;;  %v12374_v1 = vadd.f32 %v12280_v62, %v1044_v49  ;;  %11011 = vtanh.f32 %v12363_v54 }
 0x1c2   : > { %v1053_v24 = vpop.f32.mrf.mxu1  ;;  %v11000_v33 = vpop.eup %10999 }
 0x1c3   : > { %1467 = vrot.lane.b32.xlu1 %v10998_v21, %s11864_s26  ;;  %11013 = vtanh.f32 %v12374_v1 }
 0x1c4   : > { %v10723_v27 = vpop.f32.mrf.mxu1  ;;  %v11002_v61 = vpop.eup %11001 }
 0x1c5   : > { %1469 = vrot.lane.b32.xlu0 %v11002_v61, %s11864_s26 }
 0x1c6   : > { %v1063_v30 = vpop.f32.mrf.mxu1  ;;  %v11004_v4 = vpop.eup %11003 }
 0x1c7   : > { %1471 = vrot.lane.b32.xlu1 %v11000_v33, %s11864_s26 }
 0x1c8   : > { %v10726_v36 = vpop.f32.mrf.mxu1  ;;  %v11006_v12 = vpop.eup %11005 }
 0x1c9   : > { %v1079_v38 = vadd.f32 %v10726_v36, %v12260_v45  ;;  %v1059_v45 = vadd.f32 %v10720_v20, %v12252_v41  ;;  %1473 = vrot.lane.b32.xlu0 %v11006_v12, %s11864_s26  ;;  %v1064_v20 = vadd.f32 %v1063_v30, %v12258_v44 }
 0x1ca   : > { %v1073_v46 = vpop.f32.mrf.mxu1  ;;  %v11008_v26 = vpop.eup %11007 }
 0x1cb   : > { %v12360_v51 = vadd.f32 %v12280_v62, %v1079_v38  ;;  %v1074_v39 = vadd.f32 %v1073_v46, %v12262_v47  ;;  %1475 = vrot.lane.b32.xlu1 %v11004_v4, %s11864_s26  ;;  %v12388_v10 = vadd.f32 %v12280_v62, %v1059_v45  ;;  %v12420_v30 = vadd.f32 %v12280_v62, %v1064_v20 }
 0x1cc   : > { %v10729_v57 = vpop.f32.mrf.mxu1  ;;  %v11010_v29 = vpop.eup %11009  ;;  %v1162_v4 = vsub.f32 0.0, %v12283_v2  ;;  %v1166_v2 = vsub.f32 0.0, %v12299_v17  ;;  %v1167_v20 = vsub.f32 0.0, %v12310_v28  ;;  %v1170_v17 = vsub.f32 0.0, %v12316_v32 }
 0x1cd   : > { %v1089_v63 = vadd.f32 %v10729_v57, %v12264_v48  ;;  %v12371_v40 = vadd.f32 %v12280_v62, %v1074_v39  ;;  %v1054_v48 = vadd.f32 %v1053_v24, %v12254_v42  ;;  %11015 = vtanh.f32 %v12388_v10  ;;  %1477 = vrot.lane.b32.xlu0 %v11010_v29, %s11864_s26 }
 0x1ce   : > { %v1083_v0 = vpop.f32.mrf.mxu1  ;;  %v11012_v36 = vpop.eup %11011  ;;  %v1211_v29 = vmul.f32 1.442695, %v1170_v17 }
 0x1cf   : > { %v12377_v3 = vadd.f32 %v12280_v62, %v1089_v63  ;;  %v1084_v47 = vadd.f32 %v1083_v0, %v12266_v50  ;;  %v1069_v50 = vadd.f32 %v10723_v27, %v12256_v43  ;;  %v12393_v14 = vadd.f32 %v12280_v62, %v1054_v48  ;;  %1479 = vrot.lane.b32.xlu1 %v11008_v26, %s11864_s26 }
 0x1d0   : > { %v10732_v41 = vpop.f32.mrf.mxu1  ;;  %v11014_v38 = vpop.eup %11013  ;;  %v1161_v0 = vsub.f32 0.0, %v12287_v5  ;;  %v1164_v5 = vsub.f32 0.0, %v12290_v9  ;;  %v1168_v9 = vsub.f32 0.0, %v12306_v23  ;;  %v1205_v26 = vmul.f32 1.442695, %v1167_v20 }
 0x1d1   : > { %v12384_v6 = vadd.f32 %v12280_v62, %v1084_v47  ;;  %v1099_v7 = vadd.f32 %v10732_v41, %v12268_v52  ;;  %v12407_v22 = vadd.f32 %v12280_v62, %v1069_v50  ;;  %11017 = vtanh.f32 %v12393_v14  ;;  %1481 = vrot.lane.b32.xlu0 %v11014_v38, %s11864_s26 }
 0x1d2   : > { %v1093_v11 = vpop.f32.mrf.mxu1  ;;  %v1193_v48 = vmul.f32 1.442695, %v1161_v0 }
 0x1d3   : > { %v12396_v42 = vadd.f32 %v12280_v62, %v1099_v7  ;;  %v1094_v16 = vadd.f32 %v1093_v11, %v12270_v53  ;;  %11019 = vtanh.f32 %v12407_v22  ;;  %1483 = vrot.lane.b32.xlu1 %v11012_v36, %s11864_s26  ;;  %v1163_v7 = vsub.f32 0.0, %v12295_v13 }
 0x1d4   : > { %v10735_v18 = vpop.f32.mrf.mxu1  ;;  %11021 = vtanh.f32 %v12420_v30  ;;  %v1195_v11 = vmul.f32 1.442695, %v1162_v4  ;;  %v1172_v36 = vsub.f32 0.0, %v12326_v60 }
 0x1d5   : > { %v1109_v52 = vadd.f32 %v10735_v18, %v12272_v55  ;;  %v12404_v43 = vadd.f32 %v12280_v62, %v1094_v16  ;;  %11023 = vtanh.f32 %v12360_v51  ;;  %v1197_v12 = vmul.f32 1.442695, %v1163_v7 }
 0x1d6   : > { %v1103_v21 = vpop.f32.mrf.mxu1  ;;  %11025 = vtanh.f32 %v12371_v40  ;;  %v1165_v16 = vsub.f32 0.0, %v12302_v19  ;;  %v1169_v19 = vsub.f32 0.0, %v12319_v34  ;;  %v1171_v34 = vsub.f32 0.0, %v12332_v8 }
 0x1d7   : > { %v12410_v24 = vadd.f32 %v12280_v62, %v1109_v52  ;;  %v1104_v53 = vadd.f32 %v1103_v21, %v12274_v56  ;;  %11027 = vtanh.f32 %v12377_v3  ;;  %v1199_v52 = vmul.f32 1.442695, %v1164_v5 }
 0x1d8   : > { %v10738_v55 = vpop.f32.mrf.mxu1  ;;  %11029 = vtanh.f32 %v12384_v6  ;;  %v1201_v13 = vmul.f32 1.442695, %v1165_v16  ;;  %v1203_v21 = vmul.f32 1.442695, %v1166_v2  ;;  %v1176_v7 = vsub.f32 0.0, %v12349_v31 }
 0x1d9   : > { %v12416_v44 = vadd.f32 %v12280_v62, %v1104_v53  ;;  %v1119_v27 = vadd.f32 %v10738_v55, %v12276_v58  ;;  %11031 = vtanh.f32 %v12396_v42  ;;  %v1207_v55 = vmul.f32 1.442695, %v1168_v9 }
 0x1da   : > { %v1113_v33 = vpop.f32.mrf.mxu1  ;;  %v11016_v46 = vpop.eup %11015  ;;  %11033 = vtanh.f32 %v12404_v43  ;;  %v1175_v5 = vsub.f32 0.0, %v12353_v37  ;;  %v1223_v2 = vmul.f32 1.442695, %v1176_v7  ;;  %v1177_v9 = vsub.f32 0.0, %v12374_v1 }
 0x1db   : > { %v12425_v56 = vadd.f32 %v12280_v62, %v1119_v27  ;;  %v1114_v35 = vadd.f32 %v1113_v33, %v12278_v59  ;;  %1487 = vrot.lane.b32.xlu1 %v11016_v46, %s11864_s26  ;;  %11035 = vtanh.f32 %v12410_v24  ;;  %v1209_v27 = vmul.f32 1.442695, %v1169_v19 }
 0x1dc   : > { %11037 = vtanh.f32 %v12416_v44  ;;  %v1215_v46 = vmul.f32 1.442695, %v1172_v36  ;;  %v1221_v31 = vmul.f32 1.442695, %v1175_v5 }
 0x1dd   : > { %v12431_v58 = vadd.f32 %v12280_v62, %v1114_v35  ;;  %11039 = vtanh.f32 %v12425_v56 }
 0x1de   : > { %v11018_v49 = vpop.eup %11017 }
 0x1df   : > { %1485 = vrot.lane.b32.xlu0 %v11018_v49, %s11864_s26  ;;  %11041 = vtanh.f32 %v12431_v58 }
 0x1e0   : > { %v11020_v59 = vpop.eup %11019  ;;  %11043 = vpow2.f32 %v1193_v48 }
 0x1e1   : > { %1491 = vrot.lane.b32.xlu1 %v11020_v59, %s11864_s26  ;;  %v11022_v62 = vpop.eup %11021  ;;  %11045 = vpow2.f32 %v1195_v11 }
 0x1e2   : > { %v11024_v39 = vpop.eup %11023  ;;  %11047 = vpow2.f32 %v1197_v12 }
 0x1e3   : > { %1489 = vrot.lane.b32.xlu0 %v11022_v62, %s11864_s26  ;;  %v11026_v57 = vpop.eup %11025  ;;  %11049 = vpow2.f32 %v1199_v52  ;;  %v1174_v62 = vsub.f32 0.0, %v12337_v15 }
 0x1e4   : > { %v11028_v61 = vpop.eup %11027  ;;  %11051 = vpow2.f32 %v1201_v13  ;;  %v1178_v13 = vsub.f32 0.0, %v12363_v54 }
 0x1e5   : > { %1495 = vrot.lane.b32.xlu1 %v11024_v39, %s11864_s26  ;;  %v11030_v63 = vpop.eup %11029  ;;  %11053 = vpow2.f32 %v1203_v21  ;;  %v1213_v39 = vmul.f32 1.442695, %v1171_v34  ;;  %v1219_v0 = vmul.f32 1.442695, %v1174_v62 }
 0x1e6   : > { %v11032_v45 = vpop.eup %11031  ;;  %11055 = vpow2.f32 %v1205_v26  ;;  %v1227_v17 = vmul.f32 1.442695, %v1178_v13  ;;  %v1183_v13 = vsub.f32 0.0, %v12371_v40 }
 0x1e7   : > { %1493 = vrot.lane.b32.xlu0 %v11026_v57, %s11864_s26  ;;  %v11034_v47 = vpop.eup %11033  ;;  %11057 = vpow2.f32 %v1207_v55 }
 0x1e8   : > { %v11036_v41 = vpop.eup %11035  ;;  %11059 = vpow2.f32 %v1209_v27 }
 0x1e9   : > { %1499 = vrot.lane.b32.xlu1 %v11028_v61, %s11864_s26  ;;  %v11038_v50 = vpop.eup %11037  ;;  %11061 = vpow2.f32 %v1211_v29  ;;  %v1180_v29 = vsub.f32 0.0, %v12388_v10 }
 0x1ea   : > { %v11040_v18 = vpop.eup %11039 }
 0x1eb   : > { %1497 = vrot.lane.b32.xlu0 %v11030_v63, %s11864_s26 }
 0x1ec   : > { %v11042_v53 = vpop.eup %11041 }
 0x1ed   : > { %1503 = vrot.lane.b32.xlu1 %v11032_v45, %s11864_s26  ;;  %v11044_v28 = vpop.eup %11043  ;;  %v1173_v45 = vsub.f32 0.0, %v12344_v25 }
 0x1ee   : > { %v11046_v33 = vpop.eup %11045  ;;  %v1257_v35 = vadd.f32 1.0, %v11044_v28 }
 0x1ef   : > { %1501 = vrot.lane.b32.xlu0 %v11034_v47, %s11864_s26  ;;  %v11048_v23 = vpop.eup %11047  ;;  %v1258_v38 = vadd.f32 1.0, %v11046_v33  ;;  %v1217_v48 = vmul.f32 1.442695, %v1173_v45 }
 0x1f0   : > { %11063 = vrcp.f32 %v1257_v35  ;;  %v11050_v49 = vpop.eup %11049  ;;  %v1259_v32 = vadd.f32 1.0, %v11048_v23  ;;  %v1225_v35 = vmul.f32 1.442695, %v1177_v9 }
 0x1f1   : > { %1507 = vrot.lane.b32.xlu1 %v11036_v41, %s11864_s26  ;;  %v11052_v59 = vpop.eup %11051  ;;  %11065 = vrcp.f32 %v1258_v38  ;;  %v1260_v61 = vadd.f32 1.0, %v11050_v49 }
 0x1f2   : > { %v11054_v57 = vpop.eup %11053  ;;  %11067 = vpow2.f32 %v1215_v46  ;;  %v1261_v60 = vadd.f32 1.0, %v11052_v59  ;;  %v1179_v46 = vsub.f32 0.0, %v12393_v14 }
 0x1f3   : > { %1505 = vrot.lane.b32.xlu0 %v11038_v50, %s11864_s26  ;;  %v11056_v63 = vpop.eup %11055  ;;  %11069 = vrcp.f32 %v1259_v32  ;;  %v1262_v47 = vadd.f32 1.0, %v11054_v57  ;;  %v1231_v32 = vmul.f32 1.442695, %v1180_v29 }
 0x1f4   : > { %11071 = vpow2.f32 %v1213_v39  ;;  %v1263_v8 = vadd.f32 1.0, %v11056_v63  ;;  %v11058_v4 = vpop.eup %11057 }
 0x1f5   : > { %11073 = vrcp.f32 %v1260_v61  ;;  %v11060_v15 = vpop.eup %11059  ;;  %v1264_v50 = vadd.f32 1.0, %v11058_v4  ;;  %v1182_v61 = vsub.f32 0.0, %v12407_v22  ;;  %v1181_v4 = vsub.f32 0.0, %v12420_v30 }
 0x1f6   : > { %11075 = vrcp.f32 %v1261_v60  ;;  %v11062_v11 = vpop.eup %11061  ;;  %v1265_v12 = vadd.f32 1.0, %v11060_v15  ;;  %v1229_v60 = vmul.f32 1.442695, %v1179_v46 }
 0x1f7   : > { %1511 = vrot.lane.b32.xlu0 %v11040_v18, %s11864_s26  ;;  %11077 = vpow2.f32 %v1219_v0  ;;  %v1266_v20 = vadd.f32 1.0, %v11062_v11  ;;  %v1235_v22 = vmul.f32 1.442695, %v1182_v61  ;;  %v1233_v30 = vmul.f32 1.442695, %v1181_v4 }
 0x1f8   : > { %11079 = vrcp.f32 %v1262_v47 }
 0x1f9   : > { %11081 = vrcp.f32 %v1263_v8 }
 0x1fa   : > { %11083 = vpow2.f32 %v1217_v48 }
 0x1fb   : > { %1509 = vrot.lane.b32.xlu0 %v11042_v53, %s11864_s26  ;;  %11085 = vrcp.f32 %v1264_v50 }
 0x1fc   : > { %11087 = vrcp.f32 %v1265_v12  ;;  %v1184_v12 = vsub.f32 0.0, %v12360_v51 }
 0x1fd   : > { %v12474_v25 = vpop.eup %11063  ;;  %11089 = vpow2.f32 %v1223_v2 }
 0x1fe   : > { %v12478_v21 = vpop.eup %11065  ;;  %11091 = vrcp.f32 %v1266_v20 }
 0x1ff   : > { %v11068_v37 = vpop.eup %11067  ;;  %11093 = vpow2.f32 %v1221_v31 }
 0x200   : > { %v12481_v53 = vpop.eup %11069  ;;  %v1268_v27 = vadd.f32 1.0, %v11068_v37  ;;  %11095 = vpow2.f32 %v1227_v17  ;;  %v1239_v37 = vmul.f32 1.442695, %v1184_v12 }
 0x201   : > { %v11072_v28 = vpop.eup %11071 }
 0x202   : > { %v12488_v33 = vpop.eup %11073  ;;  %v1267_v34 = vadd.f32 1.0, %v11072_v28  ;;  %11097 = vrcp.f32 %v1268_v27  ;;  %v1185_v28 = vsub.f32 0.0, %v12384_v6 }
 0x203   : > { %v12491_v1 = vpop.eup %11075  ;;  %11099 = vpow2.f32 %v1225_v35 }
 0x204   : > { %v11078_v38 = vpop.eup %11077  ;;  %11101 = vrcp.f32 %v1267_v34  ;;  %v1241_v46 = vmul.f32 1.442695, %v1185_v28 }
 0x205   : > { %v12496_v10 = vpop.eup %11079  ;;  %v1270_v57 = vadd.f32 1.0, %v11078_v38  ;;  %11103 = vpow2.f32 %v1231_v32 }
 0x206   : > { %v12499_v62 = vpop.eup %11081 }
 0x207   : > { %v11084_v39 = vpop.eup %11083  ;;  %11105 = vrcp.f32 %v1270_v57  ;;  %v1187_v57 = vsub.f32 0.0, %v12404_v43 }
 0x208   : > { %v12506_v47 = vpop.eup %11085  ;;  %v1269_v8 = vadd.f32 1.0, %v11084_v39  ;;  %11107 = vpow2.f32 %v1229_v60 }
 0x209   : > { %v12510_v48 = vpop.eup %11087 }
 0x20a   : > { %v11090_v7 = vpop.eup %11089  ;;  %11109 = vrcp.f32 %v1269_v8  ;;  %v1245_v8 = vmul.f32 1.442695, %v1187_v57 }
 0x20b   : > { %v12514_v50 = vpop.eup %11091  ;;  %11111 = vpow2.f32 %v1235_v22 }
 0x20c   : > { %v11094_v5 = vpop.eup %11093  ;;  %11113 = vpow2.f32 %v1233_v30 }
 0x20d   : > { %v1271_v20 = vadd.f32 1.0, %v11094_v5 }
 0x221   : > { %v1452_v41 = vpop.permute.xlu0 %1451 }
 0x222   : > { %v1546_v26 = vmul.f32 %v12478_v21, %v1452_v41 }
 0x225   : > { %v1450_v16 = vpop.permute.xlu0 %1449  ;;  %v1456_v18 = vpop.permute.xlu1 %1455 }
 0x226   : > { %v1545_v52 = vmul.f32 %v12474_v25, %v1450_v16  ;;  %v1548_v36 = vmul.f32 %v12488_v33, %v1456_v18  ;;  %v1272_v16 = vadd.f32 1.0, %v11090_v7  ;;  %v1189_v7 = vsub.f32 0.0, %v12416_v44 }
 0x228   : > { %1609 = vrot.lane.b32.xlu1 %v1545_v52, %s11865_s16  ;;  %v11096_v52 = vpop.eup %11095  ;;  %11115 = vrcp.f32 %v1272_v16 }
 0x229   : > { %v1454_v19 = vpop.permute.xlu1 %1453  ;;  %v12522_v31 = vpop.eup %11097  ;;  %11117 = vrcp.f32 %v1271_v20 }
 0x22a   : > { %v1547_v54 = vmul.f32 %v12481_v53, %v1454_v19  ;;  %v11100_v9 = vpop.eup %11099  ;;  %v1186_v19 = vsub.f32 0.0, %v12377_v3  ;;  %11119 = vpow2.f32 %v1239_v37 }
 0x22b   : > { %v1458_v55 = vpop.permute.xlu0 %1457  ;;  %v12526_v17 = vpop.eup %11101  ;;  %v1273_v29 = vadd.f32 1.0, %v11100_v9 }
 0x22c   : > { %1611 = vrot.lane.b32.xlu1 %v1546_v26, %s11865_s16  ;;  %1613 = vrot.lane.b32.xlu0 %v1547_v54, %s11865_s16  ;;  %v1549_v49 = vmul.f32 %v12491_v1, %v1458_v55  ;;  %v1274_v26 = vadd.f32 1.0, %v11096_v52  ;;  %v1237_v54 = vmul.f32 1.442695, %v1183_v13  ;;  %v11104_v40 = vpop.eup %11103  ;;  %v1192_v52 = vsub.f32 0.0, %v12425_v56 }
 0x22d   : > { %v1460_v23 = vpop.permute.xlu1 %1459  ;;  %v12531_v35 = vpop.eup %11105  ;;  %v1276_v38 = vadd.f32 1.0, %v11104_v40 }
 0x22e   : > { %v1550_v14 = vmul.f32 %v12496_v10, %v1460_v23  ;;  %11121 = vrcp.f32 %v1274_v26  ;;  %v11108_v23 = vpop.eup %11107 }
 0x22f   : > { %v1462_v59 = vpop.permute.xlu0 %1461  ;;  %11123 = vpow2.f32 %v1237_v54  ;;  %v12536_v32 = vpop.eup %11109  ;;  %v1191_v54 = vsub.f32 0.0, %v12431_v58 }
 0x230   : > { %1615 = vrot.lane.b32.xlu1 %v1548_v36, %s11865_s16  ;;  %1617 = vrot.lane.b32.xlu0 %v1549_v49, %s11865_s16  ;;  %v1551_v45 = vmul.f32 %v12499_v62, %v1462_v59  ;;  %v1243_v36 = vmul.f32 1.442695, %v1186_v19  ;;  %v1188_v49 = vsub.f32 0.0, %v12396_v42  ;;  %11125 = vrcp.f32 %v1273_v29  ;;  %v11112_v6 = vpop.eup %11111 }
 0x231   : > { %v1464_v63 = vpop.permute.xlu1 %1463  ;;  %v1275_v59 = vadd.f32 1.0, %v11108_v23  ;;  %v1278_v60 = vadd.f32 1.0, %v11112_v6  ;;  %v1255_v19 = vmul.f32 1.442695, %v1192_v52  ;;  %v1253_v23 = vmul.f32 1.442695, %v1191_v54 }
 0x232   : > { %v1552_v41 = vmul.f32 %v12506_v47, %v1464_v63  ;;  %11127 = vpow2.f32 %v1243_v36  ;;  %v11114_v63 = vpop.eup %11113 }
 0x233   : > { %v1466_v0 = vpop.permute.xlu0 %1465  ;;  %11129 = vrcp.f32 %v1276_v38  ;;  %v1277_v43 = vadd.f32 1.0, %v11114_v63 }
 0x234   : > { %1619 = vrot.lane.b32.xlu1 %v1550_v14, %s11865_s16  ;;  %1621 = vrot.lane.b32.xlu0 %v1551_v45, %s11865_s16  ;;  %v1553_v11 = vmul.f32 %v12510_v48, %v1466_v0  ;;  %11131 = vpow2.f32 %v1241_v46  ;;  %v1247_v14 = vmul.f32 1.442695, %v1188_v49  ;;  %v1190_v45 = vsub.f32 0.0, %v12410_v24 }
 0x235   : > { %v1468_v15 = vpop.permute.xlu1 %1467  ;;  %v12542_v42 = vpop.eup %11115  ;;  %11133 = vrcp.f32 %v1275_v59 }
 0x236   : > { %v1554_v2 = vmul.f32 %v12514_v50, %v1468_v15  ;;  %v12546_v22 = vpop.eup %11117  ;;  %11135 = vpow2.f32 %v1247_v14  ;;  %v1251_v5 = vmul.f32 1.442695, %v1190_v45 }
 0x237   : > { %v1470_v55 = vpop.permute.xlu0 %1469  ;;  %v11120_v15 = vpop.eup %11119  ;;  %11137 = vrcp.f32 %v1278_v60 }
 0x238   : > { %1623 = vrot.lane.b32.xlu1 %v1552_v41, %s11865_s16  ;;  %1625 = vrot.lane.b32.xlu0 %v1553_v11, %s11865_s16  ;;  %v1555_v27 = vmul.f32 %v12526_v17, %v1470_v55  ;;  %11139 = vpow2.f32 %v1245_v8  ;;  %v1280_v16 = vadd.f32 1.0, %v11120_v15 }
 0x239   : > { %v1472_v18 = vpop.permute.xlu1 %1471  ;;  %11141 = vrcp.f32 %v1277_v43 }
 0x23a   : > { %v1556_v51 = vmul.f32 %v12522_v31, %v1472_v18  ;;  %v1249_v18 = vmul.f32 1.442695, %v1189_v7  ;;  %11143 = vpow2.f32 %v1251_v5 }
 0x23b   : > { %v1474_v39 = vpop.permute.xlu0 %1473  ;;  %v12551_v30 = vpop.eup %11121  ;;  %11145 = vrcp.f32 %v1280_v16 }
 0x23c   : > { %1627 = vrot.lane.b32.xlu1 %v1554_v2, %s11865_s16  ;;  %1629 = vrot.lane.b32.xlu0 %v1555_v27, %s11865_s16  ;;  %v1557_v61 = vmul.f32 %v12536_v32, %v1474_v39  ;;  %v11124_v12 = vpop.eup %11123  ;;  %11147 = vpow2.f32 %v1249_v18 }
 0x23d   : > { %v1476_v3 = vpop.permute.xlu1 %1475  ;;  %v12556_v44 = vpop.eup %11125  ;;  %v1279_v37 = vadd.f32 1.0, %v11124_v12 }
 0x23e   : > { %v1558_v34 = vmul.f32 %v12531_v35, %v1476_v3 }
 0x23f   : > { %v1478_v41 = vpop.permute.xlu0 %1477  ;;  %v11128_v13 = vpop.eup %11127  ;;  %11149 = vrcp.f32 %v1279_v37 }
 0x240   : > { %1631 = vrot.lane.b32.xlu1 %v1556_v51, %s11865_s16  ;;  %1633 = vrot.lane.b32.xlu0 %v1557_v61, %s11865_s16  ;;  %v1559_v11 = vmul.f32 %v12546_v22, %v1478_v41  ;;  %v12560_v9 = vpop.eup %11129  ;;  %v1282_v55 = vadd.f32 1.0, %v11128_v13  ;;  %11151 = vpow2.f32 %v1255_v19 }
 0x241   : > { %v1480_v0 = vpop.permute.xlu1 %1479  ;;  %v11132_v26 = vpop.eup %11131 }
 0x242   : > { %v1560_v4 = vmul.f32 %v12542_v42, %v1480_v0  ;;  %v12565_v28 = vpop.eup %11133  ;;  %v1281_v29 = vadd.f32 1.0, %v11132_v26  ;;  %11153 = vrcp.f32 %v1282_v55 }
 0x243   : > { %v1482_v20 = vpop.permute.xlu0 %1481  ;;  %v11136_v3 = vpop.eup %11135 }
 0x244   : > { %1635 = vrot.lane.b32.xlu1 %v1558_v34, %s11865_s16  ;;  %1637 = vrot.lane.b32.xlu0 %v1559_v11, %s11865_s16  ;;  %v1561_v51 = vmul.f32 %v12556_v44, %v1482_v20  ;;  %v12569_v38 = vpop.eup %11137  ;;  %11155 = vrcp.f32 %v1281_v29  ;;  %v1284_v49 = vadd.f32 1.0, %v11136_v3 }
 0x245   : > { %v1484_v24 = vpop.permute.xlu1 %1483  ;;  %v11140_v46 = vpop.eup %11139  ;;  %11157 = vpow2.f32 %v1253_v23 }
 0x246   : > { %v1562_v2 = vmul.f32 %v12551_v30, %v1484_v24  ;;  %v12573_v6 = vpop.eup %11141  ;;  %v1283_v61 = vadd.f32 1.0, %v11140_v46  ;;  %11159 = vrcp.f32 %v1284_v49  ;;  %v1385_v49 = vmul.f32 0.0, %v12474_v25 }
 0x247   : > { %v11144_v57 = vpop.eup %11143 }
 0x248   : > { %1639 = vrot.lane.b32.xlu1 %v1560_v4, %s11865_s16  ;;  %1641 = vrot.lane.b32.xlu0 %v1561_v51, %s11865_s16  ;;  %v12578_v14 = vpop.eup %11145  ;;  %v1286_v45 = vadd.f32 1.0, %v11144_v57  ;;  %11161 = vrcp.f32 %v1283_v61  ;;  %v1386_v57 = vmul.f32 0.0, %v12478_v21  ;;  %v1387_v61 = vmul.f32 0.0, %v12481_v53 }
 0x249   : > { %v11148_v60 = vpop.eup %11147 }
 0x24a   : > { %v1285_v43 = vadd.f32 1.0, %v11148_v60  ;;  %11163 = vrcp.f32 %v1286_v45 }
 0x24c   : > { %1643 = vrot.lane.b32.xlu1 %v1562_v2, %s11865_s16  ;;  %v12581_v8 = vpop.eup %11149  ;;  %11165 = vrcp.f32 %v1285_v43  ;;  %v1389_v43 = vmul.f32 0.0, %v12491_v1 }
 0x24d   : > { %v1488_v56 = vpop.permute.xlu1 %1487  ;;  %v11152_v15 = vpop.eup %11151 }
 0x24e   : > { %v1564_v40 = vmul.f32 %v12560_v9, %v1488_v56  ;;  %v1288_v12 = vadd.f32 1.0, %v11152_v15 }
 0x24f   : > { %v12585_v7 = vpop.eup %11153 }
 0x250   : > { %1647 = vrot.lane.b32.xlu1 %v1564_v40, %s11865_s16  ;;  %11167 = vrcp.f32 %v1288_v12  ;;  %v1390_v12 = vmul.f32 0.0, %v12496_v10 }
 0x251   : > { %v1486_v27 = vpop.permute.xlu0 %1485  ;;  %v12589_v24 = vpop.eup %11155 }
 0x252   : > { %v1563_v36 = vmul.f32 %v12565_v28, %v1486_v27  ;;  %v11158_v16 = vpop.eup %11157 }
 0x253   : > { %v1492_v58 = vpop.permute.xlu1 %1491  ;;  %v12593_v52 = vpop.eup %11159  ;;  %v1287_v20 = vadd.f32 1.0, %v11158_v16  ;;  %v1391_v16 = vmul.f32 0.0, %v12499_v62 }
 0x254   : > { %1645 = vrot.lane.b32.xlu0 %v1563_v36, %s11865_s16  ;;  %v1566_v34 = vmul.f32 %v12569_v38, %v1492_v58 }
 0x255   : > { %v1490_v59 = vpop.permute.xlu0 %1489  ;;  %v12597_v51 = vpop.eup %11161  ;;  %11169 = vrcp.f32 %v1287_v20 }
 0x256   : > { %1651 = vrot.lane.b32.xlu1 %v1566_v34, %s11865_s16  ;;  %v1565_v39 = vmul.f32 %v12573_v6, %v1490_v59 }
 0x257   : > { %v1496_v63 = vpop.permute.xlu1 %1495  ;;  %v12601_v54 = vpop.eup %11163 }
 0x258   : > { %1649 = vrot.lane.b32.xlu0 %v1565_v39, %s11865_s16  ;;  %v1568_v0 = vmul.f32 %v12578_v14, %v1496_v63 }
 0x259   : > { %v1494_v4 = vpop.permute.xlu0 %1493  ;;  %v12605_v40 = vpop.eup %11165 }
 0x25a   : > { %1655 = vrot.lane.b32.xlu1 %v1568_v0, %s11865_s16  ;;  %v1567_v41 = vmul.f32 %v12581_v8, %v1494_v4  ;;  %v1388_v4 = vmul.f32 0.0, %v12488_v33 }
 0x25b   : > { %v1500_v11 = vpop.permute.xlu1 %1499 }
 0x25c   : > { %1653 = vrot.lane.b32.xlu0 %v1567_v41, %s11865_s16  ;;  %v1570_v5 = vmul.f32 %v12585_v7, %v1500_v11 }
 0x25d   : > { %v1498_v2 = vpop.permute.xlu0 %1497  ;;  %v12610_v36 = vpop.eup %11167 }
 0x25e   : > { %1659 = vrot.lane.b32.xlu1 %v1570_v5, %s11865_s16  ;;  %v1569_v18 = vmul.f32 %v12589_v24, %v1498_v2 }
 0x25f   : > { %v1504_v13 = vpop.permute.xlu1 %1503 }
 0x260   : > { %1657 = vrot.lane.b32.xlu0 %v1569_v18, %s11865_s16  ;;  %v1572_v37 = vmul.f32 %v12593_v52, %v1504_v13 }
 0x261   : > { %v1502_v26 = vpop.permute.xlu0 %1501 }
 0x262   : > { %1663 = vrot.lane.b32.xlu1 %v1572_v37, %s11865_s16  ;;  %v1571_v19 = vmul.f32 %v12597_v51, %v1502_v26  ;;  %v12614_v58 = vpop.eup %11169  ;;  %v1392_v37 = vmul.f32 0.0, %v12506_v47 }
 0x263   : > { %v1508_v56 = vpop.permute.xlu1 %1507 }
 0x264   : > { %1661 = vrot.lane.b32.xlu0 %v1571_v19, %s11865_s16  ;;  %v1574_v55 = vmul.f32 %v12601_v54, %v1508_v56  ;;  %v1393_v19 = vmul.f32 0.0, %v12510_v48 }
 0x265   : > { %v1506_v27 = vpop.permute.xlu0 %1505 }
 0x266   : > { %1667 = vrot.lane.b32.xlu1 %v1574_v55, %s11865_s16  ;;  %v1573_v29 = vmul.f32 %v12605_v40, %v1506_v27 }
 0x268   : > { %1665 = vrot.lane.b32.xlu0 %v1573_v29, %s11865_s16 }
 0x269   : > { %v1512_v3 = vpop.permute.xlu0 %1511 }
 0x26a   : > { %v1576_v23 = vmul.f32 %v12610_v36, %v1512_v3  ;;  %v1394_v3 = vmul.f32 0.0, %v12514_v50 }
 0x26c   : > { %1671 = vrot.lane.b32.xlu1 %v1576_v23, %s11865_s16 }
 0x26d   : > { %v1510_v34 = vpop.permute.xlu0 %1509 }
 0x26e   : > { %v1575_v46 = vmul.f32 %v12614_v58, %v1510_v34 }
 0x270   : > { %1669 = vrot.lane.b32.xlu0 %v1575_v46, %s11865_s16 }
 0x29a   : > { %v1610_v59 = vpop.permute.xlu1 %1609 }
 0x29b   : > { %v1705_v39 = vadd.f32 %v1610_v59, %v1385_v49  ;;  %v1396_v59 = vmul.f32 0.0, %v12522_v31 }
 0x29d   : > { %11171 = vtanh.f32 %v1705_v39 }
 0x29e   : > { %v1612_v63 = vpop.permute.xlu1 %1611  ;;  %v1614_v60 = vpop.permute.xlu0 %1613 }
 0x29f   : > { %v1706_v45 = vadd.f32 %v1612_v63, %v1386_v57  ;;  %v1707_v0 = vadd.f32 %v1614_v60, %v1387_v61  ;;  %v1395_v60 = vmul.f32 0.0, %v12526_v17 }
 0x2a1   : > { %11173 = vtanh.f32 %v1706_v45 }
 0x2a2   : > { %11175 = vtanh.f32 %v1707_v0  ;;  %v1616_v41 = vpop.permute.xlu1 %1615  ;;  %v1618_v15 = vpop.permute.xlu0 %1617 }
 0x2a3   : > { %v1708_v11 = vadd.f32 %v1616_v41, %v1388_v4  ;;  %v1709_v5 = vadd.f32 %v1618_v15, %v1389_v43  ;;  %v1398_v41 = vmul.f32 0.0, %v12531_v35 }
 0x2a5   : > { %11177 = vtanh.f32 %v1708_v11 }
 0x2a6   : > { %11179 = vtanh.f32 %v1709_v5  ;;  %v1620_v2 = vpop.permute.xlu1 %1619  ;;  %v1622_v18 = vpop.permute.xlu0 %1621 }
 0x2a7   : > { %v1710_v20 = vadd.f32 %v1620_v2, %v1390_v12  ;;  %v1711_v13 = vadd.f32 %v1622_v18, %v1391_v16  ;;  %v1397_v16 = vmul.f32 0.0, %v12536_v32 }
 0x2a9   : > { %11181 = vtanh.f32 %v1710_v20 }
 0x2aa   : > { %v11172_v26 = vpop.eup %11171  ;;  %11183 = vtanh.f32 %v1711_v13  ;;  %v1624_v56 = vpop.permute.xlu1 %1623  ;;  %v1400_v13 = vmul.f32 0.0, %v12542_v42 }
 0x2ab   : > { %v1626_v55 = vpop.permute.xlu0 %1625  ;;  %v1712_v27 = vadd.f32 %v1624_v56, %v1392_v37  ;;  %1801 = vrot.lane.b32.xlu0 %v11172_v26, %s11866_s14  ;;  %v1399_v26 = vmul.f32 0.0, %v12546_v22 }
 0x2ac   : > { %v1713_v29 = vadd.f32 %v1626_v55, %v1393_v19 }
 0x2ad   : > { %11185 = vtanh.f32 %v1712_v27 }
 0x2ae   : > { %v11174_v23 = vpop.eup %11173  ;;  %11187 = vtanh.f32 %v1713_v29  ;;  %v1628_v34 = vpop.permute.xlu1 %1627  ;;  %v1402_v29 = vmul.f32 0.0, %v12551_v30 }
 0x2af   : > { %v11176_v46 = vpop.eup %11175  ;;  %v1714_v49 = vadd.f32 %v1628_v34, %v1394_v3  ;;  %1803 = vrot.lane.b32.xlu1 %v11174_v23, %s11866_s14  ;;  %v1630_v45 = vpop.permute.xlu0 %1629 }
 0x2b0   : > { %1805 = vrot.lane.b32.xlu0 %v11176_v46, %s11866_s14  ;;  %v1715_v4 = vadd.f32 %v1630_v45, %v1395_v60  ;;  %v1401_v46 = vmul.f32 0.0, %v12556_v44  ;;  %v1403_v60 = vmul.f32 0.0, %v12565_v28 }
 0x2b1   : > { %11189 = vtanh.f32 %v1714_v49 }
 0x2b2   : > { %v11178_v39 = vpop.eup %11177  ;;  %v1632_v57 = vpop.permute.xlu1 %1631 }
 0x2b3   : > { %v11180_v61 = vpop.eup %11179  ;;  %v1716_v63 = vadd.f32 %v1632_v57, %v1396_v59  ;;  %1807 = vrot.lane.b32.xlu1 %v11178_v39, %s11866_s14  ;;  %v1634_v2 = vpop.permute.xlu0 %1633  ;;  %v1404_v57 = vmul.f32 0.0, %v12560_v9 }
 0x2b4   : > { %1809 = vrot.lane.b32.xlu0 %v11180_v61, %s11866_s14  ;;  %v1717_v18 = vadd.f32 %v1634_v2, %v1397_v16 }
 0x2b5   : > { %11191 = vtanh.f32 %v1716_v63 }
 0x2b6   : > { %v11182_v0 = vpop.eup %11181  ;;  %11193 = vtanh.f32 %v1715_v4  ;;  %v1636_v15 = vpop.permute.xlu1 %1635 }
 0x2b7   : > { %v11184_v43 = vpop.eup %11183  ;;  %1811 = vrot.lane.b32.xlu1 %v11182_v0, %s11866_s14  ;;  %v1718_v11 = vadd.f32 %v1636_v15, %v1398_v41  ;;  %v1638_v55 = vpop.permute.xlu0 %1637 }
 0x2b8   : > { %1813 = vrot.lane.b32.xlu0 %v11184_v43, %s11866_s14  ;;  %v1719_v27 = vadd.f32 %v1638_v55, %v1399_v26  ;;  %v1406_v43 = vmul.f32 0.0, %v12569_v38 }
 0x2b9   : > { %11195 = vtanh.f32 %v1718_v11 }
 0x2ba   : > { %v11186_v5 = vpop.eup %11185  ;;  %11197 = vtanh.f32 %v1717_v18  ;;  %v1640_v37 = vpop.permute.xlu1 %1639 }
 0x2bb   : > { %v11188_v12 = vpop.eup %11187  ;;  %1815 = vrot.lane.b32.xlu1 %v11186_v5, %s11866_s14  ;;  %v1720_v19 = vadd.f32 %v1640_v37, %v1400_v13  ;;  %v1642_v59 = vpop.permute.xlu0 %1641 }
 0x2bc   : > { %1817 = vrot.lane.b32.xlu0 %v11188_v12, %s11866_s14  ;;  %v1721_v39 = vadd.f32 %v1642_v59, %v1401_v46  ;;  %v1405_v12 = vmul.f32 0.0, %v12573_v6  ;;  %v1409_v46 = vmul.f32 0.0, %v12589_v24 }
 0x2bd   : > { %11199 = vtanh.f32 %v1720_v19  ;;  %v1407_v19 = vmul.f32 0.0, %v12581_v8 }
 0x2be   : > { %v11190_v20 = vpop.eup %11189  ;;  %11201 = vtanh.f32 %v1719_v27  ;;  %v1644_v23 = vpop.permute.xlu1 %1643 }
 0x2bf   : > { %1819 = vrot.lane.b32.xlu1 %v11190_v20, %s11866_s14  ;;  %v1722_v34 = vadd.f32 %v1644_v23, %v1402_v29  ;;  %v1408_v20 = vmul.f32 0.0, %v12578_v14  ;;  %v1410_v29 = vmul.f32 0.0, %v12585_v7 }
 0x2c1   : > { %11203 = vtanh.f32 %v1722_v34 }
 0x2c2   : > { %v11192_v56 = vpop.eup %11191  ;;  %11205 = vtanh.f32 %v1721_v39  ;;  %v1648_v61 = vpop.permute.xlu1 %1647 }
 0x2c3   : > { %1823 = vrot.lane.b32.xlu1 %v11192_v56, %s11866_s14  ;;  %v11194_v3 = vpop.eup %11193  ;;  %v1724_v45 = vadd.f32 %v1648_v61, %v1404_v57  ;;  %v1412_v57 = vmul.f32 0.0, %v12593_v52 }
 0x2c4   : > { %1821 = vrot.lane.b32.xlu0 %v11194_v3, %s11866_s14 }
 0x2c5   : > { %11207 = vtanh.f32 %v1724_v45  ;;  %v1411_v45 = vmul.f32 0.0, %v12597_v51 }
 0x2c6   : > { %v11196_v49 = vpop.eup %11195  ;;  %v1646_v0 = vpop.permute.xlu0 %1645 }
 0x2c7   : > { %1827 = vrot.lane.b32.xlu1 %v11196_v49, %s11866_s14  ;;  %v11198_v63 = vpop.eup %11197  ;;  %v1723_v4 = vadd.f32 %v1646_v0, %v1403_v60 }
 0x2c8   : > { %1825 = vrot.lane.b32.xlu0 %v11198_v63, %s11866_s14  ;;  %v1652_v15 = vpop.permute.xlu1 %1651 }
 0x2c9   : > { %11209 = vtanh.f32 %v1723_v4  ;;  %v1726_v11 = vadd.f32 %v1652_v15, %v1406_v43 }
 0x2ca   : > { %v11200_v41 = vpop.eup %11199  ;;  %v1650_v16 = vpop.permute.xlu0 %1649 }
 0x2cb   : > { %1831 = vrot.lane.b32.xlu1 %v11200_v41, %s11866_s14  ;;  %v11202_v5 = vpop.eup %11201  ;;  %11211 = vtanh.f32 %v1726_v11  ;;  %v1725_v2 = vadd.f32 %v1650_v16, %v1405_v12  ;;  %v1414_v41 = vmul.f32 0.0, %v12601_v54  ;;  %v1413_v12 = vmul.f32 0.0, %v12605_v40 }
 0x2cc   : > { %1829 = vrot.lane.b32.xlu0 %v11202_v5, %s11866_s14  ;;  %v1656_v13 = vpop.permute.xlu1 %1655 }
 0x2cd   : > { %11213 = vtanh.f32 %v1725_v2  ;;  %v1728_v26 = vadd.f32 %v1656_v13, %v1408_v20  ;;  %v1416_v20 = vmul.f32 0.0, %v12610_v36 }
 0x2ce   : > { %v11204_v18 = vpop.eup %11203  ;;  %v1654_v56 = vpop.permute.xlu0 %1653 }
 0x2cf   : > { %1835 = vrot.lane.b32.xlu1 %v11204_v18, %s11866_s14  ;;  %v11206_v37 = vpop.eup %11205  ;;  %11215 = vtanh.f32 %v1728_v26  ;;  %v1727_v27 = vadd.f32 %v1654_v56, %v1407_v19  ;;  %v1415_v56 = vmul.f32 0.0, %v12614_v58 }
 0x2d0   : > { %1833 = vrot.lane.b32.xlu0 %v11206_v37, %s11866_s14  ;;  %v1660_v23 = vpop.permute.xlu1 %1659 }
 0x2d1   : > { %11217 = vtanh.f32 %v1727_v27  ;;  %v1730_v34 = vadd.f32 %v1660_v23, %v1410_v29  ;;  %v2090_v23 = vld [vmem:[#allocation18 + $0x8] sm:$0xff] }
 0x2d2   : > { %v11208_v55 = vpop.eup %11207  ;;  %v1658_v59 = vpop.permute.xlu0 %1657  ;;  %10739 = vmatprep.subr.mxu0 %v2090_v23 }
 0x2d3   : > { %1839 = vrot.lane.b32.xlu1 %v11208_v55, %s11866_s14  ;;  %11219 = vtanh.f32 %v1730_v34  ;;  %v1729_v39 = vadd.f32 %v1658_v59, %v1409_v46  ;;  %v2089_v34 = vld [vmem:[#allocation18] sm:$0xff]  ;;  %10740 = vmatpush3.msra.mxu0 %v2090_v23 }
 0x2d4   : > { %v1664_v63 = vpop.permute.xlu1 %1663  ;;  %10741 = vmatprep.subr.mxu0 %v2089_v34 }
 0x2d5   : > { %11221 = vtanh.f32 %v1729_v39  ;;  %v1732_v60 = vadd.f32 %v1664_v63, %v1412_v57  ;;  %10742 = vmatpush3.msra.mxu0 %v2089_v34 }
 0x2d6   : > { %v11210_v3 = vpop.eup %11209  ;;  %v1662_v0 = vpop.permute.xlu0 %1661 }
 0x2d7   : > { %1837 = vrot.lane.b32.xlu0 %v11210_v3, %s11866_s14  ;;  %11223 = vtanh.f32 %v1732_v60  ;;  %v1731_v43 = vadd.f32 %v1662_v0, %v1411_v45 }
 0x2d8   : > { %v11212_v49 = vpop.eup %11211  ;;  %v1668_v15 = vpop.permute.xlu1 %1667 }
 0x2d9   : > { %1843 = vrot.lane.b32.xlu1 %v11212_v49, %s11866_s14  ;;  %11225 = vtanh.f32 %v1731_v43  ;;  %v1734_v5 = vadd.f32 %v1668_v15, %v1414_v41 }
 0x2da   : > { %v11214_v61 = vpop.eup %11213  ;;  %v1666_v16 = vpop.permute.xlu0 %1665 }
 0x2db   : > { %1841 = vrot.lane.b32.xlu0 %v11214_v61, %s11866_s14  ;;  %11227 = vtanh.f32 %v1734_v5  ;;  %v1733_v18 = vadd.f32 %v1666_v16, %v1413_v12 }
 0x2dc   : > { %v11216_v4 = vpop.eup %11215 }
 0x2dd   : > { %1847 = vrot.lane.b32.xlu1 %v11216_v4, %s11866_s14  ;;  %11229 = vtanh.f32 %v1733_v18 }
 0x2de   : > { %v11218_v11 = vpop.eup %11217  ;;  %v1672_v37 = vpop.permute.xlu1 %1671 }
 0x2df   : > { %1845 = vrot.lane.b32.xlu0 %v11218_v11, %s11866_s14  ;;  %v1736_v26 = vadd.f32 %v1672_v37, %v1416_v20 }
 0x2e0   : > { %v11220_v2 = vpop.eup %11219 }
 0x2e1   : > { %1851 = vrot.lane.b32.xlu1 %v11220_v2, %s11866_s14  ;;  %11231 = vtanh.f32 %v1736_v26 }
 0x2e2   : > { %v11222_v13 = vpop.eup %11221  ;;  %v1670_v55 = vpop.permute.xlu0 %1669 }
 0x2e3   : > { %1849 = vrot.lane.b32.xlu0 %v11222_v13, %s11866_s14  ;;  %v1735_v27 = vadd.f32 %v1670_v55, %v1415_v56 }
 0x2e4   : > { %v11224_v19 = vpop.eup %11223 }
 0x2e5   : > { %1855 = vrot.lane.b32.xlu1 %v11224_v19, %s11866_s14  ;;  %11233 = vtanh.f32 %v1735_v27 }
 0x2e6   : > { %v11226_v29 = vpop.eup %11225 }
 0x2e7   : > { %1853 = vrot.lane.b32.xlu0 %v11226_v29, %s11866_s14 }
 0x2e8   : > { %v11228_v3 = vpop.eup %11227 }
 0x2e9   : > { %1859 = vrot.lane.b32.xlu1 %v11228_v3, %s11866_s14 }
 0x2ea   : > { %v11230_v46 = vpop.eup %11229 }
 0x2eb   : > { %1857 = vrot.lane.b32.xlu0 %v11230_v46, %s11866_s14 }
 0x2ee   : > { %v11232_v49 = vpop.eup %11231 }
 0x2ef   : > { %1863 = vrot.lane.b32.xlu0 %v11232_v49, %s11866_s14 }
 0x2f2   : > { %v11234_v59 = vpop.eup %11233 }
 0x2f3   : > { %1861 = vrot.lane.b32.xlu0 %v11234_v59, %s11866_s14 }
 0x31d   : > { %v1802_v39 = vpop.permute.xlu0 %1801 }
 0x31e   : > { %v1897_v57 = vmul.f32 %v12474_v25, %v1802_v39 }
 0x320   : > { %1961 = vrot.lane.b32.xlu1 %v1897_v57, %s11867_s3 }
 0x321   : > { %v1804_v61 = vpop.permute.xlu1 %1803 }
 0x322   : > { %v1898_v63 = vmul.f32 %v12478_v21, %v1804_v61  ;;  %v1806_v60 = vpop.permute.xlu0 %1805 }
 0x323   : > { %v1899_v45 = vmul.f32 %v12481_v53, %v1806_v60 }
 0x324   : > { %1963 = vrot.lane.b32.xlu1 %v1898_v63, %s11867_s3 }
 0x325   : > { %1965 = vrot.lane.b32.xlu0 %v1899_v45, %s11867_s3  ;;  %v1808_v0 = vpop.permute.xlu1 %1807 }
 0x326   : > { %v1900_v4 = vmul.f32 %v12488_v33, %v1808_v0  ;;  %v1810_v43 = vpop.permute.xlu0 %1809 }
 0x327   : > { %v1901_v41 = vmul.f32 %v12491_v1, %v1810_v43 }
 0x328   : > { %1967 = vrot.lane.b32.xlu1 %v1900_v4, %s11867_s3 }
 0x329   : > { %1969 = vrot.lane.b32.xlu0 %v1901_v41, %s11867_s3  ;;  %v1812_v25 = vpop.permute.xlu1 %1811 }
 0x32a   : > { %v1902_v21 = vmul.f32 %v12496_v10, %v1812_v25  ;;  %v1814_v15 = vpop.permute.xlu0 %1813 }
 0x32b   : > { %v1903_v53 = vmul.f32 %v12499_v62, %v1814_v15 }
 0x32c   : > { %1971 = vrot.lane.b32.xlu1 %v1902_v21, %s11867_s3 }
 0x32d   : > { %1973 = vrot.lane.b32.xlu0 %v1903_v53, %s11867_s3  ;;  %v1816_v11 = vpop.permute.xlu1 %1815 }
 0x32e   : > { %v1904_v33 = vmul.f32 %v12506_v47, %v1816_v11  ;;  %v1818_v5 = vpop.permute.xlu0 %1817 }
 0x32f   : > { %v1905_v1 = vmul.f32 %v12510_v48, %v1818_v5 }
 0x330   : > { %1975 = vrot.lane.b32.xlu1 %v1904_v33, %s11867_s3 }
 0x331   : > { %1977 = vrot.lane.b32.xlu0 %v1905_v1, %s11867_s3  ;;  %v1820_v12 = vpop.permute.xlu1 %1819 }
 0x332   : > { %v1906_v10 = vmul.f32 %v12514_v50, %v1820_v12 }
 0x334   : > { %1979 = vrot.lane.b32.xlu1 %v1906_v10, %s11867_s3 }
 0x335   : > { %v1824_v62 = vpop.permute.xlu1 %1823 }
 0x336   : > { %v1908_v16 = vmul.f32 %v12522_v31, %v1824_v62  ;;  %v1822_v2 = vpop.permute.xlu0 %1821 }
 0x337   : > { %v1907_v47 = vmul.f32 %v12526_v17, %v1822_v2 }
 0x338   : > { %1983 = vrot.lane.b32.xlu1 %v1908_v16, %s11867_s3 }
 0x339   : > { %1981 = vrot.lane.b32.xlu0 %v1907_v47, %s11867_s3  ;;  %v1828_v48 = vpop.permute.xlu1 %1827 }
 0x33a   : > { %v1910_v18 = vmul.f32 %v12531_v35, %v1828_v48  ;;  %v1826_v20 = vpop.permute.xlu0 %1825 }
 0x33b   : > { %v1909_v50 = vmul.f32 %v12536_v32, %v1826_v20 }
 0x33c   : > { %1987 = vrot.lane.b32.xlu1 %v1910_v18, %s11867_s3 }
 0x33d   : > { %1985 = vrot.lane.b32.xlu0 %v1909_v50, %s11867_s3  ;;  %v1832_v13 = vpop.permute.xlu1 %1831 }
 0x33e   : > { %v1912_v31 = vmul.f32 %v12542_v42, %v1832_v13  ;;  %v1830_v37 = vpop.permute.xlu0 %1829 }
 0x33f   : > { %v1911_v26 = vmul.f32 %v12546_v22, %v1830_v37 }
 0x340   : > { %1991 = vrot.lane.b32.xlu1 %v1912_v31, %s11867_s3 }
 0x341   : > { %1989 = vrot.lane.b32.xlu0 %v1911_v26, %s11867_s3  ;;  %v1836_v17 = vpop.permute.xlu1 %1835 }
 0x342   : > { %v1914_v35 = vmul.f32 %v12551_v30, %v1836_v17  ;;  %v1834_v19 = vpop.permute.xlu0 %1833 }
 0x343   : > { %v1913_v32 = vmul.f32 %v12556_v44, %v1834_v19 }
 0x344   : > { %1995 = vrot.lane.b32.xlu1 %v1914_v35, %s11867_s3 }
 0x345   : > { %1993 = vrot.lane.b32.xlu0 %v1913_v32, %s11867_s3  ;;  %v1840_v56 = vpop.permute.xlu1 %1839 }
 0x346   : > { %v1916_v42 = vmul.f32 %v12560_v9, %v1840_v56 }
 0x348   : > { %1999 = vrot.lane.b32.xlu1 %v1916_v42, %s11867_s3 }
 0x349   : > { %v1838_v55 = vpop.permute.xlu0 %1837 }
 0x34a   : > { %v1915_v22 = vmul.f32 %v12565_v28, %v1838_v55 }
 0x34b   : > { %v1844_v27 = vpop.permute.xlu1 %1843 }
 0x34c   : > { %1997 = vrot.lane.b32.xlu0 %v1915_v22, %s11867_s3  ;;  %v1918_v30 = vmul.f32 %v12569_v38, %v1844_v27 }
 0x34d   : > { %v1842_v29 = vpop.permute.xlu0 %1841 }
 0x34e   : > { %2003 = vrot.lane.b32.xlu1 %v1918_v30, %s11867_s3  ;;  %v1917_v44 = vmul.f32 %v12573_v6, %v1842_v29 }
 0x34f   : > { %v1848_v3 = vpop.permute.xlu1 %1847 }
 0x350   : > { %2001 = vrot.lane.b32.xlu0 %v1917_v44, %s11867_s3  ;;  %v1920_v9 = vmul.f32 %v12578_v14, %v1848_v3 }
 0x351   : > { %v1846_v23 = vpop.permute.xlu0 %1845 }
 0x352   : > { %2007 = vrot.lane.b32.xlu1 %v1920_v9, %s11867_s3  ;;  %v1919_v28 = vmul.f32 %v12581_v8, %v1846_v23 }
 0x353   : > { %v1852_v34 = vpop.permute.xlu1 %1851 }
 0x354   : > { %2005 = vrot.lane.b32.xlu0 %v1919_v28, %s11867_s3  ;;  %v1922_v38 = vmul.f32 %v12585_v7, %v1852_v34 }
 0x355   : > { %v1850_v46 = vpop.permute.xlu0 %1849 }
 0x356   : > { %2011 = vrot.lane.b32.xlu1 %v1922_v38, %s11867_s3  ;;  %v1921_v6 = vmul.f32 %v12589_v24, %v1850_v46 }
 0x357   : > { %v1856_v49 = vpop.permute.xlu1 %1855 }
 0x358   : > { %2009 = vrot.lane.b32.xlu0 %v1921_v6, %s11867_s3  ;;  %v1924_v14 = vmul.f32 %v12593_v52, %v1856_v49 }
 0x359   : > { %v1854_v59 = vpop.permute.xlu0 %1853 }
 0x35a   : > { %2015 = vrot.lane.b32.xlu1 %v1924_v14, %s11867_s3  ;;  %v1923_v8 = vmul.f32 %v12597_v51, %v1854_v59 }
 0x35b   : > { %v1860_v39 = vpop.permute.xlu1 %1859 }
 0x35c   : > { %2013 = vrot.lane.b32.xlu0 %v1923_v8, %s11867_s3  ;;  %v1926_v7 = vmul.f32 %v12601_v54, %v1860_v39 }
 0x35d   : > { %v1858_v57 = vpop.permute.xlu0 %1857 }
 0x35e   : > { %2019 = vrot.lane.b32.xlu1 %v1926_v7, %s11867_s3  ;;  %v1925_v24 = vmul.f32 %v12605_v40, %v1858_v57 }
 0x360   : > { %2017 = vrot.lane.b32.xlu0 %v1925_v24, %s11867_s3 }
 0x361   : > { %v1864_v61 = vpop.permute.xlu0 %1863 }
 0x362   : > { %v1928_v52 = vmul.f32 %v12610_v36, %v1864_v61 }
 0x364   : > { %2023 = vrot.lane.b32.xlu1 %v1928_v52, %s11867_s3 }
 0x365   : > { %v1862_v63 = vpop.permute.xlu0 %1861 }
 0x366   : > { %v1927_v51 = vmul.f32 %v12614_v58, %v1862_v63 }
 0x368   : > { %2021 = vrot.lane.b32.xlu0 %v1927_v51, %s11867_s3 }
 0x392   : > { %v1962_v60 = vpop.permute.xlu1 %1961 }
 0x393   : > { %2057 = vst.msk [vmem:[#allocation2] sm:$0xff] %vm571_vm1, %v1962_v60  ;;  %10743 = vmatprep.mubr.msk.f32.mxu0 %vm571_vm1, %v1962_v60 }
 0x396   : > { %v1964_v54 = vpop.permute.xlu1 %1963 }
 0x397   : > { %2058 = vst.msk [vmem:[#allocation2 + $0x8] sm:$0xff] %vm571_vm1, %v1964_v54  ;;  %v1966_v40 = vpop.permute.xlu0 %1965  ;;  %10744 = vmatmul.mubr.msk.f32.vlgmr.msra.gmra.mxu0 %vm571_vm1, %v1964_v54 }
 0x398   : > { %2059 = vst.msk [vmem:[#allocation2 + $0x10] sm:$0xff] %vm571_vm1, %v1966_v40  ;;  %10746 = vmatprep.mubr.msk.f32.mxu0 %vm571_vm1, %v1966_v40 }
 0x39a   : > { %v1968_v36 = vpop.permute.xlu1 %1967 }
 0x39b   : > { %2060 = vst.msk [vmem:[#allocation2 + $0x18] sm:$0xff] %vm571_vm1, %v1968_v36  ;;  %v1970_v58 = vpop.permute.xlu0 %1969  ;;  %10747 = vmatmul.mubr.msk.f32.gmra.mxu0 %vm571_vm1, %v1968_v36 }
 0x39c   : > { %2061 = vst.msk [vmem:[#allocation2 + $0x20] sm:$0xff] %vm571_vm1, %v1970_v58  ;;  %10749 = vmatprep.mubr.msk.f32.mxu0 %vm571_vm1, %v1970_v58 }
 0x39e   : > { %v1972_v45 = vpop.permute.xlu1 %1971 }
 0x39f   : > { %2062 = vst.msk [vmem:[#allocation2 + $0x28] sm:$0xff] %vm571_vm1, %v1972_v45  ;;  %v1974_v0 = vpop.permute.xlu0 %1973  ;;  %10750 = vmatmul.mubr.msk.f32.gmra.mxu0 %vm571_vm1, %v1972_v45 }
 0x3a0   : > { %2063 = vst.msk [vmem:[#allocation2 + $0x30] sm:$0xff] %vm571_vm1, %v1974_v0  ;;  %10752 = vmatprep.mubr.msk.f32.mxu0 %vm571_vm1, %v1974_v0 }
 0x3a2   : > { %v1976_v4 = vpop.permute.xlu1 %1975 }
 0x3a3   : > { %2064 = vst.msk [vmem:[#allocation2 + $0x38] sm:$0xff] %vm571_vm1, %v1976_v4  ;;  %v1978_v43 = vpop.permute.xlu0 %1977  ;;  %10753 = vmatmul.mubr.msk.f32.gmra.mxu0 %vm571_vm1, %v1976_v4 }
 0x3a4   : > { %2065 = vst.msk [vmem:[#allocation2 + $0x40] sm:$0xff] %vm571_vm1, %v1978_v43  ;;  %10755 = vmatprep.mubr.msk.f32.mxu0 %vm571_vm1, %v1978_v43 }
 0x3a6   : > { %v1980_v41 = vpop.permute.xlu1 %1979 }
 0x3a7   : > { %2066 = vst.msk [vmem:[#allocation2 + $0x48] sm:$0xff] %vm571_vm1, %v1980_v41  ;;  %10756 = vmatmul.mubr.msk.f32.gmra.mxu0 %vm571_vm1, %v1980_v41 }
 0x3aa   : > { %v1984_v25 = vpop.permute.xlu1 %1983 }
 0x3ab   : > { %2068 = vst.msk [vmem:[#allocation2 + $0x58] sm:$0xff] %vm571_vm1, %v1984_v25  ;;  %v1982_v21 = vpop.permute.xlu0 %1981 }
 0x3ac   : > { %2067 = vst.msk [vmem:[#allocation2 + $0x50] sm:$0xff] %vm571_vm1, %v1982_v21  ;;  %10758 = vmatprep.mubr.msk.f32.mxu0 %vm571_vm1, %v1982_v21 }
 0x3ad   : > { %10759 = vmatmul.mubr.msk.f32.gmra.mxu0 %vm571_vm1, %v1984_v25 }
 0x3ae   : > { %v1988_v15 = vpop.permute.xlu1 %1987 }
 0x3af   : > { %2070 = vst.msk [vmem:[#allocation2 + $0x68] sm:$0xff] %vm571_vm1, %v1988_v15  ;;  %v1986_v53 = vpop.permute.xlu0 %1985 }
 0x3b0   : > { %2069 = vst.msk [vmem:[#allocation2 + $0x60] sm:$0xff] %vm571_vm1, %v1986_v53  ;;  %10761 = vmatprep.mubr.msk.f32.mxu0 %vm571_vm1, %v1986_v53 }
 0x3b1   : > { %10762 = vmatmul.mubr.msk.f32.gmra.mxu0 %vm571_vm1, %v1988_v15 }
 0x3b2   : > { %v1992_v11 = vpop.permute.xlu1 %1991 }
 0x3b3   : > { %2072 = vst.msk [vmem:[#allocation2 + $0x78] sm:$0xff] %vm571_vm1, %v1992_v11  ;;  %v1990_v33 = vpop.permute.xlu0 %1989 }
 0x3b4   : > { %2071 = vst.msk [vmem:[#allocation2 + $0x70] sm:$0xff] %vm571_vm1, %v1990_v33  ;;  %10764 = vmatprep.mubr.msk.f32.mxu0 %vm571_vm1, %v1990_v33 }
 0x3b5   : > { %10765 = vmatmul.mubr.msk.f32.gmra.mxu0 %vm571_vm1, %v1992_v11 }
 0x3b6   : > { %v1996_v5 = vpop.permute.xlu1 %1995 }
 0x3b7   : > { %2074 = vst.msk [vmem:[#allocation2 + $0x88] sm:$0xff] %vm571_vm1, %v1996_v5  ;;  %v1994_v1 = vpop.permute.xlu0 %1993 }
 0x3b8   : > { %2073 = vst.msk [vmem:[#allocation2 + $0x80] sm:$0xff] %vm571_vm1, %v1994_v1  ;;  %10767 = vmatprep.mubr.msk.f32.mxu0 %vm571_vm1, %v1994_v1 }
 0x3b9   : > { %10768 = vmatmul.mubr.msk.f32.gmra.mxu0 %vm571_vm1, %v1996_v5 }
 0x3ba   : > { %v2000_v12 = vpop.permute.xlu1 %1999 }
 0x3bb   : > { %2076 = vst.msk [vmem:[#allocation2 + $0x98] sm:$0xff] %vm571_vm1, %v2000_v12 }
 0x3be   : > { %v1998_v10 = vpop.permute.xlu0 %1997 }
 0x3bf   : > { %2075 = vst.msk [vmem:[#allocation2 + $0x90] sm:$0xff] %vm571_vm1, %v1998_v10  ;;  %10770 = vmatprep.mubr.msk.f32.mxu0 %vm571_vm1, %v1998_v10 }
 0x3c0   : > { %10771 = vmatmul.mubr.msk.f32.gmra.mxu0 %vm571_vm1, %v2000_v12  ;;  %v2004_v62 = vpop.permute.xlu1 %2003 }
 0x3c1   : > { %2078 = vst.msk [vmem:[#allocation2 + $0xa8] sm:$0xff] %vm571_vm1, %v2004_v62 }
 0x3c2   : > { %v2002_v16 = vpop.permute.xlu0 %2001 }
 0x3c3   : > { %2077 = vst.msk [vmem:[#allocation2 + $0xa0] sm:$0xff] %vm571_vm1, %v2002_v16  ;;  %10773 = vmatprep.mubr.msk.f32.mxu0 %vm571_vm1, %v2002_v16 }
 0x3c4   : > { %10774 = vmatmul.mubr.msk.f32.gmra.mxu0 %vm571_vm1, %v2004_v62  ;;  %v2008_v2 = vpop.permute.xlu1 %2007 }
 0x3c5   : > { %2080 = vst.msk [vmem:[#allocation2 + $0xb8] sm:$0xff] %vm571_vm1, %v2008_v2 }
 0x3c6   : > { %v2006_v47 = vpop.permute.xlu0 %2005 }
 0x3c7   : > { %2079 = vst.msk [vmem:[#allocation2 + $0xb0] sm:$0xff] %vm571_vm1, %v2006_v47  ;;  %10776 = vmatprep.mubr.msk.f32.mxu0 %vm571_vm1, %v2006_v47 }
 0x3c8   : > { %10777 = vmatmul.mubr.msk.f32.gmra.mxu0 %vm571_vm1, %v2008_v2  ;;  %v2012_v48 = vpop.permute.xlu1 %2011 }
 0x3c9   : > { %2082 = vst.msk [vmem:[#allocation2 + $0xc8] sm:$0xff] %vm571_vm1, %v2012_v48 }
 0x3ca   : > { %v2010_v18 = vpop.permute.xlu0 %2009 }
 0x3cb   : > { %2081 = vst.msk [vmem:[#allocation2 + $0xc0] sm:$0xff] %vm571_vm1, %v2010_v18  ;;  %10779 = vmatprep.mubr.msk.f32.mxu0 %vm571_vm1, %v2010_v18 }
 0x3cc   : > { %10780 = vmatmul.mubr.msk.f32.gmra.mxu0 %vm571_vm1, %v2012_v48  ;;  %v2016_v20 = vpop.permute.xlu1 %2015 }
 0x3cd   : > { %2084 = vst.msk [vmem:[#allocation2 + $0xd8] sm:$0xff] %vm571_vm1, %v2016_v20 }
 0x3ce   : > { %v2014_v50 = vpop.permute.xlu0 %2013 }
 0x3cf   : > { %2083 = vst.msk [vmem:[#allocation2 + $0xd0] sm:$0xff] %vm571_vm1, %v2014_v50  ;;  %10782 = vmatprep.mubr.msk.f32.mxu0 %vm571_vm1, %v2014_v50 }
 0x3d0   : > { %10783 = vmatmul.mubr.msk.f32.gmra.mxu0 %vm571_vm1, %v2016_v20  ;;  %v2020_v13 = vpop.permute.xlu1 %2019 }
 0x3d1   : > { %2086 = vst.msk [vmem:[#allocation2 + $0xe8] sm:$0xff] %vm571_vm1, %v2020_v13 }
 0x3d2   : > { %v2018_v31 = vpop.permute.xlu0 %2017 }
 0x3d3   : > { %2085 = vst.msk [vmem:[#allocation2 + $0xe0] sm:$0xff] %vm571_vm1, %v2018_v31  ;;  %10785 = vmatprep.mubr.msk.f32.mxu0 %vm571_vm1, %v2018_v31 }
 0x3d4   : > { %10786 = vmatmul.mubr.msk.f32.gmra.mxu0 %vm571_vm1, %v2020_v13 }
 0x3d6   : > { %v2024_v37 = vpop.permute.xlu1 %2023 }
 0x3d7   : > { %2088 = vst.msk [vmem:[#allocation2 + $0xf8] sm:$0xff] %vm571_vm1, %v2024_v37 }
 0x3da   : > { %v2022_v26 = vpop.permute.xlu0 %2021 }
 0x3db   : > { %2087 = vst.msk [vmem:[#allocation2 + $0xf0] sm:$0xff] %vm571_vm1, %v2022_v26  ;;  %10788 = vmatprep.mubr.msk.f32.mxu0 %vm571_vm1, %v2022_v26 }
 0x3dc   : > { %10789 = vmatmul.mubr.msk.f32.gmra.mxu0 %vm571_vm1, %v2024_v37 }
 0x457   : > { %v10745_v17 = vpop.f32.mrf.mxu0 }
 0x458   : > { %2381 = vst [vmem:[#allocation3] sm:$0xff] %v10745_v17 }
 0x459   : > { %v2221_v35 = vpop.f32.mrf.mxu0 }
 0x45a   : > { %2380 = vst [vmem:[#allocation3 + $0xb0] sm:$0xff] %v2221_v35 }
 0x45b   : > { %v10748_v19 = vpop.f32.mrf.mxu0 }
 0x45c   : > { %2383 = vst [vmem:[#allocation3 + $0x18] sm:$0xff] %v10748_v19 }
 0x45d   : > { %v2231_v32 = vpop.f32.mrf.mxu0 }
 0x45e   : > { %2382 = vst [vmem:[#allocation3 + $0xd8] sm:$0xff] %v2231_v32 }
 0x45f   : > { %v10751_v56 = vpop.f32.mrf.mxu0 }
 0x460   : > { %2385 = vst [vmem:[#allocation3 + $0x68] sm:$0xff] %v10751_v56 }
 0x461   : > { %v2241_v42 = vpop.f32.mrf.mxu0 }
 0x462   : > { %2384 = vst [vmem:[#allocation3 + $0x50] sm:$0xff] %v2241_v42 }
 0x463   : > { %v10754_v55 = vpop.f32.mrf.mxu0 }
 0x464   : > { %2387 = vst [vmem:[#allocation3 + $0x48] sm:$0xff] %v10754_v55 }
 0x465   : > { %v2251_v22 = vpop.f32.mrf.mxu0 }
 0x466   : > { %2386 = vst [vmem:[#allocation3 + $0x30] sm:$0xff] %v2251_v22 }
 0x467   : > { %v10757_v27 = vpop.f32.mrf.mxu0 }
 0x468   : > { %2389 = vst [vmem:[#allocation3 + $0x88] sm:$0xff] %v10757_v27 }
 0x469   : > { %v2261_v30 = vpop.f32.mrf.mxu0 }
 0x46a   : > { %2388 = vst [vmem:[#allocation3 + $0x80] sm:$0xff] %v2261_v30 }
 0x46d   : > { %v10760_v29 = vpop.f32.mrf.mxu0 }
 0x46e   : > { %2391 = vst [vmem:[#allocation3 + $0xb8] sm:$0xff] %v10760_v29 }
 0x46f   : > { %v2271_v44 = vpop.f32.mrf.mxu0 }
 0x470   : > { %2390 = vst [vmem:[#allocation3 + $0xe8] sm:$0xff] %v2271_v44 }
 0x471   : > { %v10763_v3 = vpop.f32.mrf.mxu0 }
 0x472   : > { %2393 = vst [vmem:[#allocation3 + $0xf0] sm:$0xff] %v10763_v3 }
 0x473   : > { %v2281_v9 = vpop.f32.mrf.mxu0 }
 0x474   : > { %2392 = vst [vmem:[#allocation3 + $0x60] sm:$0xff] %v2281_v9 }
 0x475   : > { %v10766_v23 = vpop.f32.mrf.mxu0 }
 0x476   : > { %2395 = vst [vmem:[#allocation3 + $0x78] sm:$0xff] %v10766_v23 }
 0x477   : > { %v2291_v28 = vpop.f32.mrf.mxu0 }
 0x478   : > { %2394 = vst [vmem:[#allocation3 + $0x8] sm:$0xff] %v2291_v28 }
 0x479   : > { %v10769_v34 = vpop.f32.mrf.mxu0 }
 0x47a   : > { %2397 = vst [vmem:[#allocation3 + $0x58] sm:$0xff] %v10769_v34 }
 0x47b   : > { %v2301_v38 = vpop.f32.mrf.mxu0 }
 0x47c   : > { %2396 = vst [vmem:[#allocation3 + $0x38] sm:$0xff] %v2301_v38 }
 0x480   : > { %v10772_v46 = vpop.f32.mrf.mxu0 }
 0x481   : > { %2399 = vst [vmem:[#allocation3 + $0xc8] sm:$0xff] %v10772_v46 }
 0x482   : > { %v2311_v6 = vpop.f32.mrf.mxu0 }
 0x483   : > { %2398 = vst [vmem:[#allocation3 + $0x40] sm:$0xff] %v2311_v6 }
 0x484   : > { %v10775_v49 = vpop.f32.mrf.mxu0 }
 0x485   : > { %2401 = vst [vmem:[#allocation3 + $0x90] sm:$0xff] %v10775_v49 }
 0x486   : > { %v2321_v14 = vpop.f32.mrf.mxu0 }
 0x487   : > { %2400 = vst [vmem:[#allocation3 + $0xe0] sm:$0xff] %v2321_v14 }
 0x488   : > { %v10778_v59 = vpop.f32.mrf.mxu0 }
 0x489   : > { %2403 = vst [vmem:[#allocation3 + $0xc0] sm:$0xff] %v10778_v59 }
 0x48a   : > { %v2331_v8 = vpop.f32.mrf.mxu0 }
 0x48b   : > { %2402 = vst [vmem:[#allocation3 + $0x70] sm:$0xff] %v2331_v8 }
 0x48c   : > { %v10781_v39 = vpop.f32.mrf.mxu0 }
 0x48d   : > { %2405 = vst [vmem:[#allocation3 + $0xd0] sm:$0xff] %v10781_v39 }
 0x48e   : > { %v2341_v7 = vpop.f32.mrf.mxu0 }
 0x48f   : > { %2404 = vst [vmem:[#allocation3 + $0xa8] sm:$0xff] %v2341_v7 }
 0x490   : > { %v10784_v57 = vpop.f32.mrf.mxu0 }
 0x491   : > { %2407 = vst [vmem:[#allocation3 + $0x28] sm:$0xff] %v10784_v57 }
 0x492   : > { %v2351_v24 = vpop.f32.mrf.mxu0 }
 0x493   : > { %2406 = vst [vmem:[#allocation3 + $0x10] sm:$0xff] %v2351_v24 }
 0x494   : > { %v10787_v61 = vpop.f32.mrf.mxu0 }
 0x495   : > { %2409 = vst [vmem:[#allocation3 + $0xf8] sm:$0xff] %v10787_v61 }
 0x496   : > { %v2361_v52 = vpop.f32.mrf.mxu0 }
 0x497   : > { %2408 = vst [vmem:[#allocation3 + $0xa0] sm:$0xff] %v2361_v52 }
 0x49c   : > { %v10790_v63 = vpop.f32.mrf.mxu0 }
 0x49d   : > { %2411 = vst [vmem:[#allocation3 + $0x98] sm:$0xff] %v10790_v63 }
 0x49e   : > { %v2371_v51 = vpop.f32.mrf.mxu0 }
 0x49f   : > { %2410 = vst [vmem:[#allocation3 + $0x20] sm:$0xff] %v2371_v51 }
 0x4a0 PF: > { %v2419_v60 = vld [vmem:[#allocation10 + $0x8] sm:$0xff]  ;;  %v2418_v54 = vld [vmem:[#allocation10] sm:$0xff]  ;;  %s10485_s20 = sshll.u32 %s11958_s25, 5  ;;  %vm2427_vm2 = vcmask 130048   ;;  %v2534_v4 = vld [vmem:[%s17771_s6 + $0x28] sm:$0xff]  ;;  %vm2544_vm3 = vcmask 523264   ;;  %v2652_v9 = vlaneseq }
 0x4a1   : > { %v2536_v40 = vld [vmem:[%s17771_s6 + $0x38] sm:$0xff]  ;;  %10791 = vmatprep.subr.mxu0 %v2419_v60  ;;  %v2535_v36 = vld [vmem:[%s17771_s6 + $0x30] sm:$0xff]  ;;  %s2413_s27 = scalar_lea.vmem [#allocation2], %s10485_s20  ;;  %v2533_v43 = vld [vmem:[%s17771_s6 + $0x20] sm:$0xff]  ;;  %v11868_v26 = vmov 0.0   ;;  %s10508_s17 = sshll.u32 %s11958_s25, 17 }
 0x4a2   : > { %10801 = vmatprep.subr.mxu1 %v2536_v40  ;;  %10792 = vmatpush3.msra.mxu0 %v2419_v60  ;;  %v2414_v58 = vld [vmem:[%s2413_s27] sm:$0xff]  ;;  %v2415_v45 = vld [vmem:[%s2413_s27 + $0x8] sm:$0xff]  ;;  %v2416_v0 = vld [vmem:[%s2413_s27 + $0x10] sm:$0xff]  ;;  %v12843_v23 = vshrl.u32 %v2652_v9, 7  ;;  %s17717_s30 = scalar_lea.hbm %s17777_s12, %s10508_s17  ;;  %s17725_s25 = scalar_lea.sflag [#allocation6], %s525_s1 }
 0x4a3   : > { %10802 = vmatpush3.msra.mxu1 %v2536_v40  ;;  %10793 = vmatprep.subr.mxu0 %v2418_v54  ;;  %v2417_v41 = vld [vmem:[%s2413_s27 + $0x18] sm:$0xff]  ;;  %v2531_v21 = vld [vmem:[%s17771_s6 + $0x10] sm:$0xff]  ;;  %v2530_v15 = vld [vmem:[%s17771_s6 + $0x8] sm:$0xff]  ;;  %s10245_s27 = sshll.u32 %s12116_s18, 4  ;;  %p17920_p10 = scmp.ne.s32.totalorder %s17831_s13, 0  ;;  %s17719_s27 = int_to_ptr.vmem [resolvable:$true] %s10245_s27 }
 0x4a4   : > { %10795 = vmatprep.mubr.msk.f32.mxu0 %vm2427_vm2, %v2414_v58  ;;  %10794 = vmatpush3.msra.mxu0 %v2418_v54  ;;  %v2532_v25 = vld [vmem:[%s17771_s6 + $0x18] sm:$0xff]  ;;  %v2529_v53 = vld [vmem:[%s17771_s6] sm:$0xff]  ;;  %v2647_v31 = vld [vmem:[#allocation15 + $0x8] sm:$0xff]  ;;  %v12846_v28 = vsub.s32 0, %v12843_v23  ;;  %v12849_v38 = vsub.s32 1, %v12843_v23  ;;  %s11763_s28 = scalar_lea.vmem %s17719_s27, 131072 }
 0x4a5   : > { %10803 = vmatprep.subr.mxu1 %v2535_v36  ;;  %10796 = vmatmul.mubr.msk.f32.vlgmr.msra.gmra.mxu0 %vm2427_vm2, %v2415_v45  ;;  %v2649_v11 = vld [vmem:[#allocation15 + $0x18] sm:$0xff]  ;;  %v2648_v33 = vld [vmem:[#allocation15 + $0x10] sm:$0xff]  ;;  %v2646_v37 = vld [vmem:[#allocation15] sm:$0xff]  ;;  %p11764_p12 = scmp.ne.s32.totalorder %s17719_s27, %s11763_s28  ;;  %s11869_s26 = smov [#allocation21]  }
 0x4a6   : > { %10804 = vmatpush3.msra.mxu1 %v2535_v36  ;;  %10798 = vmatprep.mubr.msk.f32.mxu0 %vm2427_vm2, %v2416_v0  ;;  %v10486_v5 = vld [vmem:[#allocation12] ss:$0 sm:$0xff]  ;;  %v10491_v35 = vld [vmem:[#allocation13] ss:$0 sm:$0xff]  ;;  %v2650_v34 = vld [vmem:[#allocation16] sm:$0x3] }
 0x4a7   : > { %10805 = vmatprep.subr.mxu1 %v2534_v4  ;;  %2702 = vmatprep.subr.mxu0 %v2649_v11  ;;  %v2655_v46 = vrot.slane %v2650_v34, %v12846_v28  ;;  %v2659_v6 = vrot.slane %v2650_v34, %v12849_v38  ;;  %p11765_p0 = pnand %p11764_p12, %p17920_p10  ;;  %s11767_s16 = sshll.u32 %s11869_s26, 4  ;;  %s11768_s16 = int_to_ptr.vmem [resolvable:$false] %s11767_s16 }
 0x4a8   : > { %10806 = vmatpush3.msra.mxu1 %v2534_v4  ;;  %2703 = vmatpush1.msra.mxu0 %v2648_v33  ;;  %s11769_s14 = scalar_lea.vmem %s11768_s16, 262144  ;;  %p11770_p6 = scmp.lt.s32.totalorder %s17719_s27, %s11768_s16 }
 0x4a9   : > { %10807 = vmatprep.subr.mxu1 %v2533_v43  ;;  %10799 = vmatmul.mubr.msk.f32.gmra.mxu0 %vm2427_vm2, %v2417_v41  ;;  %p11766_p5 = pneg %p11765_p0  ;;  %p11771_p11 = scmp.lt.s32.totalorder %s11769_s14, %s11763_s28 }
 0x4aa   : > { %10808 = vmatpush3.msra.mxu1 %v2533_v43  ;;  %2704 = vmatprep.subr.mxu0 %v2647_v31 }
 0x4ab   : > { %10809 = vmatprep.subr.mxu1 %v2532_v25  ;;  %2705 = vmatpush1.msra.mxu0 %v2646_v37  ;;  %p11772_p13 = por %p11771_p11, %p11770_p6 }
 0x4ac   : > { %10810 = vmatpush3.msra.mxu1 %v2532_v25  ;;  %2738 = vmatprep.mubr.f32.mxu0 %v11868_v26 }
 0x4ad   : > { %10811 = vmatprep.subr.mxu1 %v2531_v21  ;;  %p11773_p1 = pnand %p11772_p13, %p11766_p5 }
 0x4ae   : > { %10812 = vmatpush3.msra.mxu1 %v2531_v21 }
 0x4af   : > { %10813 = vmatprep.subr.mxu1 %v2530_v15 }
 0x4b0   : > { %10814 = vmatpush3.msra.mxu1 %v2530_v15 }
 0x4b1   : > { %10815 = vmatprep.subr.mxu1 %v2529_v53 }
 0x4b2   : > { %10816 = vmatpush3.msra.mxu1 %v2529_v53 }
 0x565   : > { %v10797_v1 = vpop.f32.mrf.mxu0 }
 0x566   : > { %v2512_v12 = vadd.f32 %v10797_v1, %v10486_v5 }
 0x567   : > { %v2506_v10 = vpop.f32.mrf.mxu0 }
 0x568   : > { %v2507_v62 = vadd.f32 %v10486_v5, %v2506_v10  ;;  %v2526_v48 = vmax.f32 %v2512_v12, 0.0 }
 0x569   : > { %v10800_v16 = vpop.f32.mrf.mxu0 }
 0x56a   : > { %v2525_v2 = vmax.f32 %v2507_v62, 0.0  ;;  %v2522_v47 = vadd.f32 %v10800_v16, %v10486_v5 }
 0x56b   : > { %v2516_v18 = vpop.f32.mrf.mxu0 }
 0x56c   : > { %10817 = vmatprep.mubr.msk.f32.mxu1 %vm2544_vm3, %v2525_v2  ;;  %v2517_v20 = vadd.f32 %v10486_v5, %v2516_v18  ;;  %v2528_v50 = vmax.f32 %v2522_v47, 0.0 }
 0x56d   : > { %10818 = vmatmul.mubr.msk.f32.vlgmr.msra.gmra.mxu1 %vm2544_vm3, %v2526_v48 }
 0x56e   : > { %v2527_v13 = vmax.f32 %v2517_v20, 0.0 }
 0x570   : > { %10820 = vmatprep.mubr.msk.f32.mxu1 %vm2544_vm3, %v2527_v13 }
 0x571   : > { %10821 = vmatmul.mubr.msk.f32.gmra.mxu1 %vm2544_vm3, %v2528_v50 }
 0x62d   : > { %v10819_v17 = vpop.f32.mrf.mxu1 }
 0x62e   : > { %v2629_v42 = vadd.f32 %v10819_v17, %v10491_v35 }
 0x62f   : > { %v2623_v19 = vpop.f32.mrf.mxu1 }
 0x630   : > { %v2624_v32 = vadd.f32 %v10491_v35, %v2623_v19  ;;  %v2643_v30 = vmax.f32 %v2629_v42, 0.0 }
 0x631   : > { %v10822_v56 = vpop.f32.mrf.mxu1 }
 0x632   : > { %v2642_v55 = vmax.f32 %v2624_v32, 0.0  ;;  %v2639_v29 = vadd.f32 %v10822_v56, %v10491_v35 }
 0x633   : > { %v2633_v22 = vpop.f32.mrf.mxu1 }
 0x634   : > { %10496 = vmatmul.mubr.msk.f32.vlgmr.msra.gmra.mxu0 %vm2427_vm2, %v2642_v55  ;;  %v2634_v27 = vadd.f32 %v10491_v35, %v2633_v22  ;;  %v2645_v3 = vmax.f32 %v2639_v29, 0.0 }
 0x635   : > { %2744 = vmatprep.mubr.f32.mxu0 %v11868_v26 }
 0x636   : > { %v2644_v44 = vmax.f32 %v2634_v27, 0.0 }
 0x638   : > { %10497 = vmatmul.mubr.msk.f32.gmra.mxu0 %vm2427_vm2, %v2643_v30 }
 0x639   : > { %2750 = vmatprep.mubr.f32.mxu0 %v11868_v26 }
 0x63c   : > { %10498 = vmatmul.mubr.msk.f32.gmra.mxu0 %vm2427_vm2, %v2644_v44 }
 0x63d   : > { %2756 = vmatprep.mubr.f32.mxu0 %v11868_v26 }
 0x640   : > { %10499 = vmatmul.mubr.msk.f32.gmra.mxu0 %vm2427_vm2, %v2645_v3 }
 0x6f4   : > { %v2740_v49 = vpop.f32.mrf.mxu0 }
 0x6f5   : > { %v2741_v14 = vadd.f32 %v2740_v49, %v2655_v46 }
 0x6f6   : > { %v2742_v59 = vpop.f32.mrf.mxu0 }
 0x6f7   : > { %v2743_v8 = vadd.f32 %v2742_v59, %v2659_v6  ;;  %v2763_v7 = vmax.f32 %v2741_v14, 0.0 }
 0x6f8   : > { %v2746_v39 = vpop.f32.mrf.mxu0 }
 0x6f9   : > { %v2764_v57 = vmax.f32 %v2743_v8, 0.0  ;;  %v2747_v24 = vadd.f32 %v2746_v39, %v2655_v46 }
 0x6fa   : > { %v2748_v61 = vpop.f32.mrf.mxu0 }
 0x6fb   : > { %v2749_v52 = vadd.f32 %v2748_v61, %v2659_v6  ;;  %v2771_v63 = vmax.f32 %v2763_v7, %v2764_v57  ;;  %v2765_v60 = vmax.f32 %v2747_v24, 0.0 }
 0x6fc   : > { %v2752_v51 = vpop.f32.mrf.mxu0 }
 0x6fd   : > { %v2766_v54 = vmax.f32 %v2749_v52, 0.0  ;;  %v2753_v40 = vadd.f32 %v2752_v51, %v2655_v46  ;;  %2772 = vmax.xlane.f32.xlu0 %v2771_v63  ;;  %v12872_v52 = vsub.s32 2, %v12843_v23  ;;  %v12875_v63 = vsub.s32 3, %v12843_v23 }
 0x6fe   : > { %v2754_v36 = vpop.f32.mrf.mxu0  ;;  %v12878_v51 = vsub.s32 4, %v12843_v23 }
 0x6ff   : > { %v2767_v58 = vmax.f32 %v2753_v40, 0.0  ;;  %v2755_v45 = vadd.f32 %v2754_v36, %v2659_v6  ;;  %v2774_v0 = vmax.f32 %v2765_v60, %v2766_v54  ;;  %v12887_v40 = vsub.s32 7, %v12843_v23 }
 0x700   : > { %v2758_v4 = vpop.f32.mrf.mxu0 }
 0x701   : > { %v2768_v43 = vmax.f32 %v2755_v45, 0.0  ;;  %v2759_v41 = vadd.f32 %v2758_v4, %v2655_v46  ;;  %2775 = vmax.xlane.f32.xlu0 %v2774_v0 }
 0x702   : > { %v2760_v25 = vpop.f32.mrf.mxu0 }
 0x703   : > { %v2769_v21 = vmax.f32 %v2759_v41, 0.0  ;;  %v2761_v15 = vadd.f32 %v2760_v25, %v2659_v6  ;;  %v2777_v53 = vmax.f32 %v2767_v58, %v2768_v43 }
 0x705   : > { %v2770_v11 = vmax.f32 %v2761_v15, 0.0  ;;  %2778 = vmax.xlane.f32.xlu1 %v2777_v53 }
 0x707   : > { %v2780_v33 = vmax.f32 %v2769_v21, %v2770_v11 }
 0x709   : > { %2781 = vmax.xlane.f32.xlu1 %v2780_v33 }
 0x786   : > { %v2773_v5 = vpop.xlane.xlu0 %2772 }
 0x787   : > { %v2783_v1 = vsub.f32 %v2763_v7, %v2773_v5  ;;  %v2784_v12 = vsub.f32 %v2764_v57, %v2773_v5 }
 0x789   : > { %v2791_v10 = vmul.f32 1.442695, %v2783_v1  ;;  %v2793_v62 = vmul.f32 1.442695, %v2784_v12 }
 0x78a   : > { %v2776_v16 = vpop.xlane.xlu0 %2775 }
 0x78b   : > { %11235 = vpow2.f32 %v2791_v10  ;;  %v2785_v2 = vsub.f32 %v2765_v60, %v2776_v16  ;;  %v2786_v47 = vsub.f32 %v2766_v54, %v2776_v16  ;;  %v12881_v60 = vsub.s32 5, %v12843_v23 }
 0x78c   : > { %11237 = vpow2.f32 %v2793_v62  ;;  %v12884_v54 = vsub.s32 6, %v12843_v23 }
 0x78d   : > { %v2795_v48 = vmul.f32 1.442695, %v2785_v2  ;;  %v2797_v18 = vmul.f32 1.442695, %v2786_v47 }
 0x78e   : > { %v2779_v20 = vpop.xlane.xlu1 %2778 }
 0x78f   : > { %11239 = vpow2.f32 %v2795_v48  ;;  %v2787_v50 = vsub.f32 %v2767_v58, %v2779_v20  ;;  %v2788_v13 = vsub.f32 %v2768_v43, %v2779_v20 }
 0x790   : > { %11241 = vpow2.f32 %v2797_v18 }
 0x791   : > { %v2799_v31 = vmul.f32 1.442695, %v2787_v50  ;;  %v2801_v37 = vmul.f32 1.442695, %v2788_v13 }
 0x792   : > { %v2782_v26 = vpop.xlane.xlu1 %2781 }
 0x793   : > { %11243 = vpow2.f32 %v2799_v31  ;;  %v2789_v17 = vsub.f32 %v2769_v21, %v2782_v26  ;;  %v2790_v35 = vsub.f32 %v2770_v11, %v2782_v26 }
 0x794   : > { %11245 = vpow2.f32 %v2801_v37 }
 0x795   : > { %v2803_v19 = vmul.f32 1.442695, %v2789_v17  ;;  %v2805_v32 = vmul.f32 1.442695, %v2790_v35 }
 0x797   : > { %11247 = vpow2.f32 %v2803_v19 }
 0x798   : > { %v11236_v56 = vpop.eup %11235  ;;  %11249 = vpow2.f32 %v2805_v32 }
 0x799   : > { %v12853_v42 = vpop.eup %11237 }
 0x79a   : > { %v2807_v55 = vadd.f32 %v12853_v42, %v11236_v56 }
 0x79c   : > { %v11240_v22 = vpop.eup %11239  ;;  %2808 = vadd.xlane.f32.xlu0 %v2807_v55 }
 0x79d   : > { %v11242_v27 = vpop.eup %11241 }
 0x79e   : > { %v2810_v30 = vadd.f32 %v11242_v27, %v11240_v22 }
 0x7a0   : > { %v11244_v29 = vpop.eup %11243  ;;  %2811 = vadd.xlane.f32.xlu1 %v2810_v30 }
 0x7a1   : > { %v11246_v44 = vpop.eup %11245 }
 0x7a2   : > { %v2813_v3 = vadd.f32 %v11246_v44, %v11244_v29 }
 0x7a4   : > { %v11248_v9 = vpop.eup %11247  ;;  %2814 = vadd.xlane.f32.xlu0 %v2813_v3 }
 0x7a5   : > { %v11250_v34 = vpop.eup %11249 }
 0x7a6   : > { %v2816_v46 = vadd.f32 %v11250_v34, %v11248_v9 }
 0x7a8   : > { %2817 = vadd.xlane.f32.xlu1 %v2816_v46 }
 0x825   : > { %v2809_v6 = vpop.xlane.xlu0 %2808 }
 0x826   : > { %11251 = vrcp.f32 %v2809_v6  ;;  %v13065_v6 = vld [vmem:[#allocation3] sm:$0xff] }
 0x829   : > { %v2812_v49 = vpop.xlane.xlu1 %2811 }
 0x82a   : > { %11253 = vrcp.f32 %v2812_v49  ;;  %v13067_v49 = vld [vmem:[#allocation3 + $0xb0] sm:$0xff] }
 0x82d   : > { %v2815_v14 = vpop.xlane.xlu0 %2814 }
 0x82e   : > { %11255 = vrcp.f32 %v2815_v14  ;;  %v13069_v14 = vld [vmem:[#allocation19] ss:$0 sm:$0xff] }
 0x831   : > { %v2818_v59 = vpop.xlane.xlu1 %2817 }
 0x832   : > { %11257 = vrcp.f32 %v2818_v59 }
 0x833   : > { %v12856_v8 = vpop.eup %11251 }
 0x834   : > { %v12859_v39 = vmul.f32 %v12856_v8, %v11236_v56 }
 0x836   : > { %v12863_v7 = vrot.slane %v12859_v39, %v12846_v28 }
 0x837   : > { %v11254_v57 = vpop.eup %11253 }
 0x838   : > { %2840 = vbcast.lane.b32.xlu1 %v12863_v7, 264  ;;  %2836 = vbcast.lane.b32.xlu0 %v12863_v7, 256  ;;  %v12867_v24 = vmul.f32 %v11254_v57, %v11240_v22  ;;  %v12869_v61 = vmul.f32 %v11254_v57, %v11242_v27 }
 0x83a   : > { %v12892_v58 = vrot.slane %v12867_v24, %v12872_v52  ;;  %v12896_v45 = vrot.slane %v12869_v61, %v12872_v52  ;;  %v12900_v0 = vrot.slane %v12867_v24, %v12875_v63  ;;  %v12904_v4 = vrot.slane %v12869_v61, %v12875_v63 }
 0x83b   : > { %v11256_v36 = vpop.eup %11255  ;;  %v12909_v23 = vrot.slane %v12867_v24, %v12878_v51  ;;  %v12913_v43 = vrot.slane %v12869_v61, %v12878_v51  ;;  %v12917_v41 = vrot.slane %v12867_v24, %v12881_v60  ;;  %v12921_v25 = vrot.slane %v12869_v61, %v12881_v60 }
 0x83c   : > { %2844 = vbcast.lane.b32.xlu1 %v12863_v7, 272  ;;  %2852 = vbcast.lane.b32.xlu0 %v12863_v7, 288  ;;  %v12925_v15 = vrot.slane %v12867_v24, %v12884_v54  ;;  %v12929_v53 = vrot.slane %v12869_v61, %v12884_v54  ;;  %v12933_v11 = vrot.slane %v12867_v24, %v12887_v40 }
 0x83d   : > { %v12937_v33 = vrot.slane %v12869_v61, %v12887_v40  ;;  %v12939_v5 = vmul.f32 %v11256_v36, %v11244_v29  ;;  %v12941_v1 = vmul.f32 %v11256_v36, %v11246_v44  ;;  %v13073_v36 = vld [vmem:[#allocation3 + $0xd8] sm:$0xff] }
 0x83e   : > { %17856 = vst [vmem:[#allocation33_spill] sm:$0xff] %v12925_v15  ;;  %17857 = vst [vmem:[#allocation34_spill] sm:$0xff] %v12929_v53 }
 0x83f   : > { %v11258_v21 = vpop.eup %11257  ;;  %17858 = vst [vmem:[#allocation35_spill] sm:$0xff] %v12933_v11  ;;  %17859 = vst [vmem:[#allocation36_spill] sm:$0xff] %v12937_v33  ;;  %v12951_v62 = vrot.slane %v12939_v5, %v12872_v52  ;;  %v12955_v16 = vrot.slane %v12941_v1, %v12872_v52  ;;  %v12959_v2 = vrot.slane %v12939_v5, %v12875_v63 }
 0x840   : > { %17860 = vst [vmem:[#allocation37_spill] sm:$0xff] %v12939_v5  ;;  %17861 = vst [vmem:[#allocation38_spill] sm:$0xff] %v12941_v1  ;;  %2848 = vbcast.lane.b32.xlu1 %v12863_v7, 280  ;;  %2860 = vbcast.lane.b32.xlu0 %v12863_v7, 304  ;;  %v12945_v12 = vmul.f32 %v11258_v21, %v11248_v9  ;;  %v12947_v10 = vmul.f32 %v11258_v21, %v11250_v34 }
 0x841   : > { %17864 = vst [vmem:[#allocation41_spill] sm:$0xff] %v12951_v62  ;;  %17865 = vst [vmem:[#allocation42_spill] sm:$0xff] %v12955_v16  ;;  %v12963_v47 = vrot.slane %v12941_v1, %v12875_v63  ;;  %v12967_v48 = vrot.slane %v12939_v5, %v12878_v51  ;;  %v12971_v18 = vrot.slane %v12941_v1, %v12878_v51  ;;  %v13224_v16 = vld [vmem:[#allocation3 + $0xa0] sm:$0xff]  ;;  %v13232_v62 = vld [vmem:[#allocation3 + $0x28] sm:$0xff] }
 0x842   : > { %17862 = vst [vmem:[#allocation39_spill] sm:$0xff] %v12945_v12  ;;  %17863 = vst [vmem:[#allocation40_spill] sm:$0xff] %v12947_v10  ;;  %v12975_v20 = vrot.slane %v12939_v5, %v12881_v60  ;;  %v12979_v50 = vrot.slane %v12941_v1, %v12881_v60  ;;  %v12984_v13 = vrot.slane %v12939_v5, %v12884_v54 }
 0x843   : > { %17866 = vst [vmem:[#allocation43_spill] sm:$0xff] %v12959_v2  ;;  %17867 = vst [vmem:[#allocation44_spill] sm:$0xff] %v12963_v47  ;;  %v12988_v31 = vrot.slane %v12941_v1, %v12884_v54  ;;  %v12992_v37 = vrot.slane %v12939_v5, %v12887_v40  ;;  %v12996_v26 = vrot.slane %v12941_v1, %v12887_v40  ;;  %v13208_v47 = vld [vmem:[#allocation3 + $0xc0] sm:$0xff]  ;;  %v13212_v2 = vld [vmem:[#allocation3 + $0x10] sm:$0xff] }
 0x844   : > { %17868 = vst [vmem:[#allocation45_spill] sm:$0xff] %v12967_v48  ;;  %17869 = vst [vmem:[#allocation46_spill] sm:$0xff] %v12971_v18  ;;  %2856 = vbcast.lane.b32.xlu1 %v12863_v7, 296  ;;  %2868 = vbcast.lane.b32.xlu0 %v12863_v7, 320  ;;  %v13001_v17 = vrot.slane %v12945_v12, %v12872_v52  ;;  %v13005_v35 = vrot.slane %v12947_v10, %v12872_v52  ;;  %v13196_v18 = vld [vmem:[#allocation3 + $0x90] sm:$0xff]  ;;  %v13236_v1 = vld [vmem:[#allocation3 + $0x20] sm:$0xff] }
 0x845   : > { %17870 = vst [vmem:[#allocation47_spill] sm:$0xff] %v12975_v20  ;;  %17871 = vst [vmem:[#allocation48_spill] sm:$0xff] %v12979_v50  ;;  %v13009_v19 = vrot.slane %v12945_v12, %v12875_v63  ;;  %v13013_v32 = vrot.slane %v12947_v10, %v12875_v63  ;;  %v13017_v56 = vrot.slane %v12945_v12, %v12878_v51  ;;  %v13180_v50 = vld [vmem:[#allocation3 + $0xc8] sm:$0xff]  ;;  %v13184_v20 = vld [vmem:[#allocation3 + $0x70] sm:$0xff] }
 0x846   : > { %17872 = vst [vmem:[#allocation49_spill] sm:$0xff] %v12984_v13  ;;  %17873 = vst [vmem:[#allocation50_spill] sm:$0xff] %v12988_v31  ;;  %v13021_v55 = vrot.slane %v12947_v10, %v12878_v51  ;;  %v13025_v22 = vrot.slane %v12945_v12, %v12881_v60  ;;  %v13029_v27 = vrot.slane %v12947_v10, %v12881_v60  ;;  %v13168_v31 = vld [vmem:[#allocation3 + $0x58] sm:$0xff]  ;;  %v13172_v13 = vld [vmem:[#allocation3 + $0xe0] sm:$0xff] }
 0x847   : > { %17874 = vst [vmem:[#allocation51_spill] sm:$0xff] %v12992_v37  ;;  %17875 = vst [vmem:[#allocation52_spill] sm:$0xff] %v12996_v26  ;;  %v13034_v30 = vrot.slane %v12945_v12, %v12884_v54  ;;  %v13038_v29 = vrot.slane %v12947_v10, %v12884_v54  ;;  %v13042_v44 = vrot.slane %v12945_v12, %v12887_v40  ;;  %v13148_v12 = vld [vmem:[#allocation3 + $0x38] sm:$0xff]  ;;  %v13160_v37 = vld [vmem:[#allocation3 + $0x40] sm:$0xff] }
 0x848   : > { %17876 = vst [vmem:[#allocation53_spill] sm:$0xff] %v13001_v17  ;;  %17877 = vst [vmem:[#allocation54_spill] sm:$0xff] %v13005_v35  ;;  %2864 = vbcast.lane.b32.xlu1 %v12863_v7, 312  ;;  %v13046_v3 = vrot.slane %v12947_v10, %v12887_v40  ;;  %2876 = vbcast.lane.b32.xlu0 %v12863_v7, 336  ;;  %v13053_v9 = vmul.f32 %v12856_v8, %v12853_v42  ;;  %v13132_v35 = vld [vmem:[#allocation3 + $0xb8] sm:$0xff]  ;;  %v13136_v17 = vld [vmem:[#allocation3 + $0x8] sm:$0xff] }
 0x849   : > { %17878 = vst [vmem:[#allocation55_spill] sm:$0xff] %v13009_v19  ;;  %17879 = vst [vmem:[#allocation56_spill] sm:$0xff] %v13013_v32  ;;  %v2968_v42 = vrot.slane %v12859_v39, %v12849_v38  ;;  %v13112_v32 = vld [vmem:[#allocation3 + $0xe8] sm:$0xff]  ;;  %v13144_v10 = vld [vmem:[#allocation3 + $0xf0] sm:$0xff] }
 0x84a   : > { %17880 = vst [vmem:[#allocation57_spill] sm:$0xff] %v13017_v56  ;;  %17881 = vst [vmem:[#allocation58_spill] sm:$0xff] %v13021_v55  ;;  %v2901_v34 = vrot.slane %v13053_v9, %v12846_v28  ;;  %v3035_v46 = vrot.slane %v13053_v9, %v12849_v38  ;;  %v13156_v26 = vld [vmem:[#allocation3 + $0x78] sm:$0xff] }
 0x84b   : > { %17882 = vst [vmem:[#allocation59_spill] sm:$0xff] %v13025_v22  ;;  %17883 = vst [vmem:[#allocation60_spill] sm:$0xff] %v13029_v27  ;;  %v13244_v5 = vld [vmem:[#allocation3 + $0xf8] sm:$0xff] }
 0x84c   : > { %17884 = vst [vmem:[#allocation61_spill] sm:$0xff] %v13034_v30  ;;  %17885 = vst [vmem:[#allocation62_spill] sm:$0xff] %v13038_v29  ;;  %2872 = vbcast.lane.b32.xlu1 %v12863_v7, 328  ;;  %2884 = vbcast.lane.b32.xlu0 %v12863_v7, 352  ;;  %v13083_v29 = vld [vmem:[#allocation3 + $0x18] sm:$0xff]  ;;  %v13086_v30 = vld [vmem:[#allocation3 + $0x30] sm:$0xff] }
 0x84d   : > { %17886 = vst [vmem:[#allocation63_spill] sm:$0xff] %v13042_v44  ;;  %17887 = vst [vmem:[#allocation64_spill] sm:$0xff] %v13046_v3 }
 0x850   : > { %2880 = vbcast.lane.b32.xlu1 %v12863_v7, 344  ;;  %2892 = vbcast.lane.b32.xlu0 %v12863_v7, 368 }
 0x854   : > { %2888 = vbcast.lane.b32.xlu1 %v12863_v7, 360  ;;  %2903 = vbcast.lane.b32.xlu0 %v2901_v34, 256 }
 0x858   : > { %2896 = vbcast.lane.b32.xlu1 %v12863_v7, 376  ;;  %2911 = vbcast.lane.b32.xlu0 %v2901_v34, 272 }
 0x85c   : > { %2907 = vbcast.lane.b32.xlu1 %v2901_v34, 264  ;;  %2919 = vbcast.lane.b32.xlu0 %v2901_v34, 288 }
 0x860   : > { %2915 = vbcast.lane.b32.xlu1 %v2901_v34, 280  ;;  %2927 = vbcast.lane.b32.xlu0 %v2901_v34, 304 }
 0x864   : > { %2923 = vbcast.lane.b32.xlu1 %v2901_v34, 296  ;;  %2935 = vbcast.lane.b32.xlu0 %v2901_v34, 320 }
 0x868   : > { %2931 = vbcast.lane.b32.xlu1 %v2901_v34, 312  ;;  %2943 = vbcast.lane.b32.xlu0 %v2901_v34, 336 }
 0x86c   : > { %2939 = vbcast.lane.b32.xlu1 %v2901_v34, 328  ;;  %2951 = vbcast.lane.b32.xlu0 %v2901_v34, 352 }
 0x870   : > { %2947 = vbcast.lane.b32.xlu1 %v2901_v34, 344  ;;  %2959 = vbcast.lane.b32.xlu0 %v2901_v34, 368 }
 0x874   : > { %2955 = vbcast.lane.b32.xlu1 %v2901_v34, 360  ;;  %2970 = vbcast.lane.b32.xlu0 %v2968_v42, 256 }
 0x878   : > { %2963 = vbcast.lane.b32.xlu1 %v2901_v34, 376  ;;  %2978 = vbcast.lane.b32.xlu0 %v2968_v42, 272  ;;  %v13076_v34 = vld [vmem:[#allocation3 + $0x50] sm:$0xff] }
 0x87c   : > { %2974 = vbcast.lane.b32.xlu1 %v2968_v42, 264  ;;  %2986 = vbcast.lane.b32.xlu0 %v2968_v42, 288 }
 0x880   : > { %2982 = vbcast.lane.b32.xlu1 %v2968_v42, 280  ;;  %2994 = vbcast.lane.b32.xlu0 %v2968_v42, 304 }
 0x884   : > { %2990 = vbcast.lane.b32.xlu1 %v2968_v42, 296  ;;  %3002 = vbcast.lane.b32.xlu0 %v2968_v42, 320 }
 0x888   : > { %2998 = vbcast.lane.b32.xlu1 %v2968_v42, 312  ;;  %3010 = vbcast.lane.b32.xlu0 %v2968_v42, 336 }
 0x88c   : > { %3006 = vbcast.lane.b32.xlu1 %v2968_v42, 328  ;;  %3018 = vbcast.lane.b32.xlu0 %v2968_v42, 352 }
 0x890   : > { %3014 = vbcast.lane.b32.xlu1 %v2968_v42, 344  ;;  %3026 = vbcast.lane.b32.xlu0 %v2968_v42, 368 }
 0x894   : > { %3022 = vbcast.lane.b32.xlu1 %v2968_v42, 360  ;;  %3037 = vbcast.lane.b32.xlu0 %v3035_v46, 256 }
 0x898   : > { %3030 = vbcast.lane.b32.xlu1 %v2968_v42, 376  ;;  %3045 = vbcast.lane.b32.xlu0 %v3035_v46, 272 }
 0x89c   : > { %3041 = vbcast.lane.b32.xlu1 %v3035_v46, 264  ;;  %3053 = vbcast.lane.b32.xlu0 %v3035_v46, 288 }
 0x8a0   : > { %3049 = vbcast.lane.b32.xlu1 %v3035_v46, 280  ;;  %3061 = vbcast.lane.b32.xlu0 %v3035_v46, 304 }
 0x8a4   : > { %3057 = vbcast.lane.b32.xlu1 %v3035_v46, 296  ;;  %3069 = vbcast.lane.b32.xlu0 %v3035_v46, 320 }
 0x8a8   : > { %3065 = vbcast.lane.b32.xlu1 %v3035_v46, 312  ;;  %3077 = vbcast.lane.b32.xlu0 %v3035_v46, 336 }
 0x8aa   : > { %v2841_v59 = vpop.permute.xlu1 %2840  ;;  %v2837_v7 = vpop.permute.xlu0 %2836 }
 0x8ab   : > { %v7152_v8 = vmul.f32 %v13065_v6, %v2841_v59  ;;  %v7151_v57 = vmul.f32 %v13067_v49, %v2837_v7 }
 0x8ac   : > { %3073 = vbcast.lane.b32.xlu1 %v3035_v46, 328  ;;  %3085 = vbcast.lane.b32.xlu0 %v3035_v46, 352 }
 0x8ad   : > { %v8183_v21 = vadd.f32 %v13069_v14, %v7152_v8  ;;  %v8182_v42 = vadd.f32 %v13069_v14, %v7151_v57 }
 0x8ae   : > { %v2845_v3 = vpop.permute.xlu1 %2844  ;;  %v2853_v59 = vpop.permute.xlu0 %2852 }
 0x8af   : > { %9207 = vst [vmem:[%s12116_s18 + $0x8] sm:$0xff] %v8183_v21  ;;  %v7153_v44 = vmul.f32 %v13073_v36, %v2845_v3  ;;  %9206 = vst [vmem:[%s12116_s18] sm:$0xff] %v8182_v42  ;;  %v7155_v7 = vmul.f32 %v13076_v34, %v2853_v59  ;;  %v13091_v21 = vrot.slane %v12859_v39, %v12872_v52 }
 0x8b0   : > { %3081 = vbcast.lane.b32.xlu1 %v3035_v46, 344  ;;  %3093 = vbcast.lane.b32.xlu0 %v3035_v46, 368 }
 0x8b1   : > { %v8184_v8 = vadd.f32 %v13069_v14, %v7153_v44  ;;  %v8186_v57 = vadd.f32 %v13069_v14, %v7155_v7  ;;  %v13097_v44 = vld [vmem:[#allocation3 + $0x68] sm:$0xff]  ;;  %v13101_v7 = vld [vmem:[#allocation3 + $0x80] sm:$0xff] }
 0x8b2   : > { %v2849_v27 = vpop.permute.xlu1 %2848  ;;  %v2861_v42 = vpop.permute.xlu0 %2860 }
 0x8b3   : > { %9208 = vst [vmem:[%s12116_s18 + $0x10] sm:$0xff] %v8184_v8  ;;  %v7154_v3 = vmul.f32 %v13083_v29, %v2849_v27  ;;  %9210 = vst [vmem:[%s12116_s18 + $0x20] sm:$0xff] %v8186_v57  ;;  %v7157_v59 = vmul.f32 %v13086_v30, %v2861_v42  ;;  %v13108_v42 = vld [vmem:[#allocation3 + $0x48] sm:$0xff] }
 0x8b4   : > { %3089 = vbcast.lane.b32.xlu1 %v3035_v46, 360  ;;  %3104 = vbcast.lane.b32.xlu0 %v13091_v21, 256 }
 0x8b5   : > { %v8185_v22 = vadd.f32 %v13069_v14, %v7154_v3  ;;  %v8188_v55 = vadd.f32 %v13069_v14, %v7157_v59 }
 0x8b6   : > { %v2857_v56 = vpop.permute.xlu1 %2856  ;;  %v2869_v8 = vpop.permute.xlu0 %2868 }
 0x8b7   : > { %9209 = vst [vmem:[%s12116_s18 + $0x18] sm:$0xff] %v8185_v22  ;;  %v7156_v27 = vmul.f32 %v13097_v44, %v2857_v56  ;;  %9212 = vst [vmem:[%s12116_s18 + $0x30] sm:$0xff] %v8188_v55  ;;  %v7159_v57 = vmul.f32 %v13101_v7, %v2869_v8  ;;  %v13124_v8 = vld [vmem:[#allocation3 + $0x60] sm:$0xff] }
 0x8b8   : > { %3097 = vbcast.lane.b32.xlu1 %v3035_v46, 376  ;;  %3112 = vbcast.lane.b32.xlu0 %v13091_v21, 272  ;;  %v13120_v46 = vld [vmem:[#allocation3 + $0x88] sm:$0xff] }
 0x8b9   : > { %v8187_v3 = vadd.f32 %v13069_v14, %v7156_v27  ;;  %v8190_v59 = vadd.f32 %v13069_v14, %v7159_v57 }
 0x8ba   : > { %v2865_v19 = vpop.permute.xlu1 %2864  ;;  %v2877_v55 = vpop.permute.xlu0 %2876 }
 0x8bb   : > { %9211 = vst [vmem:[%s12116_s18 + $0x28] sm:$0xff] %v8187_v3  ;;  %v7158_v56 = vmul.f32 %v13108_v42, %v2865_v19  ;;  %9214 = vst [vmem:[%s12116_s18 + $0x40] sm:$0xff] %v8190_v59  ;;  %v7161_v22 = vmul.f32 %v13112_v32, %v2877_v55 }
 0x8bc   : > { %3108 = vbcast.lane.b32.xlu1 %v13091_v21, 264  ;;  %3120 = vbcast.lane.b32.xlu0 %v13091_v21, 288 }
 0x8bd   : > { %v8189_v27 = vadd.f32 %v13069_v14, %v7158_v56  ;;  %v8192_v57 = vadd.f32 %v13069_v14, %v7161_v22 }
 0x8be   : > { %v2873_v3 = vpop.permute.xlu1 %2872  ;;  %v2885_v59 = vpop.permute.xlu0 %2884 }
 0x8bf   : > { %9213 = vst [vmem:[%s12116_s18 + $0x38] sm:$0xff] %v8189_v27  ;;  %v7160_v19 = vmul.f32 %v13120_v46, %v2873_v3  ;;  %9216 = vst [vmem:[%s12116_s18 + $0x50] sm:$0xff] %v8192_v57  ;;  %v7163_v55 = vmul.f32 %v13124_v8, %v2885_v59 }
 0x8c0   : > { %3116 = vbcast.lane.b32.xlu1 %v13091_v21, 280  ;;  %3128 = vbcast.lane.b32.xlu0 %v13091_v21, 304 }
 0x8c1   : > { %v8191_v56 = vadd.f32 %v13069_v14, %v7160_v19  ;;  %v8194_v22 = vadd.f32 %v13069_v14, %v7163_v55 }
 0x8c2   : > { %v2881_v27 = vpop.permute.xlu1 %2880  ;;  %v2893_v3 = vpop.permute.xlu0 %2892 }
 0x8c3   : > { %9215 = vst [vmem:[%s12116_s18 + $0x48] sm:$0xff] %v8191_v56  ;;  %v7162_v57 = vmul.f32 %v13132_v35, %v2881_v27  ;;  %9218 = vst [vmem:[%s12116_s18 + $0x60] sm:$0xff] %v8194_v22  ;;  %v7165_v59 = vmul.f32 %v13136_v17, %v2893_v3 }
 0x8c4   : > { %3124 = vbcast.lane.b32.xlu1 %v13091_v21, 296  ;;  %3136 = vbcast.lane.b32.xlu0 %v13091_v21, 320 }
 0x8c5   : > { %v8193_v19 = vadd.f32 %v13069_v14, %v7162_v57  ;;  %v8196_v55 = vadd.f32 %v13069_v14, %v7165_v59 }
 0x8c6   : > { %v2889_v56 = vpop.permute.xlu1 %2888  ;;  %v2904_v27 = vpop.permute.xlu0 %2903 }
 0x8c7   : > { %9217 = vst [vmem:[%s12116_s18 + $0x58] sm:$0xff] %v8193_v19  ;;  %v7164_v22 = vmul.f32 %v13144_v10, %v2889_v56  ;;  %9220 = vst [vmem:[%s12116_s18 + $0x70] sm:$0xff] %v8196_v55  ;;  %v7167_v3 = vmul.f32 %v13148_v12, %v2904_v27 }
 0x8c8   : > { %3132 = vbcast.lane.b32.xlu1 %v13091_v21, 312  ;;  %3144 = vbcast.lane.b32.xlu0 %v13091_v21, 336 }
 0x8c9   : > { %v8195_v57 = vadd.f32 %v13069_v14, %v7164_v22  ;;  %v8198_v59 = vadd.f32 %v13069_v14, %v7167_v3 }
 0x8ca   : > { %v2897_v19 = vpop.permute.xlu1 %2896  ;;  %v2912_v56 = vpop.permute.xlu0 %2911 }
 0x8cb   : > { %9219 = vst [vmem:[%s12116_s18 + $0x68] sm:$0xff] %v8195_v57  ;;  %v7166_v55 = vmul.f32 %v13156_v26, %v2897_v19  ;;  %9222 = vst [vmem:[%s12116_s18 + $0x80] sm:$0xff] %v8198_v59  ;;  %v7169_v27 = vmul.f32 %v13160_v37, %v2912_v56 }
 0x8cc   : > { %3140 = vbcast.lane.b32.xlu1 %v13091_v21, 328  ;;  %3152 = vbcast.lane.b32.xlu0 %v13091_v21, 352 }
 0x8cd   : > { %v8197_v22 = vadd.f32 %v13069_v14, %v7166_v55  ;;  %v8200_v3 = vadd.f32 %v13069_v14, %v7169_v27 }
 0x8ce   : > { %v2908_v57 = vpop.permute.xlu1 %2907  ;;  %v2920_v19 = vpop.permute.xlu0 %2919 }
 0x8cf   : > { %9221 = vst [vmem:[%s12116_s18 + $0x78] sm:$0xff] %v8197_v22  ;;  %v7168_v59 = vmul.f32 %v13168_v31, %v2908_v57  ;;  %9224 = vst [vmem:[%s12116_s18 + $0x90] sm:$0xff] %v8200_v3  ;;  %v7171_v56 = vmul.f32 %v13172_v13, %v2920_v19  ;;  %v13189_v57 = vrot.slane %v13053_v9, %v12872_v52 }
 0x8d0   : > { %3148 = vbcast.lane.b32.xlu1 %v13091_v21, 344  ;;  %3160 = vbcast.lane.b32.xlu0 %v13091_v21, 368 }
 0x8d1   : > { %v8199_v55 = vadd.f32 %v13069_v14, %v7168_v59  ;;  %v8202_v27 = vadd.f32 %v13069_v14, %v7171_v56  ;;  %v13200_v56 = vld [vmem:[#allocation3 + $0xa8] sm:$0xff] }
 0x8d2   : > { %v2916_v22 = vpop.permute.xlu1 %2915  ;;  %v2928_v19 = vpop.permute.xlu0 %2927 }
 0x8d3   : > { %9223 = vst [vmem:[%s12116_s18 + $0x88] sm:$0xff] %v8199_v55  ;;  %v7170_v3 = vmul.f32 %v13180_v50, %v2916_v22  ;;  %9226 = vst [vmem:[%s12116_s18 + $0xa0] sm:$0xff] %v8202_v27  ;;  %v7173_v59 = vmul.f32 %v13184_v20, %v2928_v19 }
 0x8d4   : > { %3156 = vbcast.lane.b32.xlu1 %v13091_v21, 360  ;;  %3171 = vbcast.lane.b32.xlu0 %v13189_v57, 256 }
 0x8d5   : > { %v8201_v48 = vadd.f32 %v13069_v14, %v7170_v3  ;;  %v8204_v52 = vadd.f32 %v13069_v14, %v7173_v59 }
 0x8d6   : > { %v2924_v55 = vpop.permute.xlu1 %2923  ;;  %v2936_v22 = vpop.permute.xlu0 %2935 }
 0x8d7   : > { %9225 = vst [vmem:[%s12116_s18 + $0x98] sm:$0xff] %v8201_v48  ;;  %v7172_v27 = vmul.f32 %v13196_v18, %v2924_v55  ;;  %9228 = vst [vmem:[%s12116_s18 + $0xb0] sm:$0xff] %v8204_v52  ;;  %v7175_v19 = vmul.f32 %v13200_v56, %v2936_v22  ;;  %v13220_v22 = vld [vmem:[#allocation3 + $0xd0] sm:$0xff] }
 0x8d8   : > { %3164 = vbcast.lane.b32.xlu1 %v13091_v21, 376  ;;  %3179 = vbcast.lane.b32.xlu0 %v13189_v57, 272 }
 0x8d9   : > { %v8203_v3 = vadd.f32 %v13069_v14, %v7172_v27  ;;  %v8206_v59 = vadd.f32 %v13069_v14, %v7175_v19 }
 0x8da   : > { %v2932_v48 = vpop.permute.xlu1 %2931  ;;  %v2944_v55 = vpop.permute.xlu0 %2943 }
 0x8db   : > { %9227 = vst [vmem:[%s12116_s18 + $0xa8] sm:$0xff] %v8203_v3  ;;  %v7174_v52 = vmul.f32 %v13208_v47, %v2932_v48  ;;  %9230 = vst [vmem:[%s12116_s18 + $0xc0] sm:$0xff] %v8206_v59  ;;  %v7177_v21 = vmul.f32 %v13212_v2, %v2944_v55 }
 0x8dc   : > { %3175 = vbcast.lane.b32.xlu1 %v13189_v57, 264  ;;  %3187 = vbcast.lane.b32.xlu0 %v13189_v57, 288 }
 0x8dd   : > { %v8205_v27 = vadd.f32 %v13069_v14, %v7174_v52  ;;  %v8208_v19 = vadd.f32 %v13069_v14, %v7177_v21 }
 0x8de   : > { %v2940_v3 = vpop.permute.xlu1 %2939  ;;  %v2952_v48 = vpop.permute.xlu0 %2951 }
 0x8df   : > { %9229 = vst [vmem:[%s12116_s18 + $0xb8] sm:$0xff] %v8205_v27  ;;  %v7176_v59 = vmul.f32 %v13220_v22, %v2940_v3  ;;  %9232 = vst [vmem:[%s12116_s18 + $0xd0] sm:$0xff] %v8208_v19  ;;  %v7179_v55 = vmul.f32 %v13224_v16, %v2952_v48 }
 0x8e0   : > { %3183 = vbcast.lane.b32.xlu1 %v13189_v57, 280  ;;  %3195 = vbcast.lane.b32.xlu0 %v13189_v57, 304 }
 0x8e1   : > { %v8207_v52 = vadd.f32 %v13069_v14, %v7176_v59  ;;  %v8210_v21 = vadd.f32 %v13069_v14, %v7179_v55 }
 0x8e2   : > { %v2948_v27 = vpop.permute.xlu1 %2947  ;;  %v2960_v3 = vpop.permute.xlu0 %2959 }
 0x8e3   : > { %9231 = vst [vmem:[%s12116_s18 + $0xc8] sm:$0xff] %v8207_v52  ;;  %v7178_v19 = vmul.f32 %v13232_v62, %v2948_v27  ;;  %9234 = vst [vmem:[%s12116_s18 + $0xe0] sm:$0xff] %v8210_v21  ;;  %v7181_v48 = vmul.f32 %v13236_v1, %v2960_v3  ;;  %v13254_v3 = vld [vmem:[#allocation3 + $0x98] sm:$0xff] }
 0x8e4   : > { %3191 = vbcast.lane.b32.xlu1 %v13189_v57, 296  ;;  %3203 = vbcast.lane.b32.xlu0 %v13189_v57, 320 }
 0x8e5   : > { %v8209_v59 = vadd.f32 %v13069_v14, %v7178_v19  ;;  %v8212_v55 = vadd.f32 %v13069_v14, %v7181_v48 }
 0x8e6   : > { %v2956_v33 = vpop.permute.xlu1 %2955  ;;  %v2971_v27 = vpop.permute.xlu0 %2970 }
 0x8e7   : > { %9233 = vst [vmem:[%s12116_s18 + $0xd8] sm:$0xff] %v8209_v59  ;;  %v7180_v52 = vmul.f32 %v13244_v5, %v2956_v33  ;;  %9236 = vst [vmem:[%s12116_s18 + $0xf0] sm:$0xff] %v8212_v55  ;;  %v7183_v21 = vmul.f32 %v13067_v49, %v2971_v27 }
 0x8e8   : > { %3199 = vbcast.lane.b32.xlu1 %v13189_v57, 312  ;;  %3211 = vbcast.lane.b32.xlu0 %v13189_v57, 336 }
 0x8e9   : > { %v8211_v19 = vadd.f32 %v13069_v14, %v7180_v52  ;;  %v8214_v48 = vadd.f32 %v13069_v14, %v7183_v21 }
 0x8ea   : > { %v2964_v11 = vpop.permute.xlu1 %2963  ;;  %v2979_v59 = vpop.permute.xlu0 %2978 }
 0x8eb   : > { %9235 = vst [vmem:[%s12116_s18 + $0xe8] sm:$0xff] %v8211_v19  ;;  %v7182_v33 = vmul.f32 %v13254_v3, %v2964_v11  ;;  %9238 = vst [vmem:[%s12116_s18 + $0x100] sm:$0xff] %v8214_v48  ;;  %v7185_v55 = vmul.f32 %v13073_v36, %v2979_v59 }
 0x8ec   : > { %3207 = vbcast.lane.b32.xlu1 %v13189_v57, 328  ;;  %3219 = vbcast.lane.b32.xlu0 %v13189_v57, 352 }
 0x8ed   : > { %v8213_v27 = vadd.f32 %v13069_v14, %v7182_v33  ;;  %v8216_v52 = vadd.f32 %v13069_v14, %v7185_v55  ;;  %v13277_v55 = vrot.slane %v12859_v39, %v12875_v63 }
 0x8ee   : > { %v2975_v53 = vpop.permute.xlu1 %2974  ;;  %v2987_v19 = vpop.permute.xlu0 %2986 }
 0x8ef   : > { %9237 = vst [vmem:[%s12116_s18 + $0xf8] sm:$0xff] %v8213_v27  ;;  %v7184_v21 = vmul.f32 %v13065_v6, %v2975_v53  ;;  %9240 = vst [vmem:[%s12116_s18 + $0x110] sm:$0xff] %v8216_v52  ;;  %v7187_v11 = vmul.f32 %v13076_v34, %v2987_v19 }
 0x8f0   : > { %3215 = vbcast.lane.b32.xlu1 %v13189_v57, 344  ;;  %3227 = vbcast.lane.b32.xlu0 %v13189_v57, 368 }
 0x8f1   : > { %v8215_v48 = vadd.f32 %v13069_v14, %v7184_v21  ;;  %v8218_v33 = vadd.f32 %v13069_v14, %v7187_v11 }
 0x8f2   : > { %v2983_v59 = vpop.permute.xlu1 %2982  ;;  %v2995_v27 = vpop.permute.xlu0 %2994 }
 0x8f3   : > { %9239 = vst [vmem:[%s12116_s18 + $0x108] sm:$0xff] %v8215_v48  ;;  %v7186_v53 = vmul.f32 %v13083_v29, %v2983_v59  ;;  %9242 = vst [vmem:[%s12116_s18 + $0x120] sm:$0xff] %v8218_v33  ;;  %v7189_v52 = vmul.f32 %v13086_v30, %v2995_v27 }
 0x8f4   : > { %3223 = vbcast.lane.b32.xlu1 %v13189_v57, 360  ;;  %3238 = vbcast.lane.b32.xlu0 %v13277_v55, 256 }
 0x8f5   : > { %v8217_v21 = vadd.f32 %v13069_v14, %v7186_v53  ;;  %v8220_v19 = vadd.f32 %v13069_v14, %v7189_v52 }
 0x8f6   : > { %v2991_v11 = vpop.permute.xlu1 %2990  ;;  %v3003_v15 = vpop.permute.xlu0 %3002 }
 0x8f7   : > { %9241 = vst [vmem:[%s12116_s18 + $0x118] sm:$0xff] %v8217_v21  ;;  %v7188_v48 = vmul.f32 %v13097_v44, %v2991_v11  ;;  %9244 = vst [vmem:[%s12116_s18 + $0x130] sm:$0xff] %v8220_v19  ;;  %v7191_v33 = vmul.f32 %v13101_v7, %v3003_v15 }
 0x8f8   : > { %3231 = vbcast.lane.b32.xlu1 %v13189_v57, 376  ;;  %3246 = vbcast.lane.b32.xlu0 %v13277_v55, 272 }
 0x8f9   : > { %v8219_v59 = vadd.f32 %v13069_v14, %v7188_v48  ;;  %v8222_v53 = vadd.f32 %v13069_v14, %v7191_v33 }
 0x8fa   : > { %v2999_v27 = vpop.permute.xlu1 %2998  ;;  %v3011_v21 = vpop.permute.xlu0 %3010 }
 0x8fb   : > { %9243 = vst [vmem:[%s12116_s18 + $0x128] sm:$0xff] %v8219_v59  ;;  %v7190_v52 = vmul.f32 %v13108_v42, %v2999_v27  ;;  %9246 = vst [vmem:[%s12116_s18 + $0x140] sm:$0xff] %v8222_v53  ;;  %v7193_v19 = vmul.f32 %v13112_v32, %v3011_v21 }
 0x8fc   : > { %3242 = vbcast.lane.b32.xlu1 %v13277_v55, 264  ;;  %3254 = vbcast.lane.b32.xlu0 %v13277_v55, 288 }
 0x8fd   : > { %v8221_v15 = vadd.f32 %v13069_v14, %v7190_v52  ;;  %v8224_v57 = vadd.f32 %v13069_v14, %v7193_v19 }
 0x8fe   : > { %v3007_v11 = vpop.permute.xlu1 %3006  ;;  %v3019_v33 = vpop.permute.xlu0 %3018 }
 0x8ff   : > { %9245 = vst [vmem:[%s12116_s18 + $0x138] sm:$0xff] %v8221_v15  ;;  %v7192_v48 = vmul.f32 %v13120_v46, %v3007_v11  ;;  %9248 = vst [vmem:[%s12116_s18 + $0x150] sm:$0xff] %v8224_v57  ;;  %v7195_v59 = vmul.f32 %v13124_v8, %v3019_v33 }
 0x900   : > { %3250 = vbcast.lane.b32.xlu1 %v13277_v55, 280  ;;  %3262 = vbcast.lane.b32.xlu0 %v13277_v55, 304 }
 0x901   : > { %v8223_v53 = vadd.f32 %v13069_v14, %v7192_v48  ;;  %v8226_v27 = vadd.f32 %v13069_v14, %v7195_v59 }
 0x902   : > { %v3015_v52 = vpop.permute.xlu1 %3014  ;;  %v3027_v19 = vpop.permute.xlu0 %3026 }
 0x903   : > { %9247 = vst [vmem:[%s12116_s18 + $0x148] sm:$0xff] %v8223_v53  ;;  %v7194_v21 = vmul.f32 %v13132_v35, %v3015_v52  ;;  %9250 = vst [vmem:[%s12116_s18 + $0x160] sm:$0xff] %v8226_v27  ;;  %v7197_v15 = vmul.f32 %v13136_v17, %v3027_v19 }
 0x904   : > { %3258 = vbcast.lane.b32.xlu1 %v13277_v55, 296  ;;  %3270 = vbcast.lane.b32.xlu0 %v13277_v55, 320 }
 0x905   : > { %v8225_v57 = vadd.f32 %v13069_v14, %v7194_v21  ;;  %v8228_v11 = vadd.f32 %v13069_v14, %v7197_v15 }
 0x906   : > { %v3023_v48 = vpop.permute.xlu1 %3022  ;;  %v3038_v59 = vpop.permute.xlu0 %3037 }
 0x907   : > { %9249 = vst [vmem:[%s12116_s18 + $0x158] sm:$0xff] %v8225_v57  ;;  %v7196_v33 = vmul.f32 %v13144_v10, %v3023_v48  ;;  %9252 = vst [vmem:[%s12116_s18 + $0x170] sm:$0xff] %v8228_v11  ;;  %v7199_v53 = vmul.f32 %v13148_v12, %v3038_v59 }
 0x908   : > { %3266 = vbcast.lane.b32.xlu1 %v13277_v55, 312  ;;  %3278 = vbcast.lane.b32.xlu0 %v13277_v55, 336 }
 0x909   : > { %v8227_v27 = vadd.f32 %v13069_v14, %v7196_v33  ;;  %v8230_v52 = vadd.f32 %v13069_v14, %v7199_v53 }
 0x90a   : > { %v3031_v21 = vpop.permute.xlu1 %3030  ;;  %v3046_v15 = vpop.permute.xlu0 %3045 }
 0x90b   : > { %9251 = vst [vmem:[%s12116_s18 + $0x168] sm:$0xff] %v8227_v27  ;;  %v7198_v19 = vmul.f32 %v13156_v26, %v3031_v21  ;;  %9254 = vst [vmem:[%s12116_s18 + $0x180] sm:$0xff] %v8230_v52  ;;  %v7201_v57 = vmul.f32 %v13160_v37, %v3046_v15  ;;  %v13345_v15 = vrot.slane %v13053_v9, %v12875_v63 }
 0x90c   : > { %3274 = vbcast.lane.b32.xlu1 %v13277_v55, 328  ;;  %3286 = vbcast.lane.b32.xlu0 %v13277_v55, 352 }
 0x90d   : > { %v8229_v11 = vadd.f32 %v13069_v14, %v7198_v19  ;;  %v8232_v48 = vadd.f32 %v13069_v14, %v7201_v57 }
 0x90e   : > { %v3042_v33 = vpop.permute.xlu1 %3041  ;;  %v3054_v53 = vpop.permute.xlu0 %3053 }
 0x90f   : > { %9253 = vst [vmem:[%s12116_s18 + $0x178] sm:$0xff] %v8229_v11  ;;  %v7200_v59 = vmul.f32 %v13168_v31, %v3042_v33  ;;  %9256 = vst [vmem:[%s12116_s18 + $0x190] sm:$0xff] %v8232_v48  ;;  %v7203_v27 = vmul.f32 %v13172_v13, %v3054_v53 }
 0x910   : > { %3282 = vbcast.lane.b32.xlu1 %v13277_v55, 344  ;;  %3294 = vbcast.lane.b32.xlu0 %v13277_v55, 368 }
 0x911   : > { %v8231_v52 = vadd.f32 %v13069_v14, %v7200_v59  ;;  %v8234_v21 = vadd.f32 %v13069_v14, %v7203_v27 }
 0x912   : > { %v3050_v19 = vpop.permute.xlu1 %3049  ;;  %v3062_v11 = vpop.permute.xlu0 %3061 }
 0x913   : > { %9255 = vst [vmem:[%s12116_s18 + $0x188] sm:$0xff] %v8231_v52  ;;  %v7202_v57 = vmul.f32 %v13180_v50, %v3050_v19  ;;  %9258 = vst [vmem:[%s12116_s18 + $0x1a0] sm:$0xff] %v8234_v21  ;;  %v7205_v48 = vmul.f32 %v13184_v20, %v3062_v11 }
 0x914   : > { %3290 = vbcast.lane.b32.xlu1 %v13277_v55, 360  ;;  %3305 = vbcast.lane.b32.xlu0 %v13345_v15, 256 }
 0x915   : > { %v8233_v33 = vadd.f32 %v13069_v14, %v7202_v57  ;;  %v8236_v59 = vadd.f32 %v13069_v14, %v7205_v48 }
 0x916   : > { %v3058_v53 = vpop.permute.xlu1 %3057  ;;  %v3070_v27 = vpop.permute.xlu0 %3069 }
 0x917   : > { %9257 = vst [vmem:[%s12116_s18 + $0x198] sm:$0xff] %v8233_v33  ;;  %v7204_v63 = vmul.f32 %v13196_v18, %v3058_v53  ;;  %9260 = vst [vmem:[%s12116_s18 + $0x1b0] sm:$0xff] %v8236_v59  ;;  %v7207_v52 = vmul.f32 %v13200_v56, %v3070_v27 }
 0x918   : > { %3298 = vbcast.lane.b32.xlu1 %v13277_v55, 376  ;;  %3313 = vbcast.lane.b32.xlu0 %v13345_v15, 272 }
 0x919   : > { %v8235_v21 = vadd.f32 %v13069_v14, %v7204_v63  ;;  %v8238_v19 = vadd.f32 %v13069_v14, %v7207_v52 }
 0x91a   : > { %v3066_v57 = vpop.permute.xlu1 %3065  ;;  %v3078_v48 = vpop.permute.xlu0 %3077 }
 0x91b   : > { %9259 = vst [vmem:[%s12116_s18 + $0x1a8] sm:$0xff] %v8235_v21  ;;  %v7206_v11 = vmul.f32 %v13208_v47, %v3066_v57  ;;  %9262 = vst [vmem:[%s12116_s18 + $0x1c0] sm:$0xff] %v8238_v19  ;;  %v7209_v33 = vmul.f32 %v13212_v2, %v3078_v48 }
 0x91c   : > { %3309 = vbcast.lane.b32.xlu1 %v13345_v15, 264  ;;  %3321 = vbcast.lane.b32.xlu0 %v13345_v15, 288 }
 0x91d   : > { %v8237_v55 = vadd.f32 %v13069_v14, %v7206_v11  ;;  %v8240_v59 = vadd.f32 %v13069_v14, %v7209_v33 }
 0x91e   : > { %v3074_v53 = vpop.permute.xlu1 %3073  ;;  %v3086_v27 = vpop.permute.xlu0 %3085 }
 0x91f   : > { %9261 = vst [vmem:[%s12116_s18 + $0x1b8] sm:$0xff] %v8237_v55  ;;  %v7208_v63 = vmul.f32 %v13220_v22, %v3074_v53  ;;  %9264 = vst [vmem:[%s12116_s18 + $0x1d0] sm:$0xff] %v8240_v59  ;;  %v7211_v52 = vmul.f32 %v13224_v16, %v3086_v27 }
 0x920   : > { %3317 = vbcast.lane.b32.xlu1 %v13345_v15, 280  ;;  %3329 = vbcast.lane.b32.xlu0 %v13345_v15, 304 }
 0x921   : > { %v8239_v21 = vadd.f32 %v13069_v14, %v7208_v63  ;;  %v8242_v19 = vadd.f32 %v13069_v14, %v7211_v52 }
 0x922   : > { %v3082_v57 = vpop.permute.xlu1 %3081  ;;  %v3094_v48 = vpop.permute.xlu0 %3093 }
 0x923   : > { %9263 = vst [vmem:[%s12116_s18 + $0x1c8] sm:$0xff] %v8239_v21  ;;  %v7210_v11 = vmul.f32 %v13232_v62, %v3082_v57  ;;  %9266 = vst [vmem:[%s12116_s18 + $0x1e0] sm:$0xff] %v8242_v19  ;;  %v7213_v33 = vmul.f32 %v13236_v1, %v3094_v48 }
 0x924   : > { %3325 = vbcast.lane.b32.xlu1 %v13345_v15, 296  ;;  %3337 = vbcast.lane.b32.xlu0 %v13345_v15, 320 }
 0x925   : > { %v8241_v55 = vadd.f32 %v13069_v14, %v7210_v11  ;;  %v8244_v59 = vadd.f32 %v13069_v14, %v7213_v33 }
 0x926   : > { %v3090_v53 = vpop.permute.xlu1 %3089  ;;  %v3105_v27 = vpop.permute.xlu0 %3104 }
 0x927   : > { %9265 = vst [vmem:[%s12116_s18 + $0x1d8] sm:$0xff] %v8241_v55  ;;  %v7212_v63 = vmul.f32 %v13244_v5, %v3090_v53  ;;  %9268 = vst [vmem:[%s12116_s18 + $0x1f0] sm:$0xff] %v8244_v59  ;;  %v7215_v52 = vmul.f32 %v13067_v49, %v3105_v27 }
 0x928   : > { %3333 = vbcast.lane.b32.xlu1 %v13345_v15, 312  ;;  %3345 = vbcast.lane.b32.xlu0 %v13345_v15, 336 }
 0x929   : > { %v8243_v21 = vadd.f32 %v13069_v14, %v7212_v63  ;;  %v8246_v19 = vadd.f32 %v13069_v14, %v7215_v52 }
 0x92a   : > { %v3098_v57 = vpop.permute.xlu1 %3097  ;;  %v3113_v48 = vpop.permute.xlu0 %3112 }
 0x92b   : > { %9267 = vst [vmem:[%s12116_s18 + $0x1e8] sm:$0xff] %v8243_v21  ;;  %v7214_v11 = vmul.f32 %v13254_v3, %v3098_v57  ;;  %9270 = vst [vmem:[%s12116_s18 + $0x200] sm:$0xff] %v8246_v19  ;;  %v7217_v33 = vmul.f32 %v13073_v36, %v3113_v48  ;;  %v13413_v57 = vrot.slane %v12859_v39, %v12878_v51 }
 0x92c   : > { %3341 = vbcast.lane.b32.xlu1 %v13345_v15, 328  ;;  %3353 = vbcast.lane.b32.xlu0 %v13345_v15, 352 }
 0x92d   : > { %v8245_v55 = vadd.f32 %v13069_v14, %v7214_v11  ;;  %v8248_v59 = vadd.f32 %v13069_v14, %v7217_v33 }
 0x92e   : > { %v3109_v53 = vpop.permute.xlu1 %3108  ;;  %v3121_v27 = vpop.permute.xlu0 %3120 }
 0x92f   : > { %9269 = vst [vmem:[%s12116_s18 + $0x1f8] sm:$0xff] %v8245_v55  ;;  %v7216_v63 = vmul.f32 %v13065_v6, %v3109_v53  ;;  %9272 = vst [vmem:[%s12116_s18 + $0x210] sm:$0xff] %v8248_v59  ;;  %v7219_v52 = vmul.f32 %v13076_v34, %v3121_v27 }
 0x930   : > { %3349 = vbcast.lane.b32.xlu1 %v13345_v15, 344  ;;  %3361 = vbcast.lane.b32.xlu0 %v13345_v15, 368 }
 0x931   : > { %v8247_v36 = vadd.f32 %v13069_v14, %v7216_v63  ;;  %v8250_v21 = vadd.f32 %v13069_v14, %v7219_v52 }
 0x932   : > { %v3117_v19 = vpop.permute.xlu1 %3116  ;;  %v3129_v11 = vpop.permute.xlu0 %3128 }
 0x933   : > { %9271 = vst [vmem:[%s12116_s18 + $0x208] sm:$0xff] %v8247_v36  ;;  %v7218_v6 = vmul.f32 %v13083_v29, %v3117_v19  ;;  %9274 = vst [vmem:[%s12116_s18 + $0x220] sm:$0xff] %v8250_v21  ;;  %v7221_v34 = vmul.f32 %v13086_v30, %v3129_v11 }
 0x934   : > { %3357 = vbcast.lane.b32.xlu1 %v13345_v15, 360  ;;  %3372 = vbcast.lane.b32.xlu0 %v13413_v57, 256 }
 0x935   : > { %v8249_v48 = vadd.f32 %v13069_v14, %v7218_v6  ;;  %v8252_v33 = vadd.f32 %v13069_v14, %v7221_v34 }
 0x936   : > { %v3125_v55 = vpop.permute.xlu1 %3124  ;;  %v3137_v53 = vpop.permute.xlu0 %3136 }
 0x937   : > { %9273 = vst [vmem:[%s12116_s18 + $0x218] sm:$0xff] %v8249_v48  ;;  %v7220_v59 = vmul.f32 %v13097_v44, %v3125_v55  ;;  %9276 = vst [vmem:[%s12116_s18 + $0x230] sm:$0xff] %v8252_v33  ;;  %v7223_v29 = vmul.f32 %v13101_v7, %v3137_v53 }
 0x938   : > { %3365 = vbcast.lane.b32.xlu1 %v13345_v15, 376  ;;  %3380 = vbcast.lane.b32.xlu0 %v13413_v57, 272 }
 0x939   : > { %v8251_v30 = vadd.f32 %v13069_v14, %v7220_v59  ;;  %v8254_v63 = vadd.f32 %v13069_v14, %v7223_v29 }
 0x93a   : > { %v3133_v27 = vpop.permute.xlu1 %3132  ;;  %v3145_v36 = vpop.permute.xlu0 %3144 }
 0x93b   : > { %9275 = vst [vmem:[%s12116_s18 + $0x228] sm:$0xff] %v8251_v30  ;;  %v7222_v52 = vmul.f32 %v13108_v42, %v3133_v27  ;;  %9278 = vst [vmem:[%s12116_s18 + $0x240] sm:$0xff] %v8254_v63  ;;  %v7225_v44 = vmul.f32 %v13112_v32, %v3145_v36 }
 0x93c   : > { %3376 = vbcast.lane.b32.xlu1 %v13413_v57, 264  ;;  %3388 = vbcast.lane.b32.xlu0 %v13413_v57, 288 }
 0x93d   : > { %v8253_v7 = vadd.f32 %v13069_v14, %v7222_v52  ;;  %v8256_v15 = vadd.f32 %v13069_v14, %v7225_v44 }
 0x93e   : > { %v3141_v21 = vpop.permute.xlu1 %3140  ;;  %v3153_v6 = vpop.permute.xlu0 %3152 }
 0x93f   : > { %9277 = vst [vmem:[%s12116_s18 + $0x238] sm:$0xff] %v8253_v7  ;;  %v7224_v19 = vmul.f32 %v13120_v46, %v3141_v21  ;;  %9280 = vst [vmem:[%s12116_s18 + $0x250] sm:$0xff] %v8256_v15  ;;  %v7227_v42 = vmul.f32 %v13124_v8, %v3153_v6 }
 0x940   : > { %3384 = vbcast.lane.b32.xlu1 %v13413_v57, 280  ;;  %3396 = vbcast.lane.b32.xlu0 %v13413_v57, 304 }
 0x941   : > { %v8255_v32 = vadd.f32 %v13069_v14, %v7224_v19  ;;  %v8258_v11 = vadd.f32 %v13069_v14, %v7227_v42 }
 0x942   : > { %v3149_v34 = vpop.permute.xlu1 %3148  ;;  %v3161_v33 = vpop.permute.xlu0 %3160 }
 0x943   : > { %9279 = vst [vmem:[%s12116_s18 + $0x248] sm:$0xff] %v8255_v32  ;;  %v7226_v48 = vmul.f32 %v13132_v35, %v3149_v34  ;;  %9282 = vst [vmem:[%s12116_s18 + $0x260] sm:$0xff] %v8258_v11  ;;  %v7229_v46 = vmul.f32 %v13136_v17, %v3161_v33  ;;  %v13481_v33 = vrot.slane %v13053_v9, %v12878_v51 }
 0x944   : > { %3392 = vbcast.lane.b32.xlu1 %v13413_v57, 296  ;;  %3404 = vbcast.lane.b32.xlu0 %v13413_v57, 320 }
 0x945   : > { %v8257_v8 = vadd.f32 %v13069_v14, %v7226_v48  ;;  %v8260_v55 = vadd.f32 %v13069_v14, %v7229_v46 }
 0x946   : > { %v3157_v59 = vpop.permute.xlu1 %3156  ;;  %v3172_v29 = vpop.permute.xlu0 %3171 }
 0x947   : > { %9281 = vst [vmem:[%s12116_s18 + $0x258] sm:$0xff] %v8257_v8  ;;  %v7228_v53 = vmul.f32 %v13144_v10, %v3157_v59  ;;  %9284 = vst [vmem:[%s12116_s18 + $0x270] sm:$0xff] %v8260_v55  ;;  %v7231_v30 = vmul.f32 %v13148_v12, %v3172_v29 }
 0x948   : > { %3400 = vbcast.lane.b32.xlu1 %v13413_v57, 312  ;;  %3412 = vbcast.lane.b32.xlu0 %v13413_v57, 336 }
 0x949   : > { %v8259_v63 = vadd.f32 %v13069_v14, %v7228_v53  ;;  %v8262_v27 = vadd.f32 %v13069_v14, %v7231_v30 }
 0x94a   : > { %v3165_v52 = vpop.permute.xlu1 %3164  ;;  %v3180_v44 = vpop.permute.xlu0 %3179 }
 0x94b   : > { %9283 = vst [vmem:[%s12116_s18 + $0x268] sm:$0xff] %v8259_v63  ;;  %v7230_v36 = vmul.f32 %v13156_v26, %v3165_v52  ;;  %9286 = vst [vmem:[%s12116_s18 + $0x280] sm:$0xff] %v8262_v27  ;;  %v7233_v7 = vmul.f32 %v13160_v37, %v3180_v44 }
 0x94c   : > { %3408 = vbcast.lane.b32.xlu1 %v13413_v57, 328  ;;  %3420 = vbcast.lane.b32.xlu0 %v13413_v57, 352 }
 0x94d   : > { %v8261_v15 = vadd.f32 %v13069_v14, %v7230_v36  ;;  %v8264_v21 = vadd.f32 %v13069_v14, %v7233_v7 }
 0x94e   : > { %v3176_v19 = vpop.permute.xlu1 %3175  ;;  %v3188_v42 = vpop.permute.xlu0 %3187 }
 0x94f   : > { %9285 = vst [vmem:[%s12116_s18 + $0x278] sm:$0xff] %v8261_v15  ;;  %v7232_v6 = vmul.f32 %v13168_v31, %v3176_v19  ;;  %9288 = vst [vmem:[%s12116_s18 + $0x290] sm:$0xff] %v8264_v21  ;;  %v7235_v32 = vmul.f32 %v13172_v13, %v3188_v42 }
 0x950   : > { %3416 = vbcast.lane.b32.xlu1 %v13413_v57, 344  ;;  %3428 = vbcast.lane.b32.xlu0 %v13413_v57, 368 }
 0x951   : > { %v8263_v11 = vadd.f32 %v13069_v14, %v7232_v6  ;;  %v8266_v34 = vadd.f32 %v13069_v14, %v7235_v32 }
 0x952   : > { %v3184_v48 = vpop.permute.xlu1 %3183  ;;  %v3196_v8 = vpop.permute.xlu0 %3195 }
 0x953   : > { %9287 = vst [vmem:[%s12116_s18 + $0x288] sm:$0xff] %v8263_v11  ;;  %v7234_v46 = vmul.f32 %v13180_v50, %v3184_v48  ;;  %9290 = vst [vmem:[%s12116_s18 + $0x2a0] sm:$0xff] %v8266_v34  ;;  %v7237_v55 = vmul.f32 %v13184_v20, %v3196_v8 }
 0x954   : > { %3424 = vbcast.lane.b32.xlu1 %v13413_v57, 360  ;;  %3439 = vbcast.lane.b32.xlu0 %v13481_v33, 256 }
 0x955   : > { %v8265_v59 = vadd.f32 %v13069_v14, %v7234_v46  ;;  %v8268_v53 = vadd.f32 %v13069_v14, %v7237_v55 }
 0x956   : > { %v3192_v29 = vpop.permute.xlu1 %3191  ;;  %v3204_v30 = vpop.permute.xlu0 %3203 }
 0x957   : > { %9289 = vst [vmem:[%s12116_s18 + $0x298] sm:$0xff] %v8265_v59  ;;  %v7236_v51 = vmul.f32 %v13196_v18, %v3192_v29  ;;  %9292 = vst [vmem:[%s12116_s18 + $0x2b0] sm:$0xff] %v8268_v53  ;;  %v7239_v63 = vmul.f32 %v13200_v56, %v3204_v30 }
 0x958   : > { %3432 = vbcast.lane.b32.xlu1 %v13413_v57, 376  ;;  %3447 = vbcast.lane.b32.xlu0 %v13481_v33, 272 }
 0x959   : > { %v8267_v27 = vadd.f32 %v13069_v14, %v7236_v51  ;;  %v8270_v52 = vadd.f32 %v13069_v14, %v7239_v63 }
 0x95a   : > { %v3200_v36 = vpop.permute.xlu1 %3199  ;;  %v3212_v7 = vpop.permute.xlu0 %3211 }
 0x95b   : > { %9291 = vst [vmem:[%s12116_s18 + $0x2a8] sm:$0xff] %v8267_v27  ;;  %v7238_v44 = vmul.f32 %v13208_v47, %v3200_v36  ;;  %9294 = vst [vmem:[%s12116_s18 + $0x2c0] sm:$0xff] %v8270_v52  ;;  %v7241_v15 = vmul.f32 %v13212_v2, %v3212_v7  ;;  %v13528_v27 = vld [vmem:[#allocation19] ss:$0 sm:$0xff] }
 0x95c   : > { %3443 = vbcast.lane.b32.xlu1 %v13481_v33, 264  ;;  %3455 = vbcast.lane.b32.xlu0 %v13481_v33, 288 }
 0x95d   : > { %v8269_v57 = vadd.f32 %v13069_v14, %v7238_v44  ;;  %v8272_v21 = vadd.f32 %v13069_v14, %v7241_v15  ;;  %v13536_v15 = vld [vmem:[#allocation3 + $0xd8] sm:$0xff] }
 0x95e   : > { %v3208_v19 = vpop.permute.xlu1 %3207  ;;  %v3220_v42 = vpop.permute.xlu0 %3219 }
 0x95f   : > { %9293 = vst [vmem:[%s12116_s18 + $0x2b8] sm:$0xff] %v8269_v57  ;;  %v7240_v6 = vmul.f32 %v13220_v22, %v3208_v19  ;;  %9296 = vst [vmem:[%s12116_s18 + $0x2d0] sm:$0xff] %v8272_v21  ;;  %v7243_v32 = vmul.f32 %v13224_v16, %v3220_v42 }
 0x960   : > { %3451 = vbcast.lane.b32.xlu1 %v13481_v33, 280  ;;  %3463 = vbcast.lane.b32.xlu0 %v13481_v33, 304 }
 0x961   : > { %v8271_v11 = vadd.f32 %v13069_v14, %v7240_v6  ;;  %v8274_v34 = vadd.f32 %v13069_v14, %v7243_v32  ;;  %v13544_v6 = vld [vmem:[#allocation3] sm:$0xff] }
 0x962   : > { %v3216_v48 = vpop.permute.xlu1 %3215  ;;  %v3228_v8 = vpop.permute.xlu0 %3227 }
 0x963   : > { %9295 = vst [vmem:[%s12116_s18 + $0x2c8] sm:$0xff] %v8271_v11  ;;  %v7242_v46 = vmul.f32 %v13232_v62, %v3216_v48  ;;  %9298 = vst [vmem:[%s12116_s18 + $0x2e0] sm:$0xff] %v8274_v34  ;;  %v7245_v55 = vmul.f32 %v13236_v1, %v3228_v8  ;;  %v13548_v11 = vld [vmem:[#allocation3 + $0x50] sm:$0xff] }
 0x964   : > { %3459 = vbcast.lane.b32.xlu1 %v13481_v33, 296  ;;  %3471 = vbcast.lane.b32.xlu0 %v13481_v33, 320 }
 0x965   : > { %v8273_v59 = vadd.f32 %v13069_v14, %v7242_v46  ;;  %v8276_v53 = vadd.f32 %v13069_v14, %v7245_v55  ;;  %v13557_v55 = vrot.slane %v12859_v39, %v12881_v60 }
 0x966   : > { %v3224_v29 = vpop.permute.xlu1 %3223  ;;  %v3239_v30 = vpop.permute.xlu0 %3238 }
 0x967   : > { %9297 = vst [vmem:[%s12116_s18 + $0x2d8] sm:$0xff] %v8273_v59  ;;  %v7244_v51 = vmul.f32 %v13244_v5, %v3224_v29  ;;  %9300 = vst [vmem:[%s12116_s18 + $0x2f0] sm:$0xff] %v8276_v53  ;;  %v7247_v63 = vmul.f32 %v13067_v49, %v3239_v30  ;;  %v13560_v59 = vld [vmem:[#allocation3 + $0x18] sm:$0xff] }
 0x968   : > { %3467 = vbcast.lane.b32.xlu1 %v13481_v33, 312  ;;  %3479 = vbcast.lane.b32.xlu0 %v13481_v33, 336 }
 0x969   : > { %v8275_v52 = vadd.f32 %v13528_v27, %v7244_v51  ;;  %v8278_v14 = vadd.f32 %v13528_v27, %v7247_v63  ;;  %v13564_v51 = vld [vmem:[#allocation3 + $0x30] sm:$0xff] }
 0x96a   : > { %v3232_v36 = vpop.permute.xlu1 %3231  ;;  %v3247_v7 = vpop.permute.xlu0 %3246 }
 0x96b   : > { %9299 = vst [vmem:[%s12116_s18 + $0x2e8] sm:$0xff] %v8275_v52  ;;  %v7246_v44 = vmul.f32 %v13254_v3, %v3232_v36  ;;  %9302 = vst [vmem:[%s12116_s18 + $0x300] sm:$0xff] %v8278_v14  ;;  %v7249_v49 = vmul.f32 %v13536_v15, %v3247_v7  ;;  %v13572_v36 = vld [vmem:[#allocation3 + $0x68] sm:$0xff] }
 0x96c   : > { %3475 = vbcast.lane.b32.xlu1 %v13481_v33, 328  ;;  %3487 = vbcast.lane.b32.xlu0 %v13481_v33, 352 }
 0x96d   : > { %v8277_v57 = vadd.f32 %v13528_v27, %v7246_v44  ;;  %v8280_v21 = vadd.f32 %v13528_v27, %v7249_v49  ;;  %v13576_v49 = vld [vmem:[#allocation3 + $0x80] sm:$0xff] }
 0x96e   : > { %v3243_v19 = vpop.permute.xlu1 %3242  ;;  %v3255_v32 = vpop.permute.xlu0 %3254 }
 0x96f   : > { %9301 = vst [vmem:[%s12116_s18 + $0x2f8] sm:$0xff] %v8277_v57  ;;  %v7248_v42 = vmul.f32 %v13544_v6, %v3243_v19  ;;  %9304 = vst [vmem:[%s12116_s18 + $0x310] sm:$0xff] %v8280_v21  ;;  %v7251_v34 = vmul.f32 %v13548_v11, %v3255_v32  ;;  %v13584_v32 = vld [vmem:[#allocation3 + $0x48] sm:$0xff] }
 0x970   : > { %3483 = vbcast.lane.b32.xlu1 %v13481_v33, 344  ;;  %3495 = vbcast.lane.b32.xlu0 %v13481_v33, 368 }
 0x971   : > { %v8279_v48 = vadd.f32 %v13528_v27, %v7248_v42  ;;  %v8282_v46 = vadd.f32 %v13528_v27, %v7251_v34 }
 0x972   : > { %v3251_v8 = vpop.permute.xlu1 %3250  ;;  %v3263_v29 = vpop.permute.xlu0 %3262 }
 0x973   : > { %9303 = vst [vmem:[%s12116_s18 + $0x308] sm:$0xff] %v8279_v48  ;;  %v7250_v53 = vmul.f32 %v13560_v59, %v3251_v8  ;;  %9306 = vst [vmem:[%s12116_s18 + $0x320] sm:$0xff] %v8282_v46  ;;  %v7253_v30 = vmul.f32 %v13564_v51, %v3263_v29  ;;  %v13588_v46 = vld [vmem:[#allocation3 + $0xe8] sm:$0xff] }
 0x974   : > { %3491 = vbcast.lane.b32.xlu1 %v13481_v33, 360  ;;  %3506 = vbcast.lane.b32.xlu0 %v13557_v55, 256 }
 0x975   : > { %v8281_v63 = vadd.f32 %v13528_v27, %v7250_v53  ;;  %v8284_v52 = vadd.f32 %v13528_v27, %v7253_v30  ;;  %v13596_v30 = vld [vmem:[#allocation3 + $0x88] sm:$0xff] }
 0x976   : > { %v3259_v14 = vpop.permute.xlu1 %3258  ;;  %v3271_v7 = vpop.permute.xlu0 %3270 }
 0x977   : > { %9305 = vst [vmem:[%s12116_s18 + $0x318] sm:$0xff] %v8281_v63  ;;  %v7252_v44 = vmul.f32 %v13572_v36, %v3259_v14  ;;  %9308 = vst [vmem:[%s12116_s18 + $0x330] sm:$0xff] %v8284_v52  ;;  %v7255_v57 = vmul.f32 %v13576_v49, %v3271_v7  ;;  %v13600_v14 = vld [vmem:[#allocation3 + $0x60] sm:$0xff] }
 0x978   : > { %3499 = vbcast.lane.b32.xlu1 %v13481_v33, 376  ;;  %3514 = vbcast.lane.b32.xlu0 %v13557_v55, 272 }
 0x979   : > { %v8283_v21 = vadd.f32 %v13528_v27, %v7252_v44  ;;  %v8286_v19 = vadd.f32 %v13528_v27, %v7255_v57 }
 0x97a   : > { %v3267_v42 = vpop.permute.xlu1 %3266  ;;  %v3279_v48 = vpop.permute.xlu0 %3278 }
 0x97b   : > { %9307 = vst [vmem:[%s12116_s18 + $0x328] sm:$0xff] %v8283_v21  ;;  %v7254_v34 = vmul.f32 %v13584_v32, %v3267_v42  ;;  %9310 = vst [vmem:[%s12116_s18 + $0x340] sm:$0xff] %v8286_v19  ;;  %v7257_v33 = vmul.f32 %v13588_v46, %v3279_v48 }
 0x97c   : > { %3510 = vbcast.lane.b32.xlu1 %v13557_v55, 264  ;;  %3522 = vbcast.lane.b32.xlu0 %v13557_v55, 288 }
 0x97d   : > { %v8285_v8 = vadd.f32 %v13528_v27, %v7254_v34  ;;  %v8288_v53 = vadd.f32 %v13528_v27, %v7257_v33 }
 0x97e   : > { %v3275_v29 = vpop.permute.xlu1 %3274  ;;  %v3287_v52 = vpop.permute.xlu0 %3286 }
 0x97f   : > { %9309 = vst [vmem:[%s12116_s18 + $0x338] sm:$0xff] %v8285_v8  ;;  %v7256_v63 = vmul.f32 %v13596_v30, %v3275_v29  ;;  %9312 = vst [vmem:[%s12116_s18 + $0x350] sm:$0xff] %v8288_v53  ;;  %v7259_v44 = vmul.f32 %v13600_v14, %v3287_v52 }
 0x980   : > { %3518 = vbcast.lane.b32.xlu1 %v13557_v55, 280  ;;  %3530 = vbcast.lane.b32.xlu0 %v13557_v55, 304 }
 0x981   : > { %v8287_v7 = vadd.f32 %v13528_v27, %v7256_v63  ;;  %v8290_v57 = vadd.f32 %v13528_v27, %v7259_v44 }
 0x982   : > { %v3283_v21 = vpop.permute.xlu1 %3282  ;;  %v3295_v42 = vpop.permute.xlu0 %3294 }
 0x983   : > { %9311 = vst [vmem:[%s12116_s18 + $0x348] sm:$0xff] %v8287_v7  ;;  %v7258_v19 = vmul.f32 %v13132_v35, %v3283_v21  ;;  %9314 = vst [vmem:[%s12116_s18 + $0x360] sm:$0xff] %v8290_v57  ;;  %v7261_v34 = vmul.f32 %v13136_v17, %v3295_v42 }
 0x984   : > { %3526 = vbcast.lane.b32.xlu1 %v13557_v55, 296  ;;  %3538 = vbcast.lane.b32.xlu0 %v13557_v55, 320 }
 0x985   : > { %v8289_v48 = vadd.f32 %v13528_v27, %v7258_v19  ;;  %v8292_v33 = vadd.f32 %v13528_v27, %v7261_v34 }
 0x986   : > { %v3291_v8 = vpop.permute.xlu1 %3290  ;;  %v3306_v29 = vpop.permute.xlu0 %3305 }
 0x987   : > { %9313 = vst [vmem:[%s12116_s18 + $0x358] sm:$0xff] %v8289_v48  ;;  %v7260_v53 = vmul.f32 %v13144_v10, %v3291_v8  ;;  %9316 = vst [vmem:[%s12116_s18 + $0x370] sm:$0xff] %v8292_v33  ;;  %v7263_v35 = vmul.f32 %v13148_v12, %v3306_v29  ;;  %v13641_v33 = vrot.slane %v13053_v9, %v12881_v60 }
 0x988   : > { %3534 = vbcast.lane.b32.xlu1 %v13557_v55, 312  ;;  %3546 = vbcast.lane.b32.xlu0 %v13557_v55, 336 }
 0x989   : > { %v8291_v17 = vadd.f32 %v13528_v27, %v7260_v53  ;;  %v8294_v63 = vadd.f32 %v13528_v27, %v7263_v35 }
 0x98a   : > { %v3299_v52 = vpop.permute.xlu1 %3298  ;;  %v3314_v7 = vpop.permute.xlu0 %3313 }
 0x98b   : > { %9315 = vst [vmem:[%s12116_s18 + $0x368] sm:$0xff] %v8291_v17  ;;  %v7262_v44 = vmul.f32 %v13156_v26, %v3299_v52  ;;  %9318 = vst [vmem:[%s12116_s18 + $0x380] sm:$0xff] %v8294_v63  ;;  %v7265_v10 = vmul.f32 %v13160_v37, %v3314_v7 }
 0x98c   : > { %3542 = vbcast.lane.b32.xlu1 %v13557_v55, 328  ;;  %3554 = vbcast.lane.b32.xlu0 %v13557_v55, 352 }
 0x98d   : > { %v8293_v12 = vadd.f32 %v13528_v27, %v7262_v44  ;;  %v8296_v57 = vadd.f32 %v13528_v27, %v7265_v10 }
 0x98e   : > { %v3310_v21 = vpop.permute.xlu1 %3309  ;;  %v3322_v42 = vpop.permute.xlu0 %3321 }
 0x98f   : > { %9317 = vst [vmem:[%s12116_s18 + $0x378] sm:$0xff] %v8293_v12  ;;  %v7264_v19 = vmul.f32 %v13168_v31, %v3310_v21  ;;  %9320 = vst [vmem:[%s12116_s18 + $0x390] sm:$0xff] %v8296_v57  ;;  %v7267_v26 = vmul.f32 %v13172_v13, %v3322_v42 }
 0x990   : > { %3550 = vbcast.lane.b32.xlu1 %v13557_v55, 344  ;;  %3562 = vbcast.lane.b32.xlu0 %v13557_v55, 368 }
 0x991   : > { %v8295_v37 = vadd.f32 %v13528_v27, %v7264_v19  ;;  %v8298_v34 = vadd.f32 %v13528_v27, %v7267_v26 }
 0x992   : > { %v3318_v48 = vpop.permute.xlu1 %3317  ;;  %v3330_v8 = vpop.permute.xlu0 %3329 }
 0x993   : > { %9319 = vst [vmem:[%s12116_s18 + $0x388] sm:$0xff] %v8295_v37  ;;  %v7266_v31 = vmul.f32 %v13180_v50, %v3318_v48  ;;  %9322 = vst [vmem:[%s12116_s18 + $0x3a0] sm:$0xff] %v8298_v34  ;;  %v7269_v13 = vmul.f32 %v13184_v20, %v3330_v8 }
 0x994   : > { %3558 = vbcast.lane.b32.xlu1 %v13557_v55, 360  ;;  %3573 = vbcast.lane.b32.xlu0 %v13641_v33, 256 }
 0x995   : > { %v8297_v53 = vadd.f32 %v13528_v27, %v7266_v31  ;;  %v8300_v29 = vadd.f32 %v13528_v27, %v7269_v13 }
 0x996   : > { %v3326_v35 = vpop.permute.xlu1 %3325  ;;  %v3338_v17 = vpop.permute.xlu0 %3337 }
 0x997   : > { %9321 = vst [vmem:[%s12116_s18 + $0x398] sm:$0xff] %v8297_v53  ;;  %v7268_v60 = vmul.f32 %v13196_v18, %v3326_v35  ;;  %9324 = vst [vmem:[%s12116_s18 + $0x3b0] sm:$0xff] %v8300_v29  ;;  %v7271_v50 = vmul.f32 %v13200_v56, %v3338_v17 }
 0x998   : > { %3566 = vbcast.lane.b32.xlu1 %v13557_v55, 376  ;;  %3581 = vbcast.lane.b32.xlu0 %v13641_v33, 272 }
 0x999   : > { %v8299_v20 = vadd.f32 %v13528_v27, %v7268_v60  ;;  %v8302_v63 = vadd.f32 %v13528_v27, %v7271_v50 }
 0x99a   : > { %v3334_v52 = vpop.permute.xlu1 %3333  ;;  %v3346_v7 = vpop.permute.xlu0 %3345 }
 0x99b   : > { %9323 = vst [vmem:[%s12116_s18 + $0x3a8] sm:$0xff] %v8299_v20  ;;  %v7270_v44 = vmul.f32 %v13208_v47, %v3334_v52  ;;  %9326 = vst [vmem:[%s12116_s18 + $0x3c0] sm:$0xff] %v8302_v63  ;;  %v7273_v18 = vmul.f32 %v13212_v2, %v3346_v7 }
 0x99c   : > { %3577 = vbcast.lane.b32.xlu1 %v13641_v33, 264  ;;  %3589 = vbcast.lane.b32.xlu0 %v13641_v33, 288 }
 0x99d   : > { %v8301_v56 = vadd.f32 %v13528_v27, %v7270_v44  ;;  %v8304_v55 = vadd.f32 %v13528_v27, %v7273_v18  ;;  %v13711_v18 = vrot.slane %v12859_v39, %v12884_v54 }
 0x99e   : > { %v3342_v10 = vpop.permute.xlu1 %3341  ;;  %v3354_v57 = vpop.permute.xlu0 %3353 }
 0x99f   : > { %9325 = vst [vmem:[%s12116_s18 + $0x3b8] sm:$0xff] %v8301_v56  ;;  %v7272_v12 = vmul.f32 %v13220_v22, %v3342_v10  ;;  %9328 = vst [vmem:[%s12116_s18 + $0x3d0] sm:$0xff] %v8304_v55  ;;  %v7275_v47 = vmul.f32 %v13224_v16, %v3354_v57 }
 0x9a0   : > { %3585 = vbcast.lane.b32.xlu1 %v13641_v33, 280  ;;  %3597 = vbcast.lane.b32.xlu0 %v13641_v33, 304 }
 0x9a1   : > { %v8303_v2 = vadd.f32 %v13528_v27, %v7272_v12  ;;  %v8306_v21 = vadd.f32 %v13528_v27, %v7275_v47 }
 0x9a2   : > { %v3350_v19 = vpop.permute.xlu1 %3349  ;;  %v3362_v26 = vpop.permute.xlu0 %3361 }
 0x9a3   : > { %9327 = vst [vmem:[%s12116_s18 + $0x3c8] sm:$0xff] %v8303_v2  ;;  %v7274_v42 = vmul.f32 %v13232_v62, %v3350_v19  ;;  %9330 = vst [vmem:[%s12116_s18 + $0x3e0] sm:$0xff] %v8306_v21  ;;  %v7277_v22 = vmul.f32 %v13236_v1, %v3362_v26  ;;  %v13686_v62 = vld [vmem:[#allocation3 + $0xb0] sm:$0xff] }
 0x9a4   : > { %3593 = vbcast.lane.b32.xlu1 %v13641_v33, 296  ;;  %3605 = vbcast.lane.b32.xlu0 %v13641_v33, 320 }
 0x9a5   : > { %v8305_v16 = vadd.f32 %v13528_v27, %v7274_v42  ;;  %v8308_v37 = vadd.f32 %v13528_v27, %v7277_v22 }
 0x9a6   : > { %v3358_v34 = vpop.permute.xlu1 %3357  ;;  %v3373_v31 = vpop.permute.xlu0 %3372 }
 0x9a7   : > { %9329 = vst [vmem:[%s12116_s18 + $0x3d8] sm:$0xff] %v8305_v16  ;;  %v7276_v48 = vmul.f32 %v13244_v5, %v3358_v34  ;;  %9332 = vst [vmem:[%s12116_s18 + $0x3f0] sm:$0xff] %v8308_v37  ;;  %v7279_v1 = vmul.f32 %v13686_v62, %v3373_v31 }
 0x9a8   : > { %3601 = vbcast.lane.b32.xlu1 %v13641_v33, 312  ;;  %3613 = vbcast.lane.b32.xlu0 %v13641_v33, 336 }
 0x9a9   : > { %v8307_v8 = vadd.f32 %v13528_v27, %v7276_v48  ;;  %v8310_v13 = vadd.f32 %v13528_v27, %v7279_v1 }
 0x9aa   : > { %v3366_v53 = vpop.permute.xlu1 %3365  ;;  %v3381_v29 = vpop.permute.xlu0 %3380 }
 0x9ab   : > { %9331 = vst [vmem:[%s12116_s18 + $0x3e8] sm:$0xff] %v8307_v8  ;;  %v7278_v5 = vmul.f32 %v13254_v3, %v3366_v53  ;;  %9334 = vst [vmem:[%s12116_s18 + $0x400] sm:$0xff] %v8310_v13  ;;  %v7281_v35 = vmul.f32 %v13536_v15, %v3381_v29 }
 0x9ac   : > { %3609 = vbcast.lane.b32.xlu1 %v13641_v33, 328  ;;  %3621 = vbcast.lane.b32.xlu0 %v13641_v33, 352 }
 0x9ad   : > { %v8309_v60 = vadd.f32 %v13528_v27, %v7278_v5  ;;  %v8312_v17 = vadd.f32 %v13528_v27, %v7281_v35  ;;  %v13746_v35 = vld [vmem:[#allocation3 + $0xb8] sm:$0xff] }
 0x9ae   : > { %v3377_v50 = vpop.permute.xlu1 %3376  ;;  %v3389_v63 = vpop.permute.xlu0 %3388 }
 0x9af   : > { %9333 = vst [vmem:[%s12116_s18 + $0x3f8] sm:$0xff] %v8309_v60  ;;  %v7280_v20 = vmul.f32 %v13544_v6, %v3377_v50  ;;  %9336 = vst [vmem:[%s12116_s18 + $0x410] sm:$0xff] %v8312_v17  ;;  %v7283_v3 = vmul.f32 %v13548_v11, %v3389_v63  ;;  %v13750_v50 = vld [vmem:[#allocation3 + $0x8] sm:$0xff] }
 0x9b0   : > { %3617 = vbcast.lane.b32.xlu1 %v13641_v33, 344  ;;  %3629 = vbcast.lane.b32.xlu0 %v13641_v33, 368 }
 0x9b1   : > { %v8311_v52 = vadd.f32 %v13528_v27, %v7280_v20  ;;  %v8314_v44 = vadd.f32 %v13528_v27, %v7283_v3 }
 0x9b2   : > { %v3385_v7 = vpop.permute.xlu1 %3384  ;;  %v3397_v55 = vpop.permute.xlu0 %3396 }
 0x9b3   : > { %9335 = vst [vmem:[%s12116_s18 + $0x408] sm:$0xff] %v8311_v52  ;;  %v7282_v56 = vmul.f32 %v13560_v59, %v3385_v7  ;;  %9338 = vst [vmem:[%s12116_s18 + $0x420] sm:$0xff] %v8314_v44  ;;  %v7285_v10 = vmul.f32 %v13564_v51, %v3397_v55  ;;  %v13758_v44 = vld [vmem:[#allocation3 + $0xf0] sm:$0xff]  ;;  %v13762_v55 = vld [vmem:[#allocation3 + $0x38] sm:$0xff] }
 0x9b4   : > { %3625 = vbcast.lane.b32.xlu1 %v13641_v33, 360  ;;  %3640 = vbcast.lane.b32.xlu0 %v13711_v18, 256 }
 0x9b5   : > { %v8313_v12 = vadd.f32 %v13528_v27, %v7282_v56  ;;  %v8316_v57 = vadd.f32 %v13528_v27, %v7285_v10 }
 0x9b6   : > { %v3393_v47 = vpop.permute.xlu1 %3392  ;;  %v3405_v21 = vpop.permute.xlu0 %3404 }
 0x9b7   : > { %9337 = vst [vmem:[%s12116_s18 + $0x418] sm:$0xff] %v8313_v12  ;;  %v7284_v2 = vmul.f32 %v13572_v36, %v3393_v47  ;;  %9340 = vst [vmem:[%s12116_s18 + $0x430] sm:$0xff] %v8316_v57  ;;  %v7287_v19 = vmul.f32 %v13576_v49, %v3405_v21 }
 0x9b8   : > { %3633 = vbcast.lane.b32.xlu1 %v13641_v33, 376  ;;  %3648 = vbcast.lane.b32.xlu0 %v13711_v18, 272 }
 0x9b9   : > { %v8315_v42 = vadd.f32 %v13528_v27, %v7284_v2  ;;  %v8318_v26 = vadd.f32 %v13528_v27, %v7287_v19  ;;  %v13770_v2 = vld [vmem:[#allocation3 + $0x78] sm:$0xff] }
 0x9ba   : > { %v3401_v22 = vpop.permute.xlu1 %3400  ;;  %v3413_v37 = vpop.permute.xlu0 %3412 }
 0x9bb   : > { %9339 = vst [vmem:[%s12116_s18 + $0x428] sm:$0xff] %v8315_v42  ;;  %v7286_v16 = vmul.f32 %v13584_v32, %v3401_v22  ;;  %9342 = vst [vmem:[%s12116_s18 + $0x440] sm:$0xff] %v8318_v26  ;;  %v7289_v34 = vmul.f32 %v13588_v46, %v3413_v37  ;;  %v13774_v42 = vld [vmem:[#allocation3 + $0x40] sm:$0xff] }
 0x9bc   : > { %3644 = vbcast.lane.b32.xlu1 %v13711_v18, 264  ;;  %3656 = vbcast.lane.b32.xlu0 %v13711_v18, 288 }
 0x9bd   : > { %v8317_v33 = vadd.f32 %v13528_v27, %v7286_v16  ;;  %v8320_v48 = vadd.f32 %v13528_v27, %v7289_v34  ;;  %v13782_v34 = vld [vmem:[#allocation3 + $0x58] sm:$0xff] }
 0x9be   : > { %v3409_v31 = vpop.permute.xlu1 %3408  ;;  %v3421_v8 = vpop.permute.xlu0 %3420 }
 0x9bf   : > { %9341 = vst [vmem:[%s12116_s18 + $0x438] sm:$0xff] %v8317_v33  ;;  %v7288_v1 = vmul.f32 %v13596_v30, %v3409_v31  ;;  %9344 = vst [vmem:[%s12116_s18 + $0x450] sm:$0xff] %v8320_v48  ;;  %v7291_v13 = vmul.f32 %v13600_v14, %v3421_v8  ;;  %v13786_v31 = vld [vmem:[#allocation3 + $0xe0] sm:$0xff] }
 0x9c0   : > { %3652 = vbcast.lane.b32.xlu1 %v13711_v18, 280  ;;  %3664 = vbcast.lane.b32.xlu0 %v13711_v18, 304 }
 0x9c1   : > { %v8319_v53 = vadd.f32 %v13528_v27, %v7288_v1  ;;  %v8322_v5 = vadd.f32 %v13528_v27, %v7291_v13 }
 0x9c2   : > { %v3417_v29 = vpop.permute.xlu1 %3416  ;;  %v3429_v17 = vpop.permute.xlu0 %3428 }
 0x9c3   : > { %9343 = vst [vmem:[%s12116_s18 + $0x448] sm:$0xff] %v8319_v53  ;;  %v7290_v60 = vmul.f32 %v13746_v35, %v3417_v29  ;;  %9346 = vst [vmem:[%s12116_s18 + $0x460] sm:$0xff] %v8322_v5  ;;  %v7293_v20 = vmul.f32 %v13750_v50, %v3429_v17  ;;  %v13795_v5 = vrot.slane %v13053_v9, %v12884_v54  ;;  %v13798_v29 = vld [vmem:[#allocation3 + $0xc8] sm:$0xff] }
 0x9c4   : > { %3660 = vbcast.lane.b32.xlu1 %v13711_v18, 296  ;;  %3672 = vbcast.lane.b32.xlu0 %v13711_v18, 320 }
 0x9c5   : > { %v8321_v63 = vadd.f32 %v13528_v27, %v7290_v60  ;;  %v8324_v3 = vadd.f32 %v13528_v27, %v7293_v20  ;;  %v13802_v20 = vld [vmem:[#allocation3 + $0x70] sm:$0xff] }
 0x9c6   : > { %v3425_v52 = vpop.permute.xlu1 %3424  ;;  %v3440_v56 = vpop.permute.xlu0 %3439 }
 0x9c7   : > { %9345 = vst [vmem:[%s12116_s18 + $0x458] sm:$0xff] %v8321_v63  ;;  %v7292_v7 = vmul.f32 %v13758_v44, %v3425_v52  ;;  %9348 = vst [vmem:[%s12116_s18 + $0x470] sm:$0xff] %v8324_v3  ;;  %v7295_v10 = vmul.f32 %v13762_v55, %v3440_v56 }
 0x9c8   : > { %3668 = vbcast.lane.b32.xlu1 %v13711_v18, 312  ;;  %3680 = vbcast.lane.b32.xlu0 %v13711_v18, 336 }
 0x9c9   : > { %v8323_v12 = vadd.f32 %v13528_v27, %v7292_v7  ;;  %v8326_v57 = vadd.f32 %v13528_v27, %v7295_v10  ;;  %v13810_v7 = vld [vmem:[#allocation3 + $0x90] sm:$0xff] }
 0x9ca   : > { %v3433_v47 = vpop.permute.xlu1 %3432  ;;  %v3448_v19 = vpop.permute.xlu0 %3447 }
 0x9cb   : > { %9347 = vst [vmem:[%s12116_s18 + $0x468] sm:$0xff] %v8323_v12  ;;  %v7294_v21 = vmul.f32 %v13770_v2, %v3433_v47  ;;  %9350 = vst [vmem:[%s12116_s18 + $0x480] sm:$0xff] %v8326_v57  ;;  %v7297_v26 = vmul.f32 %v13774_v42, %v3448_v19  ;;  %v13814_v12 = vld [vmem:[#allocation3 + $0xa8] sm:$0xff] }
 0x9cc   : > { %3676 = vbcast.lane.b32.xlu1 %v13711_v18, 328  ;;  %3688 = vbcast.lane.b32.xlu0 %v13711_v18, 352 }
 0x9cd   : > { %v8325_v22 = vadd.f32 %v13528_v27, %v7294_v21  ;;  %v8328_v16 = vadd.f32 %v13528_v27, %v7297_v26  ;;  %v13822_v26 = vld [vmem:[#allocation3 + $0xc0] sm:$0xff] }
 0x9ce   : > { %v3444_v37 = vpop.permute.xlu1 %3443  ;;  %v3456_v48 = vpop.permute.xlu0 %3455 }
 0x9cf   : > { %9349 = vst [vmem:[%s12116_s18 + $0x478] sm:$0xff] %v8325_v22  ;;  %v7296_v33 = vmul.f32 %v13782_v34, %v3444_v37  ;;  %9352 = vst [vmem:[%s12116_s18 + $0x490] sm:$0xff] %v8328_v16  ;;  %v7299_v1 = vmul.f32 %v13786_v31, %v3456_v48  ;;  %v13826_v37 = vld [vmem:[#allocation3 + $0x10] sm:$0xff] }
 0x9d0   : > { %3684 = vbcast.lane.b32.xlu1 %v13711_v18, 344  ;;  %3696 = vbcast.lane.b32.xlu0 %v13711_v18, 368 }
 0x9d1   : > { %v8327_v8 = vadd.f32 %v13528_v27, %v7296_v33  ;;  %v8330_v13 = vadd.f32 %v13528_v27, %v7299_v1 }
 0x9d2   : > { %v3452_v53 = vpop.permute.xlu1 %3451  ;;  %v3464_v17 = vpop.permute.xlu0 %3463 }
 0x9d3   : > { %9351 = vst [vmem:[%s12116_s18 + $0x488] sm:$0xff] %v8327_v8  ;;  %v7298_v60 = vmul.f32 %v13798_v29, %v3452_v53  ;;  %9354 = vst [vmem:[%s12116_s18 + $0x4a0] sm:$0xff] %v8330_v13  ;;  %v7301_v63 = vmul.f32 %v13802_v20, %v3464_v17  ;;  %v13834_v8 = vld [vmem:[#allocation3 + $0xd0] sm:$0xff] }
 0x9d4   : > { %3692 = vbcast.lane.b32.xlu1 %v13711_v18, 360  ;;  %3707 = vbcast.lane.b32.xlu0 %v13795_v5, 256 }
 0x9d5   : > { %v8329_v3 = vadd.f32 %v13528_v27, %v7298_v60  ;;  %v8332_v54 = vadd.f32 %v13528_v27, %v7301_v63  ;;  %v13838_v60 = vld [vmem:[#allocation3 + $0xa0] sm:$0xff] }
 0x9d6   : > { %v3460_v52 = vpop.permute.xlu1 %3459  ;;  %v3472_v10 = vpop.permute.xlu0 %3471 }
 0x9d7   : > { %9353 = vst [vmem:[%s12116_s18 + $0x498] sm:$0xff] %v8329_v3  ;;  %v7300_v56 = vmul.f32 %v13810_v7, %v3460_v52  ;;  %9356 = vst [vmem:[%s12116_s18 + $0x4b0] sm:$0xff] %v8332_v54  ;;  %v7303_v57 = vmul.f32 %v13814_v12, %v3472_v10  ;;  %v13846_v52 = vld [vmem:[#allocation3 + $0x28] sm:$0xff] }
 0x9d8   : > { %3700 = vbcast.lane.b32.xlu1 %v13711_v18, 376  ;;  %3715 = vbcast.lane.b32.xlu0 %v13795_v5, 272 }
 0x9d9   : > { %v8331_v47 = vadd.f32 %v13528_v27, %v7300_v56  ;;  %v8334_v21 = vadd.f32 %v13528_v27, %v7303_v57  ;;  %v13850_v57 = vld [vmem:[#allocation3 + $0x20] sm:$0xff] }
 0x9da   : > { %v3468_v19 = vpop.permute.xlu1 %3467  ;;  %v3480_v16 = vpop.permute.xlu0 %3479 }
 0x9db   : > { %9355 = vst [vmem:[%s12116_s18 + $0x4a8] sm:$0xff] %v8331_v47  ;;  %v7302_v22 = vmul.f32 %v13822_v26, %v3468_v19  ;;  %9358 = vst [vmem:[%s12116_s18 + $0x4c0] sm:$0xff] %v8334_v21  ;;  %v7305_v18 = vmul.f32 %v13826_v37, %v3480_v16  ;;  %v13858_v16 = vld [vmem:[#allocation3 + $0xf8] sm:$0xff] }
 0x9dc   : > { %3711 = vbcast.lane.b32.xlu1 %v13795_v5, 264  ;;  %3723 = vbcast.lane.b32.xlu0 %v13795_v5, 288 }
 0x9dd   : > { %v8333_v33 = vadd.f32 %v13528_v27, %v7302_v22  ;;  %v8336_v48 = vadd.f32 %v13528_v27, %v7305_v18 }
 0x9de   : > { %v3476_v1 = vpop.permute.xlu1 %3475  ;;  %v3488_v53 = vpop.permute.xlu0 %3487 }
 0x9df   : > { %9357 = vst [vmem:[%s12116_s18 + $0x4b8] sm:$0xff] %v8333_v33  ;;  %v7304_v13 = vmul.f32 %v13834_v8, %v3476_v1  ;;  %9360 = vst [vmem:[%s12116_s18 + $0x4d0] sm:$0xff] %v8336_v48  ;;  %v7307_v17 = vmul.f32 %v13838_v60, %v3488_v53 }
 0x9e0   : > { %3719 = vbcast.lane.b32.xlu1 %v13795_v5, 280  ;;  %3731 = vbcast.lane.b32.xlu0 %v13795_v5, 304 }
 0x9e1   : > { %v8335_v63 = vadd.f32 %v13528_v27, %v7304_v13  ;;  %v8338_v3 = vadd.f32 %v13528_v27, %v7307_v17  ;;  %v13868_v17 = vld [vmem:[#allocation3 + $0x98] sm:$0xff] }
 0x9e2   : > { %v3484_v54 = vpop.permute.xlu1 %3483  ;;  %v3496_v10 = vpop.permute.xlu0 %3495 }
 0x9e3   : > { %9359 = vst [vmem:[%s12116_s18 + $0x4c8] sm:$0xff] %v8335_v63  ;;  %v7306_v56 = vmul.f32 %v13846_v52, %v3484_v54  ;;  %9362 = vst [vmem:[%s12116_s18 + $0x4e0] sm:$0xff] %v8338_v3  ;;  %v7309_v47 = vmul.f32 %v13850_v57, %v3496_v10 }
 0x9e4   : > { %3727 = vbcast.lane.b32.xlu1 %v13795_v5, 296  ;;  %3739 = vbcast.lane.b32.xlu0 %v13795_v5, 320 }
 0x9e5   : > { %v8337_v21 = vadd.f32 %v13528_v27, %v7306_v56  ;;  %v8340_v19 = vadd.f32 %v13528_v27, %v7309_v47 }
 0x9e6   : > { %v3492_v22 = vpop.permute.xlu1 %3491  ;;  %v3507_v33 = vpop.permute.xlu0 %3506 }
 0x9e7   : > { %9361 = vst [vmem:[%s12116_s18 + $0x4d8] sm:$0xff] %v8337_v21  ;;  %v7308_v18 = vmul.f32 %v13858_v16, %v3492_v22  ;;  %9364 = vst [vmem:[%s12116_s18 + $0x4f0] sm:$0xff] %v8340_v19  ;;  %v7311_v48 = vmul.f32 %v13686_v62, %v3507_v33 }
 0x9e8   : > { %3735 = vbcast.lane.b32.xlu1 %v13795_v5, 312  ;;  %3747 = vbcast.lane.b32.xlu0 %v13795_v5, 336 }
 0x9e9   : > { %v8339_v1 = vadd.f32 %v13528_v27, %v7308_v18  ;;  %v8342_v13 = vadd.f32 %v13528_v27, %v7311_v48 }
 0x9ea   : > { %v3500_v53 = vpop.permute.xlu1 %3499  ;;  %v3515_v3 = vpop.permute.xlu0 %3514 }
 0x9eb   : > { %9363 = vst [vmem:[%s12116_s18 + $0x4e8] sm:$0xff] %v8339_v1  ;;  %v7310_v63 = vmul.f32 %v13868_v17, %v3500_v53  ;;  %9366 = vst [vmem:[%s12116_s18 + $0x500] sm:$0xff] %v8342_v13  ;;  %v7313_v54 = vmul.f32 %v13536_v15, %v3515_v3  ;;  %v13887_v1 = vrot.slane %v12859_v39, %v12887_v40 }
 0x9ec   : > { %3743 = vbcast.lane.b32.xlu1 %v13795_v5, 328  ;;  %3755 = vbcast.lane.b32.xlu0 %v13795_v5, 352 }
 0x9ed   : > { %v8341_v56 = vadd.f32 %v13528_v27, %v7310_v63  ;;  %v8344_v10 = vadd.f32 %v13528_v27, %v7313_v54 }
 0x9ee   : > { %v3511_v47 = vpop.permute.xlu1 %3510  ;;  %v3523_v19 = vpop.permute.xlu0 %3522 }
 0x9ef   : > { %9365 = vst [vmem:[%s12116_s18 + $0x4f8] sm:$0xff] %v8341_v56  ;;  %v7312_v21 = vmul.f32 %v13544_v6, %v3511_v47  ;;  %9368 = vst [vmem:[%s12116_s18 + $0x510] sm:$0xff] %v8344_v10  ;;  %v7315_v22 = vmul.f32 %v13548_v11, %v3523_v19 }
 0x9f0   : > { %3751 = vbcast.lane.b32.xlu1 %v13795_v5, 344  ;;  %3763 = vbcast.lane.b32.xlu0 %v13795_v5, 368 }
 0x9f1   : > { %v8343_v18 = vadd.f32 %v13528_v27, %v7312_v21  ;;  %v8346_v33 = vadd.f32 %v13528_v27, %v7315_v22 }
 0x9f2   : > { %v3519_v48 = vpop.permute.xlu1 %3518  ;;  %v3531_v53 = vpop.permute.xlu0 %3530 }
 0x9f3   : > { %9367 = vst [vmem:[%s12116_s18 + $0x508] sm:$0xff] %v8343_v18  ;;  %v7314_v13 = vmul.f32 %v13560_v59, %v3519_v48  ;;  %9370 = vst [vmem:[%s12116_s18 + $0x520] sm:$0xff] %v8346_v33  ;;  %v7317_v63 = vmul.f32 %v13564_v51, %v3531_v53 }
 0x9f4   : > { %3759 = vbcast.lane.b32.xlu1 %v13795_v5, 360  ;;  %3774 = vbcast.lane.b32.xlu0 %v13887_v1, 256 }
 0x9f5   : > { %v8345_v3 = vadd.f32 %v13528_v27, %v7314_v13  ;;  %v8348_v54 = vadd.f32 %v13528_v27, %v7317_v63 }
 0x9f6   : > { %v3527_v56 = vpop.permute.xlu1 %3526  ;;  %v3539_v10 = vpop.permute.xlu0 %3538 }
 0x9f7   : > { %9369 = vst [vmem:[%s12116_s18 + $0x518] sm:$0xff] %v8345_v3  ;;  %v7316_v39 = vmul.f32 %v13572_v36, %v3527_v56  ;;  %9372 = vst [vmem:[%s12116_s18 + $0x530] sm:$0xff] %v8348_v54  ;;  %v7319_v47 = vmul.f32 %v13576_v49, %v3539_v10 }
 0x9f8   : > { %3767 = vbcast.lane.b32.xlu1 %v13795_v5, 376  ;;  %3782 = vbcast.lane.b32.xlu0 %v13887_v1, 272 }
 0x9f9   : > { %v8347_v21 = vadd.f32 %v13528_v27, %v7316_v39  ;;  %v8350_v19 = vadd.f32 %v13528_v27, %v7319_v47 }
 0x9fa   : > { %v3535_v22 = vpop.permute.xlu1 %3534  ;;  %v3547_v33 = vpop.permute.xlu0 %3546 }
 0x9fb   : > { %9371 = vst [vmem:[%s12116_s18 + $0x528] sm:$0xff] %v8347_v21  ;;  %v7318_v18 = vmul.f32 %v13584_v32, %v3535_v22  ;;  %9374 = vst [vmem:[%s12116_s18 + $0x540] sm:$0xff] %v8350_v19  ;;  %v7321_v48 = vmul.f32 %v13588_v46, %v3547_v33 }
 0x9fc   : > { %3778 = vbcast.lane.b32.xlu1 %v13887_v1, 264  ;;  %3790 = vbcast.lane.b32.xlu0 %v13887_v1, 288 }
 0x9fd   : > { %v8349_v5 = vadd.f32 %v13528_v27, %v7318_v18  ;;  %v8352_v13 = vadd.f32 %v13528_v27, %v7321_v48 }
 0x9fe   : > { %v3543_v53 = vpop.permute.xlu1 %3542  ;;  %v3555_v3 = vpop.permute.xlu0 %3554 }
 0x9ff   : > { %9373 = vst [vmem:[%s12116_s18 + $0x538] sm:$0xff] %v8349_v5  ;;  %v7320_v63 = vmul.f32 %v13596_v30, %v3543_v53  ;;  %9376 = vst [vmem:[%s12116_s18 + $0x550] sm:$0xff] %v8352_v13  ;;  %v7323_v54 = vmul.f32 %v13600_v14, %v3555_v3 }
 0xa00   : > { %3786 = vbcast.lane.b32.xlu1 %v13887_v1, 280  ;;  %3798 = vbcast.lane.b32.xlu0 %v13887_v1, 304 }
 0xa01   : > { %v8351_v56 = vadd.f32 %v13528_v27, %v7320_v63  ;;  %v8354_v39 = vadd.f32 %v13528_v27, %v7323_v54 }
 0xa02   : > { %v3551_v10 = vpop.permute.xlu1 %3550  ;;  %v3563_v21 = vpop.permute.xlu0 %3562 }
 0xa03   : > { %9375 = vst [vmem:[%s12116_s18 + $0x548] sm:$0xff] %v8351_v56  ;;  %v7322_v47 = vmul.f32 %v13746_v35, %v3551_v10  ;;  %9378 = vst [vmem:[%s12116_s18 + $0x560] sm:$0xff] %v8354_v39  ;;  %v7325_v19 = vmul.f32 %v13750_v50, %v3563_v21 }
 0xa04   : > { %3794 = vbcast.lane.b32.xlu1 %v13887_v1, 296  ;;  %3806 = vbcast.lane.b32.xlu0 %v13887_v1, 320 }
 0xa05   : > { %v8353_v22 = vadd.f32 %v13528_v27, %v7322_v47  ;;  %v8356_v18 = vadd.f32 %v13528_v27, %v7325_v19 }
 0xa06   : > { %v3559_v33 = vpop.permute.xlu1 %3558  ;;  %v3574_v5 = vpop.permute.xlu0 %3573 }
 0xa07   : > { %9377 = vst [vmem:[%s12116_s18 + $0x558] sm:$0xff] %v8353_v22  ;;  %v7324_v48 = vmul.f32 %v13758_v44, %v3559_v33  ;;  %9380 = vst [vmem:[%s12116_s18 + $0x570] sm:$0xff] %v8356_v18  ;;  %v7327_v13 = vmul.f32 %v13762_v55, %v3574_v5 }
 0xa08   : > { %3802 = vbcast.lane.b32.xlu1 %v13887_v1, 312  ;;  %3814 = vbcast.lane.b32.xlu0 %v13887_v1, 336 }
 0xa09   : > { %v8355_v53 = vadd.f32 %v13528_v27, %v7324_v48  ;;  %v8358_v63 = vadd.f32 %v13528_v27, %v7327_v13  ;;  %v13955_v13 = vrot.slane %v13053_v9, %v12887_v40 }
 0xa0a   : > { %v3567_v3 = vpop.permute.xlu1 %3566  ;;  %v3582_v56 = vpop.permute.xlu0 %3581 }
 0xa0b   : > { %9379 = vst [vmem:[%s12116_s18 + $0x568] sm:$0xff] %v8355_v53  ;;  %v7326_v54 = vmul.f32 %v13770_v2, %v3567_v3  ;;  %9382 = vst [vmem:[%s12116_s18 + $0x580] sm:$0xff] %v8358_v63  ;;  %v7329_v39 = vmul.f32 %v13774_v42, %v3582_v56 }
 0xa0c   : > { %3810 = vbcast.lane.b32.xlu1 %v13887_v1, 328  ;;  %3822 = vbcast.lane.b32.xlu0 %v13887_v1, 352 }
 0xa0d   : > { %v8357_v10 = vadd.f32 %v13528_v27, %v7326_v54  ;;  %v8360_v47 = vadd.f32 %v13528_v27, %v7329_v39 }
 0xa0e   : > { %v3578_v21 = vpop.permute.xlu1 %3577  ;;  %v3590_v22 = vpop.permute.xlu0 %3589 }
 0xa0f   : > { %9381 = vst [vmem:[%s12116_s18 + $0x578] sm:$0xff] %v8357_v10  ;;  %v7328_v19 = vmul.f32 %v13782_v34, %v3578_v21  ;;  %9384 = vst [vmem:[%s12116_s18 + $0x590] sm:$0xff] %v8360_v47  ;;  %v7331_v18 = vmul.f32 %v13786_v31, %v3590_v22 }
 0xa10   : > { %3818 = vbcast.lane.b32.xlu1 %v13887_v1, 344  ;;  %3830 = vbcast.lane.b32.xlu0 %v13887_v1, 368 }
 0xa11   : > { %v8359_v33 = vadd.f32 %v13528_v27, %v7328_v19  ;;  %v8362_v48 = vadd.f32 %v13528_v27, %v7331_v18 }
 0xa12   : > { %v3586_v5 = vpop.permute.xlu1 %3585  ;;  %v3598_v63 = vpop.permute.xlu0 %3597 }
 0xa13   : > { %9383 = vst [vmem:[%s12116_s18 + $0x588] sm:$0xff] %v8359_v33  ;;  %v7330_v53 = vmul.f32 %v13798_v29, %v3586_v5  ;;  %9386 = vst [vmem:[%s12116_s18 + $0x5a0] sm:$0xff] %v8362_v48  ;;  %v7333_v3 = vmul.f32 %v13802_v20, %v3598_v63 }
 0xa14   : > { %3826 = vbcast.lane.b32.xlu1 %v13887_v1, 360  ;;  %3841 = vbcast.lane.b32.xlu0 %v13955_v13, 256 }
 0xa15   : > { %v8361_v54 = vadd.f32 %v13528_v27, %v7330_v53  ;;  %v8364_v56 = vadd.f32 %v13528_v27, %v7333_v3 }
 0xa16   : > { %v3594_v39 = vpop.permute.xlu1 %3593  ;;  %v3606_v9 = vpop.permute.xlu0 %3605 }
 0xa17   : > { %9385 = vst [vmem:[%s12116_s18 + $0x598] sm:$0xff] %v8361_v54  ;;  %v7332_v40 = vmul.f32 %v13810_v7, %v3594_v39  ;;  %9388 = vst [vmem:[%s12116_s18 + $0x5b0] sm:$0xff] %v8364_v56  ;;  %v7335_v10 = vmul.f32 %v13814_v12, %v3606_v9 }
 0xa18   : > { %3834 = vbcast.lane.b32.xlu1 %v13887_v1, 376  ;;  %3849 = vbcast.lane.b32.xlu0 %v13955_v13, 272 }
 0xa19   : > { %v8363_v47 = vadd.f32 %v13528_v27, %v7332_v40  ;;  %v8366_v21 = vadd.f32 %v13528_v27, %v7335_v10 }
 0xa1a   : > { %v3602_v19 = vpop.permute.xlu1 %3601  ;;  %v3614_v18 = vpop.permute.xlu0 %3613 }
 0xa1b   : > { %9387 = vst [vmem:[%s12116_s18 + $0x5a8] sm:$0xff] %v8363_v47  ;;  %v7334_v22 = vmul.f32 %v13822_v26, %v3602_v19  ;;  %9390 = vst [vmem:[%s12116_s18 + $0x5c0] sm:$0xff] %v8366_v21  ;;  %v7337_v33 = vmul.f32 %v13826_v37, %v3614_v18 }
 0xa1c   : > { %3845 = vbcast.lane.b32.xlu1 %v13955_v13, 264  ;;  %3857 = vbcast.lane.b32.xlu0 %v13955_v13, 288 }
 0xa1d   : > { %v8365_v1 = vadd.f32 %v13528_v27, %v7334_v22  ;;  %v8368_v48 = vadd.f32 %v13528_v27, %v7337_v33 }
 0xa1e   : > { %v3610_v5 = vpop.permute.xlu1 %3609  ;;  %v3622_v63 = vpop.permute.xlu0 %3621 }
 0xa1f   : > { %9389 = vst [vmem:[%s12116_s18 + $0x5b8] sm:$0xff] %v8365_v1  ;;  %v7336_v53 = vmul.f32 %v13834_v8, %v3610_v5  ;;  %9392 = vst [vmem:[%s12116_s18 + $0x5d0] sm:$0xff] %v8368_v48  ;;  %v7339_v3 = vmul.f32 %v13838_v60, %v3622_v63 }
 0xa20   : > { %3853 = vbcast.lane.b32.xlu1 %v13955_v13, 280  ;;  %3865 = vbcast.lane.b32.xlu0 %v13955_v13, 304 }
 0xa21   : > { %v8367_v54 = vadd.f32 %v13528_v27, %v7336_v53  ;;  %v8370_v56 = vadd.f32 %v13528_v27, %v7339_v3 }
 0xa22   : > { %v3618_v39 = vpop.permute.xlu1 %3617  ;;  %v3630_v9 = vpop.permute.xlu0 %3629 }
 0xa23   : > { %9391 = vst [vmem:[%s12116_s18 + $0x5c8] sm:$0xff] %v8367_v54  ;;  %v7338_v40 = vmul.f32 %v13846_v52, %v3618_v39  ;;  %9394 = vst [vmem:[%s12116_s18 + $0x5e0] sm:$0xff] %v8370_v56  ;;  %v7341_v10 = vmul.f32 %v13850_v57, %v3630_v9 }
 0xa24   : > { %3861 = vbcast.lane.b32.xlu1 %v13955_v13, 296  ;;  %3873 = vbcast.lane.b32.xlu0 %v13955_v13, 320 }
 0xa25   : > { %v8369_v47 = vadd.f32 %v13528_v27, %v7338_v40  ;;  %v8372_v21 = vadd.f32 %v13528_v27, %v7341_v10 }
 0xa26   : > { %v3626_v19 = vpop.permute.xlu1 %3625  ;;  %v3641_v18 = vpop.permute.xlu0 %3640 }
 0xa27   : > { %9393 = vst [vmem:[%s12116_s18 + $0x5d8] sm:$0xff] %v8369_v47  ;;  %v7340_v22 = vmul.f32 %v13858_v16, %v3626_v19  ;;  %9396 = vst [vmem:[%s12116_s18 + $0x5f0] sm:$0xff] %v8372_v21  ;;  %v7343_v33 = vmul.f32 %v13686_v62, %v3641_v18  ;;  %v14023_v19 = vrot.slane %v12867_v24, %v12846_v28  ;;  %v14030_v18 = vld [vmem:[#allocation19] ss:$0 sm:$0xff] }
 0xa28   : > { %3869 = vbcast.lane.b32.xlu1 %v13955_v13, 312  ;;  %3881 = vbcast.lane.b32.xlu0 %v13955_v13, 336 }
 0xa29   : > { %v8371_v1 = vadd.f32 %v13528_v27, %v7340_v22  ;;  %v8374_v48 = vadd.f32 %v13528_v27, %v7343_v33 }
 0xa2a   : > { %v3634_v5 = vpop.permute.xlu1 %3633  ;;  %v3649_v63 = vpop.permute.xlu0 %3648 }
 0xa2b   : > { %9395 = vst [vmem:[%s12116_s18 + $0x5e8] sm:$0xff] %v8371_v1  ;;  %v7342_v53 = vmul.f32 %v13868_v17, %v3634_v5  ;;  %9398 = vst [vmem:[%s12116_s18 + $0x600] sm:$0xff] %v8374_v48  ;;  %v7345_v3 = vmul.f32 %v13536_v15, %v3649_v63 }
 0xa2c   : > { %3877 = vbcast.lane.b32.xlu1 %v13955_v13, 328  ;;  %3889 = vbcast.lane.b32.xlu0 %v13955_v13, 352 }
 0xa2d   : > { %v8373_v54 = vadd.f32 %v13528_v27, %v7342_v53  ;;  %v8376_v56 = vadd.f32 %v13528_v27, %v7345_v3 }
 0xa2e   : > { %v3645_v39 = vpop.permute.xlu1 %3644  ;;  %v3657_v9 = vpop.permute.xlu0 %3656 }
 0xa2f   : > { %9397 = vst [vmem:[%s12116_s18 + $0x5f8] sm:$0xff] %v8373_v54  ;;  %v7344_v40 = vmul.f32 %v13544_v6, %v3645_v39  ;;  %9400 = vst [vmem:[%s12116_s18 + $0x610] sm:$0xff] %v8376_v56  ;;  %v7347_v10 = vmul.f32 %v13548_v11, %v3657_v9 }
 0xa30   : > { %3885 = vbcast.lane.b32.xlu1 %v13955_v13, 344  ;;  %3897 = vbcast.lane.b32.xlu0 %v13955_v13, 368 }
 0xa31   : > { %v8375_v15 = vadd.f32 %v13528_v27, %v7344_v40  ;;  %v8378_v47 = vadd.f32 %v13528_v27, %v7347_v10 }
 0xa32   : > { %v3653_v21 = vpop.permute.xlu1 %3652  ;;  %v3665_v22 = vpop.permute.xlu0 %3664 }
 0xa33   : > { %9399 = vst [vmem:[%s12116_s18 + $0x608] sm:$0xff] %v8375_v15  ;;  %v7346_v6 = vmul.f32 %v13560_v59, %v3653_v21  ;;  %9402 = vst [vmem:[%s12116_s18 + $0x620] sm:$0xff] %v8378_v47  ;;  %v7349_v11 = vmul.f32 %v13564_v51, %v3665_v22 }
 0xa34   : > { %3893 = vbcast.lane.b32.xlu1 %v13955_v13, 360  ;;  %3908 = vbcast.lane.b32.xlu0 %v14023_v19, 256 }
 0xa35   : > { %v8377_v27 = vadd.f32 %v14030_v18, %v7346_v6  ;;  %v8380_v33 = vadd.f32 %v14030_v18, %v7349_v11 }
 0xa36   : > { %v3661_v1 = vpop.permute.xlu1 %3660  ;;  %v3673_v48 = vpop.permute.xlu0 %3672 }
 0xa37   : > { %9401 = vst [vmem:[%s12116_s18 + $0x618] sm:$0xff] %v8377_v27  ;;  %v7348_v59 = vmul.f32 %v13572_v36, %v3661_v1  ;;  %9404 = vst [vmem:[%s12116_s18 + $0x630] sm:$0xff] %v8380_v33  ;;  %v7351_v51 = vmul.f32 %v13576_v49, %v3673_v48 }
 0xa38   : > { %3901 = vbcast.lane.b32.xlu1 %v13955_v13, 376  ;;  %3916 = vbcast.lane.b32.xlu0 %v14023_v19, 272 }
 0xa39   : > { %v8379_v5 = vadd.f32 %v14030_v18, %v7348_v59  ;;  %v8382_v53 = vadd.f32 %v14030_v18, %v7351_v51 }
 0xa3a   : > { %v3669_v63 = vpop.permute.xlu1 %3668  ;;  %v3681_v54 = vpop.permute.xlu0 %3680 }
 0xa3b   : > { %9403 = vst [vmem:[%s12116_s18 + $0x628] sm:$0xff] %v8379_v5  ;;  %v7350_v3 = vmul.f32 %v13584_v32, %v3669_v63  ;;  %9406 = vst [vmem:[%s12116_s18 + $0x640] sm:$0xff] %v8382_v53  ;;  %v7353_v36 = vmul.f32 %v13588_v46, %v3681_v54 }
 0xa3c   : > { %3912 = vbcast.lane.b32.xlu1 %v14023_v19, 264  ;;  %3924 = vbcast.lane.b32.xlu0 %v14023_v19, 288 }
 0xa3d   : > { %v8381_v49 = vadd.f32 %v14030_v18, %v7350_v3  ;;  %v8384_v13 = vadd.f32 %v14030_v18, %v7353_v36 }
 0xa3e   : > { %v3677_v56 = vpop.permute.xlu1 %3676  ;;  %v3689_v40 = vpop.permute.xlu0 %3688 }
 0xa3f   : > { %9405 = vst [vmem:[%s12116_s18 + $0x638] sm:$0xff] %v8381_v49  ;;  %v7352_v39 = vmul.f32 %v13596_v30, %v3677_v56  ;;  %9408 = vst [vmem:[%s12116_s18 + $0x650] sm:$0xff] %v8384_v13  ;;  %v7355_v32 = vmul.f32 %v13600_v14, %v3689_v40  ;;  %v14093_v40 = vrot.slane %v12869_v61, %v12846_v28 }
 0xa40   : > { %3920 = vbcast.lane.b32.xlu1 %v14023_v19, 280  ;;  %3932 = vbcast.lane.b32.xlu0 %v14023_v19, 304 }
 0xa41   : > { %v8383_v46 = vadd.f32 %v14030_v18, %v7352_v39  ;;  %v8386_v9 = vadd.f32 %v14030_v18, %v7355_v32 }
 0xa42   : > { %v3685_v10 = vpop.permute.xlu1 %3684  ;;  %v3697_v47 = vpop.permute.xlu0 %3696 }
 0xa43   : > { %9407 = vst [vmem:[%s12116_s18 + $0x648] sm:$0xff] %v8383_v46  ;;  %v7354_v15 = vmul.f32 %v13746_v35, %v3685_v10  ;;  %9410 = vst [vmem:[%s12116_s18 + $0x660] sm:$0xff] %v8386_v9  ;;  %v7357_v30 = vmul.f32 %v13750_v50, %v3697_v47 }
 0xa44   : > { %3928 = vbcast.lane.b32.xlu1 %v14023_v19, 296  ;;  %3940 = vbcast.lane.b32.xlu0 %v14023_v19, 320 }
 0xa45   : > { %v8385_v14 = vadd.f32 %v14030_v18, %v7354_v15  ;;  %v8388_v21 = vadd.f32 %v14030_v18, %v7357_v30 }
 0xa46   : > { %v3693_v6 = vpop.permute.xlu1 %3692  ;;  %v3708_v11 = vpop.permute.xlu0 %3707 }
 0xa47   : > { %9409 = vst [vmem:[%s12116_s18 + $0x658] sm:$0xff] %v8385_v14  ;;  %v7356_v22 = vmul.f32 %v13758_v44, %v3693_v6  ;;  %9412 = vst [vmem:[%s12116_s18 + $0x670] sm:$0xff] %v8388_v21  ;;  %v7359_v27 = vmul.f32 %v13762_v55, %v3708_v11 }
 0xa48   : > { %3936 = vbcast.lane.b32.xlu1 %v14023_v19, 312  ;;  %3948 = vbcast.lane.b32.xlu0 %v14023_v19, 336 }
 0xa49   : > { %v8387_v33 = vadd.f32 %v14030_v18, %v7356_v22  ;;  %v8390_v1 = vadd.f32 %v14030_v18, %v7359_v27 }
 0xa4a   : > { %v3701_v59 = vpop.permute.xlu1 %3700  ;;  %v3716_v51 = vpop.permute.xlu0 %3715 }
 0xa4b   : > { %9411 = vst [vmem:[%s12116_s18 + $0x668] sm:$0xff] %v8387_v33  ;;  %v7358_v48 = vmul.f32 %v13770_v2, %v3701_v59  ;;  %9414 = vst [vmem:[%s12116_s18 + $0x680] sm:$0xff] %v8390_v1  ;;  %v7361_v5 = vmul.f32 %v13774_v42, %v3716_v51 }
 0xa4c   : > { %3944 = vbcast.lane.b32.xlu1 %v14023_v19, 328  ;;  %3956 = vbcast.lane.b32.xlu0 %v14023_v19, 352 }
 0xa4d   : > { %v8389_v53 = vadd.f32 %v14030_v18, %v7358_v48  ;;  %v8392_v63 = vadd.f32 %v14030_v18, %v7361_v5 }
 0xa4e   : > { %v3712_v3 = vpop.permute.xlu1 %3711  ;;  %v3724_v36 = vpop.permute.xlu0 %3723 }
 0xa4f   : > { %9413 = vst [vmem:[%s12116_s18 + $0x678] sm:$0xff] %v8389_v53  ;;  %v7360_v54 = vmul.f32 %v13782_v34, %v3712_v3  ;;  %9416 = vst [vmem:[%s12116_s18 + $0x690] sm:$0xff] %v8392_v63  ;;  %v7363_v49 = vmul.f32 %v13786_v31, %v3724_v36 }
 0xa50   : > { %3952 = vbcast.lane.b32.xlu1 %v14023_v19, 344  ;;  %3964 = vbcast.lane.b32.xlu0 %v14023_v19, 368 }
 0xa51   : > { %v8391_v13 = vadd.f32 %v14030_v18, %v7360_v54  ;;  %v8394_v56 = vadd.f32 %v14030_v18, %v7363_v49 }
 0xa52   : > { %v3720_v39 = vpop.permute.xlu1 %3719  ;;  %v3732_v46 = vpop.permute.xlu0 %3731 }
 0xa53   : > { %9415 = vst [vmem:[%s12116_s18 + $0x688] sm:$0xff] %v8391_v13  ;;  %v7362_v32 = vmul.f32 %v13798_v29, %v3720_v39  ;;  %9418 = vst [vmem:[%s12116_s18 + $0x6a0] sm:$0xff] %v8394_v56  ;;  %v7365_v9 = vmul.f32 %v13802_v20, %v3732_v46 }
 0xa54   : > { %3960 = vbcast.lane.b32.xlu1 %v14023_v19, 360  ;;  %3975 = vbcast.lane.b32.xlu0 %v14093_v40, 256 }
 0xa55   : > { %v8393_v10 = vadd.f32 %v14030_v18, %v7362_v32  ;;  %v8396_v15 = vadd.f32 %v14030_v18, %v7365_v9 }
 0xa56   : > { %v3728_v47 = vpop.permute.xlu1 %3727  ;;  %v3740_v14 = vpop.permute.xlu0 %3739 }
 0xa57   : > { %9417 = vst [vmem:[%s12116_s18 + $0x698] sm:$0xff] %v8393_v10  ;;  %v7364_v30 = vmul.f32 %v13810_v7, %v3728_v47  ;;  %9420 = vst [vmem:[%s12116_s18 + $0x6b0] sm:$0xff] %v8396_v15  ;;  %v7367_v21 = vmul.f32 %v13814_v12, %v3740_v14 }
 0xa58   : > { %3968 = vbcast.lane.b32.xlu1 %v14023_v19, 376  ;;  %3983 = vbcast.lane.b32.xlu0 %v14093_v40, 272 }
 0xa59   : > { %v8395_v6 = vadd.f32 %v14030_v18, %v7364_v30  ;;  %v8398_v22 = vadd.f32 %v14030_v18, %v7367_v21 }
 0xa5a   : > { %v3736_v11 = vpop.permute.xlu1 %3735  ;;  %v3748_v33 = vpop.permute.xlu0 %3747 }
 0xa5b   : > { %9419 = vst [vmem:[%s12116_s18 + $0x6a8] sm:$0xff] %v8395_v6  ;;  %v7366_v27 = vmul.f32 %v13822_v26, %v3736_v11  ;;  %9422 = vst [vmem:[%s12116_s18 + $0x6c0] sm:$0xff] %v8398_v22  ;;  %v7369_v1 = vmul.f32 %v13826_v37, %v3748_v33  ;;  %v14146_v6 = vld [vmem:[#allocation3 + $0xd8] sm:$0xff]  ;;  %v14154_v33 = vld [vmem:[#allocation3] sm:$0xff] }
 0xa5c   : > { %3979 = vbcast.lane.b32.xlu1 %v14093_v40, 264  ;;  %3991 = vbcast.lane.b32.xlu0 %v14093_v40, 288 }
 0xa5d   : > { %v8397_v19 = vadd.f32 %v14030_v18, %v7366_v27  ;;  %v8400_v59 = vadd.f32 %v14030_v18, %v7369_v1 }
 0xa5e   : > { %v3744_v48 = vpop.permute.xlu1 %3743  ;;  %v3756_v5 = vpop.permute.xlu0 %3755 }
 0xa5f   : > { %9421 = vst [vmem:[%s12116_s18 + $0x6b8] sm:$0xff] %v8397_v19  ;;  %v7368_v51 = vmul.f32 %v13834_v8, %v3744_v48  ;;  %9424 = vst [vmem:[%s12116_s18 + $0x6d0] sm:$0xff] %v8400_v59  ;;  %v7371_v53 = vmul.f32 %v13838_v60, %v3756_v5  ;;  %v14158_v59 = vld [vmem:[#allocation3 + $0x50] sm:$0xff] }
 0xa60   : > { %3987 = vbcast.lane.b32.xlu1 %v14093_v40, 280  ;;  %3999 = vbcast.lane.b32.xlu0 %v14093_v40, 304 }
 0xa61   : > { %v8399_v63 = vadd.f32 %v14030_v18, %v7368_v51  ;;  %v8402_v3 = vadd.f32 %v14030_v18, %v7371_v53 }
 0xa62   : > { %v3752_v54 = vpop.permute.xlu1 %3751  ;;  %v3764_v49 = vpop.permute.xlu0 %3763 }
 0xa63   : > { %9423 = vst [vmem:[%s12116_s18 + $0x6c8] sm:$0xff] %v8399_v63  ;;  %v7370_v36 = vmul.f32 %v13846_v52, %v3752_v54  ;;  %9426 = vst [vmem:[%s12116_s18 + $0x6e0] sm:$0xff] %v8402_v3  ;;  %v7373_v13 = vmul.f32 %v13850_v57, %v3764_v49  ;;  %v14167_v63 = vrot.slane %v12867_v24, %v12849_v38  ;;  %v14170_v3 = vld [vmem:[#allocation3 + $0x18] sm:$0xff]  ;;  %v14174_v49 = vld [vmem:[#allocation3 + $0x30] sm:$0xff] }
 0xa64   : > { %3995 = vbcast.lane.b32.xlu1 %v14093_v40, 296  ;;  %4007 = vbcast.lane.b32.xlu0 %v14093_v40, 320 }
 0xa65   : > { %v8401_v56 = vadd.f32 %v14030_v18, %v7370_v36  ;;  %v8404_v39 = vadd.f32 %v14030_v18, %v7373_v13 }
 0xa66   : > { %v3760_v32 = vpop.permute.xlu1 %3759  ;;  %v3775_v9 = vpop.permute.xlu0 %3774 }
 0xa67   : > { %9425 = vst [vmem:[%s12116_s18 + $0x6d8] sm:$0xff] %v8401_v56  ;;  %v7372_v46 = vmul.f32 %v13858_v16, %v3760_v32  ;;  %9428 = vst [vmem:[%s12116_s18 + $0x6f0] sm:$0xff] %v8404_v39  ;;  %v7375_v10 = vmul.f32 %v13686_v62, %v3775_v9  ;;  %v14182_v32 = vld [vmem:[#allocation3 + $0x68] sm:$0xff] }
 0xa68   : > { %4003 = vbcast.lane.b32.xlu1 %v14093_v40, 312  ;;  %4015 = vbcast.lane.b32.xlu0 %v14093_v40, 336 }
 0xa69   : > { %v8403_v15 = vadd.f32 %v14030_v18, %v7372_v46  ;;  %v8406_v47 = vadd.f32 %v14030_v18, %v7375_v10  ;;  %v14186_v10 = vld [vmem:[#allocation3 + $0x80] sm:$0xff] }
 0xa6a   : > { %v3768_v30 = vpop.permute.xlu1 %3767  ;;  %v3783_v21 = vpop.permute.xlu0 %3782 }
 0xa6b   : > { %9427 = vst [vmem:[%s12116_s18 + $0x6e8] sm:$0xff] %v8403_v15  ;;  %v7374_v14 = vmul.f32 %v13868_v17, %v3768_v30  ;;  %9430 = vst [vmem:[%s12116_s18 + $0x700] sm:$0xff] %v8406_v47  ;;  %v7377_v62 = vmul.f32 %v14146_v6, %v3783_v21  ;;  %v14194_v21 = vld [vmem:[#allocation3 + $0x48] sm:$0xff] }
 0xa6c   : > { %4011 = vbcast.lane.b32.xlu1 %v14093_v40, 328  ;;  %4023 = vbcast.lane.b32.xlu0 %v14093_v40, 352 }
 0xa6d   : > { %v8405_v22 = vadd.f32 %v14030_v18, %v7374_v14  ;;  %v8408_v11 = vadd.f32 %v14030_v18, %v7377_v62 }
 0xa6e   : > { %v3779_v27 = vpop.permute.xlu1 %3778  ;;  %v3791_v19 = vpop.permute.xlu0 %3790 }
 0xa6f   : > { %9429 = vst [vmem:[%s12116_s18 + $0x6f8] sm:$0xff] %v8405_v22  ;;  %v7376_v1 = vmul.f32 %v14154_v33, %v3779_v27  ;;  %9432 = vst [vmem:[%s12116_s18 + $0x710] sm:$0xff] %v8408_v11  ;;  %v7379_v48 = vmul.f32 %v14158_v59, %v3791_v19  ;;  %v14198_v11 = vld [vmem:[#allocation3 + $0xe8] sm:$0xff] }
 0xa70   : > { %4019 = vbcast.lane.b32.xlu1 %v14093_v40, 344  ;;  %4031 = vbcast.lane.b32.xlu0 %v14093_v40, 368 }
 0xa71   : > { %v8407_v51 = vadd.f32 %v14030_v18, %v7376_v1  ;;  %v8410_v5 = vadd.f32 %v14030_v18, %v7379_v48  ;;  %v14206_v48 = vld [vmem:[#allocation3 + $0x88] sm:$0xff] }
 0xa72   : > { %v3787_v53 = vpop.permute.xlu1 %3786  ;;  %v3799_v36 = vpop.permute.xlu0 %3798 }
 0xa73   : > { %9431 = vst [vmem:[%s12116_s18 + $0x708] sm:$0xff] %v8407_v51  ;;  %v7378_v54 = vmul.f32 %v14170_v3, %v3787_v53  ;;  %9434 = vst [vmem:[%s12116_s18 + $0x720] sm:$0xff] %v8410_v5  ;;  %v7381_v13 = vmul.f32 %v14174_v49, %v3799_v36  ;;  %v14210_v53 = vld [vmem:[#allocation3 + $0x60] sm:$0xff] }
 0xa74   : > { %4027 = vbcast.lane.b32.xlu1 %v14093_v40, 360  ;;  %4042 = vbcast.lane.b32.xlu0 %v14167_v63, 256 }
 0xa75   : > { %v8409_v56 = vadd.f32 %v14030_v18, %v7378_v54  ;;  %v8412_v24 = vadd.f32 %v14030_v18, %v7381_v13 }
 0xa76   : > { %v3795_v39 = vpop.permute.xlu1 %3794  ;;  %v3807_v9 = vpop.permute.xlu0 %3806 }
 0xa77   : > { %9433 = vst [vmem:[%s12116_s18 + $0x718] sm:$0xff] %v8409_v56  ;;  %v7380_v46 = vmul.f32 %v14182_v32, %v3795_v39  ;;  %9436 = vst [vmem:[%s12116_s18 + $0x730] sm:$0xff] %v8412_v24  ;;  %v7383_v15 = vmul.f32 %v14186_v10, %v3807_v9 }
 0xa78   : > { %4035 = vbcast.lane.b32.xlu1 %v14093_v40, 376  ;;  %4050 = vbcast.lane.b32.xlu0 %v14167_v63, 272 }
 0xa79   : > { %v8411_v47 = vadd.f32 %v14030_v18, %v7380_v46  ;;  %v8414_v30 = vadd.f32 %v14030_v18, %v7383_v15 }
 0xa7a   : > { %v3803_v14 = vpop.permute.xlu1 %3802  ;;  %v3815_v22 = vpop.permute.xlu0 %3814 }
 0xa7b   : > { %9435 = vst [vmem:[%s12116_s18 + $0x728] sm:$0xff] %v8411_v47  ;;  %v7382_v62 = vmul.f32 %v14194_v21, %v3803_v14  ;;  %9438 = vst [vmem:[%s12116_s18 + $0x740] sm:$0xff] %v8414_v30  ;;  %v7385_v40 = vmul.f32 %v14198_v11, %v3815_v22 }
 0xa7c   : > { %4046 = vbcast.lane.b32.xlu1 %v14167_v63, 264  ;;  %4058 = vbcast.lane.b32.xlu0 %v14167_v63, 288 }
 0xa7d   : > { %v8413_v27 = vadd.f32 %v14030_v18, %v7382_v62  ;;  %v8416_v1 = vadd.f32 %v14030_v18, %v7385_v40 }
 0xa7e   : > { %v3811_v19 = vpop.permute.xlu1 %3810  ;;  %v3823_v5 = vpop.permute.xlu0 %3822 }
 0xa7f   : > { %9437 = vst [vmem:[%s12116_s18 + $0x738] sm:$0xff] %v8413_v27  ;;  %v7384_v51 = vmul.f32 %v14206_v48, %v3811_v19  ;;  %9440 = vst [vmem:[%s12116_s18 + $0x750] sm:$0xff] %v8416_v1  ;;  %v7387_v54 = vmul.f32 %v14210_v53, %v3823_v5 }
 0xa80   : > { %4054 = vbcast.lane.b32.xlu1 %v14167_v63, 280  ;;  %4066 = vbcast.lane.b32.xlu0 %v14167_v63, 304 }
 0xa81   : > { %v8415_v36 = vadd.f32 %v14030_v18, %v7384_v51  ;;  %v8418_v13 = vadd.f32 %v14030_v18, %v7387_v54 }
 0xa82   : > { %v3819_v56 = vpop.permute.xlu1 %3818  ;;  %v3831_v39 = vpop.permute.xlu0 %3830 }
 0xa83   : > { %9439 = vst [vmem:[%s12116_s18 + $0x748] sm:$0xff] %v8415_v36  ;;  %v7386_v24 = vmul.f32 %v13746_v35, %v3819_v56  ;;  %9442 = vst [vmem:[%s12116_s18 + $0x760] sm:$0xff] %v8418_v13  ;;  %v7389_v46 = vmul.f32 %v13750_v50, %v3831_v39  ;;  %v14251_v13 = vrot.slane %v12869_v61, %v12849_v38 }
 0xa84   : > { %4062 = vbcast.lane.b32.xlu1 %v14167_v63, 296  ;;  %4074 = vbcast.lane.b32.xlu0 %v14167_v63, 320 }
 0xa85   : > { %v8417_v9 = vadd.f32 %v14030_v18, %v7386_v24  ;;  %v8420_v15 = vadd.f32 %v14030_v18, %v7389_v46 }
 0xa86   : > { %v3827_v47 = vpop.permute.xlu1 %3826  ;;  %v3842_v14 = vpop.permute.xlu0 %3841 }
 0xa87   : > { %9441 = vst [vmem:[%s12116_s18 + $0x758] sm:$0xff] %v8417_v9  ;;  %v7388_v30 = vmul.f32 %v13758_v44, %v3827_v47  ;;  %9444 = vst [vmem:[%s12116_s18 + $0x770] sm:$0xff] %v8420_v15  ;;  %v7391_v35 = vmul.f32 %v13762_v55, %v3842_v14 }
 0xa88   : > { %4070 = vbcast.lane.b32.xlu1 %v14167_v63, 312  ;;  %4082 = vbcast.lane.b32.xlu0 %v14167_v63, 336 }
 0xa89   : > { %v8419_v50 = vadd.f32 %v14030_v18, %v7388_v30  ;;  %v8422_v62 = vadd.f32 %v14030_v18, %v7391_v35 }
 0xa8a   : > { %v3835_v22 = vpop.permute.xlu1 %3834  ;;  %v3850_v27 = vpop.permute.xlu0 %3849 }
 0xa8b   : > { %9443 = vst [vmem:[%s12116_s18 + $0x768] sm:$0xff] %v8419_v50  ;;  %v7390_v40 = vmul.f32 %v13770_v2, %v3835_v22  ;;  %9446 = vst [vmem:[%s12116_s18 + $0x780] sm:$0xff] %v8422_v62  ;;  %v7393_v44 = vmul.f32 %v13774_v42, %v3850_v27 }
 0xa8c   : > { %4078 = vbcast.lane.b32.xlu1 %v14167_v63, 328  ;;  %4090 = vbcast.lane.b32.xlu0 %v14167_v63, 352 }
 0xa8d   : > { %v8421_v55 = vadd.f32 %v14030_v18, %v7390_v40  ;;  %v8424_v1 = vadd.f32 %v14030_v18, %v7393_v44 }
 0xa8e   : > { %v3846_v19 = vpop.permute.xlu1 %3845  ;;  %v3858_v5 = vpop.permute.xlu0 %3857 }
 0xa8f   : > { %9445 = vst [vmem:[%s12116_s18 + $0x778] sm:$0xff] %v8421_v55  ;;  %v7392_v51 = vmul.f32 %v13782_v34, %v3846_v19  ;;  %9448 = vst [vmem:[%s12116_s18 + $0x790] sm:$0xff] %v8424_v1  ;;  %v7395_v2 = vmul.f32 %v13786_v31, %v3858_v5 }
 0xa90   : > { %4086 = vbcast.lane.b32.xlu1 %v14167_v63, 344  ;;  %4098 = vbcast.lane.b32.xlu0 %v14167_v63, 368 }
 0xa91   : > { %v8423_v42 = vadd.f32 %v14030_v18, %v7392_v51  ;;  %v8426_v54 = vadd.f32 %v14030_v18, %v7395_v2 }
 0xa92   : > { %v3854_v36 = vpop.permute.xlu1 %3853  ;;  %v3866_v56 = vpop.permute.xlu0 %3865 }
 0xa93   : > { %9447 = vst [vmem:[%s12116_s18 + $0x788] sm:$0xff] %v8423_v42  ;;  %v7394_v34 = vmul.f32 %v13798_v29, %v3854_v36  ;;  %9450 = vst [vmem:[%s12116_s18 + $0x7a0] sm:$0xff] %v8426_v54  ;;  %v7397_v31 = vmul.f32 %v13802_v20, %v3866_v56 }
 0xa94   : > { %4094 = vbcast.lane.b32.xlu1 %v14167_v63, 360  ;;  %4109 = vbcast.lane.b32.xlu0 %v14251_v13, 256 }
 0xa95   : > { %v8425_v24 = vadd.f32 %v14030_v18, %v7394_v34  ;;  %v8428_v39 = vadd.f32 %v14030_v18, %v7397_v31 }
 0xa96   : > { %v3862_v46 = vpop.permute.xlu1 %3861  ;;  %v3874_v9 = vpop.permute.xlu0 %3873 }
 0xa97   : > { %9449 = vst [vmem:[%s12116_s18 + $0x798] sm:$0xff] %v8425_v24  ;;  %v7396_v61 = vmul.f32 %v13810_v7, %v3862_v46  ;;  %9452 = vst [vmem:[%s12116_s18 + $0x7b0] sm:$0xff] %v8428_v39  ;;  %v7399_v29 = vmul.f32 %v13814_v12, %v3874_v9 }
 0xa98   : > { %4102 = vbcast.lane.b32.xlu1 %v14167_v63, 376  ;;  %4117 = vbcast.lane.b32.xlu0 %v14251_v13, 272 }
 0xa99   : > { %v8427_v20 = vadd.f32 %v14030_v18, %v7396_v61  ;;  %v8430_v15 = vadd.f32 %v14030_v18, %v7399_v29 }
 0xa9a   : > { %v3870_v47 = vpop.permute.xlu1 %3869  ;;  %v3882_v14 = vpop.permute.xlu0 %3881 }
 0xa9b   : > { %9451 = vst [vmem:[%s12116_s18 + $0x7a8] sm:$0xff] %v8427_v20  ;;  %v7398_v30 = vmul.f32 %v13822_v26, %v3870_v47  ;;  %9454 = vst [vmem:[%s12116_s18 + $0x7c0] sm:$0xff] %v8430_v15  ;;  %v7401_v7 = vmul.f32 %v13826_v37, %v3882_v14 }
 0xa9c   : > { %4113 = vbcast.lane.b32.xlu1 %v14251_v13, 264  ;;  %4125 = vbcast.lane.b32.xlu0 %v14251_v13, 288 }
 0xa9d   : > { %v8429_v12 = vadd.f32 %v14030_v18, %v7398_v30  ;;  %v8432_v63 = vadd.f32 %v14030_v18, %v7401_v7 }
 0xa9e   : > { %v3878_v35 = vpop.permute.xlu1 %3877  ;;  %v3890_v62 = vpop.permute.xlu0 %3889 }
 0xa9f   : > { %9453 = vst [vmem:[%s12116_s18 + $0x7b8] sm:$0xff] %v8429_v12  ;;  %v7400_v50 = vmul.f32 %v13834_v8, %v3878_v35  ;;  %9456 = vst [vmem:[%s12116_s18 + $0x7d0] sm:$0xff] %v8432_v63  ;;  %v7403_v26 = vmul.f32 %v13838_v60, %v3890_v62 }
 0xaa0   : > { %4121 = vbcast.lane.b32.xlu1 %v14251_v13, 280  ;;  %4133 = vbcast.lane.b32.xlu0 %v14251_v13, 304 }
 0xaa1   : > { %v8431_v37 = vadd.f32 %v14030_v18, %v7400_v50  ;;  %v8434_v22 = vadd.f32 %v14030_v18, %v7403_v26 }
 0xaa2   : > { %v3886_v40 = vpop.permute.xlu1 %3885  ;;  %v3898_v44 = vpop.permute.xlu0 %3897 }
 0xaa3   : > { %9455 = vst [vmem:[%s12116_s18 + $0x7c8] sm:$0xff] %v8431_v37  ;;  %v7402_v27 = vmul.f32 %v13846_v52, %v3886_v40  ;;  %9458 = vst [vmem:[%s12116_s18 + $0x7e0] sm:$0xff] %v8434_v22  ;;  %v7405_v8 = vmul.f32 %v13850_v57, %v3898_v44  ;;  %v14296_v52 = vld [vmem:[#allocation3 + $0xb0] sm:$0xff] }
 0xaa4   : > { %4129 = vbcast.lane.b32.xlu1 %v14251_v13, 296  ;;  %4141 = vbcast.lane.b32.xlu0 %v14251_v13, 320 }
 0xaa5   : > { %v8433_v60 = vadd.f32 %v14030_v18, %v7402_v27  ;;  %v8436_v55 = vadd.f32 %v14030_v18, %v7405_v8 }
 0xaa6   : > { %v3894_v1 = vpop.permute.xlu1 %3893  ;;  %v3909_v51 = vpop.permute.xlu0 %3908 }
 0xaa7   : > { %9457 = vst [vmem:[%s12116_s18 + $0x7d8] sm:$0xff] %v8433_v60  ;;  %v7404_v19 = vmul.f32 %v13858_v16, %v3894_v1  ;;  %9460 = vst [vmem:[%s12116_s18 + $0x7f0] sm:$0xff] %v8436_v55  ;;  %v7407_v57 = vmul.f32 %v14296_v52, %v3909_v51  ;;  %v14352_v51 = vld [vmem:[#allocation3 + $0xb8] sm:$0xff] }
 0xaa8   : > { %4137 = vbcast.lane.b32.xlu1 %v14251_v13, 312  ;;  %4149 = vbcast.lane.b32.xlu0 %v14251_v13, 336 }
 0xaa9   : > { %v8435_v5 = vadd.f32 %v14030_v18, %v7404_v19  ;;  %v8438_v2 = vadd.f32 %v14030_v18, %v7407_v57 }
 0xaaa   : > { %v3902_v42 = vpop.permute.xlu1 %3901  ;;  %v3917_v54 = vpop.permute.xlu0 %3916 }
 0xaab   : > { %9459 = vst [vmem:[%s12116_s18 + $0x7e8] sm:$0xff] %v8435_v5  ;;  %v7406_v16 = vmul.f32 %v13868_v17, %v3902_v42  ;;  %9462 = vst [vmem:[%s12116_s18 + $0x800] sm:$0xff] %v8438_v2  ;;  %v7409_v36 = vmul.f32 %v14146_v6, %v3917_v54  ;;  %v14356_v2 = vld [vmem:[#allocation3 + $0x8] sm:$0xff] }
 0xaac   : > { %4145 = vbcast.lane.b32.xlu1 %v14251_v13, 328  ;;  %4157 = vbcast.lane.b32.xlu0 %v14251_v13, 352 }
 0xaad   : > { %v8437_v34 = vadd.f32 %v14030_v18, %v7406_v16  ;;  %v8440_v56 = vadd.f32 %v14030_v18, %v7409_v36 }
 0xaae   : > { %v3913_v31 = vpop.permute.xlu1 %3912  ;;  %v3925_v39 = vpop.permute.xlu0 %3924 }
 0xaaf   : > { %9461 = vst [vmem:[%s12116_s18 + $0x7f8] sm:$0xff] %v8437_v34  ;;  %v7408_v24 = vmul.f32 %v14154_v33, %v3913_v31  ;;  %9464 = vst [vmem:[%s12116_s18 + $0x810] sm:$0xff] %v8440_v56  ;;  %v7411_v17 = vmul.f32 %v14158_v59, %v3925_v39  ;;  %v14364_v34 = vld [vmem:[#allocation3 + $0xf0] sm:$0xff] }
 0xab0   : > { %4153 = vbcast.lane.b32.xlu1 %v14251_v13, 344  ;;  %4165 = vbcast.lane.b32.xlu0 %v14251_v13, 368 }
 0xab1   : > { %v8439_v46 = vadd.f32 %v14030_v18, %v7408_v24  ;;  %v8442_v61 = vadd.f32 %v14030_v18, %v7411_v17  ;;  %v14368_v24 = vld [vmem:[#allocation3 + $0x38] sm:$0xff] }
 0xab2   : > { %v3921_v9 = vpop.permute.xlu1 %3920  ;;  %v3933_v20 = vpop.permute.xlu0 %3932 }
 0xab3   : > { %9463 = vst [vmem:[%s12116_s18 + $0x808] sm:$0xff] %v8439_v46  ;;  %v7410_v29 = vmul.f32 %v14170_v3, %v3921_v9  ;;  %9466 = vst [vmem:[%s12116_s18 + $0x820] sm:$0xff] %v8442_v61  ;;  %v7413_v15 = vmul.f32 %v14174_v49, %v3933_v20  ;;  %v14376_v9 = vld [vmem:[#allocation3 + $0x78] sm:$0xff] }
 0xab4   : > { %4161 = vbcast.lane.b32.xlu1 %v14251_v13, 360  ;;  %4176 = vbcast.lane.b32.xlu0 %v12892_v58, 256 }
 0xab5   : > { %v8441_v47 = vadd.f32 %v14030_v18, %v7410_v29  ;;  %v8444_v30 = vadd.f32 %v14030_v18, %v7413_v15  ;;  %v14380_v15 = vld [vmem:[#allocation3 + $0x40] sm:$0xff] }
 0xab6   : > { %v3929_v14 = vpop.permute.xlu1 %3928  ;;  %v3941_v12 = vpop.permute.xlu0 %3940 }
 0xab7   : > { %9465 = vst [vmem:[%s12116_s18 + $0x818] sm:$0xff] %v8441_v47  ;;  %v7412_v7 = vmul.f32 %v14182_v32, %v3929_v14  ;;  %9468 = vst [vmem:[%s12116_s18 + $0x830] sm:$0xff] %v8444_v30  ;;  %v7415_v63 = vmul.f32 %v14186_v10, %v3941_v12  ;;  %v14388_v12 = vld [vmem:[#allocation3 + $0x58] sm:$0xff] }
 0xab8   : > { %4169 = vbcast.lane.b32.xlu1 %v14251_v13, 376  ;;  %4184 = vbcast.lane.b32.xlu0 %v12892_v58, 272 }
 0xab9   : > { %v8443_v35 = vadd.f32 %v14030_v18, %v7412_v7  ;;  %v8446_v50 = vadd.f32 %v14030_v18, %v7415_v63 }
 0xaba   : > { %v3937_v62 = vpop.permute.xlu1 %3936  ;;  %v3949_v37 = vpop.permute.xlu0 %3948 }
 0xabb   : > { %9467 = vst [vmem:[%s12116_s18 + $0x828] sm:$0xff] %v8443_v35  ;;  %v7414_v26 = vmul.f32 %v14194_v21, %v3937_v62  ;;  %9470 = vst [vmem:[%s12116_s18 + $0x840] sm:$0xff] %v8446_v50  ;;  %v7417_v22 = vmul.f32 %v14198_v11, %v3949_v37  ;;  %v14392_v50 = vld [vmem:[#allocation3 + $0xe0] sm:$0xff] }
 0xabc   : > { %4180 = vbcast.lane.b32.xlu1 %v12892_v58, 264  ;;  %4192 = vbcast.lane.b32.xlu0 %v12892_v58, 288 }
 0xabd   : > { %v8445_v13 = vadd.f32 %v14030_v18, %v7414_v26  ;;  %v8448_v40 = vadd.f32 %v14030_v18, %v7417_v22 }
 0xabe   : > { %v3945_v27 = vpop.permute.xlu1 %3944  ;;  %v3957_v8 = vpop.permute.xlu0 %3956 }
 0xabf   : > { %9469 = vst [vmem:[%s12116_s18 + $0x838] sm:$0xff] %v8445_v13  ;;  %v7416_v44 = vmul.f32 %v14206_v48, %v3945_v27  ;;  %9472 = vst [vmem:[%s12116_s18 + $0x850] sm:$0xff] %v8448_v40  ;;  %v7419_v60 = vmul.f32 %v14210_v53, %v3957_v8  ;;  %v14400_v13 = vld [vmem:[#allocation3 + $0xc8] sm:$0xff] }
 0xac0   : > { %4188 = vbcast.lane.b32.xlu1 %v12892_v58, 280  ;;  %4200 = vbcast.lane.b32.xlu0 %v12892_v58, 304 }
 0xac1   : > { %v8447_v55 = vadd.f32 %v14030_v18, %v7416_v44  ;;  %v8450_v1 = vadd.f32 %v14030_v18, %v7419_v60  ;;  %v14404_v44 = vld [vmem:[#allocation3 + $0x70] sm:$0xff] }
 0xac2   : > { %v3953_v19 = vpop.permute.xlu1 %3952  ;;  %v3965_v5 = vpop.permute.xlu0 %3964 }
 0xac3   : > { %9471 = vst [vmem:[%s12116_s18 + $0x848] sm:$0xff] %v8447_v55  ;;  %v7418_v57 = vmul.f32 %v14352_v51, %v3953_v19  ;;  %9474 = vst [vmem:[%s12116_s18 + $0x860] sm:$0xff] %v8450_v1  ;;  %v7421_v42 = vmul.f32 %v14356_v2, %v3965_v5  ;;  %v14412_v19 = vld [vmem:[#allocation3 + $0x90] sm:$0xff] }
 0xac4   : > { %4196 = vbcast.lane.b32.xlu1 %v12892_v58, 296  ;;  %4208 = vbcast.lane.b32.xlu0 %v12892_v58, 320 }
 0xac5   : > { %v8449_v16 = vadd.f32 %v14030_v18, %v7418_v57  ;;  %v8452_v54 = vadd.f32 %v14030_v18, %v7421_v42  ;;  %v14416_v42 = vld [vmem:[#allocation3 + $0xa8] sm:$0xff] }
 0xac6   : > { %v3961_v36 = vpop.permute.xlu1 %3960  ;;  %v3976_v31 = vpop.permute.xlu0 %3975 }
 0xac7   : > { %9473 = vst [vmem:[%s12116_s18 + $0x858] sm:$0xff] %v8449_v16  ;;  %v7420_v56 = vmul.f32 %v14364_v34, %v3961_v36  ;;  %9476 = vst [vmem:[%s12116_s18 + $0x870] sm:$0xff] %v8452_v54  ;;  %v7423_v39 = vmul.f32 %v14368_v24, %v3976_v31  ;;  %v14424_v31 = vld [vmem:[#allocation3 + $0xc0] sm:$0xff] }
 0xac8   : > { %4204 = vbcast.lane.b32.xlu1 %v12892_v58, 312  ;;  %4216 = vbcast.lane.b32.xlu0 %v12892_v58, 336 }
 0xac9   : > { %v8451_v17 = vadd.f32 %v14030_v18, %v7420_v56  ;;  %v8454_v46 = vadd.f32 %v14030_v18, %v7423_v39 }
 0xaca   : > { %v3969_v61 = vpop.permute.xlu1 %3968  ;;  %v3984_v20 = vpop.permute.xlu0 %3983 }
 0xacb   : > { %9475 = vst [vmem:[%s12116_s18 + $0x868] sm:$0xff] %v8451_v17  ;;  %v7422_v29 = vmul.f32 %v14376_v9, %v3969_v61  ;;  %9478 = vst [vmem:[%s12116_s18 + $0x880] sm:$0xff] %v8454_v46  ;;  %v7425_v47 = vmul.f32 %v14380_v15, %v3984_v20  ;;  %v14428_v46 = vld [vmem:[#allocation3 + $0x10] sm:$0xff] }
 0xacc   : > { %4212 = vbcast.lane.b32.xlu1 %v12892_v58, 328  ;;  %4224 = vbcast.lane.b32.xlu0 %v12892_v58, 352 }
 0xacd   : > { %v8453_v30 = vadd.f32 %v14030_v18, %v7422_v29  ;;  %v8456_v14 = vadd.f32 %v14030_v18, %v7425_v47  ;;  %v14436_v47 = vld [vmem:[#allocation3 + $0xd0] sm:$0xff] }
 0xace   : > { %v3980_v7 = vpop.permute.xlu1 %3979  ;;  %v3992_v35 = vpop.permute.xlu0 %3991 }
 0xacf   : > { %9477 = vst [vmem:[%s12116_s18 + $0x878] sm:$0xff] %v8453_v30  ;;  %v7424_v63 = vmul.f32 %v14388_v12, %v3980_v7  ;;  %9480 = vst [vmem:[%s12116_s18 + $0x890] sm:$0xff] %v8456_v14  ;;  %v7427_v62 = vmul.f32 %v14392_v50, %v3992_v35  ;;  %v14440_v7 = vld [vmem:[#allocation3 + $0xa0] sm:$0xff] }
 0xad0   : > { %4220 = vbcast.lane.b32.xlu1 %v12892_v58, 344  ;;  %4232 = vbcast.lane.b32.xlu0 %v12892_v58, 368 }
 0xad1   : > { %v8455_v26 = vadd.f32 %v14030_v18, %v7424_v63  ;;  %v8458_v37 = vadd.f32 %v14030_v18, %v7427_v62 }
 0xad2   : > { %v3988_v22 = vpop.permute.xlu1 %3987  ;;  %v4000_v27 = vpop.permute.xlu0 %3999 }
 0xad3   : > { %9479 = vst [vmem:[%s12116_s18 + $0x888] sm:$0xff] %v8455_v26  ;;  %v7426_v40 = vmul.f32 %v14400_v13, %v3988_v22  ;;  %9482 = vst [vmem:[%s12116_s18 + $0x8a0] sm:$0xff] %v8458_v37  ;;  %v7429_v8 = vmul.f32 %v14404_v44, %v4000_v27  ;;  %v14448_v37 = vld [vmem:[#allocation3 + $0x28] sm:$0xff]  ;;  %v14452_v27 = vld [vmem:[#allocation3 + $0x20] sm:$0xff] }
 0xad4   : > { %4228 = vbcast.lane.b32.xlu1 %v12892_v58, 360  ;;  %4243 = vbcast.lane.b32.xlu0 %v12896_v45, 256 }
 0xad5   : > { %v8457_v60 = vadd.f32 %v14030_v18, %v7426_v40  ;;  %v8460_v55 = vadd.f32 %v14030_v18, %v7429_v8 }
 0xad6   : > { %v3996_v1 = vpop.permute.xlu1 %3995  ;;  %v4008_v5 = vpop.permute.xlu0 %4007 }
 0xad7   : > { %9481 = vst [vmem:[%s12116_s18 + $0x898] sm:$0xff] %v8457_v60  ;;  %v7428_v57 = vmul.f32 %v14412_v19, %v3996_v1  ;;  %9484 = vst [vmem:[%s12116_s18 + $0x8b0] sm:$0xff] %v8460_v55  ;;  %v7431_v16 = vmul.f32 %v14416_v42, %v4008_v5 }
 0xad8   : > { %4236 = vbcast.lane.b32.xlu1 %v12892_v58, 376  ;;  %4251 = vbcast.lane.b32.xlu0 %v12896_v45, 272 }
 0xad9   : > { %v8459_v54 = vadd.f32 %v14030_v18, %v7428_v57  ;;  %v8462_v36 = vadd.f32 %v14030_v18, %v7431_v16  ;;  %v14460_v57 = vld [vmem:[#allocation3 + $0xf8] sm:$0xff] }
 0xada   : > { %v4004_v56 = vpop.permute.xlu1 %4003  ;;  %v4016_v17 = vpop.permute.xlu0 %4015 }
 0xadb   : > { %9483 = vst [vmem:[%s12116_s18 + $0x8a8] sm:$0xff] %v8459_v54  ;;  %v7430_v39 = vmul.f32 %v14424_v31, %v4004_v56  ;;  %9486 = vst [vmem:[%s12116_s18 + $0x8c0] sm:$0xff] %v8462_v36  ;;  %v7433_v58 = vmul.f32 %v14428_v46, %v4016_v17  ;;  %v14470_v17 = vld [vmem:[#allocation3 + $0x98] sm:$0xff] }
 0xadc   : > { %4247 = vbcast.lane.b32.xlu1 %v12896_v45, 264  ;;  %4259 = vbcast.lane.b32.xlu0 %v12896_v45, 288 }
 0xadd   : > { %v8461_v61 = vadd.f32 %v14030_v18, %v7430_v39  ;;  %v8464_v29 = vadd.f32 %v14030_v18, %v7433_v58 }
 0xade   : > { %v4012_v20 = vpop.permute.xlu1 %4011  ;;  %v4024_v14 = vpop.permute.xlu0 %4023 }
 0xadf   : > { %9485 = vst [vmem:[%s12116_s18 + $0x8b8] sm:$0xff] %v8461_v61  ;;  %v7432_v30 = vmul.f32 %v14436_v47, %v4012_v20  ;;  %9488 = vst [vmem:[%s12116_s18 + $0x8d0] sm:$0xff] %v8464_v29  ;;  %v7435_v63 = vmul.f32 %v14440_v7, %v4024_v14 }
 0xae0   : > { %4255 = vbcast.lane.b32.xlu1 %v12896_v45, 280  ;;  %4267 = vbcast.lane.b32.xlu0 %v12896_v45, 304 }
 0xae1   : > { %v8463_v35 = vadd.f32 %v14030_v18, %v7432_v30  ;;  %v8466_v62 = vadd.f32 %v14030_v18, %v7435_v63 }
 0xae2   : > { %v4020_v26 = vpop.permute.xlu1 %4019  ;;  %v4032_v40 = vpop.permute.xlu0 %4031 }
 0xae3   : > { %9487 = vst [vmem:[%s12116_s18 + $0x8c8] sm:$0xff] %v8463_v35  ;;  %v7434_v22 = vmul.f32 %v14448_v37, %v4020_v26  ;;  %9490 = vst [vmem:[%s12116_s18 + $0x8e0] sm:$0xff] %v8466_v62  ;;  %v7437_v8 = vmul.f32 %v14452_v27, %v4032_v40 }
 0xae4   : > { %4263 = vbcast.lane.b32.xlu1 %v12896_v45, 296  ;;  %4275 = vbcast.lane.b32.xlu0 %v12896_v45, 320 }
 0xae5   : > { %v8465_v60 = vadd.f32 %v14030_v18, %v7434_v22  ;;  %v8468_v55 = vadd.f32 %v14030_v18, %v7437_v8 }
 0xae6   : > { %v4028_v1 = vpop.permute.xlu1 %4027  ;;  %v4043_v16 = vpop.permute.xlu0 %4042 }
 0xae7   : > { %9489 = vst [vmem:[%s12116_s18 + $0x8d8] sm:$0xff] %v8465_v60  ;;  %v7436_v5 = vmul.f32 %v14460_v57, %v4028_v1  ;;  %9492 = vst [vmem:[%s12116_s18 + $0x8f0] sm:$0xff] %v8468_v55  ;;  %v7439_v54 = vmul.f32 %v14296_v52, %v4043_v16 }
 0xae8   : > { %4271 = vbcast.lane.b32.xlu1 %v12896_v45, 312  ;;  %4283 = vbcast.lane.b32.xlu0 %v12896_v45, 336 }
 0xae9   : > { %v8467_v36 = vadd.f32 %v14030_v18, %v7436_v5  ;;  %v8470_v56 = vadd.f32 %v14030_v18, %v7439_v54 }
 0xaea   : > { %v4036_v39 = vpop.permute.xlu1 %4035  ;;  %v4051_v61 = vpop.permute.xlu0 %4050 }
 0xaeb   : > { %9491 = vst [vmem:[%s12116_s18 + $0x8e8] sm:$0xff] %v8467_v36  ;;  %v7438_v58 = vmul.f32 %v14470_v17, %v4036_v39  ;;  %9494 = vst [vmem:[%s12116_s18 + $0x900] sm:$0xff] %v8470_v56  ;;  %v7441_v29 = vmul.f32 %v14146_v6, %v4051_v61 }
 0xaec   : > { %4279 = vbcast.lane.b32.xlu1 %v12896_v45, 328  ;;  %4291 = vbcast.lane.b32.xlu0 %v12896_v45, 352 }
 0xaed   : > { %v8469_v20 = vadd.f32 %v14030_v18, %v7438_v58  ;;  %v8472_v30 = vadd.f32 %v14030_v18, %v7441_v29 }
 0xaee   : > { %v4047_v14 = vpop.permute.xlu1 %4046  ;;  %v4059_v35 = vpop.permute.xlu0 %4058 }
 0xaef   : > { %9493 = vst [vmem:[%s12116_s18 + $0x8f8] sm:$0xff] %v8469_v20  ;;  %v7440_v63 = vmul.f32 %v14154_v33, %v4047_v14  ;;  %9496 = vst [vmem:[%s12116_s18 + $0x910] sm:$0xff] %v8472_v30  ;;  %v7443_v62 = vmul.f32 %v14158_v59, %v4059_v35 }
 0xaf0   : > { %4287 = vbcast.lane.b32.xlu1 %v12896_v45, 344  ;;  %4299 = vbcast.lane.b32.xlu0 %v12896_v45, 368 }
 0xaf1   : > { %v8471_v26 = vadd.f32 %v14030_v18, %v7440_v63  ;;  %v8474_v22 = vadd.f32 %v14030_v18, %v7443_v62 }
 0xaf2   : > { %v4055_v40 = vpop.permute.xlu1 %4054  ;;  %v4067_v60 = vpop.permute.xlu0 %4066 }
 0xaf3   : > { %9495 = vst [vmem:[%s12116_s18 + $0x908] sm:$0xff] %v8471_v26  ;;  %v7442_v8 = vmul.f32 %v14170_v3, %v4055_v40  ;;  %9498 = vst [vmem:[%s12116_s18 + $0x920] sm:$0xff] %v8474_v22  ;;  %v7445_v55 = vmul.f32 %v14174_v49, %v4067_v60  ;;  %v14516_v22 = vld [vmem:[#allocation19] ss:$0 sm:$0xff] }
 0xaf4   : > { %4295 = vbcast.lane.b32.xlu1 %v12896_v45, 360  ;;  %4310 = vbcast.lane.b32.xlu0 %v12900_v0, 256 }
 0xaf5   : > { %v8473_v1 = vadd.f32 %v14030_v18, %v7442_v8  ;;  %v8476_v5 = vadd.f32 %v14030_v18, %v7445_v55 }
 0xaf6   : > { %v4063_v16 = vpop.permute.xlu1 %4062  ;;  %v4075_v36 = vpop.permute.xlu0 %4074 }
 0xaf7   : > { %9497 = vst [vmem:[%s12116_s18 + $0x918] sm:$0xff] %v8473_v1  ;;  %v7444_v54 = vmul.f32 %v14182_v32, %v4063_v16  ;;  %9500 = vst [vmem:[%s12116_s18 + $0x930] sm:$0xff] %v8476_v5  ;;  %v7447_v56 = vmul.f32 %v14186_v10, %v4075_v36 }
 0xaf8   : > { %4303 = vbcast.lane.b32.xlu1 %v12896_v45, 376  ;;  %4318 = vbcast.lane.b32.xlu0 %v12900_v0, 272 }
 0xaf9   : > { %v8475_v39 = vadd.f32 %v14030_v18, %v7444_v54  ;;  %v8478_v58 = vadd.f32 %v14030_v18, %v7447_v56 }
 0xafa   : > { %v4071_v61 = vpop.permute.xlu1 %4070  ;;  %v4083_v20 = vpop.permute.xlu0 %4082 }
 0xafb   : > { %9499 = vst [vmem:[%s12116_s18 + $0x928] sm:$0xff] %v8475_v39  ;;  %v7446_v29 = vmul.f32 %v14194_v21, %v4071_v61  ;;  %9502 = vst [vmem:[%s12116_s18 + $0x940] sm:$0xff] %v8478_v58  ;;  %v7449_v30 = vmul.f32 %v14198_v11, %v4083_v20 }
 0xafc   : > { %4314 = vbcast.lane.b32.xlu1 %v12900_v0, 264  ;;  %4326 = vbcast.lane.b32.xlu0 %v12900_v0, 288 }
 0xafd   : > { %v8477_v45 = vadd.f32 %v14030_v18, %v7446_v29  ;;  %v8480_v14 = vadd.f32 %v14030_v18, %v7449_v30 }
 0xafe   : > { %v4079_v63 = vpop.permute.xlu1 %4078  ;;  %v4091_v62 = vpop.permute.xlu0 %4090 }
 0xaff   : > { %9501 = vst [vmem:[%s12116_s18 + $0x938] sm:$0xff] %v8477_v45  ;;  %v7448_v35 = vmul.f32 %v14206_v48, %v4079_v63  ;;  %9504 = vst [vmem:[%s12116_s18 + $0x950] sm:$0xff] %v8480_v14  ;;  %v7451_v26 = vmul.f32 %v14210_v53, %v4091_v62 }
 0xb00   : > { %4322 = vbcast.lane.b32.xlu1 %v12900_v0, 280  ;;  %4334 = vbcast.lane.b32.xlu0 %v12900_v0, 304 }
 0xb01   : > { %v8479_v40 = vadd.f32 %v14516_v22, %v7448_v35  ;;  %v8482_v18 = vadd.f32 %v14516_v22, %v7451_v26 }
 0xb02   : > { %v4087_v8 = vpop.permute.xlu1 %4086  ;;  %v4099_v55 = vpop.permute.xlu0 %4098 }
 0xb03   : > { %9503 = vst [vmem:[%s12116_s18 + $0x948] sm:$0xff] %v8479_v40  ;;  %v7450_v60 = vmul.f32 %v14352_v51, %v4087_v8  ;;  %9506 = vst [vmem:[%s12116_s18 + $0x960] sm:$0xff] %v8482_v18  ;;  %v7453_v1 = vmul.f32 %v14356_v2, %v4099_v55 }
 0xb04   : > { %4330 = vbcast.lane.b32.xlu1 %v12900_v0, 296  ;;  %4342 = vbcast.lane.b32.xlu0 %v12900_v0, 320 }
 0xb05   : > { %v8481_v5 = vadd.f32 %v14516_v22, %v7450_v60  ;;  %v8484_v16 = vadd.f32 %v14516_v22, %v7453_v1 }
 0xb06   : > { %v4095_v54 = vpop.permute.xlu1 %4094  ;;  %v4110_v56 = vpop.permute.xlu0 %4109 }
 0xb07   : > { %9505 = vst [vmem:[%s12116_s18 + $0x958] sm:$0xff] %v8481_v5  ;;  %v7452_v36 = vmul.f32 %v14364_v34, %v4095_v54  ;;  %9508 = vst [vmem:[%s12116_s18 + $0x970] sm:$0xff] %v8484_v16  ;;  %v7455_v39 = vmul.f32 %v14368_v24, %v4110_v56 }
 0xb08   : > { %4338 = vbcast.lane.b32.xlu1 %v12900_v0, 312  ;;  %4350 = vbcast.lane.b32.xlu0 %v12900_v0, 336 }
 0xb09   : > { %v8483_v58 = vadd.f32 %v14516_v22, %v7452_v36  ;;  %v8486_v61 = vadd.f32 %v14516_v22, %v7455_v39 }
 0xb0a   : > { %v4103_v29 = vpop.permute.xlu1 %4102  ;;  %v4118_v30 = vpop.permute.xlu0 %4117 }
 0xb0b   : > { %9507 = vst [vmem:[%s12116_s18 + $0x968] sm:$0xff] %v8483_v58  ;;  %v7454_v20 = vmul.f32 %v14376_v9, %v4103_v29  ;;  %9510 = vst [vmem:[%s12116_s18 + $0x980] sm:$0xff] %v8486_v61  ;;  %v7457_v45 = vmul.f32 %v14380_v15, %v4118_v30 }
 0xb0c   : > { %4346 = vbcast.lane.b32.xlu1 %v12900_v0, 328  ;;  %4358 = vbcast.lane.b32.xlu0 %v12900_v0, 352 }
 0xb0d   : > { %v8485_v14 = vadd.f32 %v14516_v22, %v7454_v20  ;;  %v8488_v63 = vadd.f32 %v14516_v22, %v7457_v45 }
 0xb0e   : > { %v4114_v35 = vpop.permute.xlu1 %4113  ;;  %v4126_v26 = vpop.permute.xlu0 %4125 }
 0xb0f   : > { %9509 = vst [vmem:[%s12116_s18 + $0x978] sm:$0xff] %v8485_v14  ;;  %v7456_v62 = vmul.f32 %v14388_v12, %v4114_v35  ;;  %9512 = vst [vmem:[%s12116_s18 + $0x990] sm:$0xff] %v8488_v63  ;;  %v7459_v40 = vmul.f32 %v14392_v50, %v4126_v26 }
 0xb10   : > { %4354 = vbcast.lane.b32.xlu1 %v12900_v0, 344  ;;  %4366 = vbcast.lane.b32.xlu0 %v12900_v0, 368 }
 0xb11   : > { %v8487_v18 = vadd.f32 %v14516_v22, %v7456_v62  ;;  %v8490_v8 = vadd.f32 %v14516_v22, %v7459_v40 }
 0xb12   : > { %v4122_v60 = vpop.permute.xlu1 %4121  ;;  %v4134_v1 = vpop.permute.xlu0 %4133 }
 0xb13   : > { %9511 = vst [vmem:[%s12116_s18 + $0x988] sm:$0xff] %v8487_v18  ;;  %v7458_v55 = vmul.f32 %v14400_v13, %v4122_v60  ;;  %9514 = vst [vmem:[%s12116_s18 + $0x9a0] sm:$0xff] %v8490_v8  ;;  %v7461_v5 = vmul.f32 %v14404_v44, %v4134_v1 }
 0xb14   : > { %4362 = vbcast.lane.b32.xlu1 %v12900_v0, 360  ;;  %4377 = vbcast.lane.b32.xlu0 %v12904_v4, 256 }
 0xb15   : > { %v8489_v16 = vadd.f32 %v14516_v22, %v7458_v55  ;;  %v8492_v54 = vadd.f32 %v14516_v22, %v7461_v5 }
 0xb16   : > { %v4130_v36 = vpop.permute.xlu1 %4129  ;;  %v4142_v39 = vpop.permute.xlu0 %4141 }
 0xb17   : > { %9513 = vst [vmem:[%s12116_s18 + $0x998] sm:$0xff] %v8489_v16  ;;  %v7460_v56 = vmul.f32 %v14412_v19, %v4130_v36  ;;  %9516 = vst [vmem:[%s12116_s18 + $0x9b0] sm:$0xff] %v8492_v54  ;;  %v7463_v58 = vmul.f32 %v14416_v42, %v4142_v39 }
 0xb18   : > { %4370 = vbcast.lane.b32.xlu1 %v12900_v0, 376  ;;  %4385 = vbcast.lane.b32.xlu0 %v12904_v4, 272 }
 0xb19   : > { %v8491_v61 = vadd.f32 %v14516_v22, %v7460_v56  ;;  %v8494_v29 = vadd.f32 %v14516_v22, %v7463_v58 }
 0xb1a   : > { %v4138_v20 = vpop.permute.xlu1 %4137  ;;  %v4150_v45 = vpop.permute.xlu0 %4149 }
 0xb1b   : > { %9515 = vst [vmem:[%s12116_s18 + $0x9a8] sm:$0xff] %v8491_v61  ;;  %v7462_v30 = vmul.f32 %v14424_v31, %v4138_v20  ;;  %9518 = vst [vmem:[%s12116_s18 + $0x9c0] sm:$0xff] %v8494_v29  ;;  %v7465_v14 = vmul.f32 %v14428_v46, %v4150_v45 }
 0xb1c   : > { %4381 = vbcast.lane.b32.xlu1 %v12904_v4, 264  ;;  %4393 = vbcast.lane.b32.xlu0 %v12904_v4, 288 }
 0xb1d   : > { %v8493_v0 = vadd.f32 %v14516_v22, %v7462_v30  ;;  %v8496_v63 = vadd.f32 %v14516_v22, %v7465_v14 }
 0xb1e   : > { %v4146_v35 = vpop.permute.xlu1 %4145  ;;  %v4158_v26 = vpop.permute.xlu0 %4157 }
 0xb1f   : > { %9517 = vst [vmem:[%s12116_s18 + $0x9b8] sm:$0xff] %v8493_v0  ;;  %v7464_v62 = vmul.f32 %v14436_v47, %v4146_v35  ;;  %9520 = vst [vmem:[%s12116_s18 + $0x9d0] sm:$0xff] %v8496_v63  ;;  %v7467_v40 = vmul.f32 %v14440_v7, %v4158_v26 }
 0xb20   : > { %4389 = vbcast.lane.b32.xlu1 %v12904_v4, 280  ;;  %4401 = vbcast.lane.b32.xlu0 %v12904_v4, 304 }
 0xb21   : > { %v8495_v18 = vadd.f32 %v14516_v22, %v7464_v62  ;;  %v8498_v8 = vadd.f32 %v14516_v22, %v7467_v40 }
 0xb22   : > { %v4154_v60 = vpop.permute.xlu1 %4153  ;;  %v4166_v1 = vpop.permute.xlu0 %4165 }
 0xb23   : > { %9519 = vst [vmem:[%s12116_s18 + $0x9c8] sm:$0xff] %v8495_v18  ;;  %v7466_v55 = vmul.f32 %v14448_v37, %v4154_v60  ;;  %9522 = vst [vmem:[%s12116_s18 + $0x9e0] sm:$0xff] %v8498_v8  ;;  %v7469_v5 = vmul.f32 %v14452_v27, %v4166_v1 }
 0xb24   : > { %4397 = vbcast.lane.b32.xlu1 %v12904_v4, 296  ;;  %4409 = vbcast.lane.b32.xlu0 %v12904_v4, 320 }
 0xb25   : > { %v8497_v16 = vadd.f32 %v14516_v22, %v7466_v55  ;;  %v8500_v54 = vadd.f32 %v14516_v22, %v7469_v5 }
 0xb26   : > { %v4162_v36 = vpop.permute.xlu1 %4161  ;;  %v4177_v39 = vpop.permute.xlu0 %4176 }
 0xb27   : > { %9521 = vst [vmem:[%s12116_s18 + $0x9d8] sm:$0xff] %v8497_v16  ;;  %v7468_v56 = vmul.f32 %v14460_v57, %v4162_v36  ;;  %9524 = vst [vmem:[%s12116_s18 + $0x9f0] sm:$0xff] %v8500_v54  ;;  %v7471_v58 = vmul.f32 %v14296_v52, %v4177_v39 }
 0xb28   : > { %4405 = vbcast.lane.b32.xlu1 %v12904_v4, 312  ;;  %4417 = vbcast.lane.b32.xlu0 %v12904_v4, 336 }
 0xb29   : > { %v8499_v61 = vadd.f32 %v14516_v22, %v7468_v56  ;;  %v8502_v29 = vadd.f32 %v14516_v22, %v7471_v58 }
 0xb2a   : > { %v4170_v20 = vpop.permute.xlu1 %4169  ;;  %v4185_v45 = vpop.permute.xlu0 %4184 }
 0xb2b   : > { %9523 = vst [vmem:[%s12116_s18 + $0x9e8] sm:$0xff] %v8499_v61  ;;  %v7470_v30 = vmul.f32 %v14470_v17, %v4170_v20  ;;  %9526 = vst [vmem:[%s12116_s18 + $0xa00] sm:$0xff] %v8502_v29  ;;  %v7473_v14 = vmul.f32 %v14146_v6, %v4185_v45 }
 0xb2c   : > { %4413 = vbcast.lane.b32.xlu1 %v12904_v4, 328  ;;  %4425 = vbcast.lane.b32.xlu0 %v12904_v4, 352 }
 0xb2d   : > { %v8501_v0 = vadd.f32 %v14516_v22, %v7470_v30  ;;  %v8504_v63 = vadd.f32 %v14516_v22, %v7473_v14 }
 0xb2e   : > { %v4181_v35 = vpop.permute.xlu1 %4180  ;;  %v4193_v26 = vpop.permute.xlu0 %4192 }
 0xb2f   : > { %9525 = vst [vmem:[%s12116_s18 + $0x9f8] sm:$0xff] %v8501_v0  ;;  %v7472_v62 = vmul.f32 %v14154_v33, %v4181_v35  ;;  %9528 = vst [vmem:[%s12116_s18 + $0xa10] sm:$0xff] %v8504_v63  ;;  %v7475_v40 = vmul.f32 %v14158_v59, %v4193_v26 }
 0xb30   : > { %4421 = vbcast.lane.b32.xlu1 %v12904_v4, 344  ;;  %4433 = vbcast.lane.b32.xlu0 %v12904_v4, 368 }
 0xb31   : > { %v8503_v6 = vadd.f32 %v14516_v22, %v7472_v62  ;;  %v8506_v18 = vadd.f32 %v14516_v22, %v7475_v40 }
 0xb32   : > { %v4189_v8 = vpop.permute.xlu1 %4188  ;;  %v4201_v55 = vpop.permute.xlu0 %4200 }
 0xb33   : > { %9527 = vst [vmem:[%s12116_s18 + $0xa08] sm:$0xff] %v8503_v6  ;;  %v7474_v60 = vmul.f32 %v14170_v3, %v4189_v8  ;;  %9530 = vst [vmem:[%s12116_s18 + $0xa20] sm:$0xff] %v8506_v18  ;;  %v7477_v33 = vmul.f32 %v14174_v49, %v4201_v55 }
 0xb34   : > { %4429 = vbcast.lane.b32.xlu1 %v12904_v4, 360  ;;  %4444 = vbcast.lane.b32.xlu0 %v12909_v23, 256 }
 0xb35   : > { %v8505_v59 = vadd.f32 %v14516_v22, %v7474_v60  ;;  %v8508_v1 = vadd.f32 %v14516_v22, %v7477_v33 }
 0xb36   : > { %v4197_v5 = vpop.permute.xlu1 %4196  ;;  %v4209_v54 = vpop.permute.xlu0 %4208 }
 0xb37   : > { %9529 = vst [vmem:[%s12116_s18 + $0xa18] sm:$0xff] %v8505_v59  ;;  %v7476_v16 = vmul.f32 %v14182_v32, %v4197_v5  ;;  %9532 = vst [vmem:[%s12116_s18 + $0xa30] sm:$0xff] %v8508_v1  ;;  %v7479_v3 = vmul.f32 %v14186_v10, %v4209_v54 }
 0xb38   : > { %4437 = vbcast.lane.b32.xlu1 %v12904_v4, 376  ;;  %4452 = vbcast.lane.b32.xlu0 %v12909_v23, 272 }
 0xb39   : > { %v8507_v49 = vadd.f32 %v14516_v22, %v7476_v16  ;;  %v8510_v36 = vadd.f32 %v14516_v22, %v7479_v3 }
 0xb3a   : > { %v4205_v56 = vpop.permute.xlu1 %4204  ;;  %v4217_v58 = vpop.permute.xlu0 %4216 }
 0xb3b   : > { %9531 = vst [vmem:[%s12116_s18 + $0xa28] sm:$0xff] %v8507_v49  ;;  %v7478_v39 = vmul.f32 %v14194_v21, %v4205_v56  ;;  %9534 = vst [vmem:[%s12116_s18 + $0xa40] sm:$0xff] %v8510_v36  ;;  %v7481_v32 = vmul.f32 %v14198_v11, %v4217_v58 }
 0xb3c   : > { %4448 = vbcast.lane.b32.xlu1 %v12909_v23, 264  ;;  %4460 = vbcast.lane.b32.xlu0 %v12909_v23, 288 }
 0xb3d   : > { %v8509_v4 = vadd.f32 %v14516_v22, %v7478_v39  ;;  %v8512_v10 = vadd.f32 %v14516_v22, %v7481_v32 }
 0xb3e   : > { %v4213_v61 = vpop.permute.xlu1 %4212  ;;  %v4225_v20 = vpop.permute.xlu0 %4224 }
 0xb3f   : > { %9533 = vst [vmem:[%s12116_s18 + $0xa38] sm:$0xff] %v8509_v4  ;;  %v7480_v29 = vmul.f32 %v14206_v48, %v4213_v61  ;;  %9536 = vst [vmem:[%s12116_s18 + $0xa50] sm:$0xff] %v8512_v10  ;;  %v7483_v21 = vmul.f32 %v14210_v53, %v4225_v20 }
 0xb40   : > { %4456 = vbcast.lane.b32.xlu1 %v12909_v23, 280  ;;  %4468 = vbcast.lane.b32.xlu0 %v12909_v23, 304 }
 0xb41   : > { %v8511_v11 = vadd.f32 %v14516_v22, %v7480_v29  ;;  %v8514_v30 = vadd.f32 %v14516_v22, %v7483_v21 }
 0xb42   : > { %v4221_v45 = vpop.permute.xlu1 %4220  ;;  %v4233_v0 = vpop.permute.xlu0 %4232 }
 0xb43   : > { %9535 = vst [vmem:[%s12116_s18 + $0xa48] sm:$0xff] %v8511_v11  ;;  %v7482_v14 = vmul.f32 %v14352_v51, %v4221_v45  ;;  %9538 = vst [vmem:[%s12116_s18 + $0xa60] sm:$0xff] %v8514_v30  ;;  %v7485_v48 = vmul.f32 %v14356_v2, %v4233_v0 }
 0xb44   : > { %4464 = vbcast.lane.b32.xlu1 %v12909_v23, 296  ;;  %4476 = vbcast.lane.b32.xlu0 %v12909_v23, 320 }
 0xb45   : > { %v8513_v53 = vadd.f32 %v14516_v22, %v7482_v14  ;;  %v8516_v63 = vadd.f32 %v14516_v22, %v7485_v48 }
 0xb46   : > { %v4229_v35 = vpop.permute.xlu1 %4228  ;;  %v4244_v26 = vpop.permute.xlu0 %4243 }
 0xb47   : > { %9537 = vst [vmem:[%s12116_s18 + $0xa58] sm:$0xff] %v8513_v53  ;;  %v7484_v62 = vmul.f32 %v14364_v34, %v4229_v35  ;;  %9540 = vst [vmem:[%s12116_s18 + $0xa70] sm:$0xff] %v8516_v63  ;;  %v7487_v40 = vmul.f32 %v14368_v24, %v4244_v26 }
 0xb48   : > { %4472 = vbcast.lane.b32.xlu1 %v12909_v23, 312  ;;  %4484 = vbcast.lane.b32.xlu0 %v12909_v23, 336 }
 0xb49   : > { %v8515_v6 = vadd.f32 %v14516_v22, %v7484_v62  ;;  %v8518_v18 = vadd.f32 %v14516_v22, %v7487_v40 }
 0xb4a   : > { %v4237_v8 = vpop.permute.xlu1 %4236  ;;  %v4252_v55 = vpop.permute.xlu0 %4251 }
 0xb4b   : > { %9539 = vst [vmem:[%s12116_s18 + $0xa68] sm:$0xff] %v8515_v6  ;;  %v7486_v60 = vmul.f32 %v14376_v9, %v4237_v8  ;;  %9542 = vst [vmem:[%s12116_s18 + $0xa80] sm:$0xff] %v8518_v18  ;;  %v7489_v33 = vmul.f32 %v14380_v15, %v4252_v55 }
 0xb4c   : > { %4480 = vbcast.lane.b32.xlu1 %v12909_v23, 328  ;;  %4492 = vbcast.lane.b32.xlu0 %v12909_v23, 352 }
 0xb4d   : > { %v8517_v59 = vadd.f32 %v14516_v22, %v7486_v60  ;;  %v8520_v1 = vadd.f32 %v14516_v22, %v7489_v33 }
 0xb4e   : > { %v4248_v5 = vpop.permute.xlu1 %4247  ;;  %v4260_v54 = vpop.permute.xlu0 %4259 }
 0xb4f   : > { %9541 = vst [vmem:[%s12116_s18 + $0xa78] sm:$0xff] %v8517_v59  ;;  %v7488_v16 = vmul.f32 %v14388_v12, %v4248_v5  ;;  %9544 = vst [vmem:[%s12116_s18 + $0xa90] sm:$0xff] %v8520_v1  ;;  %v7491_v3 = vmul.f32 %v14392_v50, %v4260_v54 }
 0xb50   : > { %4488 = vbcast.lane.b32.xlu1 %v12909_v23, 344  ;;  %4500 = vbcast.lane.b32.xlu0 %v12909_v23, 368 }
 0xb51   : > { %v8519_v49 = vadd.f32 %v14516_v22, %v7488_v16  ;;  %v8522_v36 = vadd.f32 %v14516_v22, %v7491_v3 }
 0xb52   : > { %v4256_v56 = vpop.permute.xlu1 %4255  ;;  %v4268_v58 = vpop.permute.xlu0 %4267 }
 0xb53   : > { %9543 = vst [vmem:[%s12116_s18 + $0xa88] sm:$0xff] %v8519_v49  ;;  %v7490_v39 = vmul.f32 %v14400_v13, %v4256_v56  ;;  %9546 = vst [vmem:[%s12116_s18 + $0xaa0] sm:$0xff] %v8522_v36  ;;  %v7493_v32 = vmul.f32 %v14404_v44, %v4268_v58  ;;  %v14732_v58 = vld [vmem:[#allocation3 + $0xd8] sm:$0xff] }
 0xb54   : > { %4496 = vbcast.lane.b32.xlu1 %v12909_v23, 360  ;;  %4511 = vbcast.lane.b32.xlu0 %v12913_v43, 256 }
 0xb55   : > { %v8521_v4 = vadd.f32 %v14516_v22, %v7490_v39  ;;  %v8524_v10 = vadd.f32 %v14516_v22, %v7493_v32 }
 0xb56   : > { %v4264_v61 = vpop.permute.xlu1 %4263  ;;  %v4276_v20 = vpop.permute.xlu0 %4275 }
 0xb57   : > { %9545 = vst [vmem:[%s12116_s18 + $0xa98] sm:$0xff] %v8521_v4  ;;  %v7492_v29 = vmul.f32 %v14412_v19, %v4264_v61  ;;  %9548 = vst [vmem:[%s12116_s18 + $0xab0] sm:$0xff] %v8524_v10  ;;  %v7495_v21 = vmul.f32 %v14416_v42, %v4276_v20  ;;  %v14740_v61 = vld [vmem:[#allocation3] sm:$0xff] }
 0xb58   : > { %4504 = vbcast.lane.b32.xlu1 %v12909_v23, 376  ;;  %4519 = vbcast.lane.b32.xlu0 %v12913_v43, 272 }
 0xb59   : > { %v8523_v11 = vadd.f32 %v14516_v22, %v7492_v29  ;;  %v8526_v30 = vadd.f32 %v14516_v22, %v7495_v21  ;;  %v14744_v21 = vld [vmem:[#allocation3 + $0x50] sm:$0xff] }
 0xb5a   : > { %v4272_v45 = vpop.permute.xlu1 %4271  ;;  %v4284_v0 = vpop.permute.xlu0 %4283 }
 0xb5b   : > { %9547 = vst [vmem:[%s12116_s18 + $0xaa8] sm:$0xff] %v8523_v11  ;;  %v7494_v14 = vmul.f32 %v14424_v31, %v4272_v45  ;;  %9550 = vst [vmem:[%s12116_s18 + $0xac0] sm:$0xff] %v8526_v30  ;;  %v7497_v48 = vmul.f32 %v14428_v46, %v4284_v0  ;;  %v14752_v0 = vld [vmem:[#allocation3 + $0x18] sm:$0xff] }
 0xb5c   : > { %4515 = vbcast.lane.b32.xlu1 %v12913_v43, 264  ;;  %4527 = vbcast.lane.b32.xlu0 %v12913_v43, 288 }
 0xb5d   : > { %v8525_v23 = vadd.f32 %v14516_v22, %v7494_v14  ;;  %v8528_v53 = vadd.f32 %v14516_v22, %v7497_v48 }
 0xb5e   : > { %v4280_v63 = vpop.permute.xlu1 %4279  ;;  %v4292_v62 = vpop.permute.xlu0 %4291 }
 0xb5f   : > { %9549 = vst [vmem:[%s12116_s18 + $0xab8] sm:$0xff] %v8525_v23  ;;  %v7496_v35 = vmul.f32 %v14436_v47, %v4280_v63  ;;  %9552 = vst [vmem:[%s12116_s18 + $0xad0] sm:$0xff] %v8528_v53  ;;  %v7499_v26 = vmul.f32 %v14440_v7, %v4292_v62  ;;  %v14756_v53 = vld [vmem:[#allocation3 + $0x30] sm:$0xff] }
 0xb60   : > { %4523 = vbcast.lane.b32.xlu1 %v12913_v43, 280  ;;  %4535 = vbcast.lane.b32.xlu0 %v12913_v43, 304 }
 0xb61   : > { %v8527_v40 = vadd.f32 %v14516_v22, %v7496_v35  ;;  %v8530_v6 = vadd.f32 %v14516_v22, %v7499_v26 }
 0xb62   : > { %v4288_v18 = vpop.permute.xlu1 %4287  ;;  %v4300_v60 = vpop.permute.xlu0 %4299 }
 0xb63   : > { %9551 = vst [vmem:[%s12116_s18 + $0xac8] sm:$0xff] %v8527_v40  ;;  %v7498_v8 = vmul.f32 %v14448_v37, %v4288_v18  ;;  %9554 = vst [vmem:[%s12116_s18 + $0xae0] sm:$0xff] %v8530_v6  ;;  %v7501_v55 = vmul.f32 %v14452_v27, %v4300_v60  ;;  %v14764_v40 = vld [vmem:[#allocation3 + $0x68] sm:$0xff] }
 0xb64   : > { %4531 = vbcast.lane.b32.xlu1 %v12913_v43, 296  ;;  %4543 = vbcast.lane.b32.xlu0 %v12913_v43, 320 }
 0xb65   : > { %v8529_v33 = vadd.f32 %v14516_v22, %v7498_v8  ;;  %v8532_v59 = vadd.f32 %v14516_v22, %v7501_v55  ;;  %v14768_v8 = vld [vmem:[#allocation3 + $0x80] sm:$0xff] }
 0xb66   : > { %v4296_v1 = vpop.permute.xlu1 %4295  ;;  %v4311_v16 = vpop.permute.xlu0 %4310 }
 0xb67   : > { %9553 = vst [vmem:[%s12116_s18 + $0xad8] sm:$0xff] %v8529_v33  ;;  %v7500_v5 = vmul.f32 %v14460_v57, %v4296_v1  ;;  %9556 = vst [vmem:[%s12116_s18 + $0xaf0] sm:$0xff] %v8532_v59  ;;  %v7503_v54 = vmul.f32 %v14296_v52, %v4311_v16  ;;  %v14776_v1 = vld [vmem:[#allocation3 + $0x48] sm:$0xff] }
 0xb68   : > { %4539 = vbcast.lane.b32.xlu1 %v12913_v43, 312  ;;  %4551 = vbcast.lane.b32.xlu0 %v12913_v43, 336 }
 0xb69   : > { %v8531_v3 = vadd.f32 %v14516_v22, %v7500_v5  ;;  %v8534_v49 = vadd.f32 %v14516_v22, %v7503_v54  ;;  %v14780_v54 = vld [vmem:[#allocation3 + $0xe8] sm:$0xff] }
 0xb6a   : > { %v4304_v36 = vpop.permute.xlu1 %4303  ;;  %v4319_v39 = vpop.permute.xlu0 %4318 }
 0xb6b   : > { %9555 = vst [vmem:[%s12116_s18 + $0xae8] sm:$0xff] %v8531_v3  ;;  %v7502_v56 = vmul.f32 %v14470_v17, %v4304_v36  ;;  %9558 = vst [vmem:[%s12116_s18 + $0xb00] sm:$0xff] %v8534_v49  ;;  %v7505_v52 = vmul.f32 %v14732_v58, %v4319_v39 }
 0xb6c   : > { %4547 = vbcast.lane.b32.xlu1 %v12913_v43, 328  ;;  %4559 = vbcast.lane.b32.xlu0 %v12913_v43, 352 }
 0xb6d   : > { %v8533_v32 = vadd.f32 %v14516_v22, %v7502_v56  ;;  %v8536_v4 = vadd.f32 %v14516_v22, %v7505_v52  ;;  %v14788_v56 = vld [vmem:[#allocation3 + $0x88] sm:$0xff] }
 0xb6e   : > { %v4315_v10 = vpop.permute.xlu1 %4314  ;;  %v4327_v20 = vpop.permute.xlu0 %4326 }
 0xb6f   : > { %9557 = vst [vmem:[%s12116_s18 + $0xaf8] sm:$0xff] %v8533_v32  ;;  %v7504_v29 = vmul.f32 %v14740_v61, %v4315_v10  ;;  %9560 = vst [vmem:[%s12116_s18 + $0xb10] sm:$0xff] %v8536_v4  ;;  %v7507_v11 = vmul.f32 %v14744_v21, %v4327_v20  ;;  %v14792_v32 = vld [vmem:[#allocation3 + $0x60] sm:$0xff] }
 0xb70   : > { %4555 = vbcast.lane.b32.xlu1 %v12913_v43, 344  ;;  %4567 = vbcast.lane.b32.xlu0 %v12913_v43, 368 }
 0xb71   : > { %v8535_v30 = vadd.f32 %v14516_v22, %v7504_v29  ;;  %v8538_v45 = vadd.f32 %v14516_v22, %v7507_v11 }
 0xb72   : > { %v4323_v14 = vpop.permute.xlu1 %4322  ;;  %v4335_v23 = vpop.permute.xlu0 %4334 }
 0xb73   : > { %9559 = vst [vmem:[%s12116_s18 + $0xb08] sm:$0xff] %v8535_v30  ;;  %v7506_v48 = vmul.f32 %v14752_v0, %v4323_v14  ;;  %9562 = vst [vmem:[%s12116_s18 + $0xb20] sm:$0xff] %v8538_v45  ;;  %v7509_v63 = vmul.f32 %v14756_v53, %v4335_v23 }
 0xb74   : > { %4563 = vbcast.lane.b32.xlu1 %v12913_v43, 360  ;;  %4578 = vbcast.lane.b32.xlu0 %v12917_v41, 256 }
 0xb75   : > { %v8537_v35 = vadd.f32 %v14516_v22, %v7506_v48  ;;  %v8540_v62 = vadd.f32 %v14516_v22, %v7509_v63 }
 0xb76   : > { %v4331_v26 = vpop.permute.xlu1 %4330  ;;  %v4343_v18 = vpop.permute.xlu0 %4342 }
 0xb77   : > { %9561 = vst [vmem:[%s12116_s18 + $0xb18] sm:$0xff] %v8537_v35  ;;  %v7508_v6 = vmul.f32 %v14764_v40, %v4331_v26  ;;  %9564 = vst [vmem:[%s12116_s18 + $0xb30] sm:$0xff] %v8540_v62  ;;  %v7511_v60 = vmul.f32 %v14768_v8, %v4343_v18 }
 0xb78   : > { %4571 = vbcast.lane.b32.xlu1 %v12913_v43, 376  ;;  %4586 = vbcast.lane.b32.xlu0 %v12917_v41, 272 }
 0xb79   : > { %v8539_v55 = vadd.f32 %v14516_v22, %v7508_v6  ;;  %v8542_v33 = vadd.f32 %v14516_v22, %v7511_v60 }
 0xb7a   : > { %v4339_v59 = vpop.permute.xlu1 %4338  ;;  %v4351_v16 = vpop.permute.xlu0 %4350 }
 0xb7b   : > { %9563 = vst [vmem:[%s12116_s18 + $0xb28] sm:$0xff] %v8539_v55  ;;  %v7510_v5 = vmul.f32 %v14776_v1, %v4339_v59  ;;  %9566 = vst [vmem:[%s12116_s18 + $0xb40] sm:$0xff] %v8542_v33  ;;  %v7513_v43 = vmul.f32 %v14780_v54, %v4351_v16 }
 0xb7c   : > { %4582 = vbcast.lane.b32.xlu1 %v12917_v41, 264  ;;  %4594 = vbcast.lane.b32.xlu0 %v12917_v41, 288 }
 0xb7d   : > { %v8541_v3 = vadd.f32 %v14516_v22, %v7510_v5  ;;  %v8544_v49 = vadd.f32 %v14516_v22, %v7513_v43 }
 0xb7e   : > { %v4347_v36 = vpop.permute.xlu1 %4346  ;;  %v4359_v52 = vpop.permute.xlu0 %4358 }
 0xb7f   : > { %9565 = vst [vmem:[%s12116_s18 + $0xb38] sm:$0xff] %v8541_v3  ;;  %v7512_v39 = vmul.f32 %v14788_v56, %v4347_v36  ;;  %9568 = vst [vmem:[%s12116_s18 + $0xb50] sm:$0xff] %v8544_v49  ;;  %v7515_v4 = vmul.f32 %v14792_v32, %v4359_v52 }
 0xb80   : > { %4590 = vbcast.lane.b32.xlu1 %v12917_v41, 280  ;;  %4602 = vbcast.lane.b32.xlu0 %v12917_v41, 304 }
 0xb81   : > { %v8543_v10 = vadd.f32 %v14516_v22, %v7512_v39  ;;  %v8546_v29 = vadd.f32 %v14516_v22, %v7515_v4 }
 0xb82   : > { %v4355_v20 = vpop.permute.xlu1 %4354  ;;  %v4367_v30 = vpop.permute.xlu0 %4366 }
 0xb83   : > { %9567 = vst [vmem:[%s12116_s18 + $0xb48] sm:$0xff] %v8543_v10  ;;  %v7514_v11 = vmul.f32 %v14352_v51, %v4355_v20  ;;  %9570 = vst [vmem:[%s12116_s18 + $0xb60] sm:$0xff] %v8546_v29  ;;  %v7517_v45 = vmul.f32 %v14356_v2, %v4367_v30 }
 0xb84   : > { %4598 = vbcast.lane.b32.xlu1 %v12917_v41, 296  ;;  %4610 = vbcast.lane.b32.xlu0 %v12917_v41, 320 }
 0xb85   : > { %v8545_v14 = vadd.f32 %v14516_v22, %v7514_v11  ;;  %v8548_v48 = vadd.f32 %v14516_v22, %v7517_v45 }
 0xb86   : > { %v4363_v23 = vpop.permute.xlu1 %4362  ;;  %v4378_v35 = vpop.permute.xlu0 %4377 }
 0xb87   : > { %9569 = vst [vmem:[%s12116_s18 + $0xb58] sm:$0xff] %v8545_v14  ;;  %v7516_v63 = vmul.f32 %v14364_v34, %v4363_v23  ;;  %9572 = vst [vmem:[%s12116_s18 + $0xb70] sm:$0xff] %v8548_v48  ;;  %v7519_v51 = vmul.f32 %v14368_v24, %v4378_v35 }
 0xb88   : > { %4606 = vbcast.lane.b32.xlu1 %v12917_v41, 312  ;;  %4618 = vbcast.lane.b32.xlu0 %v12917_v41, 336 }
 0xb89   : > { %v8547_v2 = vadd.f32 %v14516_v22, %v7516_v63  ;;  %v8550_v62 = vadd.f32 %v14516_v22, %v7519_v51 }
 0xb8a   : > { %v4371_v26 = vpop.permute.xlu1 %4370  ;;  %v4386_v18 = vpop.permute.xlu0 %4385 }
 0xb8b   : > { %9571 = vst [vmem:[%s12116_s18 + $0xb68] sm:$0xff] %v8547_v2  ;;  %v7518_v6 = vmul.f32 %v14376_v9, %v4371_v26  ;;  %9574 = vst [vmem:[%s12116_s18 + $0xb80] sm:$0xff] %v8550_v62  ;;  %v7521_v34 = vmul.f32 %v14380_v15, %v4386_v18 }
 0xb8c   : > { %4614 = vbcast.lane.b32.xlu1 %v12917_v41, 328  ;;  %4626 = vbcast.lane.b32.xlu0 %v12917_v41, 352 }
 0xb8d   : > { %v8549_v24 = vadd.f32 %v14516_v22, %v7518_v6  ;;  %v8552_v60 = vadd.f32 %v14516_v22, %v7521_v34 }
 0xb8e   : > { %v4382_v55 = vpop.permute.xlu1 %4381  ;;  %v4394_v59 = vpop.permute.xlu0 %4393 }
 0xb8f   : > { %9573 = vst [vmem:[%s12116_s18 + $0xb78] sm:$0xff] %v8549_v24  ;;  %v7520_v33 = vmul.f32 %v14388_v12, %v4382_v55  ;;  %9576 = vst [vmem:[%s12116_s18 + $0xb90] sm:$0xff] %v8552_v60  ;;  %v7523_v9 = vmul.f32 %v14392_v50, %v4394_v59 }
 0xb90   : > { %4622 = vbcast.lane.b32.xlu1 %v12917_v41, 344  ;;  %4634 = vbcast.lane.b32.xlu0 %v12917_v41, 368 }
 0xb91   : > { %v8551_v15 = vadd.f32 %v14516_v22, %v7520_v33  ;;  %v8554_v5 = vadd.f32 %v14516_v22, %v7523_v9 }
 0xb92   : > { %v4390_v16 = vpop.permute.xlu1 %4389  ;;  %v4402_v3 = vpop.permute.xlu0 %4401 }
 0xb93   : > { %9575 = vst [vmem:[%s12116_s18 + $0xb88] sm:$0xff] %v8551_v15  ;;  %v7522_v43 = vmul.f32 %v14400_v13, %v4390_v16  ;;  %9578 = vst [vmem:[%s12116_s18 + $0xba0] sm:$0xff] %v8554_v5  ;;  %v7525_v12 = vmul.f32 %v14404_v44, %v4402_v3 }
 0xb94   : > { %4630 = vbcast.lane.b32.xlu1 %v12917_v41, 360  ;;  %4645 = vbcast.lane.b32.xlu0 %v12921_v25, 256 }
 0xb95   : > { %v8553_v50 = vadd.f32 %v14516_v22, %v7522_v43  ;;  %v8556_v49 = vadd.f32 %v14516_v22, %v7525_v12 }
 0xb96   : > { %v4398_v36 = vpop.permute.xlu1 %4397  ;;  %v4410_v52 = vpop.permute.xlu0 %4409 }
 0xb97   : > { %9577 = vst [vmem:[%s12116_s18 + $0xb98] sm:$0xff] %v8553_v50  ;;  %v7524_v39 = vmul.f32 %v14412_v19, %v4398_v36  ;;  %9580 = vst [vmem:[%s12116_s18 + $0xbb0] sm:$0xff] %v8556_v49  ;;  %v7527_v13 = vmul.f32 %v14416_v42, %v4410_v52  ;;  %v17888_v49 = vld [vmem:[#allocation33_spill] sm:$0xff] }
 0xb98   : > { %4638 = vbcast.lane.b32.xlu1 %v12917_v41, 376  ;;  %4653 = vbcast.lane.b32.xlu0 %v12921_v25, 272 }
 0xb99   : > { %v8555_v44 = vadd.f32 %v14516_v22, %v7524_v39  ;;  %v8558_v4 = vadd.f32 %v14516_v22, %v7527_v13 }
 0xb9a   : > { %v4406_v10 = vpop.permute.xlu1 %4405  ;;  %v4418_v20 = vpop.permute.xlu0 %4417 }
 0xb9b   : > { %9579 = vst [vmem:[%s12116_s18 + $0xba8] sm:$0xff] %v8555_v44  ;;  %v7526_v29 = vmul.f32 %v14424_v31, %v4406_v10  ;;  %9582 = vst [vmem:[%s12116_s18 + $0xbc0] sm:$0xff] %v8558_v4  ;;  %v7529_v19 = vmul.f32 %v14428_v46, %v4418_v20 }
 0xb9c   : > { %4649 = vbcast.lane.b32.xlu1 %v12921_v25, 264  ;;  %4661 = vbcast.lane.b32.xlu0 %v12921_v25, 288 }
 0xb9d   : > { %v8557_v41 = vadd.f32 %v14516_v22, %v7526_v29  ;;  %v8560_v42 = vadd.f32 %v14516_v22, %v7529_v19 }
 0xb9e   : > { %v4414_v11 = vpop.permute.xlu1 %4413  ;;  %v4426_v45 = vpop.permute.xlu0 %4425 }
 0xb9f   : > { %9581 = vst [vmem:[%s12116_s18 + $0xbb8] sm:$0xff] %v8557_v41  ;;  %v7528_v30 = vmul.f32 %v14436_v47, %v4414_v11  ;;  %9584 = vst [vmem:[%s12116_s18 + $0xbd0] sm:$0xff] %v8560_v42  ;;  %v7531_v31 = vmul.f32 %v14440_v7, %v4426_v45 }
 0xba0   : > { %4657 = vbcast.lane.b32.xlu1 %v12921_v25, 280  ;;  %4669 = vbcast.lane.b32.xlu0 %v12921_v25, 304 }
 0xba1   : > { %v8559_v46 = vadd.f32 %v14516_v22, %v7528_v30  ;;  %v8562_v14 = vadd.f32 %v14516_v22, %v7531_v31 }
 0xba2   : > { %v4422_v48 = vpop.permute.xlu1 %4421  ;;  %v4434_v63 = vpop.permute.xlu0 %4433 }
 0xba3   : > { %9583 = vst [vmem:[%s12116_s18 + $0xbc8] sm:$0xff] %v8559_v46  ;;  %v7530_v23 = vmul.f32 %v14448_v37, %v4422_v48  ;;  %9586 = vst [vmem:[%s12116_s18 + $0xbe0] sm:$0xff] %v8562_v14  ;;  %v7533_v47 = vmul.f32 %v14452_v27, %v4434_v63  ;;  %v14874_v37 = vld [vmem:[#allocation3 + $0xb0] sm:$0xff] }
 0xba4   : > { %4665 = vbcast.lane.b32.xlu1 %v12921_v25, 296  ;;  %4677 = vbcast.lane.b32.xlu0 %v12921_v25, 320 }
 0xba5   : > { %v8561_v7 = vadd.f32 %v14516_v22, %v7530_v23  ;;  %v8564_v35 = vadd.f32 %v14516_v22, %v7533_v47  ;;  %v14930_v23 = vld [vmem:[#allocation3 + $0xb8] sm:$0xff] }
 0xba6   : > { %v4430_v51 = vpop.permute.xlu1 %4429  ;;  %v4445_v62 = vpop.permute.xlu0 %4444 }
 0xba7   : > { %9585 = vst [vmem:[%s12116_s18 + $0xbd8] sm:$0xff] %v8561_v7  ;;  %v7532_v2 = vmul.f32 %v14460_v57, %v4430_v51  ;;  %9588 = vst [vmem:[%s12116_s18 + $0xbf0] sm:$0xff] %v8564_v35  ;;  %v7535_v27 = vmul.f32 %v14874_v37, %v4445_v62  ;;  %v14934_v7 = vld [vmem:[#allocation3 + $0x8] sm:$0xff] }
 0xba8   : > { %4673 = vbcast.lane.b32.xlu1 %v12921_v25, 312  ;;  %4685 = vbcast.lane.b32.xlu0 %v12921_v25, 336 }
 0xba9   : > { %v8563_v26 = vadd.f32 %v14516_v22, %v7532_v2  ;;  %v8566_v6 = vadd.f32 %v14516_v22, %v7535_v27  ;;  %v14942_v27 = vld [vmem:[#allocation3 + $0xf0] sm:$0xff] }
 0xbaa   : > { %v4438_v18 = vpop.permute.xlu1 %4437  ;;  %v4453_v34 = vpop.permute.xlu0 %4452 }
 0xbab   : > { %9587 = vst [vmem:[%s12116_s18 + $0xbe8] sm:$0xff] %v8563_v26  ;;  %v7534_v57 = vmul.f32 %v14470_v17, %v4438_v18  ;;  %9590 = vst [vmem:[%s12116_s18 + $0xc00] sm:$0xff] %v8566_v6  ;;  %v7537_v24 = vmul.f32 %v14732_v58, %v4453_v34  ;;  %v14946_v18 = vld [vmem:[#allocation3 + $0x38] sm:$0xff] }
 0xbac   : > { %4681 = vbcast.lane.b32.xlu1 %v12921_v25, 328  ;;  %4693 = vbcast.lane.b32.xlu0 %v12921_v25, 352 }
 0xbad   : > { %v8565_v60 = vadd.f32 %v14516_v22, %v7534_v57  ;;  %v8568_v55 = vadd.f32 %v14516_v22, %v7537_v24 }
 0xbae   : > { %v4449_v33 = vpop.permute.xlu1 %4448  ;;  %v4461_v9 = vpop.permute.xlu0 %4460 }
 0xbaf   : > { %9589 = vst [vmem:[%s12116_s18 + $0xbf8] sm:$0xff] %v8565_v60  ;;  %v7536_v59 = vmul.f32 %v14740_v61, %v4449_v33  ;;  %9592 = vst [vmem:[%s12116_s18 + $0xc10] sm:$0xff] %v8568_v55  ;;  %v7539_v17 = vmul.f32 %v14744_v21, %v4461_v9  ;;  %v14954_v55 = vld [vmem:[#allocation3 + $0x78] sm:$0xff]  ;;  %v14958_v9 = vld [vmem:[#allocation3 + $0x40] sm:$0xff] }
 0xbb0   : > { %4689 = vbcast.lane.b32.xlu1 %v12921_v25, 344  ;;  %4701 = vbcast.lane.b32.xlu0 %v12921_v25, 368 }
 0xbb1   : > { %v8567_v15 = vadd.f32 %v14516_v22, %v7536_v59  ;;  %v8570_v5 = vadd.f32 %v14516_v22, %v7539_v17 }
 0xbb2   : > { %v4457_v16 = vpop.permute.xlu1 %4456  ;;  %v4469_v3 = vpop.permute.xlu0 %4468 }
 0xbb3   : > { %9591 = vst [vmem:[%s12116_s18 + $0xc08] sm:$0xff] %v8567_v15  ;;  %v7538_v43 = vmul.f32 %v14752_v0, %v4457_v16  ;;  %9594 = vst [vmem:[%s12116_s18 + $0xc20] sm:$0xff] %v8570_v5  ;;  %v7541_v12 = vmul.f32 %v14756_v53, %v4469_v3  ;;  %v14964_v5 = vld [vmem:[#allocation19] ss:$0 sm:$0xff] }
 0xbb4   : > { %4697 = vbcast.lane.b32.xlu1 %v12921_v25, 360  ;;  %4712 = vbcast.lane.b32.xlu0 %v17888_v49, 256  ;;  %v14968_v3 = vld [vmem:[#allocation3 + $0x58] sm:$0xff] }
 0xbb5   : > { %v8569_v50 = vadd.f32 %v14516_v22, %v7538_v43  ;;  %v8572_v36 = vadd.f32 %v14516_v22, %v7541_v12 }
 0xbb6   : > { %v4465_v39 = vpop.permute.xlu1 %4464  ;;  %v4477_v13 = vpop.permute.xlu0 %4476 }
 0xbb7   : > { %9593 = vst [vmem:[%s12116_s18 + $0xc18] sm:$0xff] %v8569_v50  ;;  %v7540_v52 = vmul.f32 %v14764_v40, %v4465_v39  ;;  %9596 = vst [vmem:[%s12116_s18 + $0xc30] sm:$0xff] %v8572_v36  ;;  %v7543_v44 = vmul.f32 %v14768_v8, %v4477_v13  ;;  %v14972_v36 = vld [vmem:[#allocation3 + $0xe0] sm:$0xff] }
 0xbb8   : > { %4705 = vbcast.lane.b32.xlu1 %v12921_v25, 376  ;;  %4720 = vbcast.lane.b32.xlu0 %v17888_v49, 272 }
 0xbb9   : > { %v8571_v4 = vadd.f32 %v14516_v22, %v7540_v52  ;;  %v8574_v10 = vadd.f32 %v14516_v22, %v7543_v44  ;;  %v14980_v44 = vld [vmem:[#allocation3 + $0xc8] sm:$0xff] }
 0xbba   : > { %v4473_v29 = vpop.permute.xlu1 %4472  ;;  %v4485_v19 = vpop.permute.xlu0 %4484 }
 0xbbb   : > { %9595 = vst [vmem:[%s12116_s18 + $0xc28] sm:$0xff] %v8571_v4  ;;  %v7542_v20 = vmul.f32 %v14776_v1, %v4473_v29  ;;  %9598 = vst [vmem:[%s12116_s18 + $0xc40] sm:$0xff] %v8574_v10  ;;  %v7545_v41 = vmul.f32 %v14780_v54, %v4485_v19  ;;  %v14984_v29 = vld [vmem:[#allocation3 + $0x70] sm:$0xff] }
 0xbbc   : > { %4716 = vbcast.lane.b32.xlu1 %v17888_v49, 264  ;;  %4728 = vbcast.lane.b32.xlu0 %v17888_v49, 288 }
 0xbbd   : > { %v8573_v25 = vadd.f32 %v14516_v22, %v7542_v20  ;;  %v8576_v42 = vadd.f32 %v14516_v22, %v7545_v41  ;;  %v17889_v41 = vld [vmem:[#allocation34_spill] sm:$0xff] }
 0xbbe   : > { %v4481_v11 = vpop.permute.xlu1 %4480  ;;  %v4493_v45 = vpop.permute.xlu0 %4492 }
 0xbbf   : > { %9597 = vst [vmem:[%s12116_s18 + $0xc38] sm:$0xff] %v8573_v25  ;;  %v7544_v30 = vmul.f32 %v14788_v56, %v4481_v11  ;;  %9600 = vst [vmem:[%s12116_s18 + $0xc50] sm:$0xff] %v8576_v42  ;;  %v7547_v31 = vmul.f32 %v14792_v32, %v4493_v45  ;;  %v14992_v11 = vld [vmem:[#allocation3 + $0x90] sm:$0xff] }
 0xbc0   : > { %4724 = vbcast.lane.b32.xlu1 %v17888_v49, 280  ;;  %4736 = vbcast.lane.b32.xlu0 %v17888_v49, 304 }
 0xbc1   : > { %v8575_v46 = vadd.f32 %v14516_v22, %v7544_v30  ;;  %v8578_v14 = vadd.f32 %v14516_v22, %v7547_v31  ;;  %v14996_v31 = vld [vmem:[#allocation3 + $0xa8] sm:$0xff] }
 0xbc2   : > { %v4489_v48 = vpop.permute.xlu1 %4488  ;;  %v4501_v47 = vpop.permute.xlu0 %4500 }
 0xbc3   : > { %9599 = vst [vmem:[%s12116_s18 + $0xc48] sm:$0xff] %v8575_v46  ;;  %v7546_v63 = vmul.f32 %v14930_v23, %v4489_v48  ;;  %9602 = vst [vmem:[%s12116_s18 + $0xc60] sm:$0xff] %v8578_v14  ;;  %v7549_v35 = vmul.f32 %v14934_v7, %v4501_v47  ;;  %v15004_v47 = vld [vmem:[#allocation3 + $0xc0] sm:$0xff] }
 0xbc4   : > { %4732 = vbcast.lane.b32.xlu1 %v17888_v49, 296  ;;  %4744 = vbcast.lane.b32.xlu0 %v17888_v49, 320 }
 0xbc5   : > { %v8577_v51 = vadd.f32 %v14516_v22, %v7546_v63  ;;  %v8580_v2 = vadd.f32 %v14516_v22, %v7549_v35 }
 0xbc6   : > { %v4497_v62 = vpop.permute.xlu1 %4496  ;;  %v4512_v6 = vpop.permute.xlu0 %4511 }
 0xbc7   : > { %9601 = vst [vmem:[%s12116_s18 + $0xc58] sm:$0xff] %v8577_v51  ;;  %v7548_v26 = vmul.f32 %v14942_v27, %v4497_v62  ;;  %9604 = vst [vmem:[%s12116_s18 + $0xc70] sm:$0xff] %v8580_v2  ;;  %v7551_v57 = vmul.f32 %v14946_v18, %v4512_v6  ;;  %v15008_v2 = vld [vmem:[#allocation3 + $0x10] sm:$0xff] }
 0xbc8   : > { %4740 = vbcast.lane.b32.xlu1 %v17888_v49, 312  ;;  %4752 = vbcast.lane.b32.xlu0 %v17888_v49, 336 }
 0xbc9   : > { %v8579_v34 = vadd.f32 %v14516_v22, %v7548_v26  ;;  %v8582_v24 = vadd.f32 %v14516_v22, %v7551_v57  ;;  %v15016_v57 = vld [vmem:[#allocation3 + $0xd0] sm:$0xff] }
 0xbca   : > { %v4505_v60 = vpop.permute.xlu1 %4504  ;;  %v4520_v59 = vpop.permute.xlu0 %4519 }
 0xbcb   : > { %9603 = vst [vmem:[%s12116_s18 + $0xc68] sm:$0xff] %v8579_v34  ;;  %v7550_v33 = vmul.f32 %v14954_v55, %v4505_v60  ;;  %9606 = vst [vmem:[%s12116_s18 + $0xc80] sm:$0xff] %v8582_v24  ;;  %v7553_v17 = vmul.f32 %v14958_v9, %v4520_v59  ;;  %v15020_v60 = vld [vmem:[#allocation3 + $0xa0] sm:$0xff] }
 0xbcc   : > { %4748 = vbcast.lane.b32.xlu1 %v17888_v49, 328  ;;  %4760 = vbcast.lane.b32.xlu0 %v17888_v49, 352 }
 0xbcd   : > { %v8581_v15 = vadd.f32 %v14516_v22, %v7550_v33  ;;  %v8584_v16 = vadd.f32 %v14964_v5, %v7553_v17 }
 0xbce   : > { %v4516_v43 = vpop.permute.xlu1 %4515  ;;  %v4528_v50 = vpop.permute.xlu0 %4527 }
 0xbcf   : > { %9605 = vst [vmem:[%s12116_s18 + $0xc78] sm:$0xff] %v8581_v15  ;;  %v7552_v12 = vmul.f32 %v14968_v3, %v4516_v43  ;;  %9608 = vst [vmem:[%s12116_s18 + $0xc90] sm:$0xff] %v8584_v16  ;;  %v7555_v22 = vmul.f32 %v14972_v36, %v4528_v50  ;;  %v15028_v16 = vld [vmem:[#allocation3 + $0x28] sm:$0xff]  ;;  %v15032_v50 = vld [vmem:[#allocation3 + $0x20] sm:$0xff] }
 0xbd0   : > { %4756 = vbcast.lane.b32.xlu1 %v17888_v49, 344  ;;  %4768 = vbcast.lane.b32.xlu0 %v17888_v49, 368 }
 0xbd1   : > { %v8583_v39 = vadd.f32 %v14964_v5, %v7552_v12  ;;  %v8586_v52 = vadd.f32 %v14964_v5, %v7555_v22 }
 0xbd2   : > { %v4524_v13 = vpop.permute.xlu1 %4523  ;;  %v4536_v10 = vpop.permute.xlu0 %4535 }
 0xbd3   : > { %9607 = vst [vmem:[%s12116_s18 + $0xc88] sm:$0xff] %v8583_v39  ;;  %v7554_v4 = vmul.f32 %v14980_v44, %v4524_v13  ;;  %9610 = vst [vmem:[%s12116_s18 + $0xca0] sm:$0xff] %v8586_v52  ;;  %v7557_v20 = vmul.f32 %v14984_v29, %v4536_v10 }
 0xbd4   : > { %4764 = vbcast.lane.b32.xlu1 %v17888_v49, 360  ;;  %4779 = vbcast.lane.b32.xlu0 %v17889_v41, 256 }
 0xbd5   : > { %v8585_v19 = vadd.f32 %v14964_v5, %v7554_v4  ;;  %v8588_v25 = vadd.f32 %v14964_v5, %v7557_v20  ;;  %v15040_v4 = vld [vmem:[#allocation3 + $0xf8] sm:$0xff] }
 0xbd6   : > { %v4532_v42 = vpop.permute.xlu1 %4531  ;;  %v4544_v45 = vpop.permute.xlu0 %4543 }
 0xbd7   : > { %9609 = vst [vmem:[%s12116_s18 + $0xc98] sm:$0xff] %v8585_v19  ;;  %v7556_v30 = vmul.f32 %v14992_v11, %v4532_v42  ;;  %9612 = vst [vmem:[%s12116_s18 + $0xcb0] sm:$0xff] %v8588_v25  ;;  %v7559_v46 = vmul.f32 %v14996_v31, %v4544_v45  ;;  %v15050_v45 = vld [vmem:[#allocation3 + $0x98] sm:$0xff] }
 0xbd8   : > { %4772 = vbcast.lane.b32.xlu1 %v17888_v49, 376  ;;  %4787 = vbcast.lane.b32.xlu0 %v17889_v41, 272 }
 0xbd9   : > { %v8587_v14 = vadd.f32 %v14964_v5, %v7556_v30  ;;  %v8590_v48 = vadd.f32 %v14964_v5, %v7559_v46 }
 0xbda   : > { %v4540_v63 = vpop.permute.xlu1 %4539  ;;  %v4552_v51 = vpop.permute.xlu0 %4551 }
 0xbdb   : > { %9611 = vst [vmem:[%s12116_s18 + $0xca8] sm:$0xff] %v8587_v14  ;;  %v7558_v35 = vmul.f32 %v15004_v47, %v4540_v63  ;;  %9614 = vst [vmem:[%s12116_s18 + $0xcc0] sm:$0xff] %v8590_v48  ;;  %v7561_v49 = vmul.f32 %v15008_v2, %v4552_v51 }
 0xbdc   : > { %4783 = vbcast.lane.b32.xlu1 %v17889_v41, 264  ;;  %4795 = vbcast.lane.b32.xlu0 %v17889_v41, 288 }
 0xbdd   : > { %v8589_v62 = vadd.f32 %v14964_v5, %v7558_v35  ;;  %v8592_v26 = vadd.f32 %v14964_v5, %v7561_v49 }
 0xbde   : > { %v4548_v6 = vpop.permute.xlu1 %4547  ;;  %v4560_v24 = vpop.permute.xlu0 %4559 }
 0xbdf   : > { %9613 = vst [vmem:[%s12116_s18 + $0xcb8] sm:$0xff] %v8589_v62  ;;  %v7560_v34 = vmul.f32 %v15016_v57, %v4548_v6  ;;  %9616 = vst [vmem:[%s12116_s18 + $0xcd0] sm:$0xff] %v8592_v26  ;;  %v7563_v33 = vmul.f32 %v15020_v60, %v4560_v24 }
 0xbe0   : > { %4791 = vbcast.lane.b32.xlu1 %v17889_v41, 280  ;;  %4803 = vbcast.lane.b32.xlu0 %v17889_v41, 304 }
 0xbe1   : > { %v8591_v59 = vadd.f32 %v14964_v5, %v7560_v34  ;;  %v8594_v17 = vadd.f32 %v14964_v5, %v7563_v33 }
 0xbe2   : > { %v4556_v15 = vpop.permute.xlu1 %4555  ;;  %v4568_v12 = vpop.permute.xlu0 %4567 }
 0xbe3   : > { %9615 = vst [vmem:[%s12116_s18 + $0xcc8] sm:$0xff] %v8591_v59  ;;  %v7562_v43 = vmul.f32 %v15028_v16, %v4556_v15  ;;  %9618 = vst [vmem:[%s12116_s18 + $0xce0] sm:$0xff] %v8594_v17  ;;  %v7565_v22 = vmul.f32 %v15032_v50, %v4568_v12 }
 0xbe4   : > { %4799 = vbcast.lane.b32.xlu1 %v17889_v41, 296  ;;  %4811 = vbcast.lane.b32.xlu0 %v17889_v41, 320 }
 0xbe5   : > { %v8593_v39 = vadd.f32 %v14964_v5, %v7562_v43  ;;  %v8596_v52 = vadd.f32 %v14964_v5, %v7565_v22  ;;  %v17890_v43 = vld [vmem:[#allocation35_spill] sm:$0xff] }
 0xbe6   : > { %v4564_v13 = vpop.permute.xlu1 %4563  ;;  %v4579_v20 = vpop.permute.xlu0 %4578 }
 0xbe7   : > { %9617 = vst [vmem:[%s12116_s18 + $0xcd8] sm:$0xff] %v8593_v39  ;;  %v7564_v10 = vmul.f32 %v15040_v4, %v4564_v13  ;;  %9620 = vst [vmem:[%s12116_s18 + $0xcf0] sm:$0xff] %v8596_v52  ;;  %v7567_v19 = vmul.f32 %v14874_v37, %v4579_v20 }
 0xbe8   : > { %4807 = vbcast.lane.b32.xlu1 %v17889_v41, 312  ;;  %4819 = vbcast.lane.b32.xlu0 %v17889_v41, 336 }
 0xbe9   : > { %v8595_v25 = vadd.f32 %v14964_v5, %v7564_v10  ;;  %v8598_v42 = vadd.f32 %v14964_v5, %v7567_v19 }
 0xbea   : > { %v4572_v30 = vpop.permute.xlu1 %4571  ;;  %v4587_v14 = vpop.permute.xlu0 %4586 }
 0xbeb   : > { %9619 = vst [vmem:[%s12116_s18 + $0xce8] sm:$0xff] %v8595_v25  ;;  %v7566_v46 = vmul.f32 %v15050_v45, %v4572_v30  ;;  %9622 = vst [vmem:[%s12116_s18 + $0xd00] sm:$0xff] %v8598_v42  ;;  %v7569_v48 = vmul.f32 %v14732_v58, %v4587_v14 }
 0xbec   : > { %4815 = vbcast.lane.b32.xlu1 %v17889_v41, 328  ;;  %4827 = vbcast.lane.b32.xlu0 %v17889_v41, 352 }
 0xbed   : > { %v8597_v63 = vadd.f32 %v14964_v5, %v7566_v46  ;;  %v8600_v35 = vadd.f32 %v14964_v5, %v7569_v48 }
 0xbee   : > { %v4583_v51 = vpop.permute.xlu1 %4582  ;;  %v4595_v62 = vpop.permute.xlu0 %4594 }
 0xbef   : > { %9621 = vst [vmem:[%s12116_s18 + $0xcf8] sm:$0xff] %v8597_v63  ;;  %v7568_v49 = vmul.f32 %v14740_v61, %v4583_v51  ;;  %9624 = vst [vmem:[%s12116_s18 + $0xd10] sm:$0xff] %v8600_v35  ;;  %v7571_v26 = vmul.f32 %v14744_v21, %v4595_v62 }
 0xbf0   : > { %4823 = vbcast.lane.b32.xlu1 %v17889_v41, 344  ;;  %4835 = vbcast.lane.b32.xlu0 %v17889_v41, 368 }
 0xbf1   : > { %v8599_v6 = vadd.f32 %v14964_v5, %v7568_v49  ;;  %v8602_v34 = vadd.f32 %v14964_v5, %v7571_v26 }
 0xbf2   : > { %v4591_v24 = vpop.permute.xlu1 %4590  ;;  %v4603_v59 = vpop.permute.xlu0 %4602 }
 0xbf3   : > { %9623 = vst [vmem:[%s12116_s18 + $0xd08] sm:$0xff] %v8599_v6  ;;  %v7570_v33 = vmul.f32 %v14752_v0, %v4591_v24  ;;  %9626 = vst [vmem:[%s12116_s18 + $0xd20] sm:$0xff] %v8602_v34  ;;  %v7573_v17 = vmul.f32 %v14756_v53, %v4603_v59 }
 0xbf4   : > { %4831 = vbcast.lane.b32.xlu1 %v17889_v41, 360  ;;  %4846 = vbcast.lane.b32.xlu0 %v17890_v43, 256 }
 0xbf5   : > { %v8601_v15 = vadd.f32 %v14964_v5, %v7570_v33  ;;  %v8604_v12 = vadd.f32 %v14964_v5, %v7573_v17 }
 0xbf6   : > { %v4599_v22 = vpop.permute.xlu1 %4598  ;;  %v4611_v52 = vpop.permute.xlu0 %4610 }
 0xbf7   : > { %9625 = vst [vmem:[%s12116_s18 + $0xd18] sm:$0xff] %v8601_v15  ;;  %v7572_v39 = vmul.f32 %v14764_v40, %v4599_v22  ;;  %9628 = vst [vmem:[%s12116_s18 + $0xd30] sm:$0xff] %v8604_v12  ;;  %v7575_v13 = vmul.f32 %v14768_v8, %v4611_v52 }
 0xbf8   : > { %4839 = vbcast.lane.b32.xlu1 %v17889_v41, 376  ;;  %4854 = vbcast.lane.b32.xlu0 %v17890_v43, 272 }
 0xbf9   : > { %v8603_v10 = vadd.f32 %v14964_v5, %v7572_v39  ;;  %v8606_v20 = vadd.f32 %v14964_v5, %v7575_v13 }
 0xbfa   : > { %v4607_v19 = vpop.permute.xlu1 %4606  ;;  %v4619_v42 = vpop.permute.xlu0 %4618 }
 0xbfb   : > { %9627 = vst [vmem:[%s12116_s18 + $0xd28] sm:$0xff] %v8603_v10  ;;  %v7574_v25 = vmul.f32 %v14776_v1, %v4607_v19  ;;  %9630 = vst [vmem:[%s12116_s18 + $0xd40] sm:$0xff] %v8606_v20  ;;  %v7577_v30 = vmul.f32 %v14780_v54, %v4619_v42 }
 0xbfc   : > { %4850 = vbcast.lane.b32.xlu1 %v17890_v43, 264  ;;  %4862 = vbcast.lane.b32.xlu0 %v17890_v43, 288 }
 0xbfd   : > { %v8605_v41 = vadd.f32 %v14964_v5, %v7574_v25  ;;  %v8608_v46 = vadd.f32 %v14964_v5, %v7577_v30 }
 0xbfe   : > { %v4615_v14 = vpop.permute.xlu1 %4614  ;;  %v4627_v63 = vpop.permute.xlu0 %4626 }
 0xbff   : > { %9629 = vst [vmem:[%s12116_s18 + $0xd38] sm:$0xff] %v8605_v41  ;;  %v7576_v48 = vmul.f32 %v14788_v56, %v4615_v14  ;;  %9632 = vst [vmem:[%s12116_s18 + $0xd50] sm:$0xff] %v8608_v46  ;;  %v7579_v35 = vmul.f32 %v14792_v32, %v4627_v63 }
 0xc00   : > { %4858 = vbcast.lane.b32.xlu1 %v17890_v43, 280  ;;  %4870 = vbcast.lane.b32.xlu0 %v17890_v43, 304 }
 0xc01   : > { %v8607_v51 = vadd.f32 %v14964_v5, %v7576_v48  ;;  %v8610_v49 = vadd.f32 %v14964_v5, %v7579_v35 }
 0xc02   : > { %v4623_v62 = vpop.permute.xlu1 %4622  ;;  %v4635_v6 = vpop.permute.xlu0 %4634 }
 0xc03   : > { %9631 = vst [vmem:[%s12116_s18 + $0xd48] sm:$0xff] %v8607_v51  ;;  %v7578_v26 = vmul.f32 %v14930_v23, %v4623_v62  ;;  %9634 = vst [vmem:[%s12116_s18 + $0xd60] sm:$0xff] %v8610_v49  ;;  %v7581_v34 = vmul.f32 %v14934_v7, %v4635_v6 }
 0xc04   : > { %4866 = vbcast.lane.b32.xlu1 %v17890_v43, 296  ;;  %4878 = vbcast.lane.b32.xlu0 %v17890_v43, 320 }
 0xc05   : > { %v8609_v24 = vadd.f32 %v14964_v5, %v7578_v26  ;;  %v8612_v33 = vadd.f32 %v14964_v5, %v7581_v34  ;;  %v17891_v26 = vld [vmem:[#allocation36_spill] sm:$0xff] }
 0xc06   : > { %v4631_v59 = vpop.permute.xlu1 %4630  ;;  %v4646_v15 = vpop.permute.xlu0 %4645 }
 0xc07   : > { %9633 = vst [vmem:[%s12116_s18 + $0xd58] sm:$0xff] %v8609_v24  ;;  %v7580_v17 = vmul.f32 %v14942_v27, %v4631_v59  ;;  %9636 = vst [vmem:[%s12116_s18 + $0xd70] sm:$0xff] %v8612_v33  ;;  %v7583_v12 = vmul.f32 %v14946_v18, %v4646_v15 }
 0xc08   : > { %4874 = vbcast.lane.b32.xlu1 %v17890_v43, 312  ;;  %4886 = vbcast.lane.b32.xlu0 %v17890_v43, 336 }
 0xc09   : > { %v8611_v22 = vadd.f32 %v14964_v5, %v7580_v17  ;;  %v8614_v39 = vadd.f32 %v14964_v5, %v7583_v12 }
 0xc0a   : > { %v4639_v52 = vpop.permute.xlu1 %4638  ;;  %v4654_v10 = vpop.permute.xlu0 %4653 }
 0xc0b   : > { %9635 = vst [vmem:[%s12116_s18 + $0xd68] sm:$0xff] %v8611_v22  ;;  %v7582_v13 = vmul.f32 %v14954_v55, %v4639_v52  ;;  %9638 = vst [vmem:[%s12116_s18 + $0xd80] sm:$0xff] %v8614_v39  ;;  %v7585_v20 = vmul.f32 %v14958_v9, %v4654_v10 }
 0xc0c   : > { %4882 = vbcast.lane.b32.xlu1 %v17890_v43, 328  ;;  %4894 = vbcast.lane.b32.xlu0 %v17890_v43, 352 }
 0xc0d   : > { %v8613_v19 = vadd.f32 %v14964_v5, %v7582_v13  ;;  %v8616_v25 = vadd.f32 %v14964_v5, %v7585_v20 }
 0xc0e   : > { %v4650_v42 = vpop.permute.xlu1 %4649  ;;  %v4662_v41 = vpop.permute.xlu0 %4661 }
 0xc0f   : > { %9637 = vst [vmem:[%s12116_s18 + $0xd78] sm:$0xff] %v8613_v19  ;;  %v7584_v30 = vmul.f32 %v14968_v3, %v4650_v42  ;;  %9640 = vst [vmem:[%s12116_s18 + $0xd90] sm:$0xff] %v8616_v25  ;;  %v7587_v46 = vmul.f32 %v14972_v36, %v4662_v41 }
 0xc10   : > { %4890 = vbcast.lane.b32.xlu1 %v17890_v43, 344  ;;  %4902 = vbcast.lane.b32.xlu0 %v17890_v43, 368 }
 0xc11   : > { %v8615_v14 = vadd.f32 %v14964_v5, %v7584_v30  ;;  %v8618_v48 = vadd.f32 %v14964_v5, %v7587_v46 }
 0xc12   : > { %v4658_v63 = vpop.permute.xlu1 %4657  ;;  %v4670_v51 = vpop.permute.xlu0 %4669 }
 0xc13   : > { %9639 = vst [vmem:[%s12116_s18 + $0xd88] sm:$0xff] %v8615_v14  ;;  %v7586_v35 = vmul.f32 %v14980_v44, %v4658_v63  ;;  %9642 = vst [vmem:[%s12116_s18 + $0xda0] sm:$0xff] %v8618_v48  ;;  %v7589_v49 = vmul.f32 %v14984_v29, %v4670_v51 }
 0xc14   : > { %4898 = vbcast.lane.b32.xlu1 %v17890_v43, 360  ;;  %4913 = vbcast.lane.b32.xlu0 %v17891_v26, 256 }
 0xc15   : > { %v8617_v62 = vadd.f32 %v14964_v5, %v7586_v35  ;;  %v8620_v6 = vadd.f32 %v14964_v5, %v7589_v49 }
 0xc16   : > { %v4666_v34 = vpop.permute.xlu1 %4665  ;;  %v4678_v33 = vpop.permute.xlu0 %4677 }
 0xc17   : > { %9641 = vst [vmem:[%s12116_s18 + $0xd98] sm:$0xff] %v8617_v62  ;;  %v7588_v24 = vmul.f32 %v14992_v11, %v4666_v34  ;;  %9644 = vst [vmem:[%s12116_s18 + $0xdb0] sm:$0xff] %v8620_v6  ;;  %v7591_v59 = vmul.f32 %v14996_v31, %v4678_v33 }
 0xc18   : > { %4906 = vbcast.lane.b32.xlu1 %v17890_v43, 376  ;;  %4921 = vbcast.lane.b32.xlu0 %v17891_v26, 272 }
 0xc19   : > { %v8619_v17 = vadd.f32 %v14964_v5, %v7588_v24  ;;  %v8622_v15 = vadd.f32 %v14964_v5, %v7591_v59 }
 0xc1a   : > { %v4674_v12 = vpop.permute.xlu1 %4673  ;;  %v4686_v39 = vpop.permute.xlu0 %4685 }
 0xc1b   : > { %9643 = vst [vmem:[%s12116_s18 + $0xda8] sm:$0xff] %v8619_v17  ;;  %v7590_v22 = vmul.f32 %v15004_v47, %v4674_v12  ;;  %9646 = vst [vmem:[%s12116_s18 + $0xdc0] sm:$0xff] %v8622_v15  ;;  %v7593_v52 = vmul.f32 %v15008_v2, %v4686_v39 }
 0xc1c   : > { %4917 = vbcast.lane.b32.xlu1 %v17891_v26, 264  ;;  %4929 = vbcast.lane.b32.xlu0 %v17891_v26, 288 }
 0xc1d   : > { %v8621_v43 = vadd.f32 %v14964_v5, %v7590_v22  ;;  %v8624_v13 = vadd.f32 %v14964_v5, %v7593_v52 }
 0xc1e   : > { %v4682_v10 = vpop.permute.xlu1 %4681  ;;  %v4694_v19 = vpop.permute.xlu0 %4693 }
 0xc1f   : > { %9645 = vst [vmem:[%s12116_s18 + $0xdb8] sm:$0xff] %v8621_v43  ;;  %v7592_v20 = vmul.f32 %v15016_v57, %v4682_v10  ;;  %9648 = vst [vmem:[%s12116_s18 + $0xdd0] sm:$0xff] %v8624_v13  ;;  %v7595_v25 = vmul.f32 %v15020_v60, %v4694_v19  ;;  %v17892_v19 = vld [vmem:[#allocation37_spill] sm:$0xff] }
 0xc20   : > { %4925 = vbcast.lane.b32.xlu1 %v17891_v26, 280  ;;  %4937 = vbcast.lane.b32.xlu0 %v17891_v26, 304 }
 0xc21   : > { %v8623_v42 = vadd.f32 %v14964_v5, %v7592_v20  ;;  %v8626_v30 = vadd.f32 %v14964_v5, %v7595_v25  ;;  %v15197_v25 = vrot.slane %v17892_v19, %v12846_v28 }
 0xc22   : > { %v4690_v41 = vpop.permute.xlu1 %4689  ;;  %v4702_v14 = vpop.permute.xlu0 %4701 }
 0xc23   : > { %9647 = vst [vmem:[%s12116_s18 + $0xdc8] sm:$0xff] %v8623_v42  ;;  %v7594_v46 = vmul.f32 %v15028_v16, %v4690_v41  ;;  %9650 = vst [vmem:[%s12116_s18 + $0xde0] sm:$0xff] %v8626_v30  ;;  %v7597_v48 = vmul.f32 %v15032_v50, %v4702_v14 }
 0xc24   : > { %4933 = vbcast.lane.b32.xlu1 %v17891_v26, 296  ;;  %4945 = vbcast.lane.b32.xlu0 %v17891_v26, 320 }
 0xc25   : > { %v8625_v63 = vadd.f32 %v14964_v5, %v7594_v46  ;;  %v8628_v35 = vadd.f32 %v14964_v5, %v7597_v48 }
 0xc26   : > { %v4698_v51 = vpop.permute.xlu1 %4697  ;;  %v4713_v62 = vpop.permute.xlu0 %4712 }
 0xc27   : > { %9649 = vst [vmem:[%s12116_s18 + $0xdd8] sm:$0xff] %v8625_v63  ;;  %v7596_v49 = vmul.f32 %v15040_v4, %v4698_v51  ;;  %9652 = vst [vmem:[%s12116_s18 + $0xdf0] sm:$0xff] %v8628_v35  ;;  %v7599_v6 = vmul.f32 %v14874_v37, %v4713_v62 }
 0xc28   : > { %4941 = vbcast.lane.b32.xlu1 %v17891_v26, 312  ;;  %4953 = vbcast.lane.b32.xlu0 %v17891_v26, 336 }
 0xc29   : > { %v8627_v34 = vadd.f32 %v14964_v5, %v7596_v49  ;;  %v8630_v24 = vadd.f32 %v14964_v5, %v7599_v6 }
 0xc2a   : > { %v4706_v33 = vpop.permute.xlu1 %4705  ;;  %v4721_v17 = vpop.permute.xlu0 %4720 }
 0xc2b   : > { %9651 = vst [vmem:[%s12116_s18 + $0xde8] sm:$0xff] %v8627_v34  ;;  %v7598_v59 = vmul.f32 %v15050_v45, %v4706_v33  ;;  %9654 = vst [vmem:[%s12116_s18 + $0xe00] sm:$0xff] %v8630_v24  ;;  %v7601_v15 = vmul.f32 %v14732_v58, %v4721_v17 }
 0xc2c   : > { %4949 = vbcast.lane.b32.xlu1 %v17891_v26, 328  ;;  %4961 = vbcast.lane.b32.xlu0 %v17891_v26, 352 }
 0xc2d   : > { %v8629_v12 = vadd.f32 %v14964_v5, %v7598_v59  ;;  %v8632_v22 = vadd.f32 %v14964_v5, %v7601_v15 }
 0xc2e   : > { %v4717_v39 = vpop.permute.xlu1 %4716  ;;  %v4729_v43 = vpop.permute.xlu0 %4728 }
 0xc2f   : > { %9653 = vst [vmem:[%s12116_s18 + $0xdf8] sm:$0xff] %v8629_v12  ;;  %v7600_v52 = vmul.f32 %v14740_v61, %v4717_v39  ;;  %9656 = vst [vmem:[%s12116_s18 + $0xe10] sm:$0xff] %v8632_v22  ;;  %v7603_v13 = vmul.f32 %v14744_v21, %v4729_v43 }
 0xc30   : > { %4957 = vbcast.lane.b32.xlu1 %v17891_v26, 344  ;;  %4969 = vbcast.lane.b32.xlu0 %v17891_v26, 368 }
 0xc31   : > { %v8631_v58 = vadd.f32 %v14964_v5, %v7600_v52  ;;  %v8634_v10 = vadd.f32 %v14964_v5, %v7603_v13 }
 0xc32   : > { %v4725_v20 = vpop.permute.xlu1 %4724  ;;  %v4737_v42 = vpop.permute.xlu0 %4736 }
 0xc33   : > { %9655 = vst [vmem:[%s12116_s18 + $0xe08] sm:$0xff] %v8631_v58  ;;  %v7602_v61 = vmul.f32 %v14752_v0, %v4725_v20  ;;  %9658 = vst [vmem:[%s12116_s18 + $0xe20] sm:$0xff] %v8634_v10  ;;  %v7605_v21 = vmul.f32 %v14756_v53, %v4737_v42 }
 0xc34   : > { %4965 = vbcast.lane.b32.xlu1 %v17891_v26, 360  ;;  %4980 = vbcast.lane.b32.xlu0 %v15197_v25, 256 }
 0xc35   : > { %v8633_v30 = vadd.f32 %v14964_v5, %v7602_v61  ;;  %v8636_v41 = vadd.f32 %v14964_v5, %v7605_v21 }
 0xc36   : > { %v4733_v46 = vpop.permute.xlu1 %4732  ;;  %v4745_v48 = vpop.permute.xlu0 %4744 }
 0xc37   : > { %9657 = vst [vmem:[%s12116_s18 + $0xe18] sm:$0xff] %v8633_v30  ;;  %v7604_v14 = vmul.f32 %v14764_v40, %v4733_v46  ;;  %9660 = vst [vmem:[%s12116_s18 + $0xe30] sm:$0xff] %v8636_v41  ;;  %v7607_v0 = vmul.f32 %v14768_v8, %v4745_v48 }
 0xc38   : > { %4973 = vbcast.lane.b32.xlu1 %v17891_v26, 376  ;;  %4988 = vbcast.lane.b32.xlu0 %v15197_v25, 272 }
 0xc39   : > { %v8635_v53 = vadd.f32 %v14964_v5, %v7604_v14  ;;  %v8638_v63 = vadd.f32 %v14964_v5, %v7607_v0 }
 0xc3a   : > { %v4741_v35 = vpop.permute.xlu1 %4740  ;;  %v4753_v49 = vpop.permute.xlu0 %4752 }
 0xc3b   : > { %9659 = vst [vmem:[%s12116_s18 + $0xe28] sm:$0xff] %v8635_v53  ;;  %v7606_v51 = vmul.f32 %v14776_v1, %v4741_v35  ;;  %9662 = vst [vmem:[%s12116_s18 + $0xe40] sm:$0xff] %v8638_v63  ;;  %v7609_v40 = vmul.f32 %v14780_v54, %v4753_v49  ;;  %v17893_v63 = vld [vmem:[#allocation38_spill] sm:$0xff] }
 0xc3c   : > { %4984 = vbcast.lane.b32.xlu1 %v15197_v25, 264  ;;  %4996 = vbcast.lane.b32.xlu0 %v15197_v25, 288  ;;  %v15265_v35 = vrot.slane %v17893_v63, %v12846_v28 }
 0xc3d   : > { %v8637_v8 = vadd.f32 %v14964_v5, %v7606_v51  ;;  %v8640_v26 = vadd.f32 %v14964_v5, %v7609_v40 }
 0xc3e   : > { %v4749_v62 = vpop.permute.xlu1 %4748  ;;  %v4761_v34 = vpop.permute.xlu0 %4760 }
 0xc3f   : > { %9661 = vst [vmem:[%s12116_s18 + $0xe38] sm:$0xff] %v8637_v8  ;;  %v7608_v6 = vmul.f32 %v14788_v56, %v4749_v62  ;;  %9664 = vst [vmem:[%s12116_s18 + $0xe50] sm:$0xff] %v8640_v26  ;;  %v7611_v1 = vmul.f32 %v14792_v32, %v4761_v34 }
 0xc40   : > { %4992 = vbcast.lane.b32.xlu1 %v15197_v25, 280  ;;  %5004 = vbcast.lane.b32.xlu0 %v15197_v25, 304 }
 0xc41   : > { %v8639_v54 = vadd.f32 %v14964_v5, %v7608_v6  ;;  %v8642_v24 = vadd.f32 %v14964_v5, %v7611_v1 }
 0xc42   : > { %v4757_v33 = vpop.permute.xlu1 %4756  ;;  %v4769_v17 = vpop.permute.xlu0 %4768 }
 0xc43   : > { %9663 = vst [vmem:[%s12116_s18 + $0xe48] sm:$0xff] %v8639_v54  ;;  %v7610_v59 = vmul.f32 %v14930_v23, %v4757_v33  ;;  %9666 = vst [vmem:[%s12116_s18 + $0xe60] sm:$0xff] %v8642_v24  ;;  %v7613_v56 = vmul.f32 %v14934_v7, %v4769_v17 }
 0xc44   : > { %5000 = vbcast.lane.b32.xlu1 %v15197_v25, 296  ;;  %5012 = vbcast.lane.b32.xlu0 %v15197_v25, 320 }
 0xc45   : > { %v8641_v32 = vadd.f32 %v14964_v5, %v7610_v59  ;;  %v8644_v15 = vadd.f32 %v14964_v5, %v7613_v56 }
 0xc46   : > { %v4765_v12 = vpop.permute.xlu1 %4764  ;;  %v4780_v39 = vpop.permute.xlu0 %4779 }
 0xc47   : > { %9665 = vst [vmem:[%s12116_s18 + $0xe58] sm:$0xff] %v8641_v32  ;;  %v7612_v22 = vmul.f32 %v14942_v27, %v4765_v12  ;;  %9668 = vst [vmem:[%s12116_s18 + $0xe70] sm:$0xff] %v8644_v15  ;;  %v7615_v52 = vmul.f32 %v14946_v18, %v4780_v39 }
 0xc48   : > { %5008 = vbcast.lane.b32.xlu1 %v15197_v25, 312  ;;  %5020 = vbcast.lane.b32.xlu0 %v15197_v25, 336 }
 0xc49   : > { %v8643_v43 = vadd.f32 %v14964_v5, %v7612_v22  ;;  %v8646_v13 = vadd.f32 %v14964_v5, %v7615_v52 }
 0xc4a   : > { %v4773_v58 = vpop.permute.xlu1 %4772  ;;  %v4788_v20 = vpop.permute.xlu0 %4787 }
 0xc4b   : > { %9667 = vst [vmem:[%s12116_s18 + $0xe68] sm:$0xff] %v8643_v43  ;;  %v7614_v10 = vmul.f32 %v14954_v55, %v4773_v58  ;;  %9670 = vst [vmem:[%s12116_s18 + $0xe80] sm:$0xff] %v8646_v13  ;;  %v7617_v61 = vmul.f32 %v14958_v9, %v4788_v20 }
 0xc4c   : > { %5016 = vbcast.lane.b32.xlu1 %v15197_v25, 328  ;;  %5028 = vbcast.lane.b32.xlu0 %v15197_v25, 352 }
 0xc4d   : > { %v8645_v42 = vadd.f32 %v14964_v5, %v7614_v10  ;;  %v8648_v21 = vadd.f32 %v14964_v5, %v7617_v61 }
 0xc4e   : > { %v4784_v30 = vpop.permute.xlu1 %4783  ;;  %v4796_v46 = vpop.permute.xlu0 %4795 }
 0xc4f   : > { %9669 = vst [vmem:[%s12116_s18 + $0xe78] sm:$0xff] %v8645_v42  ;;  %v7616_v41 = vmul.f32 %v14968_v3, %v4784_v30  ;;  %9672 = vst [vmem:[%s12116_s18 + $0xe90] sm:$0xff] %v8648_v21  ;;  %v7619_v14 = vmul.f32 %v14972_v36, %v4796_v46 }
 0xc50   : > { %5024 = vbcast.lane.b32.xlu1 %v15197_v25, 344  ;;  %5036 = vbcast.lane.b32.xlu0 %v15197_v25, 368 }
 0xc51   : > { %v8647_v48 = vadd.f32 %v14964_v5, %v7616_v41  ;;  %v8650_v0 = vadd.f32 %v14964_v5, %v7619_v14 }
 0xc52   : > { %v4792_v53 = vpop.permute.xlu1 %4791  ;;  %v4804_v49 = vpop.permute.xlu0 %4803 }
 0xc53   : > { %9671 = vst [vmem:[%s12116_s18 + $0xe88] sm:$0xff] %v8647_v48  ;;  %v7618_v51 = vmul.f32 %v14980_v44, %v4792_v53  ;;  %9674 = vst [vmem:[%s12116_s18 + $0xea0] sm:$0xff] %v8650_v0  ;;  %v7621_v40 = vmul.f32 %v14984_v29, %v4804_v49  ;;  %v15318_v49 = vld [vmem:[#allocation3 + $0xd8] sm:$0xff] }
 0xc54   : > { %5032 = vbcast.lane.b32.xlu1 %v15197_v25, 360  ;;  %5047 = vbcast.lane.b32.xlu0 %v15265_v35, 256 }
 0xc55   : > { %v8649_v8 = vadd.f32 %v14964_v5, %v7618_v51  ;;  %v8652_v26 = vadd.f32 %v14964_v5, %v7621_v40 }
 0xc56   : > { %v4800_v62 = vpop.permute.xlu1 %4799  ;;  %v4812_v34 = vpop.permute.xlu0 %4811 }
 0xc57   : > { %9673 = vst [vmem:[%s12116_s18 + $0xe98] sm:$0xff] %v8649_v8  ;;  %v7620_v6 = vmul.f32 %v14992_v11, %v4800_v62  ;;  %9676 = vst [vmem:[%s12116_s18 + $0xeb0] sm:$0xff] %v8652_v26  ;;  %v7623_v1 = vmul.f32 %v14996_v31, %v4812_v34  ;;  %v15326_v62 = vld [vmem:[#allocation3] sm:$0xff] }
 0xc58   : > { %5040 = vbcast.lane.b32.xlu1 %v15197_v25, 376  ;;  %5055 = vbcast.lane.b32.xlu0 %v15265_v35, 272 }
 0xc59   : > { %v8651_v54 = vadd.f32 %v14964_v5, %v7620_v6  ;;  %v8654_v24 = vadd.f32 %v14964_v5, %v7623_v1  ;;  %v15330_v1 = vld [vmem:[#allocation3 + $0x50] sm:$0xff] }
 0xc5a   : > { %v4808_v33 = vpop.permute.xlu1 %4807  ;;  %v4820_v17 = vpop.permute.xlu0 %4819 }
 0xc5b   : > { %9675 = vst [vmem:[%s12116_s18 + $0xea8] sm:$0xff] %v8651_v54  ;;  %v7622_v59 = vmul.f32 %v15004_v47, %v4808_v33  ;;  %9678 = vst [vmem:[%s12116_s18 + $0xec0] sm:$0xff] %v8654_v24  ;;  %v7625_v56 = vmul.f32 %v15008_v2, %v4820_v17  ;;  %v15339_v17 = vrot.slane %v17892_v19, %v12849_v38 }
 0xc5c   : > { %5051 = vbcast.lane.b32.xlu1 %v15265_v35, 264  ;;  %5063 = vbcast.lane.b32.xlu0 %v15265_v35, 288 }
 0xc5d   : > { %v8653_v25 = vadd.f32 %v14964_v5, %v7622_v59  ;;  %v8656_v32 = vadd.f32 %v14964_v5, %v7625_v56  ;;  %v15342_v56 = vld [vmem:[#allocation3 + $0x18] sm:$0xff] }
 0xc5e   : > { %v4816_v15 = vpop.permute.xlu1 %4815  ;;  %v4828_v22 = vpop.permute.xlu0 %4827 }
 0xc5f   : > { %9677 = vst [vmem:[%s12116_s18 + $0xeb8] sm:$0xff] %v8653_v25  ;;  %v7624_v12 = vmul.f32 %v15016_v57, %v4816_v15  ;;  %9680 = vst [vmem:[%s12116_s18 + $0xed0] sm:$0xff] %v8656_v32  ;;  %v7627_v39 = vmul.f32 %v15020_v60, %v4828_v22  ;;  %v15346_v15 = vld [vmem:[#allocation3 + $0x30] sm:$0xff] }
 0xc60   : > { %5059 = vbcast.lane.b32.xlu1 %v15265_v35, 280  ;;  %5071 = vbcast.lane.b32.xlu0 %v15265_v35, 304 }
 0xc61   : > { %v8655_v52 = vadd.f32 %v14964_v5, %v7624_v12  ;;  %v8658_v43 = vadd.f32 %v14964_v5, %v7627_v39 }
 0xc62   : > { %v4824_v13 = vpop.permute.xlu1 %4823  ;;  %v4836_v10 = vpop.permute.xlu0 %4835 }
 0xc63   : > { %9679 = vst [vmem:[%s12116_s18 + $0xec8] sm:$0xff] %v8655_v52  ;;  %v7626_v58 = vmul.f32 %v15028_v16, %v4824_v13  ;;  %9682 = vst [vmem:[%s12116_s18 + $0xee0] sm:$0xff] %v8658_v43  ;;  %v7629_v20 = vmul.f32 %v15032_v50, %v4836_v10  ;;  %v15354_v52 = vld [vmem:[#allocation3 + $0x68] sm:$0xff] }
 0xc64   : > { %5067 = vbcast.lane.b32.xlu1 %v15265_v35, 296  ;;  %5079 = vbcast.lane.b32.xlu0 %v15265_v35, 320 }
 0xc65   : > { %v8657_v61 = vadd.f32 %v14964_v5, %v7626_v58  ;;  %v8660_v42 = vadd.f32 %v14964_v5, %v7629_v20  ;;  %v15358_v58 = vld [vmem:[#allocation3 + $0x80] sm:$0xff] }
 0xc66   : > { %v4832_v21 = vpop.permute.xlu1 %4831  ;;  %v4847_v41 = vpop.permute.xlu0 %4846 }
 0xc67   : > { %9681 = vst [vmem:[%s12116_s18 + $0xed8] sm:$0xff] %v8657_v61  ;;  %v7628_v30 = vmul.f32 %v15040_v4, %v4832_v21  ;;  %9684 = vst [vmem:[%s12116_s18 + $0xef0] sm:$0xff] %v8660_v42  ;;  %v7631_v46 = vmul.f32 %v14874_v37, %v4847_v41  ;;  %v15366_v21 = vld [vmem:[#allocation3 + $0x48] sm:$0xff] }
 0xc68   : > { %5075 = vbcast.lane.b32.xlu1 %v15265_v35, 312  ;;  %5087 = vbcast.lane.b32.xlu0 %v15265_v35, 336 }
 0xc69   : > { %v8659_v14 = vadd.f32 %v14964_v5, %v7628_v30  ;;  %v8662_v48 = vadd.f32 %v14964_v5, %v7631_v46  ;;  %v15370_v46 = vld [vmem:[#allocation3 + $0xe8] sm:$0xff] }
 0xc6a   : > { %v4840_v0 = vpop.permute.xlu1 %4839  ;;  %v4855_v51 = vpop.permute.xlu0 %4854 }
 0xc6b   : > { %9683 = vst [vmem:[%s12116_s18 + $0xee8] sm:$0xff] %v8659_v14  ;;  %v7630_v53 = vmul.f32 %v15050_v45, %v4840_v0  ;;  %9686 = vst [vmem:[%s12116_s18 + $0xf00] sm:$0xff] %v8662_v48  ;;  %v7633_v37 = vmul.f32 %v15318_v49, %v4855_v51 }
 0xc6c   : > { %5083 = vbcast.lane.b32.xlu1 %v15265_v35, 328  ;;  %5095 = vbcast.lane.b32.xlu0 %v15265_v35, 352 }
 0xc6d   : > { %v8661_v40 = vadd.f32 %v14964_v5, %v7630_v53  ;;  %v8664_v8 = vadd.f32 %v14964_v5, %v7633_v37  ;;  %v15378_v53 = vld [vmem:[#allocation3 + $0x88] sm:$0xff] }
 0xc6e   : > { %v4851_v26 = vpop.permute.xlu1 %4850  ;;  %v4863_v34 = vpop.permute.xlu0 %4862 }
 0xc6f   : > { %9685 = vst [vmem:[%s12116_s18 + $0xef8] sm:$0xff] %v8661_v40  ;;  %v7632_v6 = vmul.f32 %v15326_v62, %v4851_v26  ;;  %9688 = vst [vmem:[%s12116_s18 + $0xf10] sm:$0xff] %v8664_v8  ;;  %v7635_v54 = vmul.f32 %v15330_v1, %v4863_v34  ;;  %v15382_v40 = vld [vmem:[#allocation3 + $0x60] sm:$0xff] }
 0xc70   : > { %5091 = vbcast.lane.b32.xlu1 %v15265_v35, 344  ;;  %5103 = vbcast.lane.b32.xlu0 %v15265_v35, 368 }
 0xc71   : > { %v8663_v24 = vadd.f32 %v14964_v5, %v7632_v6  ;;  %v8666_v33 = vadd.f32 %v14964_v5, %v7635_v54 }
 0xc72   : > { %v4859_v59 = vpop.permute.xlu1 %4858  ;;  %v4871_v32 = vpop.permute.xlu0 %4870 }
 0xc73   : > { %9687 = vst [vmem:[%s12116_s18 + $0xf08] sm:$0xff] %v8663_v24  ;;  %v7634_v25 = vmul.f32 %v15342_v56, %v4859_v59  ;;  %9690 = vst [vmem:[%s12116_s18 + $0xf20] sm:$0xff] %v8666_v33  ;;  %v7637_v12 = vmul.f32 %v15346_v15, %v4871_v32 }
 0xc74   : > { %5099 = vbcast.lane.b32.xlu1 %v15265_v35, 360  ;;  %5114 = vbcast.lane.b32.xlu0 %v15339_v17, 256 }
 0xc75   : > { %v8665_v22 = vadd.f32 %v14964_v5, %v7634_v25  ;;  %v8668_v19 = vadd.f32 %v14964_v5, %v7637_v12 }
 0xc76   : > { %v4867_v39 = vpop.permute.xlu1 %4866  ;;  %v4879_v13 = vpop.permute.xlu0 %4878 }
 0xc77   : > { %9689 = vst [vmem:[%s12116_s18 + $0xf18] sm:$0xff] %v8665_v22  ;;  %v7636_v43 = vmul.f32 %v15354_v52, %v4867_v39  ;;  %9692 = vst [vmem:[%s12116_s18 + $0xf30] sm:$0xff] %v8668_v19  ;;  %v7639_v10 = vmul.f32 %v15358_v58, %v4879_v13 }
 0xc78   : > { %5107 = vbcast.lane.b32.xlu1 %v15265_v35, 376  ;;  %5122 = vbcast.lane.b32.xlu0 %v15339_v17, 272 }
 0xc79   : > { %v8667_v20 = vadd.f32 %v14964_v5, %v7636_v43  ;;  %v8670_v61 = vadd.f32 %v14964_v5, %v7639_v10 }
 0xc7a   : > { %v4875_v42 = vpop.permute.xlu1 %4874  ;;  %v4887_v41 = vpop.permute.xlu0 %4886 }
 0xc7b   : > { %9691 = vst [vmem:[%s12116_s18 + $0xf28] sm:$0xff] %v8667_v20  ;;  %v7638_v30 = vmul.f32 %v15366_v21, %v4875_v42  ;;  %9694 = vst [vmem:[%s12116_s18 + $0xf40] sm:$0xff] %v8670_v61  ;;  %v7641_v35 = vmul.f32 %v15370_v46, %v4887_v41 }
 0xc7c   : > { %5118 = vbcast.lane.b32.xlu1 %v15339_v17, 264  ;;  %5130 = vbcast.lane.b32.xlu0 %v15339_v17, 288 }
 0xc7d   : > { %v8669_v14 = vadd.f32 %v14964_v5, %v7638_v30  ;;  %v8672_v48 = vadd.f32 %v14964_v5, %v7641_v35  ;;  %v15423_v35 = vrot.slane %v17893_v63, %v12849_v38 }
 0xc7e   : > { %v4883_v0 = vpop.permute.xlu1 %4882  ;;  %v4895_v37 = vpop.permute.xlu0 %4894 }
 0xc7f   : > { %9693 = vst [vmem:[%s12116_s18 + $0xf38] sm:$0xff] %v8669_v14  ;;  %v7640_v51 = vmul.f32 %v15378_v53, %v4883_v0  ;;  %9696 = vst [vmem:[%s12116_s18 + $0xf50] sm:$0xff] %v8672_v48  ;;  %v7643_v8 = vmul.f32 %v15382_v40, %v4895_v37 }
 0xc80   : > { %5126 = vbcast.lane.b32.xlu1 %v15339_v17, 280  ;;  %5138 = vbcast.lane.b32.xlu0 %v15339_v17, 304 }
 0xc81   : > { %v8671_v26 = vadd.f32 %v14964_v5, %v7640_v51  ;;  %v8674_v6 = vadd.f32 %v14964_v5, %v7643_v8 }
 0xc82   : > { %v4891_v34 = vpop.permute.xlu1 %4890  ;;  %v4903_v24 = vpop.permute.xlu0 %4902 }
 0xc83   : > { %9695 = vst [vmem:[%s12116_s18 + $0xf48] sm:$0xff] %v8671_v26  ;;  %v7642_v54 = vmul.f32 %v14930_v23, %v4891_v34  ;;  %9698 = vst [vmem:[%s12116_s18 + $0xf60] sm:$0xff] %v8674_v6  ;;  %v7645_v33 = vmul.f32 %v14934_v7, %v4903_v24 }
 0xc84   : > { %5134 = vbcast.lane.b32.xlu1 %v15339_v17, 296  ;;  %5146 = vbcast.lane.b32.xlu0 %v15339_v17, 320 }
 0xc85   : > { %v8673_v59 = vadd.f32 %v14964_v5, %v7642_v54  ;;  %v8676_v25 = vadd.f32 %v14964_v5, %v7645_v33 }
 0xc86   : > { %v4899_v32 = vpop.permute.xlu1 %4898  ;;  %v4914_v22 = vpop.permute.xlu0 %4913 }
 0xc87   : > { %9697 = vst [vmem:[%s12116_s18 + $0xf58] sm:$0xff] %v8673_v59  ;;  %v7644_v12 = vmul.f32 %v14942_v27, %v4899_v32  ;;  %9700 = vst [vmem:[%s12116_s18 + $0xf70] sm:$0xff] %v8676_v25  ;;  %v7647_v23 = vmul.f32 %v14946_v18, %v4914_v22 }
 0xc88   : > { %5142 = vbcast.lane.b32.xlu1 %v15339_v17, 312  ;;  %5154 = vbcast.lane.b32.xlu0 %v15339_v17, 336 }
 0xc89   : > { %v8675_v7 = vadd.f32 %v14964_v5, %v7644_v12  ;;  %v8678_v19 = vadd.f32 %v14964_v5, %v7647_v23 }
 0xc8a   : > { %v4907_v39 = vpop.permute.xlu1 %4906  ;;  %v4922_v13 = vpop.permute.xlu0 %4921 }
 0xc8b   : > { %9699 = vst [vmem:[%s12116_s18 + $0xf68] sm:$0xff] %v8675_v7  ;;  %v7646_v43 = vmul.f32 %v14954_v55, %v4907_v39  ;;  %9702 = vst [vmem:[%s12116_s18 + $0xf80] sm:$0xff] %v8678_v19  ;;  %v7649_v27 = vmul.f32 %v14958_v9, %v4922_v13 }
 0xc8c   : > { %5150 = vbcast.lane.b32.xlu1 %v15339_v17, 328  ;;  %5162 = vbcast.lane.b32.xlu0 %v15339_v17, 352 }
 0xc8d   : > { %v8677_v18 = vadd.f32 %v14964_v5, %v7646_v43  ;;  %v8680_v10 = vadd.f32 %v14964_v5, %v7649_v27 }
 0xc8e   : > { %v4918_v20 = vpop.permute.xlu1 %4917  ;;  %v4930_v42 = vpop.permute.xlu0 %4929 }
 0xc8f   : > { %9701 = vst [vmem:[%s12116_s18 + $0xf78] sm:$0xff] %v8677_v18  ;;  %v7648_v61 = vmul.f32 %v14968_v3, %v4918_v20  ;;  %9704 = vst [vmem:[%s12116_s18 + $0xf90] sm:$0xff] %v8680_v10  ;;  %v7651_v55 = vmul.f32 %v14972_v36, %v4930_v42 }
 0xc90   : > { %5158 = vbcast.lane.b32.xlu1 %v15339_v17, 344  ;;  %5170 = vbcast.lane.b32.xlu0 %v15339_v17, 368 }
 0xc91   : > { %v8679_v9 = vadd.f32 %v14964_v5, %v7648_v61  ;;  %v8682_v30 = vadd.f32 %v14964_v5, %v7651_v55 }
 0xc92   : > { %v4926_v41 = vpop.permute.xlu1 %4925  ;;  %v4938_v14 = vpop.permute.xlu0 %4937 }
 0xc93   : > { %9703 = vst [vmem:[%s12116_s18 + $0xf88] sm:$0xff] %v8679_v9  ;;  %v7650_v3 = vmul.f32 %v14980_v44, %v4926_v41  ;;  %9706 = vst [vmem:[%s12116_s18 + $0xfa0] sm:$0xff] %v8682_v30  ;;  %v7653_v36 = vmul.f32 %v14984_v29, %v4938_v14  ;;  %v15438_v29 = vld [vmem:[#allocation19] ss:$0 sm:$0xff] }
 0xc94   : > { %5166 = vbcast.lane.b32.xlu1 %v15339_v17, 360  ;;  %5181 = vbcast.lane.b32.xlu0 %v15423_v35, 256 }
 0xc95   : > { %v8681_v48 = vadd.f32 %v14964_v5, %v7650_v3  ;;  %v8684_v0 = vadd.f32 %v14964_v5, %v7653_v36 }
 0xc96   : > { %v4934_v51 = vpop.permute.xlu1 %4933  ;;  %v4946_v37 = vpop.permute.xlu0 %4945 }
 0xc97   : > { %9705 = vst [vmem:[%s12116_s18 + $0xf98] sm:$0xff] %v8681_v48  ;;  %v7652_v63 = vmul.f32 %v14992_v11, %v4934_v51  ;;  %9708 = vst [vmem:[%s12116_s18 + $0xfb0] sm:$0xff] %v8684_v0  ;;  %v7655_v44 = vmul.f32 %v14996_v31, %v4946_v37  ;;  %v17894_v0 = vld [vmem:[#allocation41_spill] sm:$0xff] }
 0xc98   : > { %5174 = vbcast.lane.b32.xlu1 %v15339_v17, 376  ;;  %5189 = vbcast.lane.b32.xlu0 %v15423_v35, 272 }
 0xc99   : > { %v8683_v8 = vadd.f32 %v15438_v29, %v7652_v63  ;;  %v8686_v5 = vadd.f32 %v15438_v29, %v7655_v44 }
 0xc9a   : > { %v4942_v26 = vpop.permute.xlu1 %4941  ;;  %v4954_v6 = vpop.permute.xlu0 %4953 }
 0xc9b   : > { %9707 = vst [vmem:[%s12116_s18 + $0xfa8] sm:$0xff] %v8683_v8  ;;  %v7654_v11 = vmul.f32 %v15004_v47, %v4942_v26  ;;  %9710 = vst [vmem:[%s12116_s18 + $0xfc0] sm:$0xff] %v8686_v5  ;;  %v7657_v31 = vmul.f32 %v15008_v2, %v4954_v6 }
 0xc9c   : > { %5185 = vbcast.lane.b32.xlu1 %v15423_v35, 264  ;;  %5197 = vbcast.lane.b32.xlu0 %v15423_v35, 288 }
 0xc9d   : > { %v8685_v17 = vadd.f32 %v15438_v29, %v7654_v11  ;;  %v8688_v34 = vadd.f32 %v15438_v29, %v7657_v31 }
 0xc9e   : > { %v4950_v54 = vpop.permute.xlu1 %4949  ;;  %v4962_v33 = vpop.permute.xlu0 %4961 }
 0xc9f   : > { %9709 = vst [vmem:[%s12116_s18 + $0xfb8] sm:$0xff] %v8685_v17  ;;  %v7656_v24 = vmul.f32 %v15016_v57, %v4950_v54  ;;  %9712 = vst [vmem:[%s12116_s18 + $0xfd0] sm:$0xff] %v8688_v34  ;;  %v7659_v47 = vmul.f32 %v15020_v60, %v4962_v33 }
 0xca0   : > { %5193 = vbcast.lane.b32.xlu1 %v15423_v35, 280  ;;  %5205 = vbcast.lane.b32.xlu0 %v15423_v35, 304 }
 0xca1   : > { %v8687_v2 = vadd.f32 %v15438_v29, %v7656_v24  ;;  %v8690_v59 = vadd.f32 %v15438_v29, %v7659_v47 }
 0xca2   : > { %v4958_v25 = vpop.permute.xlu1 %4957  ;;  %v4970_v12 = vpop.permute.xlu0 %4969 }
 0xca3   : > { %9711 = vst [vmem:[%s12116_s18 + $0xfc8] sm:$0xff] %v8687_v2  ;;  %v7658_v32 = vmul.f32 %v15028_v16, %v4958_v25  ;;  %9714 = vst [vmem:[%s12116_s18 + $0xfe0] sm:$0xff] %v8690_v59  ;;  %v7661_v57 = vmul.f32 %v15032_v50, %v4970_v12  ;;  %v15470_v16 = vld [vmem:[#allocation3 + $0xb0] sm:$0xff] }
 0xca4   : > { %5201 = vbcast.lane.b32.xlu1 %v15423_v35, 296  ;;  %5213 = vbcast.lane.b32.xlu0 %v15423_v35, 320 }
 0xca5   : > { %v8689_v60 = vadd.f32 %v15438_v29, %v7658_v32  ;;  %v8692_v22 = vadd.f32 %v15438_v29, %v7661_v57  ;;  %v15526_v32 = vld [vmem:[#allocation3 + $0xb8] sm:$0xff] }
 0xca6   : > { %v4966_v23 = vpop.permute.xlu1 %4965  ;;  %v4981_v19 = vpop.permute.xlu0 %4980 }
 0xca7   : > { %9713 = vst [vmem:[%s12116_s18 + $0xfd8] sm:$0xff] %v8689_v60  ;;  %v7660_v7 = vmul.f32 %v15040_v4, %v4966_v23  ;;  %9716 = vst [vmem:[%s12116_s18 + $0xff0] sm:$0xff] %v8692_v22  ;;  %v7663_v50 = vmul.f32 %v15470_v16, %v4981_v19  ;;  %v15530_v60 = vld [vmem:[#allocation3 + $0x8] sm:$0xff] }
 0xca8   : > { %5209 = vbcast.lane.b32.xlu1 %v15423_v35, 312  ;;  %5221 = vbcast.lane.b32.xlu0 %v15423_v35, 336 }
 0xca9   : > { %v8691_v39 = vadd.f32 %v15438_v29, %v7660_v7  ;;  %v8694_v43 = vadd.f32 %v15438_v29, %v7663_v50  ;;  %v15538_v50 = vld [vmem:[#allocation3 + $0xf0] sm:$0xff] }
 0xcaa   : > { %v4974_v13 = vpop.permute.xlu1 %4973  ;;  %v4989_v27 = vpop.permute.xlu0 %4988 }
 0xcab   : > { %9715 = vst [vmem:[%s12116_s18 + $0xfe8] sm:$0xff] %v8691_v39  ;;  %v7662_v4 = vmul.f32 %v15050_v45, %v4974_v13  ;;  %9718 = vst [vmem:[%s12116_s18 + $0x1000] sm:$0xff] %v8694_v43  ;;  %v7665_v18 = vmul.f32 %v15318_v49, %v4989_v27  ;;  %v15542_v13 = vld [vmem:[#allocation3 + $0x38] sm:$0xff] }
 0xcac   : > { %5217 = vbcast.lane.b32.xlu1 %v15423_v35, 328  ;;  %5229 = vbcast.lane.b32.xlu0 %v15423_v35, 352 }
 0xcad   : > { %v8693_v10 = vadd.f32 %v15438_v29, %v7662_v4  ;;  %v8696_v20 = vadd.f32 %v15438_v29, %v7665_v18 }
 0xcae   : > { %v4985_v61 = vpop.permute.xlu1 %4984  ;;  %v4997_v55 = vpop.permute.xlu0 %4996 }
 0xcaf   : > { %9717 = vst [vmem:[%s12116_s18 + $0xff8] sm:$0xff] %v8693_v10  ;;  %v7664_v42 = vmul.f32 %v15326_v62, %v4985_v61  ;;  %9720 = vst [vmem:[%s12116_s18 + $0x1010] sm:$0xff] %v8696_v20  ;;  %v7667_v45 = vmul.f32 %v15330_v1, %v4997_v55  ;;  %v15550_v20 = vld [vmem:[#allocation3 + $0x78] sm:$0xff]  ;;  %v15554_v55 = vld [vmem:[#allocation3 + $0x40] sm:$0xff] }
 0xcb0   : > { %5225 = vbcast.lane.b32.xlu1 %v15423_v35, 344  ;;  %5237 = vbcast.lane.b32.xlu0 %v15423_v35, 368 }
 0xcb1   : > { %v8695_v9 = vadd.f32 %v15438_v29, %v7664_v42  ;;  %v8698_v30 = vadd.f32 %v15438_v29, %v7667_v45 }
 0xcb2   : > { %v4993_v41 = vpop.permute.xlu1 %4992  ;;  %v5005_v14 = vpop.permute.xlu0 %5004 }
 0xcb3   : > { %9719 = vst [vmem:[%s12116_s18 + $0x1008] sm:$0xff] %v8695_v9  ;;  %v7666_v3 = vmul.f32 %v15342_v56, %v4993_v41  ;;  %9722 = vst [vmem:[%s12116_s18 + $0x1020] sm:$0xff] %v8698_v30  ;;  %v7669_v36 = vmul.f32 %v15346_v15, %v5005_v14 }
 0xcb4   : > { %5233 = vbcast.lane.b32.xlu1 %v15423_v35, 360  ;;  %5248 = vbcast.lane.b32.xlu0 %v17894_v0, 256 }
 0xcb5   : > { %v8697_v48 = vadd.f32 %v15438_v29, %v7666_v3  ;;  %v8700_v51 = vadd.f32 %v15438_v29, %v7669_v36  ;;  %v15562_v3 = vld [vmem:[#allocation3 + $0x58] sm:$0xff] }
 0xcb6   : > { %v5001_v63 = vpop.permute.xlu1 %5000  ;;  %v5013_v44 = vpop.permute.xlu0 %5012 }
 0xcb7   : > { %9721 = vst [vmem:[%s12116_s18 + $0x1018] sm:$0xff] %v8697_v48  ;;  %v7668_v37 = vmul.f32 %v15354_v52, %v5001_v63  ;;  %9724 = vst [vmem:[%s12116_s18 + $0x1030] sm:$0xff] %v8700_v51  ;;  %v7671_v8 = vmul.f32 %v15358_v58, %v5013_v44  ;;  %v15566_v48 = vld [vmem:[#allocation3 + $0xe0] sm:$0xff] }
 0xcb8   : > { %5241 = vbcast.lane.b32.xlu1 %v15423_v35, 376  ;;  %5256 = vbcast.lane.b32.xlu0 %v17894_v0, 272 }
 0xcb9   : > { %v8699_v5 = vadd.f32 %v15438_v29, %v7668_v37  ;;  %v8702_v26 = vadd.f32 %v15438_v29, %v7671_v8  ;;  %v15574_v8 = vld [vmem:[#allocation3 + $0xc8] sm:$0xff] }
 0xcba   : > { %v5009_v11 = vpop.permute.xlu1 %5008  ;;  %v5021_v31 = vpop.permute.xlu0 %5020 }
 0xcbb   : > { %9723 = vst [vmem:[%s12116_s18 + $0x1028] sm:$0xff] %v8699_v5  ;;  %v7670_v6 = vmul.f32 %v15366_v21, %v5009_v11  ;;  %9726 = vst [vmem:[%s12116_s18 + $0x1040] sm:$0xff] %v8702_v26  ;;  %v7673_v17 = vmul.f32 %v15370_v46, %v5021_v31  ;;  %v15578_v11 = vld [vmem:[#allocation3 + $0x70] sm:$0xff] }
 0xcbc   : > { %5252 = vbcast.lane.b32.xlu1 %v17894_v0, 264  ;;  %5264 = vbcast.lane.b32.xlu0 %v17894_v0, 288 }
 0xcbd   : > { %v8701_v35 = vadd.f32 %v15438_v29, %v7670_v6  ;;  %v8704_v34 = vadd.f32 %v15438_v29, %v7673_v17  ;;  %v17895_v17 = vld [vmem:[#allocation42_spill] sm:$0xff] }
 0xcbe   : > { %v5017_v54 = vpop.permute.xlu1 %5016  ;;  %v5029_v33 = vpop.permute.xlu0 %5028 }
 0xcbf   : > { %9725 = vst [vmem:[%s12116_s18 + $0x1038] sm:$0xff] %v8701_v35  ;;  %v7672_v24 = vmul.f32 %v15378_v53, %v5017_v54  ;;  %9728 = vst [vmem:[%s12116_s18 + $0x1050] sm:$0xff] %v8704_v34  ;;  %v7675_v47 = vmul.f32 %v15382_v40, %v5029_v33  ;;  %v15586_v54 = vld [vmem:[#allocation3 + $0x90] sm:$0xff] }
 0xcc0   : > { %5260 = vbcast.lane.b32.xlu1 %v17894_v0, 280  ;;  %5272 = vbcast.lane.b32.xlu0 %v17894_v0, 304 }
 0xcc1   : > { %v8703_v2 = vadd.f32 %v15438_v29, %v7672_v24  ;;  %v8706_v59 = vadd.f32 %v15438_v29, %v7675_v47  ;;  %v15590_v47 = vld [vmem:[#allocation3 + $0xa8] sm:$0xff] }
 0xcc2   : > { %v5025_v25 = vpop.permute.xlu1 %5024  ;;  %v5037_v57 = vpop.permute.xlu0 %5036 }
 0xcc3   : > { %9727 = vst [vmem:[%s12116_s18 + $0x1048] sm:$0xff] %v8703_v2  ;;  %v7674_v12 = vmul.f32 %v15526_v32, %v5025_v25  ;;  %9730 = vst [vmem:[%s12116_s18 + $0x1060] sm:$0xff] %v8706_v59  ;;  %v7677_v22 = vmul.f32 %v15530_v60, %v5037_v57  ;;  %v15598_v57 = vld [vmem:[#allocation3 + $0xc0] sm:$0xff] }
 0xcc4   : > { %5268 = vbcast.lane.b32.xlu1 %v17894_v0, 296  ;;  %5280 = vbcast.lane.b32.xlu0 %v17894_v0, 320 }
 0xcc5   : > { %v8705_v23 = vadd.f32 %v15438_v29, %v7674_v12  ;;  %v8708_v7 = vadd.f32 %v15438_v29, %v7677_v22 }
 0xcc6   : > { %v5033_v19 = vpop.permute.xlu1 %5032  ;;  %v5048_v43 = vpop.permute.xlu0 %5047 }
 0xcc7   : > { %9729 = vst [vmem:[%s12116_s18 + $0x1058] sm:$0xff] %v8705_v23  ;;  %v7676_v39 = vmul.f32 %v15538_v50, %v5033_v19  ;;  %9732 = vst [vmem:[%s12116_s18 + $0x1070] sm:$0xff] %v8708_v7  ;;  %v7679_v4 = vmul.f32 %v15542_v13, %v5048_v43  ;;  %v15602_v7 = vld [vmem:[#allocation3 + $0x10] sm:$0xff] }
 0xcc8   : > { %5276 = vbcast.lane.b32.xlu1 %v17894_v0, 312  ;;  %5288 = vbcast.lane.b32.xlu0 %v17894_v0, 336 }
 0xcc9   : > { %v8707_v27 = vadd.f32 %v15438_v29, %v7676_v39  ;;  %v8710_v18 = vadd.f32 %v15438_v29, %v7679_v4  ;;  %v15610_v4 = vld [vmem:[#allocation3 + $0xd0] sm:$0xff] }
 0xcca   : > { %v5041_v10 = vpop.permute.xlu1 %5040  ;;  %v5056_v42 = vpop.permute.xlu0 %5055 }
 0xccb   : > { %9731 = vst [vmem:[%s12116_s18 + $0x1068] sm:$0xff] %v8707_v27  ;;  %v7678_v61 = vmul.f32 %v15550_v20, %v5041_v10  ;;  %9734 = vst [vmem:[%s12116_s18 + $0x1080] sm:$0xff] %v8710_v18  ;;  %v7681_v45 = vmul.f32 %v15554_v55, %v5056_v42  ;;  %v15614_v10 = vld [vmem:[#allocation3 + $0xa0] sm:$0xff] }
 0xccc   : > { %5284 = vbcast.lane.b32.xlu1 %v17894_v0, 328  ;;  %5296 = vbcast.lane.b32.xlu0 %v17894_v0, 352 }
 0xccd   : > { %v8709_v9 = vadd.f32 %v15438_v29, %v7678_v61  ;;  %v8712_v30 = vadd.f32 %v15438_v29, %v7681_v45 }
 0xcce   : > { %v5052_v41 = vpop.permute.xlu1 %5051  ;;  %v5064_v36 = vpop.permute.xlu0 %5063 }
 0xccf   : > { %9733 = vst [vmem:[%s12116_s18 + $0x1078] sm:$0xff] %v8709_v9  ;;  %v7680_v14 = vmul.f32 %v15562_v3, %v5052_v41  ;;  %9736 = vst [vmem:[%s12116_s18 + $0x1090] sm:$0xff] %v8712_v30  ;;  %v7683_v51 = vmul.f32 %v15566_v48, %v5064_v36  ;;  %v15622_v30 = vld [vmem:[#allocation3 + $0x28] sm:$0xff]  ;;  %v15626_v36 = vld [vmem:[#allocation3 + $0x20] sm:$0xff] }
 0xcd0   : > { %5292 = vbcast.lane.b32.xlu1 %v17894_v0, 344  ;;  %5304 = vbcast.lane.b32.xlu0 %v17894_v0, 368 }
 0xcd1   : > { %v8711_v63 = vadd.f32 %v15438_v29, %v7680_v14  ;;  %v8714_v37 = vadd.f32 %v15438_v29, %v7683_v51 }
 0xcd2   : > { %v5060_v44 = vpop.permute.xlu1 %5059  ;;  %v5072_v26 = vpop.permute.xlu0 %5071 }
 0xcd3   : > { %9735 = vst [vmem:[%s12116_s18 + $0x1088] sm:$0xff] %v8711_v63  ;;  %v7682_v5 = vmul.f32 %v15574_v8, %v5060_v44  ;;  %9738 = vst [vmem:[%s12116_s18 + $0x10a0] sm:$0xff] %v8714_v37  ;;  %v7685_v6 = vmul.f32 %v15578_v11, %v5072_v26 }
 0xcd4   : > { %5300 = vbcast.lane.b32.xlu1 %v17894_v0, 360  ;;  %5315 = vbcast.lane.b32.xlu0 %v17895_v17, 256 }
 0xcd5   : > { %v8713_v31 = vadd.f32 %v15438_v29, %v7682_v5  ;;  %v8716_v35 = vadd.f32 %v15438_v29, %v7685_v6  ;;  %v15634_v5 = vld [vmem:[#allocation3 + $0xf8] sm:$0xff] }
 0xcd6   : > { %v5068_v34 = vpop.permute.xlu1 %5067  ;;  %v5080_v33 = vpop.permute.xlu0 %5079 }
 0xcd7   : > { %9737 = vst [vmem:[%s12116_s18 + $0x1098] sm:$0xff] %v8713_v31  ;;  %v7684_v24 = vmul.f32 %v15586_v54, %v5068_v34  ;;  %9740 = vst [vmem:[%s12116_s18 + $0x10b0] sm:$0xff] %v8716_v35  ;;  %v7687_v2 = vmul.f32 %v15590_v47, %v5080_v33  ;;  %v15644_v33 = vld [vmem:[#allocation3 + $0x98] sm:$0xff] }
 0xcd8   : > { %5308 = vbcast.lane.b32.xlu1 %v17894_v0, 376  ;;  %5323 = vbcast.lane.b32.xlu0 %v17895_v17, 272 }
 0xcd9   : > { %v8715_v59 = vadd.f32 %v15438_v29, %v7684_v24  ;;  %v8718_v25 = vadd.f32 %v15438_v29, %v7687_v2 }
 0xcda   : > { %v5076_v12 = vpop.permute.xlu1 %5075  ;;  %v5088_v23 = vpop.permute.xlu0 %5087 }
 0xcdb   : > { %9739 = vst [vmem:[%s12116_s18 + $0x10a8] sm:$0xff] %v8715_v59  ;;  %v7686_v22 = vmul.f32 %v15598_v57, %v5076_v12  ;;  %9742 = vst [vmem:[%s12116_s18 + $0x10c0] sm:$0xff] %v8718_v25  ;;  %v7689_v0 = vmul.f32 %v15602_v7, %v5088_v23 }
 0xcdc   : > { %5319 = vbcast.lane.b32.xlu1 %v17895_v17, 264  ;;  %5331 = vbcast.lane.b32.xlu0 %v17895_v17, 288 }
 0xcdd   : > { %v8717_v19 = vadd.f32 %v15438_v29, %v7686_v22  ;;  %v8720_v39 = vadd.f32 %v15438_v29, %v7689_v0 }
 0xcde   : > { %v5084_v43 = vpop.permute.xlu1 %5083  ;;  %v5096_v18 = vpop.permute.xlu0 %5095 }
 0xcdf   : > { %9741 = vst [vmem:[%s12116_s18 + $0x10b8] sm:$0xff] %v8717_v19  ;;  %v7688_v27 = vmul.f32 %v15610_v4, %v5084_v43  ;;  %9744 = vst [vmem:[%s12116_s18 + $0x10d0] sm:$0xff] %v8720_v39  ;;  %v7691_v61 = vmul.f32 %v15614_v10, %v5096_v18 }
 0xce0   : > { %5327 = vbcast.lane.b32.xlu1 %v17895_v17, 280  ;;  %5339 = vbcast.lane.b32.xlu0 %v17895_v17, 304 }
 0xce1   : > { %v8719_v42 = vadd.f32 %v15438_v29, %v7688_v27  ;;  %v8722_v45 = vadd.f32 %v15438_v29, %v7691_v61 }
 0xce2   : > { %v5092_v9 = vpop.permute.xlu1 %5091  ;;  %v5104_v14 = vpop.permute.xlu0 %5103 }
 0xce3   : > { %9743 = vst [vmem:[%s12116_s18 + $0x10c8] sm:$0xff] %v8719_v42  ;;  %v7690_v41 = vmul.f32 %v15622_v30, %v5092_v9  ;;  %9746 = vst [vmem:[%s12116_s18 + $0x10e0] sm:$0xff] %v8722_v45  ;;  %v7693_v51 = vmul.f32 %v15626_v36, %v5104_v14 }
 0xce4   : > { %5335 = vbcast.lane.b32.xlu1 %v17895_v17, 296  ;;  %5347 = vbcast.lane.b32.xlu0 %v17895_v17, 320 }
 0xce5   : > { %v8721_v63 = vadd.f32 %v15438_v29, %v7690_v41  ;;  %v8724_v37 = vadd.f32 %v15438_v29, %v7693_v51  ;;  %v17896_v41 = vld [vmem:[#allocation43_spill] sm:$0xff] }
 0xce6   : > { %v5100_v44 = vpop.permute.xlu1 %5099  ;;  %v5115_v6 = vpop.permute.xlu0 %5114 }
 0xce7   : > { %9745 = vst [vmem:[%s12116_s18 + $0x10d8] sm:$0xff] %v8721_v63  ;;  %v7692_v26 = vmul.f32 %v15634_v5, %v5100_v44  ;;  %9748 = vst [vmem:[%s12116_s18 + $0x10f0] sm:$0xff] %v8724_v37  ;;  %v7695_v31 = vmul.f32 %v15470_v16, %v5115_v6 }
 0xce8   : > { %5343 = vbcast.lane.b32.xlu1 %v17895_v17, 312  ;;  %5355 = vbcast.lane.b32.xlu0 %v17895_v17, 336 }
 0xce9   : > { %v8723_v35 = vadd.f32 %v15438_v29, %v7692_v26  ;;  %v8726_v34 = vadd.f32 %v15438_v29, %v7695_v31 }
 0xcea   : > { %v5108_v24 = vpop.permute.xlu1 %5107  ;;  %v5123_v59 = vpop.permute.xlu0 %5122 }
 0xceb   : > { %9747 = vst [vmem:[%s12116_s18 + $0x10e8] sm:$0xff] %v8723_v35  ;;  %v7694_v2 = vmul.f32 %v15644_v33, %v5108_v24  ;;  %9750 = vst [vmem:[%s12116_s18 + $0x1100] sm:$0xff] %v8726_v34  ;;  %v7697_v25 = vmul.f32 %v15318_v49, %v5123_v59 }
 0xcec   : > { %5351 = vbcast.lane.b32.xlu1 %v17895_v17, 328  ;;  %5363 = vbcast.lane.b32.xlu0 %v17895_v17, 352 }
 0xced   : > { %v8725_v12 = vadd.f32 %v15438_v29, %v7694_v2  ;;  %v8728_v22 = vadd.f32 %v15438_v29, %v7697_v25 }
 0xcee   : > { %v5119_v23 = vpop.permute.xlu1 %5118  ;;  %v5131_v19 = vpop.permute.xlu0 %5130 }
 0xcef   : > { %9749 = vst [vmem:[%s12116_s18 + $0x10f8] sm:$0xff] %v8725_v12  ;;  %v7696_v0 = vmul.f32 %v15326_v62, %v5119_v23  ;;  %9752 = vst [vmem:[%s12116_s18 + $0x1110] sm:$0xff] %v8728_v22  ;;  %v7699_v39 = vmul.f32 %v15330_v1, %v5131_v19 }
 0xcf0   : > { %5359 = vbcast.lane.b32.xlu1 %v17895_v17, 344  ;;  %5371 = vbcast.lane.b32.xlu0 %v17895_v17, 368 }
 0xcf1   : > { %v8727_v43 = vadd.f32 %v15438_v29, %v7696_v0  ;;  %v8730_v27 = vadd.f32 %v15438_v29, %v7699_v39 }
 0xcf2   : > { %v5127_v18 = vpop.permute.xlu1 %5126  ;;  %v5139_v42 = vpop.permute.xlu0 %5138 }
 0xcf3   : > { %9751 = vst [vmem:[%s12116_s18 + $0x1108] sm:$0xff] %v8727_v43  ;;  %v7698_v61 = vmul.f32 %v15342_v56, %v5127_v18  ;;  %9754 = vst [vmem:[%s12116_s18 + $0x1120] sm:$0xff] %v8730_v27  ;;  %v7701_v45 = vmul.f32 %v15346_v15, %v5139_v42 }
 0xcf4   : > { %5367 = vbcast.lane.b32.xlu1 %v17895_v17, 360  ;;  %5382 = vbcast.lane.b32.xlu0 %v17896_v41, 256 }
 0xcf5   : > { %v8729_v9 = vadd.f32 %v15438_v29, %v7698_v61  ;;  %v8732_v14 = vadd.f32 %v15438_v29, %v7701_v45 }
 0xcf6   : > { %v5135_v51 = vpop.permute.xlu1 %5134  ;;  %v5147_v37 = vpop.permute.xlu0 %5146 }
 0xcf7   : > { %9753 = vst [vmem:[%s12116_s18 + $0x1118] sm:$0xff] %v8729_v9  ;;  %v7700_v63 = vmul.f32 %v15354_v52, %v5135_v51  ;;  %9756 = vst [vmem:[%s12116_s18 + $0x1130] sm:$0xff] %v8732_v14  ;;  %v7703_v44 = vmul.f32 %v15358_v58, %v5147_v37 }
 0xcf8   : > { %5375 = vbcast.lane.b32.xlu1 %v17895_v17, 376  ;;  %5390 = vbcast.lane.b32.xlu0 %v17896_v41, 272 }
 0xcf9   : > { %v8731_v26 = vadd.f32 %v15438_v29, %v7700_v63  ;;  %v8734_v6 = vadd.f32 %v15438_v29, %v7703_v44 }
 0xcfa   : > { %v5143_v31 = vpop.permute.xlu1 %5142  ;;  %v5155_v34 = vpop.permute.xlu0 %5154 }
 0xcfb   : > { %9755 = vst [vmem:[%s12116_s18 + $0x1128] sm:$0xff] %v8731_v26  ;;  %v7702_v35 = vmul.f32 %v15366_v21, %v5143_v31  ;;  %9758 = vst [vmem:[%s12116_s18 + $0x1140] sm:$0xff] %v8734_v6  ;;  %v7705_v24 = vmul.f32 %v15370_v46, %v5155_v34 }
 0xcfc   : > { %5386 = vbcast.lane.b32.xlu1 %v17896_v41, 264  ;;  %5398 = vbcast.lane.b32.xlu0 %v17896_v41, 288 }
 0xcfd   : > { %v8733_v17 = vadd.f32 %v15438_v29, %v7702_v35  ;;  %v8736_v2 = vadd.f32 %v15438_v29, %v7705_v24 }
 0xcfe   : > { %v5151_v59 = vpop.permute.xlu1 %5150  ;;  %v5163_v12 = vpop.permute.xlu0 %5162 }
 0xcff   : > { %9757 = vst [vmem:[%s12116_s18 + $0x1138] sm:$0xff] %v8733_v17  ;;  %v7704_v25 = vmul.f32 %v15378_v53, %v5151_v59  ;;  %9760 = vst [vmem:[%s12116_s18 + $0x1150] sm:$0xff] %v8736_v2  ;;  %v7707_v22 = vmul.f32 %v15382_v40, %v5163_v12 }
 0xd00   : > { %5394 = vbcast.lane.b32.xlu1 %v17896_v41, 280  ;;  %5406 = vbcast.lane.b32.xlu0 %v17896_v41, 304 }
 0xd01   : > { %v8735_v23 = vadd.f32 %v15438_v29, %v7704_v25  ;;  %v8738_v0 = vadd.f32 %v15438_v29, %v7707_v22 }
 0xd02   : > { %v5159_v19 = vpop.permute.xlu1 %5158  ;;  %v5171_v43 = vpop.permute.xlu0 %5170 }
 0xd03   : > { %9759 = vst [vmem:[%s12116_s18 + $0x1148] sm:$0xff] %v8735_v23  ;;  %v7706_v39 = vmul.f32 %v15526_v32, %v5159_v19  ;;  %9762 = vst [vmem:[%s12116_s18 + $0x1160] sm:$0xff] %v8738_v0  ;;  %v7709_v27 = vmul.f32 %v15530_v60, %v5171_v43 }
 0xd04   : > { %5402 = vbcast.lane.b32.xlu1 %v17896_v41, 296  ;;  %5414 = vbcast.lane.b32.xlu0 %v17896_v41, 320 }
 0xd05   : > { %v8737_v18 = vadd.f32 %v15438_v29, %v7706_v39  ;;  %v8740_v61 = vadd.f32 %v15438_v29, %v7709_v27  ;;  %v17897_v39 = vld [vmem:[#allocation44_spill] sm:$0xff] }
 0xd06   : > { %v5167_v42 = vpop.permute.xlu1 %5166  ;;  %v5182_v9 = vpop.permute.xlu0 %5181 }
 0xd07   : > { %9761 = vst [vmem:[%s12116_s18 + $0x1158] sm:$0xff] %v8737_v18  ;;  %v7708_v45 = vmul.f32 %v15538_v50, %v5167_v42  ;;  %9764 = vst [vmem:[%s12116_s18 + $0x1170] sm:$0xff] %v8740_v61  ;;  %v7711_v14 = vmul.f32 %v15542_v13, %v5182_v9 }
 0xd08   : > { %5410 = vbcast.lane.b32.xlu1 %v17896_v41, 312  ;;  %5422 = vbcast.lane.b32.xlu0 %v17896_v41, 336 }
 0xd09   : > { %v8739_v51 = vadd.f32 %v15438_v29, %v7708_v45  ;;  %v8742_v63 = vadd.f32 %v15438_v29, %v7711_v14 }
 0xd0a   : > { %v5175_v37 = vpop.permute.xlu1 %5174  ;;  %v5190_v26 = vpop.permute.xlu0 %5189 }
 0xd0b   : > { %9763 = vst [vmem:[%s12116_s18 + $0x1168] sm:$0xff] %v8739_v51  ;;  %v7710_v44 = vmul.f32 %v15550_v20, %v5175_v37  ;;  %9766 = vst [vmem:[%s12116_s18 + $0x1180] sm:$0xff] %v8742_v63  ;;  %v7713_v6 = vmul.f32 %v15554_v55, %v5190_v26 }
 0xd0c   : > { %5418 = vbcast.lane.b32.xlu1 %v17896_v41, 328  ;;  %5430 = vbcast.lane.b32.xlu0 %v17896_v41, 352 }
 0xd0d   : > { %v8741_v31 = vadd.f32 %v15438_v29, %v7710_v44  ;;  %v8744_v35 = vadd.f32 %v15438_v29, %v7713_v6 }
 0xd0e   : > { %v5186_v34 = vpop.permute.xlu1 %5185  ;;  %v5198_v17 = vpop.permute.xlu0 %5197 }
 0xd0f   : > { %9765 = vst [vmem:[%s12116_s18 + $0x1178] sm:$0xff] %v8741_v31  ;;  %v7712_v24 = vmul.f32 %v15562_v3, %v5186_v34  ;;  %9768 = vst [vmem:[%s12116_s18 + $0x1190] sm:$0xff] %v8744_v35  ;;  %v7715_v2 = vmul.f32 %v15566_v48, %v5198_v17 }
 0xd10   : > { %5426 = vbcast.lane.b32.xlu1 %v17896_v41, 344  ;;  %5438 = vbcast.lane.b32.xlu0 %v17896_v41, 368 }
 0xd11   : > { %v8743_v59 = vadd.f32 %v15438_v29, %v7712_v24  ;;  %v8746_v25 = vadd.f32 %v15438_v29, %v7715_v2 }
 0xd12   : > { %v5194_v12 = vpop.permute.xlu1 %5193  ;;  %v5206_v23 = vpop.permute.xlu0 %5205 }
 0xd13   : > { %9767 = vst [vmem:[%s12116_s18 + $0x1188] sm:$0xff] %v8743_v59  ;;  %v7714_v22 = vmul.f32 %v15574_v8, %v5194_v12  ;;  %9770 = vst [vmem:[%s12116_s18 + $0x11a0] sm:$0xff] %v8746_v25  ;;  %v7717_v0 = vmul.f32 %v15578_v11, %v5206_v23 }
 0xd14   : > { %5434 = vbcast.lane.b32.xlu1 %v17896_v41, 360  ;;  %5449 = vbcast.lane.b32.xlu0 %v17897_v39, 256 }
 0xd15   : > { %v8745_v19 = vadd.f32 %v15438_v29, %v7714_v22  ;;  %v8748_v43 = vadd.f32 %v15438_v29, %v7717_v0 }
 0xd16   : > { %v5202_v27 = vpop.permute.xlu1 %5201  ;;  %v5214_v61 = vpop.permute.xlu0 %5213 }
 0xd17   : > { %9769 = vst [vmem:[%s12116_s18 + $0x1198] sm:$0xff] %v8745_v19  ;;  %v7716_v18 = vmul.f32 %v15586_v54, %v5202_v27  ;;  %9772 = vst [vmem:[%s12116_s18 + $0x11b0] sm:$0xff] %v8748_v43  ;;  %v7719_v42 = vmul.f32 %v15590_v47, %v5214_v61 }
 0xd18   : > { %5442 = vbcast.lane.b32.xlu1 %v17896_v41, 376  ;;  %5457 = vbcast.lane.b32.xlu0 %v17897_v39, 272 }
 0xd19   : > { %v8747_v45 = vadd.f32 %v15438_v29, %v7716_v18  ;;  %v8750_v9 = vadd.f32 %v15438_v29, %v7719_v42 }
 0xd1a   : > { %v5210_v14 = vpop.permute.xlu1 %5209  ;;  %v5222_v63 = vpop.permute.xlu0 %5221 }
 0xd1b   : > { %9771 = vst [vmem:[%s12116_s18 + $0x11a8] sm:$0xff] %v8747_v45  ;;  %v7718_v51 = vmul.f32 %v15598_v57, %v5210_v14  ;;  %9774 = vst [vmem:[%s12116_s18 + $0x11c0] sm:$0xff] %v8750_v9  ;;  %v7721_v37 = vmul.f32 %v15602_v7, %v5222_v63 }
 0xd1c   : > { %5453 = vbcast.lane.b32.xlu1 %v17897_v39, 264  ;;  %5465 = vbcast.lane.b32.xlu0 %v17897_v39, 288 }
 0xd1d   : > { %v8749_v41 = vadd.f32 %v15438_v29, %v7718_v51  ;;  %v8752_v44 = vadd.f32 %v15438_v29, %v7721_v37 }
 0xd1e   : > { %v5218_v26 = vpop.permute.xlu1 %5217  ;;  %v5230_v31 = vpop.permute.xlu0 %5229 }
 0xd1f   : > { %9773 = vst [vmem:[%s12116_s18 + $0x11b8] sm:$0xff] %v8749_v41  ;;  %v7720_v6 = vmul.f32 %v15610_v4, %v5218_v26  ;;  %9776 = vst [vmem:[%s12116_s18 + $0x11d0] sm:$0xff] %v8752_v44  ;;  %v7723_v35 = vmul.f32 %v15614_v10, %v5230_v31 }
 0xd20   : > { %5461 = vbcast.lane.b32.xlu1 %v17897_v39, 280  ;;  %5473 = vbcast.lane.b32.xlu0 %v17897_v39, 304 }
 0xd21   : > { %v8751_v34 = vadd.f32 %v15438_v29, %v7720_v6  ;;  %v8754_v24 = vadd.f32 %v15438_v29, %v7723_v35 }
 0xd22   : > { %v5226_v17 = vpop.permute.xlu1 %5225  ;;  %v5238_v59 = vpop.permute.xlu0 %5237 }
 0xd23   : > { %9775 = vst [vmem:[%s12116_s18 + $0x11c8] sm:$0xff] %v8751_v34  ;;  %v7722_v2 = vmul.f32 %v15622_v30, %v5226_v17  ;;  %9778 = vst [vmem:[%s12116_s18 + $0x11e0] sm:$0xff] %v8754_v24  ;;  %v7725_v25 = vmul.f32 %v15626_v36, %v5238_v59  ;;  %v17898_v34 = vld [vmem:[#allocation45_spill] sm:$0xff] }
 0xd24   : > { %5469 = vbcast.lane.b32.xlu1 %v17897_v39, 296  ;;  %5481 = vbcast.lane.b32.xlu0 %v17897_v39, 320 }
 0xd25   : > { %v8753_v12 = vadd.f32 %v15438_v29, %v7722_v2  ;;  %v8756_v22 = vadd.f32 %v15438_v29, %v7725_v25 }
 0xd26   : > { %v5234_v23 = vpop.permute.xlu1 %5233  ;;  %v5249_v19 = vpop.permute.xlu0 %5248 }
 0xd27   : > { %9777 = vst [vmem:[%s12116_s18 + $0x11d8] sm:$0xff] %v8753_v12  ;;  %v7724_v0 = vmul.f32 %v15634_v5, %v5234_v23  ;;  %9780 = vst [vmem:[%s12116_s18 + $0x11f0] sm:$0xff] %v8756_v22  ;;  %v7727_v43 = vmul.f32 %v15470_v16, %v5249_v19 }
 0xd28   : > { %5477 = vbcast.lane.b32.xlu1 %v17897_v39, 312  ;;  %5489 = vbcast.lane.b32.xlu0 %v17897_v39, 336 }
 0xd29   : > { %v8755_v27 = vadd.f32 %v15438_v29, %v7724_v0  ;;  %v8758_v18 = vadd.f32 %v15438_v29, %v7727_v43 }
 0xd2a   : > { %v5242_v61 = vpop.permute.xlu1 %5241  ;;  %v5257_v45 = vpop.permute.xlu0 %5256 }
 0xd2b   : > { %9779 = vst [vmem:[%s12116_s18 + $0x11e8] sm:$0xff] %v8755_v27  ;;  %v7726_v42 = vmul.f32 %v15644_v33, %v5242_v61  ;;  %9782 = vst [vmem:[%s12116_s18 + $0x1200] sm:$0xff] %v8758_v18  ;;  %v7729_v9 = vmul.f32 %v15318_v49, %v5257_v45 }
 0xd2c   : > { %5485 = vbcast.lane.b32.xlu1 %v17897_v39, 328  ;;  %5497 = vbcast.lane.b32.xlu0 %v17897_v39, 352 }
 0xd2d   : > { %v8757_v14 = vadd.f32 %v15438_v29, %v7726_v42  ;;  %v8760_v51 = vadd.f32 %v15438_v29, %v7729_v9 }
 0xd2e   : > { %v5253_v63 = vpop.permute.xlu1 %5252  ;;  %v5265_v41 = vpop.permute.xlu0 %5264 }
 0xd2f   : > { %9781 = vst [vmem:[%s12116_s18 + $0x11f8] sm:$0xff] %v8757_v14  ;;  %v7728_v37 = vmul.f32 %v15326_v62, %v5253_v63  ;;  %9784 = vst [vmem:[%s12116_s18 + $0x1210] sm:$0xff] %v8760_v51  ;;  %v7731_v44 = vmul.f32 %v15330_v1, %v5265_v41 }
 0xd30   : > { %5493 = vbcast.lane.b32.xlu1 %v17897_v39, 344  ;;  %5505 = vbcast.lane.b32.xlu0 %v17897_v39, 368 }
 0xd31   : > { %v8759_v49 = vadd.f32 %v15438_v29, %v7728_v37  ;;  %v8762_v26 = vadd.f32 %v15438_v29, %v7731_v44 }
 0xd32   : > { %v5261_v6 = vpop.permute.xlu1 %5260  ;;  %v5273_v35 = vpop.permute.xlu0 %5272 }
 0xd33   : > { %9783 = vst [vmem:[%s12116_s18 + $0x1208] sm:$0xff] %v8759_v49  ;;  %v7730_v31 = vmul.f32 %v15342_v56, %v5261_v6  ;;  %9786 = vst [vmem:[%s12116_s18 + $0x1220] sm:$0xff] %v8762_v26  ;;  %v7733_v62 = vmul.f32 %v15346_v15, %v5273_v35 }
 0xd34   : > { %5501 = vbcast.lane.b32.xlu1 %v17897_v39, 360  ;;  %5516 = vbcast.lane.b32.xlu0 %v17898_v34, 256 }
 0xd35   : > { %v8761_v1 = vadd.f32 %v15438_v29, %v7730_v31  ;;  %v8764_v24 = vadd.f32 %v15438_v29, %v7733_v62 }
 0xd36   : > { %v5269_v17 = vpop.permute.xlu1 %5268  ;;  %v5281_v59 = vpop.permute.xlu0 %5280 }
 0xd37   : > { %9785 = vst [vmem:[%s12116_s18 + $0x1218] sm:$0xff] %v8761_v1  ;;  %v7732_v2 = vmul.f32 %v15354_v52, %v5269_v17  ;;  %9788 = vst [vmem:[%s12116_s18 + $0x1230] sm:$0xff] %v8764_v24  ;;  %v7735_v56 = vmul.f32 %v15358_v58, %v5281_v59 }
 0xd38   : > { %5509 = vbcast.lane.b32.xlu1 %v17897_v39, 376  ;;  %5524 = vbcast.lane.b32.xlu0 %v17898_v34, 272 }
 0xd39   : > { %v8763_v15 = vadd.f32 %v15438_v29, %v7732_v2  ;;  %v8766_v25 = vadd.f32 %v15438_v29, %v7735_v56 }
 0xd3a   : > { %v5277_v12 = vpop.permute.xlu1 %5276  ;;  %v5289_v23 = vpop.permute.xlu0 %5288 }
 0xd3b   : > { %9787 = vst [vmem:[%s12116_s18 + $0x1228] sm:$0xff] %v8763_v15  ;;  %v7734_v22 = vmul.f32 %v15366_v21, %v5277_v12  ;;  %9790 = vst [vmem:[%s12116_s18 + $0x1240] sm:$0xff] %v8766_v25  ;;  %v7737_v52 = vmul.f32 %v15370_v46, %v5289_v23  ;;  %v17899_v23 = vld [vmem:[#allocation46_spill] sm:$0xff] }
 0xd3c   : > { %5520 = vbcast.lane.b32.xlu1 %v17898_v34, 264  ;;  %5532 = vbcast.lane.b32.xlu0 %v17898_v34, 288 }
 0xd3d   : > { %v8765_v58 = vadd.f32 %v15438_v29, %v7734_v22  ;;  %v8768_v39 = vadd.f32 %v15438_v29, %v7737_v52 }
 0xd3e   : > { %v5285_v0 = vpop.permute.xlu1 %5284  ;;  %v5297_v43 = vpop.permute.xlu0 %5296 }
 0xd3f   : > { %9789 = vst [vmem:[%s12116_s18 + $0x1238] sm:$0xff] %v8765_v58  ;;  %v7736_v19 = vmul.f32 %v15378_v53, %v5285_v0  ;;  %9792 = vst [vmem:[%s12116_s18 + $0x1250] sm:$0xff] %v8768_v39  ;;  %v7739_v21 = vmul.f32 %v15382_v40, %v5297_v43 }
 0xd40   : > { %5528 = vbcast.lane.b32.xlu1 %v17898_v34, 280  ;;  %5540 = vbcast.lane.b32.xlu0 %v17898_v34, 304 }
 0xd41   : > { %v8767_v46 = vadd.f32 %v15438_v29, %v7736_v19  ;;  %v8770_v27 = vadd.f32 %v15438_v29, %v7739_v21 }
 0xd42   : > { %v5293_v18 = vpop.permute.xlu1 %5292  ;;  %v5305_v42 = vpop.permute.xlu0 %5304 }
 0xd43   : > { %9791 = vst [vmem:[%s12116_s18 + $0x1248] sm:$0xff] %v8767_v46  ;;  %v7738_v61 = vmul.f32 %v15526_v32, %v5293_v18  ;;  %9794 = vst [vmem:[%s12116_s18 + $0x1260] sm:$0xff] %v8770_v27  ;;  %v7741_v53 = vmul.f32 %v15530_v60, %v5305_v42 }
 0xd44   : > { %5536 = vbcast.lane.b32.xlu1 %v17898_v34, 296  ;;  %5548 = vbcast.lane.b32.xlu0 %v17898_v34, 320 }
 0xd45   : > { %v8769_v40 = vadd.f32 %v15438_v29, %v7738_v61  ;;  %v8772_v45 = vadd.f32 %v15438_v29, %v7741_v53 }
 0xd46   : > { %v5301_v9 = vpop.permute.xlu1 %5300  ;;  %v5316_v51 = vpop.permute.xlu0 %5315 }
 0xd47   : > { %9793 = vst [vmem:[%s12116_s18 + $0x1258] sm:$0xff] %v8769_v40  ;;  %v7740_v14 = vmul.f32 %v15538_v50, %v5301_v9  ;;  %9796 = vst [vmem:[%s12116_s18 + $0x1270] sm:$0xff] %v8772_v45  ;;  %v7743_v63 = vmul.f32 %v15542_v13, %v5316_v51 }
 0xd48   : > { %5544 = vbcast.lane.b32.xlu1 %v17898_v34, 312  ;;  %5556 = vbcast.lane.b32.xlu0 %v17898_v34, 336 }
 0xd49   : > { %v8771_v37 = vadd.f32 %v15438_v29, %v7740_v14  ;;  %v8774_v41 = vadd.f32 %v15438_v29, %v7743_v63 }
 0xd4a   : > { %v5309_v44 = vpop.permute.xlu1 %5308  ;;  %v5324_v26 = vpop.permute.xlu0 %5323 }
 0xd4b   : > { %9795 = vst [vmem:[%s12116_s18 + $0x1268] sm:$0xff] %v8771_v37  ;;  %v7742_v49 = vmul.f32 %v15550_v20, %v5309_v44  ;;  %9798 = vst [vmem:[%s12116_s18 + $0x1280] sm:$0xff] %v8774_v41  ;;  %v7745_v6 = vmul.f32 %v15554_v55, %v5324_v26  ;;  %v15892_v26 = vld [vmem:[#allocation19] ss:$0 sm:$0xff] }
 0xd4c   : > { %5552 = vbcast.lane.b32.xlu1 %v17898_v34, 328  ;;  %5564 = vbcast.lane.b32.xlu0 %v17898_v34, 352 }
 0xd4d   : > { %v8773_v31 = vadd.f32 %v15438_v29, %v7742_v49  ;;  %v8776_v35 = vadd.f32 %v15438_v29, %v7745_v6 }
 0xd4e   : > { %v5320_v62 = vpop.permute.xlu1 %5319  ;;  %v5332_v24 = vpop.permute.xlu0 %5331 }
 0xd4f   : > { %9797 = vst [vmem:[%s12116_s18 + $0x1278] sm:$0xff] %v8773_v31  ;;  %v7744_v1 = vmul.f32 %v15562_v3, %v5320_v62  ;;  %9800 = vst [vmem:[%s12116_s18 + $0x1290] sm:$0xff] %v8776_v35  ;;  %v7747_v17 = vmul.f32 %v15566_v48, %v5332_v24 }
 0xd50   : > { %5560 = vbcast.lane.b32.xlu1 %v17898_v34, 344  ;;  %5572 = vbcast.lane.b32.xlu0 %v17898_v34, 368 }
 0xd51   : > { %v8775_v2 = vadd.f32 %v15438_v29, %v7744_v1  ;;  %v8778_v59 = vadd.f32 %v15438_v29, %v7747_v17 }
 0xd52   : > { %v5328_v56 = vpop.permute.xlu1 %5327  ;;  %v5340_v25 = vpop.permute.xlu0 %5339 }
 0xd53   : > { %9799 = vst [vmem:[%s12116_s18 + $0x1288] sm:$0xff] %v8775_v2  ;;  %v7746_v15 = vmul.f32 %v15574_v8, %v5328_v56  ;;  %9802 = vst [vmem:[%s12116_s18 + $0x12a0] sm:$0xff] %v8778_v59  ;;  %v7749_v12 = vmul.f32 %v15578_v11, %v5340_v25  ;;  %v15906_v56 = vld [vmem:[#allocation3 + $0xd8] sm:$0xff] }
 0xd54   : > { %5568 = vbcast.lane.b32.xlu1 %v17898_v34, 360  ;;  %5583 = vbcast.lane.b32.xlu0 %v17899_v23, 256 }
 0xd55   : > { %v8777_v22 = vadd.f32 %v15438_v29, %v7746_v15  ;;  %v8780_v52 = vadd.f32 %v15438_v29, %v7749_v12 }
 0xd56   : > { %v5336_v58 = vpop.permute.xlu1 %5335  ;;  %v5348_v0 = vpop.permute.xlu0 %5347 }
 0xd57   : > { %9801 = vst [vmem:[%s12116_s18 + $0x1298] sm:$0xff] %v8777_v22  ;;  %v7748_v39 = vmul.f32 %v15586_v54, %v5336_v58  ;;  %9804 = vst [vmem:[%s12116_s18 + $0x12b0] sm:$0xff] %v8780_v52  ;;  %v7751_v19 = vmul.f32 %v15590_v47, %v5348_v0  ;;  %v15914_v22 = vld [vmem:[#allocation3] sm:$0xff] }
 0xd58   : > { %5576 = vbcast.lane.b32.xlu1 %v17898_v34, 376  ;;  %5591 = vbcast.lane.b32.xlu0 %v17899_v23, 272 }
 0xd59   : > { %v8779_v43 = vadd.f32 %v15438_v29, %v7748_v39  ;;  %v8782_v21 = vadd.f32 %v15438_v29, %v7751_v19  ;;  %v15918_v39 = vld [vmem:[#allocation3 + $0x50] sm:$0xff] }
 0xd5a   : > { %v5344_v46 = vpop.permute.xlu1 %5343  ;;  %v5356_v18 = vpop.permute.xlu0 %5355 }
 0xd5b   : > { %9803 = vst [vmem:[%s12116_s18 + $0x12a8] sm:$0xff] %v8779_v43  ;;  %v7750_v27 = vmul.f32 %v15598_v57, %v5344_v46  ;;  %9806 = vst [vmem:[%s12116_s18 + $0x12c0] sm:$0xff] %v8782_v21  ;;  %v7753_v61 = vmul.f32 %v15602_v7, %v5356_v18  ;;  %v15926_v46 = vld [vmem:[#allocation3 + $0x18] sm:$0xff] }
 0xd5c   : > { %5587 = vbcast.lane.b32.xlu1 %v17899_v23, 264  ;;  %5599 = vbcast.lane.b32.xlu0 %v17899_v23, 288 }
 0xd5d   : > { %v8781_v34 = vadd.f32 %v15438_v29, %v7750_v27  ;;  %v8784_v42 = vadd.f32 %v15438_v29, %v7753_v61  ;;  %v15930_v61 = vld [vmem:[#allocation3 + $0x30] sm:$0xff] }
 0xd5e   : > { %v5352_v53 = vpop.permute.xlu1 %5351  ;;  %v5364_v45 = vpop.permute.xlu0 %5363 }
 0xd5f   : > { %9805 = vst [vmem:[%s12116_s18 + $0x12b8] sm:$0xff] %v8781_v34  ;;  %v7752_v40 = vmul.f32 %v15610_v4, %v5352_v53  ;;  %9808 = vst [vmem:[%s12116_s18 + $0x12d0] sm:$0xff] %v8784_v42  ;;  %v7755_v9 = vmul.f32 %v15614_v10, %v5364_v45  ;;  %v17900_v53 = vld [vmem:[#allocation47_spill] sm:$0xff] }
 0xd60   : > { %5595 = vbcast.lane.b32.xlu1 %v17899_v23, 280  ;;  %5607 = vbcast.lane.b32.xlu0 %v17899_v23, 304 }
 0xd61   : > { %v8783_v14 = vadd.f32 %v15438_v29, %v7752_v40  ;;  %v8786_v51 = vadd.f32 %v15438_v29, %v7755_v9  ;;  %v15938_v9 = vld [vmem:[#allocation3 + $0x68] sm:$0xff] }
 0xd62   : > { %v5360_v63 = vpop.permute.xlu1 %5359  ;;  %v5372_v41 = vpop.permute.xlu0 %5371 }
 0xd63   : > { %9807 = vst [vmem:[%s12116_s18 + $0x12c8] sm:$0xff] %v8783_v14  ;;  %v7754_v37 = vmul.f32 %v15622_v30, %v5360_v63  ;;  %9810 = vst [vmem:[%s12116_s18 + $0x12e0] sm:$0xff] %v8786_v51  ;;  %v7757_v44 = vmul.f32 %v15626_v36, %v5372_v41  ;;  %v15942_v63 = vld [vmem:[#allocation3 + $0x80] sm:$0xff] }
 0xd64   : > { %5603 = vbcast.lane.b32.xlu1 %v17899_v23, 296  ;;  %5615 = vbcast.lane.b32.xlu0 %v17899_v23, 320 }
 0xd65   : > { %v8785_v49 = vadd.f32 %v15438_v29, %v7754_v37  ;;  %v8788_v6 = vadd.f32 %v15892_v26, %v7757_v44 }
 0xd66   : > { %v5368_v31 = vpop.permute.xlu1 %5367  ;;  %v5383_v62 = vpop.permute.xlu0 %5382 }
 0xd67   : > { %9809 = vst [vmem:[%s12116_s18 + $0x12d8] sm:$0xff] %v8785_v49  ;;  %v7756_v35 = vmul.f32 %v15634_v5, %v5368_v31  ;;  %9812 = vst [vmem:[%s12116_s18 + $0x12f0] sm:$0xff] %v8788_v6  ;;  %v7759_v1 = vmul.f32 %v15470_v16, %v5383_v62  ;;  %v15950_v6 = vld [vmem:[#allocation3 + $0x48] sm:$0xff] }
 0xd68   : > { %5611 = vbcast.lane.b32.xlu1 %v17899_v23, 312  ;;  %5623 = vbcast.lane.b32.xlu0 %v17899_v23, 336  ;;  %v15954_v62 = vld [vmem:[#allocation3 + $0xe8] sm:$0xff] }
 0xd69   : > { %v8787_v29 = vadd.f32 %v15892_v26, %v7756_v35  ;;  %v8790_v24 = vadd.f32 %v15892_v26, %v7759_v1 }
 0xd6a   : > { %v5376_v17 = vpop.permute.xlu1 %5375  ;;  %v5391_v59 = vpop.permute.xlu0 %5390 }
 0xd6b   : > { %9811 = vst [vmem:[%s12116_s18 + $0x12e8] sm:$0xff] %v8787_v29  ;;  %v7758_v2 = vmul.f32 %v15644_v33, %v5376_v17  ;;  %9814 = vst [vmem:[%s12116_s18 + $0x1300] sm:$0xff] %v8790_v24  ;;  %v7761_v16 = vmul.f32 %v15906_v56, %v5391_v59  ;;  %v15962_v17 = vld [vmem:[#allocation3 + $0x88] sm:$0xff] }
 0xd6c   : > { %5619 = vbcast.lane.b32.xlu1 %v17899_v23, 328  ;;  %5631 = vbcast.lane.b32.xlu0 %v17899_v23, 352 }
 0xd6d   : > { %v8789_v15 = vadd.f32 %v15892_v26, %v7758_v2  ;;  %v8792_v25 = vadd.f32 %v15892_v26, %v7761_v16  ;;  %v15966_v16 = vld [vmem:[#allocation3 + $0x60] sm:$0xff] }
 0xd6e   : > { %v5387_v12 = vpop.permute.xlu1 %5386  ;;  %v5399_v58 = vpop.permute.xlu0 %5398 }
 0xd6f   : > { %9813 = vst [vmem:[%s12116_s18 + $0x12f8] sm:$0xff] %v8789_v15  ;;  %v7760_v52 = vmul.f32 %v15914_v22, %v5387_v12  ;;  %9816 = vst [vmem:[%s12116_s18 + $0x1310] sm:$0xff] %v8792_v25  ;;  %v7763_v0 = vmul.f32 %v15918_v39, %v5399_v58 }
 0xd70   : > { %5627 = vbcast.lane.b32.xlu1 %v17899_v23, 344  ;;  %5639 = vbcast.lane.b32.xlu0 %v17899_v23, 368 }
 0xd71   : > { %v8791_v19 = vadd.f32 %v15892_v26, %v7760_v52  ;;  %v8794_v43 = vadd.f32 %v15892_v26, %v7763_v0 }
 0xd72   : > { %v5395_v21 = vpop.permute.xlu1 %5394  ;;  %v5407_v18 = vpop.permute.xlu0 %5406 }
 0xd73   : > { %9815 = vst [vmem:[%s12116_s18 + $0x1308] sm:$0xff] %v8791_v19  ;;  %v7762_v27 = vmul.f32 %v15926_v46, %v5395_v21  ;;  %9818 = vst [vmem:[%s12116_s18 + $0x1320] sm:$0xff] %v8794_v43  ;;  %v7765_v34 = vmul.f32 %v15930_v61, %v5407_v18 }
 0xd74   : > { %5635 = vbcast.lane.b32.xlu1 %v17899_v23, 360  ;;  %5650 = vbcast.lane.b32.xlu0 %v17900_v53, 256 }
 0xd75   : > { %v8793_v42 = vadd.f32 %v15892_v26, %v7762_v27  ;;  %v8796_v40 = vadd.f32 %v15892_v26, %v7765_v34 }
 0xd76   : > { %v5403_v45 = vpop.permute.xlu1 %5402  ;;  %v5415_v51 = vpop.permute.xlu0 %5414 }
 0xd77   : > { %9817 = vst [vmem:[%s12116_s18 + $0x1318] sm:$0xff] %v8793_v42  ;;  %v7764_v14 = vmul.f32 %v15938_v9, %v5403_v45  ;;  %9820 = vst [vmem:[%s12116_s18 + $0x1330] sm:$0xff] %v8796_v40  ;;  %v7767_v37 = vmul.f32 %v15942_v63, %v5415_v51 }
 0xd78   : > { %5643 = vbcast.lane.b32.xlu1 %v17899_v23, 376  ;;  %5658 = vbcast.lane.b32.xlu0 %v17900_v53, 272 }
 0xd79   : > { %v8795_v41 = vadd.f32 %v15892_v26, %v7764_v14  ;;  %v8798_v44 = vadd.f32 %v15892_v26, %v7767_v37 }
 0xd7a   : > { %v5411_v49 = vpop.permute.xlu1 %5410  ;;  %v5423_v35 = vpop.permute.xlu0 %5422 }
 0xd7b   : > { %9819 = vst [vmem:[%s12116_s18 + $0x1328] sm:$0xff] %v8795_v41  ;;  %v7766_v31 = vmul.f32 %v15950_v6, %v5411_v49  ;;  %9822 = vst [vmem:[%s12116_s18 + $0x1340] sm:$0xff] %v8798_v44  ;;  %v7769_v23 = vmul.f32 %v15954_v62, %v5423_v35 }
 0xd7c   : > { %5654 = vbcast.lane.b32.xlu1 %v17900_v53, 264  ;;  %5666 = vbcast.lane.b32.xlu0 %v17900_v53, 288 }
 0xd7d   : > { %v8797_v1 = vadd.f32 %v15892_v26, %v7766_v31  ;;  %v8800_v29 = vadd.f32 %v15892_v26, %v7769_v23 }
 0xd7e   : > { %v5419_v24 = vpop.permute.xlu1 %5418  ;;  %v5431_v59 = vpop.permute.xlu0 %5430 }
 0xd7f   : > { %9821 = vst [vmem:[%s12116_s18 + $0x1338] sm:$0xff] %v8797_v1  ;;  %v7768_v2 = vmul.f32 %v15962_v17, %v5419_v24  ;;  %9824 = vst [vmem:[%s12116_s18 + $0x1350] sm:$0xff] %v8800_v29  ;;  %v7771_v15 = vmul.f32 %v15966_v16, %v5431_v59  ;;  %v17901_v1 = vld [vmem:[#allocation48_spill] sm:$0xff] }
 0xd80   : > { %5662 = vbcast.lane.b32.xlu1 %v17900_v53, 280  ;;  %5674 = vbcast.lane.b32.xlu0 %v17900_v53, 304 }
 0xd81   : > { %v8799_v25 = vadd.f32 %v15892_v26, %v7768_v2  ;;  %v8802_v12 = vadd.f32 %v15892_v26, %v7771_v15 }
 0xd82   : > { %v5427_v52 = vpop.permute.xlu1 %5426  ;;  %v5439_v0 = vpop.permute.xlu0 %5438 }
 0xd83   : > { %9823 = vst [vmem:[%s12116_s18 + $0x1348] sm:$0xff] %v8799_v25  ;;  %v7770_v58 = vmul.f32 %v15526_v32, %v5427_v52  ;;  %9826 = vst [vmem:[%s12116_s18 + $0x1360] sm:$0xff] %v8802_v12  ;;  %v7773_v19 = vmul.f32 %v15530_v60, %v5439_v0 }
 0xd84   : > { %5670 = vbcast.lane.b32.xlu1 %v17900_v53, 296  ;;  %5682 = vbcast.lane.b32.xlu0 %v17900_v53, 320 }
 0xd85   : > { %v8801_v43 = vadd.f32 %v15892_v26, %v7770_v58  ;;  %v8804_v21 = vadd.f32 %v15892_v26, %v7773_v19 }
 0xd86   : > { %v5435_v27 = vpop.permute.xlu1 %5434  ;;  %v5450_v34 = vpop.permute.xlu0 %5449 }
 0xd87   : > { %9825 = vst [vmem:[%s12116_s18 + $0x1358] sm:$0xff] %v8801_v43  ;;  %v7772_v18 = vmul.f32 %v15538_v50, %v5435_v27  ;;  %9828 = vst [vmem:[%s12116_s18 + $0x1370] sm:$0xff] %v8804_v21  ;;  %v7775_v32 = vmul.f32 %v15542_v13, %v5450_v34 }
 0xd88   : > { %5678 = vbcast.lane.b32.xlu1 %v17900_v53, 312  ;;  %5690 = vbcast.lane.b32.xlu0 %v17900_v53, 336 }
 0xd89   : > { %v8803_v60 = vadd.f32 %v15892_v26, %v7772_v18  ;;  %v8806_v42 = vadd.f32 %v15892_v26, %v7775_v32 }
 0xd8a   : > { %v5443_v40 = vpop.permute.xlu1 %5442  ;;  %v5458_v14 = vpop.permute.xlu0 %5457 }
 0xd8b   : > { %9827 = vst [vmem:[%s12116_s18 + $0x1368] sm:$0xff] %v8803_v60  ;;  %v7774_v45 = vmul.f32 %v15550_v20, %v5443_v40  ;;  %9830 = vst [vmem:[%s12116_s18 + $0x1380] sm:$0xff] %v8806_v42  ;;  %v7777_v50 = vmul.f32 %v15554_v55, %v5458_v14 }
 0xd8c   : > { %5686 = vbcast.lane.b32.xlu1 %v17900_v53, 328  ;;  %5698 = vbcast.lane.b32.xlu0 %v17900_v53, 352 }
 0xd8d   : > { %v8805_v13 = vadd.f32 %v15892_v26, %v7774_v45  ;;  %v8808_v51 = vadd.f32 %v15892_v26, %v7777_v50 }
 0xd8e   : > { %v5454_v37 = vpop.permute.xlu1 %5453  ;;  %v5466_v44 = vpop.permute.xlu0 %5465 }
 0xd8f   : > { %9829 = vst [vmem:[%s12116_s18 + $0x1378] sm:$0xff] %v8805_v13  ;;  %v7776_v41 = vmul.f32 %v15562_v3, %v5454_v37  ;;  %9832 = vst [vmem:[%s12116_s18 + $0x1390] sm:$0xff] %v8808_v51  ;;  %v7779_v20 = vmul.f32 %v15566_v48, %v5466_v44 }
 0xd90   : > { %5694 = vbcast.lane.b32.xlu1 %v17900_v53, 344  ;;  %5706 = vbcast.lane.b32.xlu0 %v17900_v53, 368 }
 0xd91   : > { %v8807_v55 = vadd.f32 %v15892_v26, %v7776_v41  ;;  %v8810_v49 = vadd.f32 %v15892_v26, %v7779_v20 }
 0xd92   : > { %v5462_v31 = vpop.permute.xlu1 %5461  ;;  %v5474_v23 = vpop.permute.xlu0 %5473 }
 0xd93   : > { %9831 = vst [vmem:[%s12116_s18 + $0x1388] sm:$0xff] %v8807_v55  ;;  %v7778_v35 = vmul.f32 %v15574_v8, %v5462_v31  ;;  %9834 = vst [vmem:[%s12116_s18 + $0x13a0] sm:$0xff] %v8810_v49  ;;  %v7781_v3 = vmul.f32 %v15578_v11, %v5474_v23 }
 0xd94   : > { %5702 = vbcast.lane.b32.xlu1 %v17900_v53, 360  ;;  %5717 = vbcast.lane.b32.xlu0 %v17901_v1, 256 }
 0xd95   : > { %v8809_v48 = vadd.f32 %v15892_v26, %v7778_v35  ;;  %v8812_v29 = vadd.f32 %v15892_v26, %v7781_v3 }
 0xd96   : > { %v5470_v24 = vpop.permute.xlu1 %5469  ;;  %v5482_v59 = vpop.permute.xlu0 %5481 }
 0xd97   : > { %9833 = vst [vmem:[%s12116_s18 + $0x1398] sm:$0xff] %v8809_v48  ;;  %v7780_v2 = vmul.f32 %v15586_v54, %v5470_v24  ;;  %9836 = vst [vmem:[%s12116_s18 + $0x13b0] sm:$0xff] %v8812_v29  ;;  %v7783_v8 = vmul.f32 %v15590_v47, %v5482_v59  ;;  %v17902_v29 = vld [vmem:[#allocation49_spill] sm:$0xff] }
 0xd98   : > { %5710 = vbcast.lane.b32.xlu1 %v17900_v53, 376  ;;  %5725 = vbcast.lane.b32.xlu0 %v17901_v1, 272 }
 0xd99   : > { %v8811_v11 = vadd.f32 %v15892_v26, %v7780_v2  ;;  %v8814_v15 = vadd.f32 %v15892_v26, %v7783_v8 }
 0xd9a   : > { %v5478_v25 = vpop.permute.xlu1 %5477  ;;  %v5490_v52 = vpop.permute.xlu0 %5489 }
 0xd9b   : > { %9835 = vst [vmem:[%s12116_s18 + $0x13a8] sm:$0xff] %v8811_v11  ;;  %v7782_v12 = vmul.f32 %v15598_v57, %v5478_v25  ;;  %9838 = vst [vmem:[%s12116_s18 + $0x13c0] sm:$0xff] %v8814_v15  ;;  %v7785_v54 = vmul.f32 %v15602_v7, %v5490_v52 }
 0xd9c   : > { %5721 = vbcast.lane.b32.xlu1 %v17901_v1, 264  ;;  %5733 = vbcast.lane.b32.xlu0 %v17901_v1, 288 }
 0xd9d   : > { %v8813_v47 = vadd.f32 %v15892_v26, %v7782_v12  ;;  %v8816_v53 = vadd.f32 %v15892_v26, %v7785_v54 }
 0xd9e   : > { %v5486_v58 = vpop.permute.xlu1 %5485  ;;  %v5498_v19 = vpop.permute.xlu0 %5497 }
 0xd9f   : > { %9837 = vst [vmem:[%s12116_s18 + $0x13b8] sm:$0xff] %v8813_v47  ;;  %v7784_v0 = vmul.f32 %v15610_v4, %v5486_v58  ;;  %9840 = vst [vmem:[%s12116_s18 + $0x13d0] sm:$0xff] %v8816_v53  ;;  %v7787_v57 = vmul.f32 %v15614_v10, %v5498_v19 }
 0xda0   : > { %5729 = vbcast.lane.b32.xlu1 %v17901_v1, 280  ;;  %5741 = vbcast.lane.b32.xlu0 %v17901_v1, 304 }
 0xda1   : > { %v8815_v7 = vadd.f32 %v15892_v26, %v7784_v0  ;;  %v8818_v43 = vadd.f32 %v15892_v26, %v7787_v57 }
 0xda2   : > { %v5494_v21 = vpop.permute.xlu1 %5493  ;;  %v5506_v18 = vpop.permute.xlu0 %5505 }
 0xda3   : > { %9839 = vst [vmem:[%s12116_s18 + $0x13c8] sm:$0xff] %v8815_v7  ;;  %v7786_v27 = vmul.f32 %v15622_v30, %v5494_v21  ;;  %9842 = vst [vmem:[%s12116_s18 + $0x13e0] sm:$0xff] %v8818_v43  ;;  %v7789_v4 = vmul.f32 %v15626_v36, %v5506_v18  ;;  %v16048_v30 = vld [vmem:[#allocation3 + $0xb0] sm:$0xff] }
 0xda4   : > { %5737 = vbcast.lane.b32.xlu1 %v17901_v1, 296  ;;  %5749 = vbcast.lane.b32.xlu0 %v17901_v1, 320 }
 0xda5   : > { %v8817_v10 = vadd.f32 %v15892_v26, %v7786_v27  ;;  %v8820_v34 = vadd.f32 %v15892_v26, %v7789_v4  ;;  %v16104_v27 = vld [vmem:[#allocation3 + $0xb8] sm:$0xff] }
 0xda6   : > { %v5502_v32 = vpop.permute.xlu1 %5501  ;;  %v5517_v42 = vpop.permute.xlu0 %5516 }
 0xda7   : > { %9841 = vst [vmem:[%s12116_s18 + $0x13d8] sm:$0xff] %v8817_v10  ;;  %v7788_v60 = vmul.f32 %v15634_v5, %v5502_v32  ;;  %9844 = vst [vmem:[%s12116_s18 + $0x13f0] sm:$0xff] %v8820_v34  ;;  %v7791_v36 = vmul.f32 %v16048_v30, %v5517_v42  ;;  %v16108_v10 = vld [vmem:[#allocation3 + $0x8] sm:$0xff] }
 0xda8   : > { %5745 = vbcast.lane.b32.xlu1 %v17901_v1, 312  ;;  %5757 = vbcast.lane.b32.xlu0 %v17901_v1, 336 }
 0xda9   : > { %v8819_v40 = vadd.f32 %v15892_v26, %v7788_v60  ;;  %v8822_v45 = vadd.f32 %v15892_v26, %v7791_v36  ;;  %v16116_v36 = vld [vmem:[#allocation3 + $0xf0] sm:$0xff] }
 0xdaa   : > { %v5510_v14 = vpop.permute.xlu1 %5509  ;;  %v5525_v50 = vpop.permute.xlu0 %5524 }
 0xdab   : > { %9843 = vst [vmem:[%s12116_s18 + $0x13e8] sm:$0xff] %v8819_v40  ;;  %v7790_v5 = vmul.f32 %v15644_v33, %v5510_v14  ;;  %9846 = vst [vmem:[%s12116_s18 + $0x1400] sm:$0xff] %v8822_v45  ;;  %v7793_v13 = vmul.f32 %v15906_v56, %v5525_v50  ;;  %v16120_v14 = vld [vmem:[#allocation3 + $0x38] sm:$0xff] }
 0xdac   : > { %5753 = vbcast.lane.b32.xlu1 %v17901_v1, 328  ;;  %5765 = vbcast.lane.b32.xlu0 %v17901_v1, 352 }
 0xdad   : > { %v8821_v51 = vadd.f32 %v15892_v26, %v7790_v5  ;;  %v8824_v37 = vadd.f32 %v15892_v26, %v7793_v13 }
 0xdae   : > { %v5521_v41 = vpop.permute.xlu1 %5520  ;;  %v5533_v20 = vpop.permute.xlu0 %5532 }
 0xdaf   : > { %9845 = vst [vmem:[%s12116_s18 + $0x13f8] sm:$0xff] %v8821_v51  ;;  %v7792_v44 = vmul.f32 %v15914_v22, %v5521_v41  ;;  %9848 = vst [vmem:[%s12116_s18 + $0x1410] sm:$0xff] %v8824_v37  ;;  %v7795_v33 = vmul.f32 %v15918_v39, %v5533_v20  ;;  %v16128_v37 = vld [vmem:[#allocation3 + $0x78] sm:$0xff]  ;;  %v16132_v20 = vld [vmem:[#allocation3 + $0x40] sm:$0xff] }
 0xdb0   : > { %5761 = vbcast.lane.b32.xlu1 %v17901_v1, 344  ;;  %5773 = vbcast.lane.b32.xlu0 %v17901_v1, 368 }
 0xdb1   : > { %v8823_v55 = vadd.f32 %v15892_v26, %v7792_v44  ;;  %v8826_v49 = vadd.f32 %v15892_v26, %v7795_v33 }
 0xdb2   : > { %v5529_v31 = vpop.permute.xlu1 %5528  ;;  %v5541_v23 = vpop.permute.xlu0 %5540 }
 0xdb3   : > { %9847 = vst [vmem:[%s12116_s18 + $0x1408] sm:$0xff] %v8823_v55  ;;  %v7794_v35 = vmul.f32 %v15926_v46, %v5529_v31  ;;  %9850 = vst [vmem:[%s12116_s18 + $0x1420] sm:$0xff] %v8826_v49  ;;  %v7797_v3 = vmul.f32 %v15930_v61, %v5541_v23 }
 0xdb4   : > { %5769 = vbcast.lane.b32.xlu1 %v17901_v1, 360  ;;  %5784 = vbcast.lane.b32.xlu0 %v17902_v29, 256 }
 0xdb5   : > { %v8825_v48 = vadd.f32 %v15892_v26, %v7794_v35  ;;  %v8828_v24 = vadd.f32 %v15892_v26, %v7797_v3  ;;  %v16140_v35 = vld [vmem:[#allocation3 + $0x58] sm:$0xff] }
 0xdb6   : > { %v5537_v2 = vpop.permute.xlu1 %5536  ;;  %v5549_v8 = vpop.permute.xlu0 %5548 }
 0xdb7   : > { %9849 = vst [vmem:[%s12116_s18 + $0x1418] sm:$0xff] %v8825_v48  ;;  %v7796_v59 = vmul.f32 %v15938_v9, %v5537_v2  ;;  %9852 = vst [vmem:[%s12116_s18 + $0x1430] sm:$0xff] %v8828_v24  ;;  %v7799_v11 = vmul.f32 %v15942_v63, %v5549_v8  ;;  %v16144_v48 = vld [vmem:[#allocation3 + $0xe0] sm:$0xff] }
 0xdb8   : > { %5777 = vbcast.lane.b32.xlu1 %v17901_v1, 376  ;;  %5792 = vbcast.lane.b32.xlu0 %v17902_v29, 272 }
 0xdb9   : > { %v8827_v15 = vadd.f32 %v15892_v26, %v7796_v59  ;;  %v8830_v25 = vadd.f32 %v15892_v26, %v7799_v11  ;;  %v16152_v11 = vld [vmem:[#allocation3 + $0xc8] sm:$0xff] }
 0xdba   : > { %v5545_v12 = vpop.permute.xlu1 %5544  ;;  %v5557_v54 = vpop.permute.xlu0 %5556 }
 0xdbb   : > { %9851 = vst [vmem:[%s12116_s18 + $0x1428] sm:$0xff] %v8827_v15  ;;  %v7798_v52 = vmul.f32 %v15950_v6, %v5545_v12  ;;  %9854 = vst [vmem:[%s12116_s18 + $0x1440] sm:$0xff] %v8830_v25  ;;  %v7801_v47 = vmul.f32 %v15954_v62, %v5557_v54  ;;  %v16156_v12 = vld [vmem:[#allocation3 + $0x70] sm:$0xff] }
 0xdbc   : > { %5788 = vbcast.lane.b32.xlu1 %v17902_v29, 264  ;;  %5800 = vbcast.lane.b32.xlu0 %v17902_v29, 288 }
 0xdbd   : > { %v8829_v1 = vadd.f32 %v15892_v26, %v7798_v52  ;;  %v8832_v53 = vadd.f32 %v15892_v26, %v7801_v47  ;;  %v17903_v47 = vld [vmem:[#allocation50_spill] sm:$0xff] }
 0xdbe   : > { %v5553_v58 = vpop.permute.xlu1 %5552  ;;  %v5565_v19 = vpop.permute.xlu0 %5564 }
 0xdbf   : > { %9853 = vst [vmem:[%s12116_s18 + $0x1438] sm:$0xff] %v8829_v1  ;;  %v7800_v0 = vmul.f32 %v15962_v17, %v5553_v58  ;;  %9856 = vst [vmem:[%s12116_s18 + $0x1450] sm:$0xff] %v8832_v53  ;;  %v7803_v57 = vmul.f32 %v15966_v16, %v5565_v19  ;;  %v16164_v58 = vld [vmem:[#allocation3 + $0x90] sm:$0xff] }
 0xdc0   : > { %5796 = vbcast.lane.b32.xlu1 %v17902_v29, 280  ;;  %5808 = vbcast.lane.b32.xlu0 %v17902_v29, 304 }
 0xdc1   : > { %v8831_v7 = vadd.f32 %v15892_v26, %v7800_v0  ;;  %v8834_v43 = vadd.f32 %v15892_v26, %v7803_v57  ;;  %v16168_v57 = vld [vmem:[#allocation3 + $0xa8] sm:$0xff] }
 0xdc2   : > { %v5561_v21 = vpop.permute.xlu1 %5560  ;;  %v5573_v4 = vpop.permute.xlu0 %5572 }
 0xdc3   : > { %9855 = vst [vmem:[%s12116_s18 + $0x1448] sm:$0xff] %v8831_v7  ;;  %v7802_v18 = vmul.f32 %v16104_v27, %v5561_v21  ;;  %9858 = vst [vmem:[%s12116_s18 + $0x1460] sm:$0xff] %v8834_v43  ;;  %v7805_v34 = vmul.f32 %v16108_v10, %v5573_v4  ;;  %v16176_v4 = vld [vmem:[#allocation3 + $0xc0] sm:$0xff] }
 0xdc4   : > { %5804 = vbcast.lane.b32.xlu1 %v17902_v29, 296  ;;  %5816 = vbcast.lane.b32.xlu0 %v17902_v29, 320 }
 0xdc5   : > { %v8833_v32 = vadd.f32 %v15892_v26, %v7802_v18  ;;  %v8836_v60 = vadd.f32 %v15892_v26, %v7805_v34 }
 0xdc6   : > { %v5569_v42 = vpop.permute.xlu1 %5568  ;;  %v5584_v45 = vpop.permute.xlu0 %5583 }
 0xdc7   : > { %9857 = vst [vmem:[%s12116_s18 + $0x1458] sm:$0xff] %v8833_v32  ;;  %v7804_v40 = vmul.f32 %v16116_v36, %v5569_v42  ;;  %9860 = vst [vmem:[%s12116_s18 + $0x1470] sm:$0xff] %v8836_v60  ;;  %v7807_v5 = vmul.f32 %v16120_v14, %v5584_v45  ;;  %v16180_v60 = vld [vmem:[#allocation3 + $0x10] sm:$0xff] }
 0xdc8   : > { %5812 = vbcast.lane.b32.xlu1 %v17902_v29, 312  ;;  %5824 = vbcast.lane.b32.xlu0 %v17902_v29, 336 }
 0xdc9   : > { %v8835_v50 = vadd.f32 %v15892_v26, %v7804_v40  ;;  %v8838_v13 = vadd.f32 %v15892_v26, %v7807_v5  ;;  %v16188_v5 = vld [vmem:[#allocation3 + $0xd0] sm:$0xff] }
 0xdca   : > { %v5577_v51 = vpop.permute.xlu1 %5576  ;;  %v5592_v44 = vpop.permute.xlu0 %5591 }
 0xdcb   : > { %9859 = vst [vmem:[%s12116_s18 + $0x1468] sm:$0xff] %v8835_v50  ;;  %v7806_v41 = vmul.f32 %v16128_v37, %v5577_v51  ;;  %9862 = vst [vmem:[%s12116_s18 + $0x1480] sm:$0xff] %v8838_v13  ;;  %v7809_v33 = vmul.f32 %v16132_v20, %v5592_v44  ;;  %v16192_v51 = vld [vmem:[#allocation3 + $0xa0] sm:$0xff] }
 0xdcc   : > { %5820 = vbcast.lane.b32.xlu1 %v17902_v29, 328  ;;  %5832 = vbcast.lane.b32.xlu0 %v17902_v29, 352 }
 0xdcd   : > { %v8837_v55 = vadd.f32 %v15892_v26, %v7806_v41  ;;  %v8840_v49 = vadd.f32 %v15892_v26, %v7809_v33 }
 0xdce   : > { %v5588_v31 = vpop.permute.xlu1 %5587  ;;  %v5600_v3 = vpop.permute.xlu0 %5599 }
 0xdcf   : > { %9861 = vst [vmem:[%s12116_s18 + $0x1478] sm:$0xff] %v8837_v55  ;;  %v7808_v23 = vmul.f32 %v16140_v35, %v5588_v31  ;;  %9864 = vst [vmem:[%s12116_s18 + $0x1490] sm:$0xff] %v8840_v49  ;;  %v7811_v24 = vmul.f32 %v16144_v48, %v5600_v3  ;;  %v16200_v49 = vld [vmem:[#allocation3 + $0x28] sm:$0xff]  ;;  %v16204_v3 = vld [vmem:[#allocation3 + $0x20] sm:$0xff] }
 0xdd0   : > { %5828 = vbcast.lane.b32.xlu1 %v17902_v29, 344  ;;  %5840 = vbcast.lane.b32.xlu0 %v17902_v29, 368 }
 0xdd1   : > { %v8839_v2 = vadd.f32 %v15892_v26, %v7808_v23  ;;  %v8842_v59 = vadd.f32 %v15892_v26, %v7811_v24 }
 0xdd2   : > { %v5596_v8 = vpop.permute.xlu1 %5595  ;;  %v5608_v25 = vpop.permute.xlu0 %5607 }
 0xdd3   : > { %9863 = vst [vmem:[%s12116_s18 + $0x1488] sm:$0xff] %v8839_v2  ;;  %v7810_v15 = vmul.f32 %v16152_v11, %v5596_v8  ;;  %9866 = vst [vmem:[%s12116_s18 + $0x14a0] sm:$0xff] %v8842_v59  ;;  %v7813_v52 = vmul.f32 %v16156_v12, %v5608_v25 }
 0xdd4   : > { %5836 = vbcast.lane.b32.xlu1 %v17902_v29, 360  ;;  %5851 = vbcast.lane.b32.xlu0 %v17903_v47, 256 }
 0xdd5   : > { %v8841_v54 = vadd.f32 %v15892_v26, %v7810_v15  ;;  %v8844_v1 = vadd.f32 %v15892_v26, %v7813_v52  ;;  %v16212_v15 = vld [vmem:[#allocation3 + $0xf8] sm:$0xff] }
 0xdd6   : > { %v5604_v53 = vpop.permute.xlu1 %5603  ;;  %v5616_v19 = vpop.permute.xlu0 %5615 }
 0xdd7   : > { %9865 = vst [vmem:[%s12116_s18 + $0x1498] sm:$0xff] %v8841_v54  ;;  %v7812_v0 = vmul.f32 %v16164_v58, %v5604_v53  ;;  %9868 = vst [vmem:[%s12116_s18 + $0x14b0] sm:$0xff] %v8844_v1  ;;  %v7815_v7 = vmul.f32 %v16168_v57, %v5616_v19  ;;  %v16222_v19 = vld [vmem:[#allocation3 + $0x98] sm:$0xff] }
 0xdd8   : > { %5844 = vbcast.lane.b32.xlu1 %v17902_v29, 376  ;;  %5859 = vbcast.lane.b32.xlu0 %v17903_v47, 272 }
 0xdd9   : > { %v8843_v43 = vadd.f32 %v15892_v26, %v7812_v0  ;;  %v8846_v21 = vadd.f32 %v15892_v26, %v7815_v7 }
 0xdda   : > { %v5612_v18 = vpop.permute.xlu1 %5611  ;;  %v5624_v32 = vpop.permute.xlu0 %5623 }
 0xddb   : > { %9867 = vst [vmem:[%s12116_s18 + $0x14a8] sm:$0xff] %v8843_v43  ;;  %v7814_v34 = vmul.f32 %v16176_v4, %v5612_v18  ;;  %9870 = vst [vmem:[%s12116_s18 + $0x14c0] sm:$0xff] %v8846_v21  ;;  %v7817_v29 = vmul.f32 %v16180_v60, %v5624_v32 }
 0xddc   : > { %5855 = vbcast.lane.b32.xlu1 %v17903_v47, 264  ;;  %5867 = vbcast.lane.b32.xlu0 %v17903_v47, 288 }
 0xddd   : > { %v8845_v42 = vadd.f32 %v15892_v26, %v7814_v34  ;;  %v8848_v40 = vadd.f32 %v15892_v26, %v7817_v29 }
 0xdde   : > { %v5620_v45 = vpop.permute.xlu1 %5619  ;;  %v5632_v13 = vpop.permute.xlu0 %5631 }
 0xddf   : > { %9869 = vst [vmem:[%s12116_s18 + $0x14b8] sm:$0xff] %v8845_v42  ;;  %v7816_v50 = vmul.f32 %v16188_v5, %v5620_v45  ;;  %9872 = vst [vmem:[%s12116_s18 + $0x14d0] sm:$0xff] %v8848_v40  ;;  %v7819_v41 = vmul.f32 %v16192_v51, %v5632_v13 }
 0xde0   : > { %5863 = vbcast.lane.b32.xlu1 %v17903_v47, 280  ;;  %5875 = vbcast.lane.b32.xlu0 %v17903_v47, 304 }
 0xde1   : > { %v8847_v44 = vadd.f32 %v15892_v26, %v7816_v50  ;;  %v8850_v33 = vadd.f32 %v15892_v26, %v7819_v41 }
 0xde2   : > { %v5628_v55 = vpop.permute.xlu1 %5627  ;;  %v5640_v23 = vpop.permute.xlu0 %5639 }
 0xde3   : > { %9871 = vst [vmem:[%s12116_s18 + $0x14c8] sm:$0xff] %v8847_v44  ;;  %v7818_v31 = vmul.f32 %v16200_v49, %v5628_v55  ;;  %9874 = vst [vmem:[%s12116_s18 + $0x14e0] sm:$0xff] %v8850_v33  ;;  %v7821_v24 = vmul.f32 %v16204_v3, %v5640_v23 }
 0xde4   : > { %5871 = vbcast.lane.b32.xlu1 %v17903_v47, 296  ;;  %5883 = vbcast.lane.b32.xlu0 %v17903_v47, 320 }
 0xde5   : > { %v8849_v2 = vadd.f32 %v15892_v26, %v7818_v31  ;;  %v8852_v59 = vadd.f32 %v15892_v26, %v7821_v24  ;;  %v17904_v31 = vld [vmem:[#allocation51_spill] sm:$0xff] }
 0xde6   : > { %v5636_v8 = vpop.permute.xlu1 %5635  ;;  %v5651_v52 = vpop.permute.xlu0 %5650 }
 0xde7   : > { %9873 = vst [vmem:[%s12116_s18 + $0x14d8] sm:$0xff] %v8849_v2  ;;  %v7820_v25 = vmul.f32 %v16212_v15, %v5636_v8  ;;  %9876 = vst [vmem:[%s12116_s18 + $0x14f0] sm:$0xff] %v8852_v59  ;;  %v7823_v54 = vmul.f32 %v16048_v30, %v5651_v52 }
 0xde8   : > { %5879 = vbcast.lane.b32.xlu1 %v17903_v47, 312  ;;  %5891 = vbcast.lane.b32.xlu0 %v17903_v47, 336 }
 0xde9   : > { %v8851_v1 = vadd.f32 %v15892_v26, %v7820_v25  ;;  %v8854_v53 = vadd.f32 %v15892_v26, %v7823_v54 }
 0xdea   : > { %v5644_v0 = vpop.permute.xlu1 %5643  ;;  %v5659_v43 = vpop.permute.xlu0 %5658 }
 0xdeb   : > { %9875 = vst [vmem:[%s12116_s18 + $0x14e8] sm:$0xff] %v8851_v1  ;;  %v7822_v7 = vmul.f32 %v16222_v19, %v5644_v0  ;;  %9878 = vst [vmem:[%s12116_s18 + $0x1500] sm:$0xff] %v8854_v53  ;;  %v7825_v21 = vmul.f32 %v15906_v56, %v5659_v43 }
 0xdec   : > { %5887 = vbcast.lane.b32.xlu1 %v17903_v47, 328  ;;  %5899 = vbcast.lane.b32.xlu0 %v17903_v47, 352 }
 0xded   : > { %v8853_v18 = vadd.f32 %v15892_v26, %v7822_v7  ;;  %v8856_v34 = vadd.f32 %v15892_v26, %v7825_v21 }
 0xdee   : > { %v5655_v32 = vpop.permute.xlu1 %5654  ;;  %v5667_v42 = vpop.permute.xlu0 %5666 }
 0xdef   : > { %9877 = vst [vmem:[%s12116_s18 + $0x14f8] sm:$0xff] %v8853_v18  ;;  %v7824_v29 = vmul.f32 %v15914_v22, %v5655_v32  ;;  %9880 = vst [vmem:[%s12116_s18 + $0x1510] sm:$0xff] %v8856_v34  ;;  %v7827_v40 = vmul.f32 %v15918_v39, %v5667_v42 }
 0xdf0   : > { %5895 = vbcast.lane.b32.xlu1 %v17903_v47, 344  ;;  %5907 = vbcast.lane.b32.xlu0 %v17903_v47, 368 }
 0xdf1   : > { %v8855_v45 = vadd.f32 %v15892_v26, %v7824_v29  ;;  %v8858_v50 = vadd.f32 %v15892_v26, %v7827_v40 }
 0xdf2   : > { %v5663_v13 = vpop.permute.xlu1 %5662  ;;  %v5675_v44 = vpop.permute.xlu0 %5674 }
 0xdf3   : > { %9879 = vst [vmem:[%s12116_s18 + $0x1508] sm:$0xff] %v8855_v45  ;;  %v7826_v41 = vmul.f32 %v15926_v46, %v5663_v13  ;;  %9882 = vst [vmem:[%s12116_s18 + $0x1520] sm:$0xff] %v8858_v50  ;;  %v7829_v33 = vmul.f32 %v15930_v61, %v5675_v44 }
 0xdf4   : > { %5903 = vbcast.lane.b32.xlu1 %v17903_v47, 360  ;;  %5918 = vbcast.lane.b32.xlu0 %v17904_v31, 256 }
 0xdf5   : > { %v8857_v55 = vadd.f32 %v15892_v26, %v7826_v41  ;;  %v8860_v23 = vadd.f32 %v15892_v26, %v7829_v33 }
 0xdf6   : > { %v5671_v24 = vpop.permute.xlu1 %5670  ;;  %v5683_v59 = vpop.permute.xlu0 %5682 }
 0xdf7   : > { %9881 = vst [vmem:[%s12116_s18 + $0x1518] sm:$0xff] %v8857_v55  ;;  %v7828_v2 = vmul.f32 %v15938_v9, %v5671_v24  ;;  %9884 = vst [vmem:[%s12116_s18 + $0x1530] sm:$0xff] %v8860_v23  ;;  %v7831_v8 = vmul.f32 %v15942_v63, %v5683_v59 }
 0xdf8   : > { %5911 = vbcast.lane.b32.xlu1 %v17903_v47, 376  ;;  %5926 = vbcast.lane.b32.xlu0 %v17904_v31, 272 }
 0xdf9   : > { %v8859_v25 = vadd.f32 %v15892_v26, %v7828_v2  ;;  %v8862_v52 = vadd.f32 %v15892_v26, %v7831_v8 }
 0xdfa   : > { %v5679_v54 = vpop.permute.xlu1 %5678  ;;  %v5691_v53 = vpop.permute.xlu0 %5690 }
 0xdfb   : > { %9883 = vst [vmem:[%s12116_s18 + $0x1528] sm:$0xff] %v8859_v25  ;;  %v7830_v1 = vmul.f32 %v15950_v6, %v5679_v54  ;;  %9886 = vst [vmem:[%s12116_s18 + $0x1540] sm:$0xff] %v8862_v52  ;;  %v7833_v0 = vmul.f32 %v15954_v62, %v5691_v53 }
 0xdfc   : > { %5922 = vbcast.lane.b32.xlu1 %v17904_v31, 264  ;;  %5934 = vbcast.lane.b32.xlu0 %v17904_v31, 288 }
 0xdfd   : > { %v8861_v47 = vadd.f32 %v15892_v26, %v7830_v1  ;;  %v8864_v7 = vadd.f32 %v15892_v26, %v7833_v0 }
 0xdfe   : > { %v5687_v43 = vpop.permute.xlu1 %5686  ;;  %v5699_v18 = vpop.permute.xlu0 %5698 }
 0xdff   : > { %9885 = vst [vmem:[%s12116_s18 + $0x1538] sm:$0xff] %v8861_v47  ;;  %v7832_v21 = vmul.f32 %v15962_v17, %v5687_v43  ;;  %9888 = vst [vmem:[%s12116_s18 + $0x1550] sm:$0xff] %v8864_v7  ;;  %v7835_v34 = vmul.f32 %v15966_v16, %v5699_v18 }
 0xe00   : > { %5930 = vbcast.lane.b32.xlu1 %v17904_v31, 280  ;;  %5942 = vbcast.lane.b32.xlu0 %v17904_v31, 304 }
 0xe01   : > { %v8863_v32 = vadd.f32 %v15892_v26, %v7832_v21  ;;  %v8866_v29 = vadd.f32 %v15892_v26, %v7835_v34 }
 0xe02   : > { %v5695_v42 = vpop.permute.xlu1 %5694  ;;  %v5707_v45 = vpop.permute.xlu0 %5706 }
 0xe03   : > { %9887 = vst [vmem:[%s12116_s18 + $0x1548] sm:$0xff] %v8863_v32  ;;  %v7834_v40 = vmul.f32 %v16104_v27, %v5695_v42  ;;  %9890 = vst [vmem:[%s12116_s18 + $0x1560] sm:$0xff] %v8866_v29  ;;  %v7837_v50 = vmul.f32 %v16108_v10, %v5707_v45 }
 0xe04   : > { %5938 = vbcast.lane.b32.xlu1 %v17904_v31, 296  ;;  %5950 = vbcast.lane.b32.xlu0 %v17904_v31, 320 }
 0xe05   : > { %v8865_v13 = vadd.f32 %v15892_v26, %v7834_v40  ;;  %v8868_v41 = vadd.f32 %v15892_v26, %v7837_v50  ;;  %v17905_v40 = vld [vmem:[#allocation52_spill] sm:$0xff] }
 0xe06   : > { %v5703_v44 = vpop.permute.xlu1 %5702  ;;  %v5718_v55 = vpop.permute.xlu0 %5717 }
 0xe07   : > { %9889 = vst [vmem:[%s12116_s18 + $0x1558] sm:$0xff] %v8865_v13  ;;  %v7836_v33 = vmul.f32 %v16116_v36, %v5703_v44  ;;  %9892 = vst [vmem:[%s12116_s18 + $0x1570] sm:$0xff] %v8868_v41  ;;  %v7839_v23 = vmul.f32 %v16120_v14, %v5718_v55 }
 0xe08   : > { %5946 = vbcast.lane.b32.xlu1 %v17904_v31, 312  ;;  %5958 = vbcast.lane.b32.xlu0 %v17904_v31, 336 }
 0xe09   : > { %v8867_v24 = vadd.f32 %v15892_v26, %v7836_v33  ;;  %v8870_v2 = vadd.f32 %v15892_v26, %v7839_v23 }
 0xe0a   : > { %v5711_v59 = vpop.permute.xlu1 %5710  ;;  %v5726_v25 = vpop.permute.xlu0 %5725 }
 0xe0b   : > { %9891 = vst [vmem:[%s12116_s18 + $0x1568] sm:$0xff] %v8867_v24  ;;  %v7838_v8 = vmul.f32 %v16128_v37, %v5711_v59  ;;  %9894 = vst [vmem:[%s12116_s18 + $0x1580] sm:$0xff] %v8870_v2  ;;  %v7841_v52 = vmul.f32 %v16132_v20, %v5726_v25 }
 0xe0c   : > { %5954 = vbcast.lane.b32.xlu1 %v17904_v31, 328  ;;  %5966 = vbcast.lane.b32.xlu0 %v17904_v31, 352 }
 0xe0d   : > { %v8869_v54 = vadd.f32 %v15892_v26, %v7838_v8  ;;  %v8872_v1 = vadd.f32 %v15892_v26, %v7841_v52 }
 0xe0e   : > { %v5722_v53 = vpop.permute.xlu1 %5721  ;;  %v5734_v47 = vpop.permute.xlu0 %5733 }
 0xe0f   : > { %9893 = vst [vmem:[%s12116_s18 + $0x1578] sm:$0xff] %v8869_v54  ;;  %v7840_v0 = vmul.f32 %v16140_v35, %v5722_v53  ;;  %9896 = vst [vmem:[%s12116_s18 + $0x1590] sm:$0xff] %v8872_v1  ;;  %v7843_v7 = vmul.f32 %v16144_v48, %v5734_v47 }
 0xe10   : > { %5962 = vbcast.lane.b32.xlu1 %v17904_v31, 344  ;;  %5974 = vbcast.lane.b32.xlu0 %v17904_v31, 368 }
 0xe11   : > { %v8871_v43 = vadd.f32 %v15892_v26, %v7840_v0  ;;  %v8874_v21 = vadd.f32 %v15892_v26, %v7843_v7 }
 0xe12   : > { %v5730_v18 = vpop.permute.xlu1 %5729  ;;  %v5742_v32 = vpop.permute.xlu0 %5741 }
 0xe13   : > { %9895 = vst [vmem:[%s12116_s18 + $0x1588] sm:$0xff] %v8871_v43  ;;  %v7842_v34 = vmul.f32 %v16152_v11, %v5730_v18  ;;  %9898 = vst [vmem:[%s12116_s18 + $0x15a0] sm:$0xff] %v8874_v21  ;;  %v7845_v29 = vmul.f32 %v16156_v12, %v5742_v32 }
 0xe14   : > { %5970 = vbcast.lane.b32.xlu1 %v17904_v31, 360  ;;  %5985 = vbcast.lane.b32.xlu0 %v17905_v40, 256 }
 0xe15   : > { %v8873_v42 = vadd.f32 %v15892_v26, %v7842_v34  ;;  %v8876_v45 = vadd.f32 %v15892_v26, %v7845_v29 }
 0xe16   : > { %v5738_v50 = vpop.permute.xlu1 %5737  ;;  %v5750_v41 = vpop.permute.xlu0 %5749 }
 0xe17   : > { %9897 = vst [vmem:[%s12116_s18 + $0x1598] sm:$0xff] %v8873_v42  ;;  %v7844_v13 = vmul.f32 %v16164_v58, %v5738_v50  ;;  %9900 = vst [vmem:[%s12116_s18 + $0x15b0] sm:$0xff] %v8876_v45  ;;  %v7847_v44 = vmul.f32 %v16168_v57, %v5750_v41 }
 0xe18   : > { %5978 = vbcast.lane.b32.xlu1 %v17904_v31, 376  ;;  %5993 = vbcast.lane.b32.xlu0 %v17905_v40, 272 }
 0xe19   : > { %v8875_v33 = vadd.f32 %v15892_v26, %v7844_v13  ;;  %v8878_v55 = vadd.f32 %v15892_v26, %v7847_v44 }
 0xe1a   : > { %v5746_v23 = vpop.permute.xlu1 %5745  ;;  %v5758_v2 = vpop.permute.xlu0 %5757 }
 0xe1b   : > { %9899 = vst [vmem:[%s12116_s18 + $0x15a8] sm:$0xff] %v8875_v33  ;;  %v7846_v24 = vmul.f32 %v16176_v4, %v5746_v23  ;;  %9902 = vst [vmem:[%s12116_s18 + $0x15c0] sm:$0xff] %v8878_v55  ;;  %v7849_v59 = vmul.f32 %v16180_v60, %v5758_v2 }
 0xe1c   : > { %5989 = vbcast.lane.b32.xlu1 %v17905_v40, 264  ;;  %6001 = vbcast.lane.b32.xlu0 %v17905_v40, 288 }
 0xe1d   : > { %v8877_v31 = vadd.f32 %v15892_v26, %v7846_v24  ;;  %v8880_v8 = vadd.f32 %v15892_v26, %v7849_v59 }
 0xe1e   : > { %v5754_v25 = vpop.permute.xlu1 %5753  ;;  %v5766_v54 = vpop.permute.xlu0 %5765 }
 0xe1f   : > { %9901 = vst [vmem:[%s12116_s18 + $0x15b8] sm:$0xff] %v8877_v31  ;;  %v7848_v52 = vmul.f32 %v16188_v5, %v5754_v25  ;;  %9904 = vst [vmem:[%s12116_s18 + $0x15d0] sm:$0xff] %v8880_v8  ;;  %v7851_v1 = vmul.f32 %v16192_v51, %v5766_v54  ;;  %v17906_v54 = vld [vmem:[#allocation39_spill] sm:$0xff] }
 0xe20   : > { %5997 = vbcast.lane.b32.xlu1 %v17905_v40, 280  ;;  %6009 = vbcast.lane.b32.xlu0 %v17905_v40, 304 }
 0xe21   : > { %v8879_v53 = vadd.f32 %v15892_v26, %v7848_v52  ;;  %v8882_v0 = vadd.f32 %v15892_v26, %v7851_v1  ;;  %v16369_v1 = vrot.slane %v17906_v54, %v12846_v28 }
 0xe22   : > { %v5762_v47 = vpop.permute.xlu1 %5761  ;;  %v5774_v43 = vpop.permute.xlu0 %5773 }
 0xe23   : > { %9903 = vst [vmem:[%s12116_s18 + $0x15c8] sm:$0xff] %v8879_v53  ;;  %v7850_v7 = vmul.f32 %v16200_v49, %v5762_v47  ;;  %9906 = vst [vmem:[%s12116_s18 + $0x15e0] sm:$0xff] %v8882_v0  ;;  %v7853_v21 = vmul.f32 %v16204_v3, %v5774_v43  ;;  %v16376_v0 = vld [vmem:[#allocation19] ss:$0 sm:$0xff] }
 0xe24   : > { %6005 = vbcast.lane.b32.xlu1 %v17905_v40, 296  ;;  %6017 = vbcast.lane.b32.xlu0 %v17905_v40, 320 }
 0xe25   : > { %v8881_v18 = vadd.f32 %v15892_v26, %v7850_v7  ;;  %v8884_v34 = vadd.f32 %v15892_v26, %v7853_v21 }
 0xe26   : > { %v5770_v32 = vpop.permute.xlu1 %5769  ;;  %v5785_v42 = vpop.permute.xlu0 %5784 }
 0xe27   : > { %9905 = vst [vmem:[%s12116_s18 + $0x15d8] sm:$0xff] %v8881_v18  ;;  %v7852_v29 = vmul.f32 %v16212_v15, %v5770_v32  ;;  %9908 = vst [vmem:[%s12116_s18 + $0x15f0] sm:$0xff] %v8884_v34  ;;  %v7855_v45 = vmul.f32 %v16048_v30, %v5785_v42 }
 0xe28   : > { %6013 = vbcast.lane.b32.xlu1 %v17905_v40, 312  ;;  %6025 = vbcast.lane.b32.xlu0 %v17905_v40, 336 }
 0xe29   : > { %v8883_v50 = vadd.f32 %v15892_v26, %v7852_v29  ;;  %v8886_v13 = vadd.f32 %v15892_v26, %v7855_v45 }
 0xe2a   : > { %v5778_v41 = vpop.permute.xlu1 %5777  ;;  %v5793_v33 = vpop.permute.xlu0 %5792 }
 0xe2b   : > { %9907 = vst [vmem:[%s12116_s18 + $0x15e8] sm:$0xff] %v8883_v50  ;;  %v7854_v44 = vmul.f32 %v16222_v19, %v5778_v41  ;;  %9910 = vst [vmem:[%s12116_s18 + $0x1600] sm:$0xff] %v8886_v13  ;;  %v7857_v55 = vmul.f32 %v15906_v56, %v5793_v33 }
 0xe2c   : > { %6021 = vbcast.lane.b32.xlu1 %v17905_v40, 328  ;;  %6033 = vbcast.lane.b32.xlu0 %v17905_v40, 352 }
 0xe2d   : > { %v8885_v23 = vadd.f32 %v15892_v26, %v7854_v44  ;;  %v8888_v24 = vadd.f32 %v15892_v26, %v7857_v55 }
 0xe2e   : > { %v5789_v2 = vpop.permute.xlu1 %5788  ;;  %v5801_v31 = vpop.permute.xlu0 %5800 }
 0xe2f   : > { %9909 = vst [vmem:[%s12116_s18 + $0x15f8] sm:$0xff] %v8885_v23  ;;  %v7856_v59 = vmul.f32 %v15914_v22, %v5789_v2  ;;  %9912 = vst [vmem:[%s12116_s18 + $0x1610] sm:$0xff] %v8888_v24  ;;  %v7859_v8 = vmul.f32 %v15918_v39, %v5801_v31 }
 0xe30   : > { %6029 = vbcast.lane.b32.xlu1 %v17905_v40, 344  ;;  %6041 = vbcast.lane.b32.xlu0 %v17905_v40, 368 }
 0xe31   : > { %v8887_v56 = vadd.f32 %v15892_v26, %v7856_v59  ;;  %v8890_v25 = vadd.f32 %v15892_v26, %v7859_v8 }
 0xe32   : > { %v5797_v52 = vpop.permute.xlu1 %5796  ;;  %v5809_v53 = vpop.permute.xlu0 %5808 }
 0xe33   : > { %9911 = vst [vmem:[%s12116_s18 + $0x1608] sm:$0xff] %v8887_v56  ;;  %v7858_v22 = vmul.f32 %v15926_v46, %v5797_v52  ;;  %9914 = vst [vmem:[%s12116_s18 + $0x1620] sm:$0xff] %v8890_v25  ;;  %v7861_v39 = vmul.f32 %v15930_v61, %v5809_v53 }
 0xe34   : > { %6037 = vbcast.lane.b32.xlu1 %v17905_v40, 360  ;;  %6052 = vbcast.lane.b32.xlu0 %v16369_v1, 256 }
 0xe35   : > { %v8889_v26 = vadd.f32 %v16376_v0, %v7858_v22  ;;  %v8892_v47 = vadd.f32 %v16376_v0, %v7861_v39 }
 0xe36   : > { %v5805_v7 = vpop.permute.xlu1 %5804  ;;  %v5817_v43 = vpop.permute.xlu0 %5816 }
 0xe37   : > { %9913 = vst [vmem:[%s12116_s18 + $0x1618] sm:$0xff] %v8889_v26  ;;  %v7860_v46 = vmul.f32 %v15938_v9, %v5805_v7  ;;  %9916 = vst [vmem:[%s12116_s18 + $0x1630] sm:$0xff] %v8892_v47  ;;  %v7863_v61 = vmul.f32 %v15942_v63, %v5817_v43 }
 0xe38   : > { %6045 = vbcast.lane.b32.xlu1 %v17905_v40, 376  ;;  %6060 = vbcast.lane.b32.xlu0 %v16369_v1, 272 }
 0xe39   : > { %v8891_v21 = vadd.f32 %v16376_v0, %v7860_v46  ;;  %v8894_v18 = vadd.f32 %v16376_v0, %v7863_v61 }
 0xe3a   : > { %v5813_v34 = vpop.permute.xlu1 %5812  ;;  %v5825_v29 = vpop.permute.xlu0 %5824 }
 0xe3b   : > { %9915 = vst [vmem:[%s12116_s18 + $0x1628] sm:$0xff] %v8891_v21  ;;  %v7862_v32 = vmul.f32 %v15950_v6, %v5813_v34  ;;  %9918 = vst [vmem:[%s12116_s18 + $0x1640] sm:$0xff] %v8894_v18  ;;  %v7865_v9 = vmul.f32 %v15954_v62, %v5825_v29  ;;  %v17907_v18 = vld [vmem:[#allocation40_spill] sm:$0xff] }
 0xe3c   : > { %6056 = vbcast.lane.b32.xlu1 %v16369_v1, 264  ;;  %6068 = vbcast.lane.b32.xlu0 %v16369_v1, 288  ;;  %v16439_v34 = vrot.slane %v17907_v18, %v12846_v28 }
 0xe3d   : > { %v8893_v63 = vadd.f32 %v16376_v0, %v7862_v32  ;;  %v8896_v40 = vadd.f32 %v16376_v0, %v7865_v9 }
 0xe3e   : > { %v5821_v42 = vpop.permute.xlu1 %5820  ;;  %v5833_v50 = vpop.permute.xlu0 %5832 }
 0xe3f   : > { %9917 = vst [vmem:[%s12116_s18 + $0x1638] sm:$0xff] %v8893_v63  ;;  %v7864_v45 = vmul.f32 %v15962_v17, %v5821_v42  ;;  %9920 = vst [vmem:[%s12116_s18 + $0x1650] sm:$0xff] %v8896_v40  ;;  %v7867_v6 = vmul.f32 %v15966_v16, %v5833_v50 }
 0xe40   : > { %6064 = vbcast.lane.b32.xlu1 %v16369_v1, 280  ;;  %6076 = vbcast.lane.b32.xlu0 %v16369_v1, 304 }
 0xe41   : > { %v8895_v62 = vadd.f32 %v16376_v0, %v7864_v45  ;;  %v8898_v13 = vadd.f32 %v16376_v0, %v7867_v6 }
 0xe42   : > { %v5829_v41 = vpop.permute.xlu1 %5828  ;;  %v5841_v33 = vpop.permute.xlu0 %5840 }
 0xe43   : > { %9919 = vst [vmem:[%s12116_s18 + $0x1648] sm:$0xff] %v8895_v62  ;;  %v7866_v44 = vmul.f32 %v16104_v27, %v5829_v41  ;;  %9922 = vst [vmem:[%s12116_s18 + $0x1660] sm:$0xff] %v8898_v13  ;;  %v7869_v17 = vmul.f32 %v16108_v10, %v5841_v33 }
 0xe44   : > { %6072 = vbcast.lane.b32.xlu1 %v16369_v1, 296  ;;  %6084 = vbcast.lane.b32.xlu0 %v16369_v1, 320 }
 0xe45   : > { %v8897_v16 = vadd.f32 %v16376_v0, %v7866_v44  ;;  %v8900_v55 = vadd.f32 %v16376_v0, %v7869_v17 }
 0xe46   : > { %v5837_v23 = vpop.permute.xlu1 %5836  ;;  %v5852_v2 = vpop.permute.xlu0 %5851 }
 0xe47   : > { %9921 = vst [vmem:[%s12116_s18 + $0x1658] sm:$0xff] %v8897_v16  ;;  %v7868_v24 = vmul.f32 %v16116_v36, %v5837_v23  ;;  %9924 = vst [vmem:[%s12116_s18 + $0x1670] sm:$0xff] %v8900_v55  ;;  %v7871_v59 = vmul.f32 %v16120_v14, %v5852_v2 }
 0xe48   : > { %6080 = vbcast.lane.b32.xlu1 %v16369_v1, 312  ;;  %6092 = vbcast.lane.b32.xlu0 %v16369_v1, 336 }
 0xe49   : > { %v8899_v31 = vadd.f32 %v16376_v0, %v7868_v24  ;;  %v8902_v8 = vadd.f32 %v16376_v0, %v7871_v59 }
 0xe4a   : > { %v5845_v56 = vpop.permute.xlu1 %5844  ;;  %v5860_v52 = vpop.permute.xlu0 %5859 }
 0xe4b   : > { %9923 = vst [vmem:[%s12116_s18 + $0x1668] sm:$0xff] %v8899_v31  ;;  %v7870_v25 = vmul.f32 %v16128_v37, %v5845_v56  ;;  %9926 = vst [vmem:[%s12116_s18 + $0x1680] sm:$0xff] %v8902_v8  ;;  %v7873_v22 = vmul.f32 %v16132_v20, %v5860_v52 }
 0xe4c   : > { %6088 = vbcast.lane.b32.xlu1 %v16369_v1, 328  ;;  %6100 = vbcast.lane.b32.xlu0 %v16369_v1, 352 }
 0xe4d   : > { %v8901_v53 = vadd.f32 %v16376_v0, %v7870_v25  ;;  %v8904_v39 = vadd.f32 %v16376_v0, %v7873_v22 }
 0xe4e   : > { %v5856_v26 = vpop.permute.xlu1 %5855  ;;  %v5868_v7 = vpop.permute.xlu0 %5867 }
 0xe4f   : > { %9925 = vst [vmem:[%s12116_s18 + $0x1678] sm:$0xff] %v8901_v53  ;;  %v7872_v47 = vmul.f32 %v16140_v35, %v5856_v26  ;;  %9928 = vst [vmem:[%s12116_s18 + $0x1690] sm:$0xff] %v8904_v39  ;;  %v7875_v46 = vmul.f32 %v16144_v48, %v5868_v7 }
 0xe50   : > { %6096 = vbcast.lane.b32.xlu1 %v16369_v1, 344  ;;  %6108 = vbcast.lane.b32.xlu0 %v16369_v1, 368 }
 0xe51   : > { %v8903_v43 = vadd.f32 %v16376_v0, %v7872_v47  ;;  %v8906_v61 = vadd.f32 %v16376_v0, %v7875_v46 }
 0xe52   : > { %v5864_v21 = vpop.permute.xlu1 %5863  ;;  %v5876_v29 = vpop.permute.xlu0 %5875 }
 0xe53   : > { %9927 = vst [vmem:[%s12116_s18 + $0x1688] sm:$0xff] %v8903_v43  ;;  %v7874_v32 = vmul.f32 %v16152_v11, %v5864_v21  ;;  %9930 = vst [vmem:[%s12116_s18 + $0x16a0] sm:$0xff] %v8906_v61  ;;  %v7877_v9 = vmul.f32 %v16156_v12, %v5876_v29 }
 0xe54   : > { %6104 = vbcast.lane.b32.xlu1 %v16369_v1, 360  ;;  %6119 = vbcast.lane.b32.xlu0 %v16439_v34, 256 }
 0xe55   : > { %v8905_v63 = vadd.f32 %v16376_v0, %v7874_v32  ;;  %v8908_v40 = vadd.f32 %v16376_v0, %v7877_v9  ;;  %v16492_v32 = vld [vmem:[#allocation3 + $0xd8] sm:$0xff] }
 0xe56   : > { %v5872_v42 = vpop.permute.xlu1 %5871  ;;  %v5884_v45 = vpop.permute.xlu0 %5883 }
 0xe57   : > { %9929 = vst [vmem:[%s12116_s18 + $0x1698] sm:$0xff] %v8905_v63  ;;  %v7876_v28 = vmul.f32 %v16164_v58, %v5872_v42  ;;  %9932 = vst [vmem:[%s12116_s18 + $0x16b0] sm:$0xff] %v8908_v40  ;;  %v7879_v50 = vmul.f32 %v16168_v57, %v5884_v45  ;;  %v16500_v40 = vld [vmem:[#allocation3] sm:$0xff]  ;;  %v16504_v45 = vld [vmem:[#allocation3 + $0x50] sm:$0xff] }
 0xe58   : > { %6112 = vbcast.lane.b32.xlu1 %v16369_v1, 376  ;;  %6127 = vbcast.lane.b32.xlu0 %v16439_v34, 272 }
 0xe59   : > { %v8907_v6 = vadd.f32 %v16376_v0, %v7876_v28  ;;  %v8910_v62 = vadd.f32 %v16376_v0, %v7879_v50 }
 0xe5a   : > { %v5880_v13 = vpop.permute.xlu1 %5879  ;;  %v5892_v44 = vpop.permute.xlu0 %5891 }
 0xe5b   : > { %9931 = vst [vmem:[%s12116_s18 + $0x16a8] sm:$0xff] %v8907_v6  ;;  %v7878_v41 = vmul.f32 %v16176_v4, %v5880_v13  ;;  %9934 = vst [vmem:[%s12116_s18 + $0x16c0] sm:$0xff] %v8910_v62  ;;  %v7881_v33 = vmul.f32 %v16180_v60, %v5892_v44  ;;  %v16516_v44 = vld [vmem:[#allocation3 + $0x18] sm:$0xff] }
 0xe5c   : > { %6123 = vbcast.lane.b32.xlu1 %v16439_v34, 264  ;;  %6135 = vbcast.lane.b32.xlu0 %v16439_v34, 288 }
 0xe5d   : > { %v8909_v1 = vadd.f32 %v16376_v0, %v7878_v41  ;;  %v8912_v17 = vadd.f32 %v16376_v0, %v7881_v33  ;;  %v16513_v41 = vrot.slane %v17906_v54, %v12849_v38 }
 0xe5e   : > { %v5888_v16 = vpop.permute.xlu1 %5887  ;;  %v5900_v23 = vpop.permute.xlu0 %5899 }
 0xe5f   : > { %9933 = vst [vmem:[%s12116_s18 + $0x16b8] sm:$0xff] %v8909_v1  ;;  %v7880_v55 = vmul.f32 %v16188_v5, %v5888_v16  ;;  %9936 = vst [vmem:[%s12116_s18 + $0x16d0] sm:$0xff] %v8912_v17  ;;  %v7883_v24 = vmul.f32 %v16192_v51, %v5900_v23  ;;  %v16520_v17 = vld [vmem:[#allocation3 + $0x30] sm:$0xff] }
 0xe60   : > { %6131 = vbcast.lane.b32.xlu1 %v16439_v34, 280  ;;  %6143 = vbcast.lane.b32.xlu0 %v16439_v34, 304 }
 0xe61   : > { %v8911_v2 = vadd.f32 %v16376_v0, %v7880_v55  ;;  %v8914_v59 = vadd.f32 %v16376_v0, %v7883_v24  ;;  %v16528_v24 = vld [vmem:[#allocation3 + $0x68] sm:$0xff] }
 0xe62   : > { %v5896_v31 = vpop.permute.xlu1 %5895  ;;  %v5908_v56 = vpop.permute.xlu0 %5907 }
 0xe63   : > { %9935 = vst [vmem:[%s12116_s18 + $0x16c8] sm:$0xff] %v8911_v2  ;;  %v7882_v8 = vmul.f32 %v16200_v49, %v5896_v31  ;;  %9938 = vst [vmem:[%s12116_s18 + $0x16e0] sm:$0xff] %v8914_v59  ;;  %v7885_v25 = vmul.f32 %v16204_v3, %v5908_v56  ;;  %v16532_v31 = vld [vmem:[#allocation3 + $0x80] sm:$0xff] }
 0xe64   : > { %6139 = vbcast.lane.b32.xlu1 %v16439_v34, 296  ;;  %6151 = vbcast.lane.b32.xlu0 %v16439_v34, 320 }
 0xe65   : > { %v8913_v52 = vadd.f32 %v16376_v0, %v7882_v8  ;;  %v8916_v22 = vadd.f32 %v16376_v0, %v7885_v25 }
 0xe66   : > { %v5904_v53 = vpop.permute.xlu1 %5903  ;;  %v5919_v26 = vpop.permute.xlu0 %5918 }
 0xe67   : > { %9937 = vst [vmem:[%s12116_s18 + $0x16d8] sm:$0xff] %v8913_v52  ;;  %v7884_v39 = vmul.f32 %v16212_v15, %v5904_v53  ;;  %9940 = vst [vmem:[%s12116_s18 + $0x16f0] sm:$0xff] %v8916_v22  ;;  %v7887_v47 = vmul.f32 %v16048_v30, %v5919_v26  ;;  %v16540_v22 = vld [vmem:[#allocation3 + $0x48] sm:$0xff] }
 0xe68   : > { %6147 = vbcast.lane.b32.xlu1 %v16439_v34, 312  ;;  %6159 = vbcast.lane.b32.xlu0 %v16439_v34, 336  ;;  %v16544_v26 = vld [vmem:[#allocation3 + $0xe8] sm:$0xff] }
 0xe69   : > { %v8915_v7 = vadd.f32 %v16376_v0, %v7884_v39  ;;  %v8918_v46 = vadd.f32 %v16376_v0, %v7887_v47 }
 0xe6a   : > { %v5912_v43 = vpop.permute.xlu1 %5911  ;;  %v5927_v21 = vpop.permute.xlu0 %5926 }
 0xe6b   : > { %9939 = vst [vmem:[%s12116_s18 + $0x16e8] sm:$0xff] %v8915_v7  ;;  %v7886_v61 = vmul.f32 %v16222_v19, %v5912_v43  ;;  %9942 = vst [vmem:[%s12116_s18 + $0x1700] sm:$0xff] %v8918_v46  ;;  %v7889_v30 = vmul.f32 %v16492_v32, %v5927_v21  ;;  %v16552_v43 = vld [vmem:[#allocation3 + $0x88] sm:$0xff] }
 0xe6c   : > { %6155 = vbcast.lane.b32.xlu1 %v16439_v34, 328  ;;  %6167 = vbcast.lane.b32.xlu0 %v16439_v34, 352 }
 0xe6d   : > { %v8917_v29 = vadd.f32 %v16376_v0, %v7886_v61  ;;  %v8920_v9 = vadd.f32 %v16376_v0, %v7889_v30  ;;  %v16556_v30 = vld [vmem:[#allocation3 + $0x60] sm:$0xff] }
 0xe6e   : > { %v5923_v63 = vpop.permute.xlu1 %5922  ;;  %v5935_v28 = vpop.permute.xlu0 %5934 }
 0xe6f   : > { %9941 = vst [vmem:[%s12116_s18 + $0x16f8] sm:$0xff] %v8917_v29  ;;  %v7888_v42 = vmul.f32 %v16500_v40, %v5923_v63  ;;  %9944 = vst [vmem:[%s12116_s18 + $0x1710] sm:$0xff] %v8920_v9  ;;  %v7891_v50 = vmul.f32 %v16504_v45, %v5935_v28 }
 0xe70   : > { %6163 = vbcast.lane.b32.xlu1 %v16439_v34, 344  ;;  %6175 = vbcast.lane.b32.xlu0 %v16439_v34, 368 }
 0xe71   : > { %v8919_v6 = vadd.f32 %v16376_v0, %v7888_v42  ;;  %v8922_v62 = vadd.f32 %v16376_v0, %v7891_v50 }
 0xe72   : > { %v5931_v13 = vpop.permute.xlu1 %5930  ;;  %v5943_v1 = vpop.permute.xlu0 %5942 }
 0xe73   : > { %9943 = vst [vmem:[%s12116_s18 + $0x1708] sm:$0xff] %v8919_v6  ;;  %v7890_v33 = vmul.f32 %v16516_v44, %v5931_v13  ;;  %9946 = vst [vmem:[%s12116_s18 + $0x1720] sm:$0xff] %v8922_v62  ;;  %v7893_v16 = vmul.f32 %v16520_v17, %v5943_v1 }
 0xe74   : > { %6171 = vbcast.lane.b32.xlu1 %v16439_v34, 360  ;;  %6186 = vbcast.lane.b32.xlu0 %v16513_v41, 256 }
 0xe75   : > { %v8921_v55 = vadd.f32 %v16376_v0, %v7890_v33  ;;  %v8924_v54 = vadd.f32 %v16376_v0, %v7893_v16 }
 0xe76   : > { %v5939_v23 = vpop.permute.xlu1 %5938  ;;  %v5951_v59 = vpop.permute.xlu0 %5950 }
 0xe77   : > { %9945 = vst [vmem:[%s12116_s18 + $0x1718] sm:$0xff] %v8921_v55  ;;  %v7892_v2 = vmul.f32 %v16528_v24, %v5939_v23  ;;  %9948 = vst [vmem:[%s12116_s18 + $0x1730] sm:$0xff] %v8924_v54  ;;  %v7895_v8 = vmul.f32 %v16532_v31, %v5951_v59 }
 0xe78   : > { %6179 = vbcast.lane.b32.xlu1 %v16439_v34, 376  ;;  %6194 = vbcast.lane.b32.xlu0 %v16513_v41, 272 }
 0xe79   : > { %v8923_v56 = vadd.f32 %v16376_v0, %v7892_v2  ;;  %v8926_v25 = vadd.f32 %v16376_v0, %v7895_v8 }
 0xe7a   : > { %v5947_v52 = vpop.permute.xlu1 %5946  ;;  %v5959_v39 = vpop.permute.xlu0 %5958 }
 0xe7b   : > { %9947 = vst [vmem:[%s12116_s18 + $0x1728] sm:$0xff] %v8923_v56  ;;  %v7894_v53 = vmul.f32 %v16540_v22, %v5947_v52  ;;  %9950 = vst [vmem:[%s12116_s18 + $0x1740] sm:$0xff] %v8926_v25  ;;  %v7897_v34 = vmul.f32 %v16544_v26, %v5959_v39  ;;  %v16597_v39 = vrot.slane %v17907_v18, %v12849_v38 }
 0xe7c   : > { %6190 = vbcast.lane.b32.xlu1 %v16513_v41, 264  ;;  %6202 = vbcast.lane.b32.xlu0 %v16513_v41, 288 }
 0xe7d   : > { %v8925_v47 = vadd.f32 %v16376_v0, %v7894_v53  ;;  %v8928_v7 = vadd.f32 %v16376_v0, %v7897_v34 }
 0xe7e   : > { %v5955_v46 = vpop.permute.xlu1 %5954  ;;  %v5967_v21 = vpop.permute.xlu0 %5966 }
 0xe7f   : > { %9949 = vst [vmem:[%s12116_s18 + $0x1738] sm:$0xff] %v8925_v47  ;;  %v7896_v61 = vmul.f32 %v16552_v43, %v5955_v46  ;;  %9952 = vst [vmem:[%s12116_s18 + $0x1750] sm:$0xff] %v8928_v7  ;;  %v7899_v29 = vmul.f32 %v16556_v30, %v5967_v21 }
 0xe80   : > { %6198 = vbcast.lane.b32.xlu1 %v16513_v41, 280  ;;  %6210 = vbcast.lane.b32.xlu0 %v16513_v41, 304 }
 0xe81   : > { %v8927_v9 = vadd.f32 %v16376_v0, %v7896_v61  ;;  %v8930_v63 = vadd.f32 %v16376_v0, %v7899_v29 }
 0xe82   : > { %v5963_v42 = vpop.permute.xlu1 %5962  ;;  %v5975_v50 = vpop.permute.xlu0 %5974 }
 0xe83   : > { %9951 = vst [vmem:[%s12116_s18 + $0x1748] sm:$0xff] %v8927_v9  ;;  %v7898_v28 = vmul.f32 %v16104_v27, %v5963_v42  ;;  %9954 = vst [vmem:[%s12116_s18 + $0x1760] sm:$0xff] %v8930_v63  ;;  %v7901_v6 = vmul.f32 %v16108_v10, %v5975_v50 }
 0xe84   : > { %6206 = vbcast.lane.b32.xlu1 %v16513_v41, 296  ;;  %6218 = vbcast.lane.b32.xlu0 %v16513_v41, 320 }
 0xe85   : > { %v8929_v62 = vadd.f32 %v16376_v0, %v7898_v28  ;;  %v8932_v13 = vadd.f32 %v16376_v0, %v7901_v6 }
 0xe86   : > { %v5971_v33 = vpop.permute.xlu1 %5970  ;;  %v5986_v16 = vpop.permute.xlu0 %5985 }
 0xe87   : > { %9953 = vst [vmem:[%s12116_s18 + $0x1758] sm:$0xff] %v8929_v62  ;;  %v7900_v1 = vmul.f32 %v16116_v36, %v5971_v33  ;;  %9956 = vst [vmem:[%s12116_s18 + $0x1770] sm:$0xff] %v8932_v13  ;;  %v7903_v27 = vmul.f32 %v16120_v14, %v5986_v16 }
 0xe88   : > { %6214 = vbcast.lane.b32.xlu1 %v16513_v41, 312  ;;  %6226 = vbcast.lane.b32.xlu0 %v16513_v41, 336 }
 0xe89   : > { %v8931_v10 = vadd.f32 %v16376_v0, %v7900_v1  ;;  %v8934_v55 = vadd.f32 %v16376_v0, %v7903_v27 }
 0xe8a   : > { %v5979_v54 = vpop.permute.xlu1 %5978  ;;  %v5994_v2 = vpop.permute.xlu0 %5993 }
 0xe8b   : > { %9955 = vst [vmem:[%s12116_s18 + $0x1768] sm:$0xff] %v8931_v10  ;;  %v7902_v23 = vmul.f32 %v16128_v37, %v5979_v54  ;;  %9958 = vst [vmem:[%s12116_s18 + $0x1780] sm:$0xff] %v8934_v55  ;;  %v7905_v36 = vmul.f32 %v16132_v20, %v5994_v2 }
 0xe8c   : > { %6222 = vbcast.lane.b32.xlu1 %v16513_v41, 328  ;;  %6234 = vbcast.lane.b32.xlu0 %v16513_v41, 352 }
 0xe8d   : > { %v8933_v14 = vadd.f32 %v16376_v0, %v7902_v23  ;;  %v8936_v59 = vadd.f32 %v16376_v0, %v7905_v36 }
 0xe8e   : > { %v5990_v8 = vpop.permute.xlu1 %5989  ;;  %v6002_v25 = vpop.permute.xlu0 %6001 }
 0xe8f   : > { %9957 = vst [vmem:[%s12116_s18 + $0x1778] sm:$0xff] %v8933_v14  ;;  %v7904_v56 = vmul.f32 %v16140_v35, %v5990_v8  ;;  %9960 = vst [vmem:[%s12116_s18 + $0x1790] sm:$0xff] %v8936_v59  ;;  %v7907_v37 = vmul.f32 %v16144_v48, %v6002_v25 }
 0xe90   : > { %6230 = vbcast.lane.b32.xlu1 %v16513_v41, 344  ;;  %6242 = vbcast.lane.b32.xlu0 %v16513_v41, 368 }
 0xe91   : > { %v8935_v20 = vadd.f32 %v16376_v0, %v7904_v56  ;;  %v8938_v52 = vadd.f32 %v16376_v0, %v7907_v37 }
 0xe92   : > { %v5998_v53 = vpop.permute.xlu1 %5997  ;;  %v6010_v34 = vpop.permute.xlu0 %6009 }
 0xe93   : > { %9959 = vst [vmem:[%s12116_s18 + $0x1788] sm:$0xff] %v8935_v20  ;;  %v7906_v35 = vmul.f32 %v16152_v11, %v5998_v53  ;;  %9962 = vst [vmem:[%s12116_s18 + $0x17a0] sm:$0xff] %v8938_v52  ;;  %v7909_v48 = vmul.f32 %v16156_v12, %v6010_v34 }
 0xe94   : > { %6238 = vbcast.lane.b32.xlu1 %v16513_v41, 360  ;;  %6253 = vbcast.lane.b32.xlu0 %v16597_v39, 256 }
 0xe95   : > { %v8937_v47 = vadd.f32 %v16376_v0, %v7906_v35  ;;  %v8940_v7 = vadd.f32 %v16376_v0, %v7909_v48  ;;  %v17908_v48 = vld [vmem:[#allocation53_spill] sm:$0xff] }
 0xe96   : > { %v6006_v46 = vpop.permute.xlu1 %6005  ;;  %v6018_v18 = vpop.permute.xlu0 %6017 }
 0xe97   : > { %9961 = vst [vmem:[%s12116_s18 + $0x1798] sm:$0xff] %v8937_v47  ;;  %v7908_v38 = vmul.f32 %v16164_v58, %v6006_v46  ;;  %9964 = vst [vmem:[%s12116_s18 + $0x17b0] sm:$0xff] %v8940_v7  ;;  %v7911_v11 = vmul.f32 %v16168_v57, %v6018_v18 }
 0xe98   : > { %6246 = vbcast.lane.b32.xlu1 %v16513_v41, 376  ;;  %6261 = vbcast.lane.b32.xlu0 %v16597_v39, 272 }
 0xe99   : > { %v8939_v12 = vadd.f32 %v16376_v0, %v7908_v38  ;;  %v8942_v61 = vadd.f32 %v16376_v0, %v7911_v11 }
 0xe9a   : > { %v6014_v21 = vpop.permute.xlu1 %6013  ;;  %v6026_v9 = vpop.permute.xlu0 %6025 }
 0xe9b   : > { %9963 = vst [vmem:[%s12116_s18 + $0x17a8] sm:$0xff] %v8939_v12  ;;  %v7910_v29 = vmul.f32 %v16176_v4, %v6014_v21  ;;  %9966 = vst [vmem:[%s12116_s18 + $0x17c0] sm:$0xff] %v8942_v61  ;;  %v7913_v58 = vmul.f32 %v16180_v60, %v6026_v9 }
 0xe9c   : > { %6257 = vbcast.lane.b32.xlu1 %v16597_v39, 264  ;;  %6269 = vbcast.lane.b32.xlu0 %v16597_v39, 288 }
 0xe9d   : > { %v8941_v57 = vadd.f32 %v16376_v0, %v7910_v29  ;;  %v8944_v41 = vadd.f32 %v16376_v0, %v7913_v58 }
 0xe9e   : > { %v6022_v63 = vpop.permute.xlu1 %6021  ;;  %v6034_v28 = vpop.permute.xlu0 %6033 }
 0xe9f   : > { %9965 = vst [vmem:[%s12116_s18 + $0x17b8] sm:$0xff] %v8941_v57  ;;  %v7912_v42 = vmul.f32 %v16188_v5, %v6022_v63  ;;  %9968 = vst [vmem:[%s12116_s18 + $0x17d0] sm:$0xff] %v8944_v41  ;;  %v7915_v4 = vmul.f32 %v16192_v51, %v6034_v28 }
 0xea0   : > { %6265 = vbcast.lane.b32.xlu1 %v16597_v39, 280  ;;  %6277 = vbcast.lane.b32.xlu0 %v16597_v39, 304 }
 0xea1   : > { %v8943_v60 = vadd.f32 %v16376_v0, %v7912_v42  ;;  %v8946_v50 = vadd.f32 %v16376_v0, %v7915_v4 }
 0xea2   : > { %v6030_v6 = vpop.permute.xlu1 %6029  ;;  %v6042_v13 = vpop.permute.xlu0 %6041 }
 0xea3   : > { %9967 = vst [vmem:[%s12116_s18 + $0x17c8] sm:$0xff] %v8943_v60  ;;  %v7914_v62 = vmul.f32 %v16200_v49, %v6030_v6  ;;  %9970 = vst [vmem:[%s12116_s18 + $0x17e0] sm:$0xff] %v8946_v50  ;;  %v7917_v5 = vmul.f32 %v16204_v3, %v6042_v13  ;;  %v16642_v49 = vld [vmem:[#allocation3 + $0xb0] sm:$0xff]  ;;  %v16698_v50 = vld [vmem:[#allocation3 + $0xb8] sm:$0xff] }
 0xea4   : > { %6273 = vbcast.lane.b32.xlu1 %v16597_v39, 296  ;;  %6285 = vbcast.lane.b32.xlu0 %v16597_v39, 320  ;;  %v16702_v13 = vld [vmem:[#allocation3 + $0x8] sm:$0xff] }
 0xea5   : > { %v8945_v51 = vadd.f32 %v16376_v0, %v7914_v62  ;;  %v8948_v33 = vadd.f32 %v16376_v0, %v7917_v5 }
 0xea6   : > { %v6038_v1 = vpop.permute.xlu1 %6037  ;;  %v6053_v27 = vpop.permute.xlu0 %6052 }
 0xea7   : > { %9969 = vst [vmem:[%s12116_s18 + $0x17d8] sm:$0xff] %v8945_v51  ;;  %v7916_v16 = vmul.f32 %v16212_v15, %v6038_v1  ;;  %9972 = vst [vmem:[%s12116_s18 + $0x17f0] sm:$0xff] %v8948_v33  ;;  %v7919_v3 = vmul.f32 %v16642_v49, %v6053_v27 }
 0xea8   : > { %6281 = vbcast.lane.b32.xlu1 %v16597_v39, 312  ;;  %6293 = vbcast.lane.b32.xlu0 %v16597_v39, 336 }
 0xea9   : > { %v8947_v10 = vadd.f32 %v16376_v0, %v7916_v16  ;;  %v8950_v55 = vadd.f32 %v16376_v0, %v7919_v3  ;;  %v16710_v16 = vld [vmem:[#allocation3 + $0xf0] sm:$0xff] }
 0xeaa   : > { %v6046_v54 = vpop.permute.xlu1 %6045  ;;  %v6061_v23 = vpop.permute.xlu0 %6060 }
 0xeab   : > { %9971 = vst [vmem:[%s12116_s18 + $0x17e8] sm:$0xff] %v8947_v10  ;;  %v7918_v15 = vmul.f32 %v16222_v19, %v6046_v54  ;;  %9974 = vst [vmem:[%s12116_s18 + $0x1800] sm:$0xff] %v8950_v55  ;;  %v7921_v2 = vmul.f32 %v16492_v32, %v6061_v23  ;;  %v16714_v10 = vld [vmem:[#allocation3 + $0x38] sm:$0xff] }
 0xeac   : > { %6289 = vbcast.lane.b32.xlu1 %v16597_v39, 328  ;;  %6301 = vbcast.lane.b32.xlu0 %v16597_v39, 352 }
 0xead   : > { %v8949_v36 = vadd.f32 %v16376_v0, %v7918_v15  ;;  %v8952_v14 = vadd.f32 %v16376_v0, %v7921_v2  ;;  %v16722_v2 = vld [vmem:[#allocation3 + $0x78] sm:$0xff] }
 0xeae   : > { %v6057_v59 = vpop.permute.xlu1 %6056  ;;  %v6069_v56 = vpop.permute.xlu0 %6068 }
 0xeaf   : > { %9973 = vst [vmem:[%s12116_s18 + $0x17f8] sm:$0xff] %v8949_v36  ;;  %v7920_v8 = vmul.f32 %v16500_v40, %v6057_v59  ;;  %9976 = vst [vmem:[%s12116_s18 + $0x1810] sm:$0xff] %v8952_v14  ;;  %v7923_v19 = vmul.f32 %v16504_v45, %v6069_v56  ;;  %v16726_v59 = vld [vmem:[#allocation3 + $0x40] sm:$0xff] }
 0xeb0   : > { %6297 = vbcast.lane.b32.xlu1 %v16597_v39, 344  ;;  %6309 = vbcast.lane.b32.xlu0 %v16597_v39, 368 }
 0xeb1   : > { %v8951_v25 = vadd.f32 %v16376_v0, %v7920_v8  ;;  %v8954_v37 = vadd.f32 %v16376_v0, %v7923_v19 }
 0xeb2   : > { %v6065_v20 = vpop.permute.xlu1 %6064  ;;  %v6077_v53 = vpop.permute.xlu0 %6076 }
 0xeb3   : > { %9975 = vst [vmem:[%s12116_s18 + $0x1808] sm:$0xff] %v8951_v25  ;;  %v7922_v52 = vmul.f32 %v16516_v44, %v6065_v20  ;;  %9978 = vst [vmem:[%s12116_s18 + $0x1820] sm:$0xff] %v8954_v37  ;;  %v7925_v35 = vmul.f32 %v16520_v17, %v6077_v53  ;;  %v16734_v37 = vld [vmem:[#allocation3 + $0x58] sm:$0xff]  ;;  %v16738_v53 = vld [vmem:[#allocation3 + $0xe0] sm:$0xff] }
 0xeb4   : > { %6305 = vbcast.lane.b32.xlu1 %v16597_v39, 360  ;;  %6320 = vbcast.lane.b32.xlu0 %v17908_v48, 256 }
 0xeb5   : > { %v8953_v34 = vadd.f32 %v16376_v0, %v7922_v52  ;;  %v8956_v47 = vadd.f32 %v16376_v0, %v7925_v35 }
 0xeb6   : > { %v6073_v7 = vpop.permute.xlu1 %6072  ;;  %v6085_v38 = vpop.permute.xlu0 %6084 }
 0xeb7   : > { %9977 = vst [vmem:[%s12116_s18 + $0x1818] sm:$0xff] %v8953_v34  ;;  %v7924_v46 = vmul.f32 %v16528_v24, %v6073_v7  ;;  %9980 = vst [vmem:[%s12116_s18 + $0x1830] sm:$0xff] %v8956_v47  ;;  %v7927_v18 = vmul.f32 %v16532_v31, %v6085_v38 }
 0xeb8   : > { %6313 = vbcast.lane.b32.xlu1 %v16597_v39, 376  ;;  %6328 = vbcast.lane.b32.xlu0 %v17908_v48, 272 }
 0xeb9   : > { %v8955_v11 = vadd.f32 %v16376_v0, %v7924_v46  ;;  %v8958_v12 = vadd.f32 %v16376_v0, %v7927_v18  ;;  %v16746_v46 = vld [vmem:[#allocation3 + $0xc8] sm:$0xff] }
 0xeba   : > { %v6081_v61 = vpop.permute.xlu1 %6080  ;;  %v6093_v29 = vpop.permute.xlu0 %6092 }
 0xebb   : > { %9979 = vst [vmem:[%s12116_s18 + $0x1828] sm:$0xff] %v8955_v11  ;;  %v7926_v21 = vmul.f32 %v16540_v22, %v6081_v61  ;;  %9982 = vst [vmem:[%s12116_s18 + $0x1840] sm:$0xff] %v8958_v12  ;;  %v7929_v9 = vmul.f32 %v16544_v26, %v6093_v29  ;;  %v16750_v11 = vld [vmem:[#allocation3 + $0x70] sm:$0xff] }
 0xebc   : > { %6324 = vbcast.lane.b32.xlu1 %v17908_v48, 264  ;;  %6336 = vbcast.lane.b32.xlu0 %v17908_v48, 288 }
 0xebd   : > { %v8957_v39 = vadd.f32 %v16376_v0, %v7926_v21  ;;  %v8960_v58 = vadd.f32 %v16376_v0, %v7929_v9  ;;  %v17909_v21 = vld [vmem:[#allocation54_spill] sm:$0xff] }
 0xebe   : > { %v6089_v57 = vpop.permute.xlu1 %6088  ;;  %v6101_v63 = vpop.permute.xlu0 %6100 }
 0xebf   : > { %9981 = vst [vmem:[%s12116_s18 + $0x1838] sm:$0xff] %v8957_v39  ;;  %v7928_v41 = vmul.f32 %v16552_v43, %v6089_v57  ;;  %9984 = vst [vmem:[%s12116_s18 + $0x1850] sm:$0xff] %v8960_v58  ;;  %v7931_v42 = vmul.f32 %v16556_v30, %v6101_v63  ;;  %v16758_v39 = vld [vmem:[#allocation3 + $0x90] sm:$0xff] }
 0xec0   : > { %6332 = vbcast.lane.b32.xlu1 %v17908_v48, 280  ;;  %6344 = vbcast.lane.b32.xlu0 %v17908_v48, 304 }
 0xec1   : > { %v8959_v28 = vadd.f32 %v16376_v0, %v7928_v41  ;;  %v8962_v4 = vadd.f32 %v16376_v0, %v7931_v42  ;;  %v16762_v41 = vld [vmem:[#allocation3 + $0xa8] sm:$0xff] }
 0xec2   : > { %v6097_v60 = vpop.permute.xlu1 %6096  ;;  %v6109_v62 = vpop.permute.xlu0 %6108 }
 0xec3   : > { %9983 = vst [vmem:[%s12116_s18 + $0x1848] sm:$0xff] %v8959_v28  ;;  %v7930_v6 = vmul.f32 %v16698_v50, %v6097_v60  ;;  %9986 = vst [vmem:[%s12116_s18 + $0x1860] sm:$0xff] %v8962_v4  ;;  %v7933_v5 = vmul.f32 %v16702_v13, %v6109_v62  ;;  %v16770_v60 = vld [vmem:[#allocation3 + $0xc0] sm:$0xff] }
 0xec4   : > { %6340 = vbcast.lane.b32.xlu1 %v17908_v48, 296  ;;  %6352 = vbcast.lane.b32.xlu0 %v17908_v48, 320 }
 0xec5   : > { %v8961_v51 = vadd.f32 %v16376_v0, %v7930_v6  ;;  %v8964_v33 = vadd.f32 %v16376_v0, %v7933_v5  ;;  %v16774_v5 = vld [vmem:[#allocation3 + $0x10] sm:$0xff] }
 0xec6   : > { %v6105_v1 = vpop.permute.xlu1 %6104  ;;  %v6120_v3 = vpop.permute.xlu0 %6119 }
 0xec7   : > { %9985 = vst [vmem:[%s12116_s18 + $0x1858] sm:$0xff] %v8961_v51  ;;  %v7932_v27 = vmul.f32 %v16710_v16, %v6105_v1  ;;  %9988 = vst [vmem:[%s12116_s18 + $0x1870] sm:$0xff] %v8964_v33  ;;  %v7935_v55 = vmul.f32 %v16714_v10, %v6120_v3 }
 0xec8   : > { %6348 = vbcast.lane.b32.xlu1 %v17908_v48, 312  ;;  %6360 = vbcast.lane.b32.xlu0 %v17908_v48, 336 }
 0xec9   : > { %v8963_v54 = vadd.f32 %v16376_v0, %v7932_v27  ;;  %v8966_v15 = vadd.f32 %v16376_v0, %v7935_v55  ;;  %v16782_v27 = vld [vmem:[#allocation3 + $0xd0] sm:$0xff] }
 0xeca   : > { %v6113_v23 = vpop.permute.xlu1 %6112  ;;  %v6128_v14 = vpop.permute.xlu0 %6127 }
 0xecb   : > { %9987 = vst [vmem:[%s12116_s18 + $0x1868] sm:$0xff] %v8963_v54  ;;  %v7934_v36 = vmul.f32 %v16722_v2, %v6113_v23  ;;  %9990 = vst [vmem:[%s12116_s18 + $0x1880] sm:$0xff] %v8966_v15  ;;  %v7937_v8 = vmul.f32 %v16726_v59, %v6128_v14  ;;  %v16786_v54 = vld [vmem:[#allocation3 + $0xa0] sm:$0xff] }
 0xecc   : > { %6356 = vbcast.lane.b32.xlu1 %v17908_v48, 328  ;;  %6368 = vbcast.lane.b32.xlu0 %v17908_v48, 352 }
 0xecd   : > { %v8965_v56 = vadd.f32 %v16376_v0, %v7934_v36  ;;  %v8968_v19 = vadd.f32 %v16376_v0, %v7937_v8  ;;  %v16794_v8 = vld [vmem:[#allocation3 + $0x28] sm:$0xff] }
 0xece   : > { %v6124_v25 = vpop.permute.xlu1 %6123  ;;  %v6136_v52 = vpop.permute.xlu0 %6135 }
 0xecf   : > { %9989 = vst [vmem:[%s12116_s18 + $0x1878] sm:$0xff] %v8965_v56  ;;  %v7936_v20 = vmul.f32 %v16734_v37, %v6124_v25  ;;  %9992 = vst [vmem:[%s12116_s18 + $0x1890] sm:$0xff] %v8968_v19  ;;  %v7939_v35 = vmul.f32 %v16738_v53, %v6136_v52  ;;  %v16798_v25 = vld [vmem:[#allocation3 + $0x20] sm:$0xff] }
 0xed0   : > { %6364 = vbcast.lane.b32.xlu1 %v17908_v48, 344  ;;  %6376 = vbcast.lane.b32.xlu0 %v17908_v48, 368 }
 0xed1   : > { %v8967_v34 = vadd.f32 %v16376_v0, %v7936_v20  ;;  %v8970_v47 = vadd.f32 %v16376_v0, %v7939_v35 }
 0xed2   : > { %v6132_v7 = vpop.permute.xlu1 %6131  ;;  %v6144_v18 = vpop.permute.xlu0 %6143 }
 0xed3   : > { %9991 = vst [vmem:[%s12116_s18 + $0x1888] sm:$0xff] %v8967_v34  ;;  %v7938_v38 = vmul.f32 %v16746_v46, %v6132_v7  ;;  %9994 = vst [vmem:[%s12116_s18 + $0x18a0] sm:$0xff] %v8970_v47  ;;  %v7941_v12 = vmul.f32 %v16750_v11, %v6144_v18  ;;  %v16806_v47 = vld [vmem:[#allocation3 + $0xf8] sm:$0xff] }
 0xed4   : > { %6372 = vbcast.lane.b32.xlu1 %v17908_v48, 360  ;;  %6387 = vbcast.lane.b32.xlu0 %v17909_v21, 256 }
 0xed5   : > { %v8969_v61 = vadd.f32 %v16376_v0, %v7938_v38  ;;  %v8972_v29 = vadd.f32 %v16376_v0, %v7941_v12 }
 0xed6   : > { %v6140_v9 = vpop.permute.xlu1 %6139  ;;  %v6152_v57 = vpop.permute.xlu0 %6151 }
 0xed7   : > { %9993 = vst [vmem:[%s12116_s18 + $0x1898] sm:$0xff] %v8969_v61  ;;  %v7940_v58 = vmul.f32 %v16758_v39, %v6140_v9  ;;  %9996 = vst [vmem:[%s12116_s18 + $0x18b0] sm:$0xff] %v8972_v29  ;;  %v7943_v63 = vmul.f32 %v16762_v41, %v6152_v57  ;;  %v16816_v9 = vld [vmem:[#allocation3 + $0x98] sm:$0xff] }
 0xed8   : > { %6380 = vbcast.lane.b32.xlu1 %v17908_v48, 376  ;;  %6395 = vbcast.lane.b32.xlu0 %v17909_v21, 272 }
 0xed9   : > { %v8971_v42 = vadd.f32 %v16376_v0, %v7940_v58  ;;  %v8974_v28 = vadd.f32 %v16376_v0, %v7943_v63 }
 0xeda   : > { %v6148_v4 = vpop.permute.xlu1 %6147  ;;  %v6160_v62 = vpop.permute.xlu0 %6159 }
 0xedb   : > { %9995 = vst [vmem:[%s12116_s18 + $0x18a8] sm:$0xff] %v8971_v42  ;;  %v7942_v6 = vmul.f32 %v16770_v60, %v6148_v4  ;;  %9998 = vst [vmem:[%s12116_s18 + $0x18c0] sm:$0xff] %v8974_v28  ;;  %v7945_v48 = vmul.f32 %v16774_v5, %v6160_v62 }
 0xedc   : > { %6391 = vbcast.lane.b32.xlu1 %v17909_v21, 264  ;;  %6403 = vbcast.lane.b32.xlu0 %v17909_v21, 288 }
 0xedd   : > { %v8973_v51 = vadd.f32 %v16376_v0, %v7942_v6  ;;  %v8976_v33 = vadd.f32 %v16376_v0, %v7945_v48 }
 0xede   : > { %v6156_v1 = vpop.permute.xlu1 %6155  ;;  %v6168_v55 = vpop.permute.xlu0 %6167 }
 0xedf   : > { %9997 = vst [vmem:[%s12116_s18 + $0x18b8] sm:$0xff] %v8973_v51  ;;  %v7944_v3 = vmul.f32 %v16782_v27, %v6156_v1  ;;  %10000 = vst [vmem:[%s12116_s18 + $0x18d0] sm:$0xff] %v8976_v33  ;;  %v7947_v15 = vmul.f32 %v16786_v54, %v6168_v55 }
 0xee0   : > { %6399 = vbcast.lane.b32.xlu1 %v17909_v21, 280  ;;  %6411 = vbcast.lane.b32.xlu0 %v17909_v21, 304 }
 0xee1   : > { %v8975_v23 = vadd.f32 %v16376_v0, %v7944_v3  ;;  %v8978_v36 = vadd.f32 %v16376_v0, %v7947_v15 }
 0xee2   : > { %v6164_v14 = vpop.permute.xlu1 %6163  ;;  %v6176_v19 = vpop.permute.xlu0 %6175 }
 0xee3   : > { %9999 = vst [vmem:[%s12116_s18 + $0x18c8] sm:$0xff] %v8975_v23  ;;  %v7946_v56 = vmul.f32 %v16794_v8, %v6164_v14  ;;  %10002 = vst [vmem:[%s12116_s18 + $0x18e0] sm:$0xff] %v8978_v36  ;;  %v7949_v20 = vmul.f32 %v16798_v25, %v6176_v19  ;;  %v17910_v36 = vld [vmem:[#allocation55_spill] sm:$0xff] }
 0xee4   : > { %6407 = vbcast.lane.b32.xlu1 %v17909_v21, 296  ;;  %6419 = vbcast.lane.b32.xlu0 %v17909_v21, 320 }
 0xee5   : > { %v8977_v52 = vadd.f32 %v16376_v0, %v7946_v56  ;;  %v8980_v35 = vadd.f32 %v16376_v0, %v7949_v20 }
 0xee6   : > { %v6172_v34 = vpop.permute.xlu1 %6171  ;;  %v6187_v38 = vpop.permute.xlu0 %6186 }
 0xee7   : > { %10001 = vst [vmem:[%s12116_s18 + $0x18d8] sm:$0xff] %v8977_v52  ;;  %v7948_v7 = vmul.f32 %v16806_v47, %v6172_v34  ;;  %10004 = vst [vmem:[%s12116_s18 + $0x18f0] sm:$0xff] %v8980_v35  ;;  %v7951_v18 = vmul.f32 %v16642_v49, %v6187_v38 }
 0xee8   : > { %6415 = vbcast.lane.b32.xlu1 %v17909_v21, 312  ;;  %6427 = vbcast.lane.b32.xlu0 %v17909_v21, 336 }
 0xee9   : > { %v8979_v12 = vadd.f32 %v16376_v0, %v7948_v7  ;;  %v8982_v61 = vadd.f32 %v16376_v0, %v7951_v18 }
 0xeea   : > { %v6180_v29 = vpop.permute.xlu1 %6179  ;;  %v6195_v57 = vpop.permute.xlu0 %6194 }
 0xeeb   : > { %10003 = vst [vmem:[%s12116_s18 + $0x18e8] sm:$0xff] %v8979_v12  ;;  %v7950_v58 = vmul.f32 %v16816_v9, %v6180_v29  ;;  %10006 = vst [vmem:[%s12116_s18 + $0x1900] sm:$0xff] %v8982_v61  ;;  %v7953_v63 = vmul.f32 %v16492_v32, %v6195_v57 }
 0xeec   : > { %6423 = vbcast.lane.b32.xlu1 %v17909_v21, 328  ;;  %6435 = vbcast.lane.b32.xlu0 %v17909_v21, 352 }
 0xeed   : > { %v8981_v42 = vadd.f32 %v16376_v0, %v7950_v58  ;;  %v8984_v28 = vadd.f32 %v16376_v0, %v7953_v63 }
 0xeee   : > { %v6191_v4 = vpop.permute.xlu1 %6190  ;;  %v6203_v62 = vpop.permute.xlu0 %6202 }
 0xeef   : > { %10005 = vst [vmem:[%s12116_s18 + $0x18f8] sm:$0xff] %v8981_v42  ;;  %v7952_v6 = vmul.f32 %v16500_v40, %v6191_v4  ;;  %10008 = vst [vmem:[%s12116_s18 + $0x1910] sm:$0xff] %v8984_v28  ;;  %v7955_v48 = vmul.f32 %v16504_v45, %v6203_v62  ;;  %v16862_v42 = vld [vmem:[#allocation19] ss:$0 sm:$0xff] }
 0xef0   : > { %6431 = vbcast.lane.b32.xlu1 %v17909_v21, 344  ;;  %6443 = vbcast.lane.b32.xlu0 %v17909_v21, 368 }
 0xef1   : > { %v8983_v51 = vadd.f32 %v16376_v0, %v7952_v6  ;;  %v8986_v33 = vadd.f32 %v16376_v0, %v7955_v48 }
 0xef2   : > { %v6199_v1 = vpop.permute.xlu1 %6198  ;;  %v6211_v55 = vpop.permute.xlu0 %6210 }
 0xef3   : > { %10007 = vst [vmem:[%s12116_s18 + $0x1908] sm:$0xff] %v8983_v51  ;;  %v7954_v3 = vmul.f32 %v16516_v44, %v6199_v1  ;;  %10010 = vst [vmem:[%s12116_s18 + $0x1920] sm:$0xff] %v8986_v33  ;;  %v7957_v15 = vmul.f32 %v16520_v17, %v6211_v55 }
 0xef4   : > { %6439 = vbcast.lane.b32.xlu1 %v17909_v21, 360  ;;  %6454 = vbcast.lane.b32.xlu0 %v17910_v36, 256 }
 0xef5   : > { %v8985_v23 = vadd.f32 %v16376_v0, %v7954_v3  ;;  %v8988_v14 = vadd.f32 %v16376_v0, %v7957_v15 }
 0xef6   : > { %v6207_v56 = vpop.permute.xlu1 %6206  ;;  %v6219_v20 = vpop.permute.xlu0 %6218 }
 0xef7   : > { %10009 = vst [vmem:[%s12116_s18 + $0x1918] sm:$0xff] %v8985_v23  ;;  %v7956_v19 = vmul.f32 %v16528_v24, %v6207_v56  ;;  %10012 = vst [vmem:[%s12116_s18 + $0x1930] sm:$0xff] %v8988_v14  ;;  %v7959_v52 = vmul.f32 %v16532_v31, %v6219_v20 }
 0xef8   : > { %6447 = vbcast.lane.b32.xlu1 %v17909_v21, 376  ;;  %6462 = vbcast.lane.b32.xlu0 %v17910_v36, 272 }
 0xef9   : > { %v8987_v35 = vadd.f32 %v16376_v0, %v7956_v19  ;;  %v8990_v34 = vadd.f32 %v16376_v0, %v7959_v52 }
 0xefa   : > { %v6215_v7 = vpop.permute.xlu1 %6214  ;;  %v6227_v18 = vpop.permute.xlu0 %6226 }
 0xefb   : > { %10011 = vst [vmem:[%s12116_s18 + $0x1928] sm:$0xff] %v8987_v35  ;;  %v7958_v38 = vmul.f32 %v16540_v22, %v6215_v7  ;;  %10014 = vst [vmem:[%s12116_s18 + $0x1940] sm:$0xff] %v8990_v34  ;;  %v7961_v12 = vmul.f32 %v16544_v26, %v6227_v18 }
 0xefc   : > { %6458 = vbcast.lane.b32.xlu1 %v17910_v36, 264  ;;  %6470 = vbcast.lane.b32.xlu0 %v17910_v36, 288 }
 0xefd   : > { %v8989_v21 = vadd.f32 %v16376_v0, %v7958_v38  ;;  %v8992_v61 = vadd.f32 %v16376_v0, %v7961_v12 }
 0xefe   : > { %v6223_v29 = vpop.permute.xlu1 %6222  ;;  %v6235_v57 = vpop.permute.xlu0 %6234 }
 0xeff   : > { %10013 = vst [vmem:[%s12116_s18 + $0x1938] sm:$0xff] %v8989_v21  ;;  %v7960_v58 = vmul.f32 %v16552_v43, %v6223_v29  ;;  %10016 = vst [vmem:[%s12116_s18 + $0x1950] sm:$0xff] %v8992_v61  ;;  %v7963_v63 = vmul.f32 %v16556_v30, %v6235_v57 }
 0xf00   : > { %6466 = vbcast.lane.b32.xlu1 %v17910_v36, 280  ;;  %6478 = vbcast.lane.b32.xlu0 %v17910_v36, 304 }
 0xf01   : > { %v8991_v28 = vadd.f32 %v16862_v42, %v7960_v58  ;;  %v8994_v0 = vadd.f32 %v16862_v42, %v7963_v63 }
 0xf02   : > { %v6231_v4 = vpop.permute.xlu1 %6230  ;;  %v6243_v62 = vpop.permute.xlu0 %6242 }
 0xf03   : > { %10015 = vst [vmem:[%s12116_s18 + $0x1948] sm:$0xff] %v8991_v28  ;;  %v7962_v6 = vmul.f32 %v16698_v50, %v6231_v4  ;;  %10018 = vst [vmem:[%s12116_s18 + $0x1960] sm:$0xff] %v8994_v0  ;;  %v7965_v48 = vmul.f32 %v16702_v13, %v6243_v62  ;;  %v17911_v0 = vld [vmem:[#allocation56_spill] sm:$0xff] }
 0xf04   : > { %6474 = vbcast.lane.b32.xlu1 %v17910_v36, 296  ;;  %6486 = vbcast.lane.b32.xlu0 %v17910_v36, 320 }
 0xf05   : > { %v8993_v51 = vadd.f32 %v16862_v42, %v7962_v6  ;;  %v8996_v33 = vadd.f32 %v16862_v42, %v7965_v48 }
 0xf06   : > { %v6239_v1 = vpop.permute.xlu1 %6238  ;;  %v6254_v55 = vpop.permute.xlu0 %6253 }
 0xf07   : > { %10017 = vst [vmem:[%s12116_s18 + $0x1958] sm:$0xff] %v8993_v51  ;;  %v7964_v3 = vmul.f32 %v16710_v16, %v6239_v1  ;;  %10020 = vst [vmem:[%s12116_s18 + $0x1970] sm:$0xff] %v8996_v33  ;;  %v7967_v15 = vmul.f32 %v16714_v10, %v6254_v55 }
 0xf08   : > { %6482 = vbcast.lane.b32.xlu1 %v17910_v36, 312  ;;  %6494 = vbcast.lane.b32.xlu0 %v17910_v36, 336 }
 0xf09   : > { %v8995_v23 = vadd.f32 %v16862_v42, %v7964_v3  ;;  %v8998_v14 = vadd.f32 %v16862_v42, %v7967_v15 }
 0xf0a   : > { %v6247_v56 = vpop.permute.xlu1 %6246  ;;  %v6262_v20 = vpop.permute.xlu0 %6261 }
 0xf0b   : > { %10019 = vst [vmem:[%s12116_s18 + $0x1968] sm:$0xff] %v8995_v23  ;;  %v7966_v19 = vmul.f32 %v16722_v2, %v6247_v56  ;;  %10022 = vst [vmem:[%s12116_s18 + $0x1980] sm:$0xff] %v8998_v14  ;;  %v7969_v52 = vmul.f32 %v16726_v59, %v6262_v20 }
 0xf0c   : > { %6490 = vbcast.lane.b32.xlu1 %v17910_v36, 328  ;;  %6502 = vbcast.lane.b32.xlu0 %v17910_v36, 352 }
 0xf0d   : > { %v8997_v35 = vadd.f32 %v16862_v42, %v7966_v19  ;;  %v9000_v34 = vadd.f32 %v16862_v42, %v7969_v52 }
 0xf0e   : > { %v6258_v7 = vpop.permute.xlu1 %6257  ;;  %v6270_v18 = vpop.permute.xlu0 %6269 }
 0xf0f   : > { %10021 = vst [vmem:[%s12116_s18 + $0x1978] sm:$0xff] %v8997_v35  ;;  %v7968_v38 = vmul.f32 %v16734_v37, %v6258_v7  ;;  %10024 = vst [vmem:[%s12116_s18 + $0x1990] sm:$0xff] %v9000_v34  ;;  %v7971_v12 = vmul.f32 %v16738_v53, %v6270_v18 }
 0xf10   : > { %6498 = vbcast.lane.b32.xlu1 %v17910_v36, 344  ;;  %6510 = vbcast.lane.b32.xlu0 %v17910_v36, 368 }
 0xf11   : > { %v8999_v21 = vadd.f32 %v16862_v42, %v7968_v38  ;;  %v9002_v61 = vadd.f32 %v16862_v42, %v7971_v12 }
 0xf12   : > { %v6266_v29 = vpop.permute.xlu1 %6265  ;;  %v6278_v57 = vpop.permute.xlu0 %6277 }
 0xf13   : > { %10023 = vst [vmem:[%s12116_s18 + $0x1988] sm:$0xff] %v8999_v21  ;;  %v7970_v58 = vmul.f32 %v16746_v46, %v6266_v29  ;;  %10026 = vst [vmem:[%s12116_s18 + $0x19a0] sm:$0xff] %v9002_v61  ;;  %v7973_v63 = vmul.f32 %v16750_v11, %v6278_v57 }
 0xf14   : > { %6506 = vbcast.lane.b32.xlu1 %v17910_v36, 360  ;;  %6521 = vbcast.lane.b32.xlu0 %v17911_v0, 256 }
 0xf15   : > { %v9001_v28 = vadd.f32 %v16862_v42, %v7970_v58  ;;  %v9004_v4 = vadd.f32 %v16862_v42, %v7973_v63 }
 0xf16   : > { %v6274_v6 = vpop.permute.xlu1 %6273  ;;  %v6286_v48 = vpop.permute.xlu0 %6285 }
 0xf17   : > { %10025 = vst [vmem:[%s12116_s18 + $0x1998] sm:$0xff] %v9001_v28  ;;  %v7972_v62 = vmul.f32 %v16758_v39, %v6274_v6  ;;  %10028 = vst [vmem:[%s12116_s18 + $0x19b0] sm:$0xff] %v9004_v4  ;;  %v7975_v51 = vmul.f32 %v16762_v41, %v6286_v48 }
 0xf18   : > { %6514 = vbcast.lane.b32.xlu1 %v17910_v36, 376  ;;  %6529 = vbcast.lane.b32.xlu0 %v17911_v0, 272 }
 0xf19   : > { %v9003_v33 = vadd.f32 %v16862_v42, %v7972_v62  ;;  %v9006_v1 = vadd.f32 %v16862_v42, %v7975_v51 }
 0xf1a   : > { %v6282_v3 = vpop.permute.xlu1 %6281  ;;  %v6294_v15 = vpop.permute.xlu0 %6293 }
 0xf1b   : > { %10027 = vst [vmem:[%s12116_s18 + $0x19a8] sm:$0xff] %v9003_v33  ;;  %v7974_v55 = vmul.f32 %v16770_v60, %v6282_v3  ;;  %10030 = vst [vmem:[%s12116_s18 + $0x19c0] sm:$0xff] %v9006_v1  ;;  %v7977_v23 = vmul.f32 %v16774_v5, %v6294_v15 }
 0xf1c   : > { %6525 = vbcast.lane.b32.xlu1 %v17911_v0, 264  ;;  %6537 = vbcast.lane.b32.xlu0 %v17911_v0, 288 }
 0xf1d   : > { %v9005_v36 = vadd.f32 %v16862_v42, %v7974_v55  ;;  %v9008_v14 = vadd.f32 %v16862_v42, %v7977_v23 }
 0xf1e   : > { %v6290_v56 = vpop.permute.xlu1 %6289  ;;  %v6302_v20 = vpop.permute.xlu0 %6301 }
 0xf1f   : > { %10029 = vst [vmem:[%s12116_s18 + $0x19b8] sm:$0xff] %v9005_v36  ;;  %v7976_v19 = vmul.f32 %v16782_v27, %v6290_v56  ;;  %10032 = vst [vmem:[%s12116_s18 + $0x19d0] sm:$0xff] %v9008_v14  ;;  %v7979_v52 = vmul.f32 %v16786_v54, %v6302_v20  ;;  %v17912_v20 = vld [vmem:[#allocation57_spill] sm:$0xff] }
 0xf20   : > { %6533 = vbcast.lane.b32.xlu1 %v17911_v0, 280  ;;  %6545 = vbcast.lane.b32.xlu0 %v17911_v0, 304 }
 0xf21   : > { %v9007_v35 = vadd.f32 %v16862_v42, %v7976_v19  ;;  %v9010_v34 = vadd.f32 %v16862_v42, %v7979_v52 }
 0xf22   : > { %v6298_v7 = vpop.permute.xlu1 %6297  ;;  %v6310_v18 = vpop.permute.xlu0 %6309 }
 0xf23   : > { %10031 = vst [vmem:[%s12116_s18 + $0x19c8] sm:$0xff] %v9007_v35  ;;  %v7978_v38 = vmul.f32 %v16794_v8, %v6298_v7  ;;  %10034 = vst [vmem:[%s12116_s18 + $0x19e0] sm:$0xff] %v9010_v34  ;;  %v7981_v12 = vmul.f32 %v16798_v25, %v6310_v18 }
 0xf24   : > { %6541 = vbcast.lane.b32.xlu1 %v17911_v0, 296  ;;  %6553 = vbcast.lane.b32.xlu0 %v17911_v0, 320 }
 0xf25   : > { %v9009_v21 = vadd.f32 %v16862_v42, %v7978_v38  ;;  %v9012_v61 = vadd.f32 %v16862_v42, %v7981_v12 }
 0xf26   : > { %v6306_v29 = vpop.permute.xlu1 %6305  ;;  %v6321_v57 = vpop.permute.xlu0 %6320 }
 0xf27   : > { %10033 = vst [vmem:[%s12116_s18 + $0x19d8] sm:$0xff] %v9009_v21  ;;  %v7980_v58 = vmul.f32 %v16806_v47, %v6306_v29  ;;  %10036 = vst [vmem:[%s12116_s18 + $0x19f0] sm:$0xff] %v9012_v61  ;;  %v7983_v63 = vmul.f32 %v16642_v49, %v6321_v57 }
 0xf28   : > { %6549 = vbcast.lane.b32.xlu1 %v17911_v0, 312  ;;  %6561 = vbcast.lane.b32.xlu0 %v17911_v0, 336 }
 0xf29   : > { %v9011_v28 = vadd.f32 %v16862_v42, %v7980_v58  ;;  %v9014_v4 = vadd.f32 %v16862_v42, %v7983_v63 }
 0xf2a   : > { %v6314_v6 = vpop.permute.xlu1 %6313  ;;  %v6329_v48 = vpop.permute.xlu0 %6328 }
 0xf2b   : > { %10035 = vst [vmem:[%s12116_s18 + $0x19e8] sm:$0xff] %v9011_v28  ;;  %v7982_v62 = vmul.f32 %v16816_v9, %v6314_v6  ;;  %10038 = vst [vmem:[%s12116_s18 + $0x1a00] sm:$0xff] %v9014_v4  ;;  %v7985_v51 = vmul.f32 %v16492_v32, %v6329_v48 }
 0xf2c   : > { %6557 = vbcast.lane.b32.xlu1 %v17911_v0, 328  ;;  %6569 = vbcast.lane.b32.xlu0 %v17911_v0, 352 }
 0xf2d   : > { %v9013_v33 = vadd.f32 %v16862_v42, %v7982_v62  ;;  %v9016_v1 = vadd.f32 %v16862_v42, %v7985_v51 }
 0xf2e   : > { %v6325_v3 = vpop.permute.xlu1 %6324  ;;  %v6337_v15 = vpop.permute.xlu0 %6336 }
 0xf2f   : > { %10037 = vst [vmem:[%s12116_s18 + $0x19f8] sm:$0xff] %v9013_v33  ;;  %v7984_v55 = vmul.f32 %v16500_v40, %v6325_v3  ;;  %10040 = vst [vmem:[%s12116_s18 + $0x1a10] sm:$0xff] %v9016_v1  ;;  %v7987_v23 = vmul.f32 %v16504_v45, %v6337_v15 }
 0xf30   : > { %6565 = vbcast.lane.b32.xlu1 %v17911_v0, 344  ;;  %6577 = vbcast.lane.b32.xlu0 %v17911_v0, 368 }
 0xf31   : > { %v9015_v32 = vadd.f32 %v16862_v42, %v7984_v55  ;;  %v9018_v36 = vadd.f32 %v16862_v42, %v7987_v23 }
 0xf32   : > { %v6333_v14 = vpop.permute.xlu1 %6332  ;;  %v6345_v19 = vpop.permute.xlu0 %6344 }
 0xf33   : > { %10039 = vst [vmem:[%s12116_s18 + $0x1a08] sm:$0xff] %v9015_v32  ;;  %v7986_v56 = vmul.f32 %v16516_v44, %v6333_v14  ;;  %10042 = vst [vmem:[%s12116_s18 + $0x1a20] sm:$0xff] %v9018_v36  ;;  %v7989_v40 = vmul.f32 %v16520_v17, %v6345_v19 }
 0xf34   : > { %6573 = vbcast.lane.b32.xlu1 %v17911_v0, 360  ;;  %6588 = vbcast.lane.b32.xlu0 %v17912_v20, 256 }
 0xf35   : > { %v9017_v45 = vadd.f32 %v16862_v42, %v7986_v56  ;;  %v9020_v52 = vadd.f32 %v16862_v42, %v7989_v40 }
 0xf36   : > { %v6341_v35 = vpop.permute.xlu1 %6340  ;;  %v6353_v7 = vpop.permute.xlu0 %6352 }
 0xf37   : > { %10041 = vst [vmem:[%s12116_s18 + $0x1a18] sm:$0xff] %v9017_v45  ;;  %v7988_v34 = vmul.f32 %v16528_v24, %v6341_v35  ;;  %10044 = vst [vmem:[%s12116_s18 + $0x1a30] sm:$0xff] %v9020_v52  ;;  %v7991_v44 = vmul.f32 %v16532_v31, %v6353_v7 }
 0xf38   : > { %6581 = vbcast.lane.b32.xlu1 %v17911_v0, 376  ;;  %6596 = vbcast.lane.b32.xlu0 %v17912_v20, 272 }
 0xf39   : > { %v9019_v17 = vadd.f32 %v16862_v42, %v7988_v34  ;;  %v9022_v38 = vadd.f32 %v16862_v42, %v7991_v44 }
 0xf3a   : > { %v6349_v18 = vpop.permute.xlu1 %6348  ;;  %v6361_v21 = vpop.permute.xlu0 %6360 }
 0xf3b   : > { %10043 = vst [vmem:[%s12116_s18 + $0x1a28] sm:$0xff] %v9019_v17  ;;  %v7990_v12 = vmul.f32 %v16540_v22, %v6349_v18  ;;  %10046 = vst [vmem:[%s12116_s18 + $0x1a40] sm:$0xff] %v9022_v38  ;;  %v7993_v24 = vmul.f32 %v16544_v26, %v6361_v21  ;;  %v17913_v18 = vld [vmem:[#allocation58_spill] sm:$0xff] }
 0xf3c   : > { %6592 = vbcast.lane.b32.xlu1 %v17912_v20, 264  ;;  %6604 = vbcast.lane.b32.xlu0 %v17912_v20, 288 }
 0xf3d   : > { %v9021_v31 = vadd.f32 %v16862_v42, %v7990_v12  ;;  %v9024_v0 = vadd.f32 %v16862_v42, %v7993_v24 }
 0xf3e   : > { %v6357_v61 = vpop.permute.xlu1 %6356  ;;  %v6369_v58 = vpop.permute.xlu0 %6368 }
 0xf3f   : > { %10045 = vst [vmem:[%s12116_s18 + $0x1a38] sm:$0xff] %v9021_v31  ;;  %v7992_v29 = vmul.f32 %v16552_v43, %v6357_v61  ;;  %10048 = vst [vmem:[%s12116_s18 + $0x1a50] sm:$0xff] %v9024_v0  ;;  %v7995_v22 = vmul.f32 %v16556_v30, %v6369_v58 }
 0xf40   : > { %6600 = vbcast.lane.b32.xlu1 %v17912_v20, 280  ;;  %6612 = vbcast.lane.b32.xlu0 %v17912_v20, 304 }
 0xf41   : > { %v9023_v26 = vadd.f32 %v16862_v42, %v7992_v29  ;;  %v9026_v57 = vadd.f32 %v16862_v42, %v7995_v22 }
 0xf42   : > { %v6365_v63 = vpop.permute.xlu1 %6364  ;;  %v6377_v4 = vpop.permute.xlu0 %6376 }
 0xf43   : > { %10047 = vst [vmem:[%s12116_s18 + $0x1a48] sm:$0xff] %v9023_v26  ;;  %v7994_v28 = vmul.f32 %v16698_v50, %v6365_v63  ;;  %10050 = vst [vmem:[%s12116_s18 + $0x1a60] sm:$0xff] %v9026_v57  ;;  %v7997_v43 = vmul.f32 %v16702_v13, %v6377_v4 }
 0xf44   : > { %6608 = vbcast.lane.b32.xlu1 %v17912_v20, 296  ;;  %6620 = vbcast.lane.b32.xlu0 %v17912_v20, 320 }
 0xf45   : > { %v9025_v30 = vadd.f32 %v16862_v42, %v7994_v28  ;;  %v9028_v6 = vadd.f32 %v16862_v42, %v7997_v43 }
 0xf46   : > { %v6373_v62 = vpop.permute.xlu1 %6372  ;;  %v6388_v51 = vpop.permute.xlu0 %6387 }
 0xf47   : > { %10049 = vst [vmem:[%s12116_s18 + $0x1a58] sm:$0xff] %v9025_v30  ;;  %v7996_v48 = vmul.f32 %v16710_v16, %v6373_v62  ;;  %10052 = vst [vmem:[%s12116_s18 + $0x1a70] sm:$0xff] %v9028_v6  ;;  %v7999_v33 = vmul.f32 %v16714_v10, %v6388_v51 }
 0xf48   : > { %6616 = vbcast.lane.b32.xlu1 %v17912_v20, 312  ;;  %6628 = vbcast.lane.b32.xlu0 %v17912_v20, 336 }
 0xf49   : > { %v9027_v1 = vadd.f32 %v16862_v42, %v7996_v48  ;;  %v9030_v3 = vadd.f32 %v16862_v42, %v7999_v33 }
 0xf4a   : > { %v6381_v55 = vpop.permute.xlu1 %6380  ;;  %v6396_v23 = vpop.permute.xlu0 %6395 }
 0xf4b   : > { %10051 = vst [vmem:[%s12116_s18 + $0x1a68] sm:$0xff] %v9027_v1  ;;  %v7998_v15 = vmul.f32 %v16722_v2, %v6381_v55  ;;  %10054 = vst [vmem:[%s12116_s18 + $0x1a80] sm:$0xff] %v9030_v3  ;;  %v8001_v32 = vmul.f32 %v16726_v59, %v6396_v23 }
 0xf4c   : > { %6624 = vbcast.lane.b32.xlu1 %v17912_v20, 328  ;;  %6636 = vbcast.lane.b32.xlu0 %v17912_v20, 352 }
 0xf4d   : > { %v9029_v36 = vadd.f32 %v16862_v42, %v7998_v15  ;;  %v9032_v14 = vadd.f32 %v16862_v42, %v8001_v32 }
 0xf4e   : > { %v6392_v56 = vpop.permute.xlu1 %6391  ;;  %v6404_v40 = vpop.permute.xlu0 %6403 }
 0xf4f   : > { %10053 = vst [vmem:[%s12116_s18 + $0x1a78] sm:$0xff] %v9029_v36  ;;  %v8000_v19 = vmul.f32 %v16734_v37, %v6392_v56  ;;  %10056 = vst [vmem:[%s12116_s18 + $0x1a90] sm:$0xff] %v9032_v14  ;;  %v8003_v45 = vmul.f32 %v16738_v53, %v6404_v40 }
 0xf50   : > { %6632 = vbcast.lane.b32.xlu1 %v17912_v20, 344  ;;  %6644 = vbcast.lane.b32.xlu0 %v17912_v20, 368 }
 0xf51   : > { %v9031_v52 = vadd.f32 %v16862_v42, %v8000_v19  ;;  %v9034_v35 = vadd.f32 %v16862_v42, %v8003_v45 }
 0xf52   : > { %v6400_v34 = vpop.permute.xlu1 %6399  ;;  %v6412_v44 = vpop.permute.xlu0 %6411 }
 0xf53   : > { %10055 = vst [vmem:[%s12116_s18 + $0x1a88] sm:$0xff] %v9031_v52  ;;  %v8002_v7 = vmul.f32 %v16746_v46, %v6400_v34  ;;  %10058 = vst [vmem:[%s12116_s18 + $0x1aa0] sm:$0xff] %v9034_v35  ;;  %v8005_v17 = vmul.f32 %v16750_v11, %v6412_v44  ;;  %v17078_v52 = vld [vmem:[#allocation3 + $0xd8] sm:$0xff]  ;;  %v17086_v44 = vld [vmem:[#allocation3] sm:$0xff] }
 0xf54   : > { %6640 = vbcast.lane.b32.xlu1 %v17912_v20, 360  ;;  %6655 = vbcast.lane.b32.xlu0 %v17913_v18, 256 }
 0xf55   : > { %v9033_v38 = vadd.f32 %v16862_v42, %v8002_v7  ;;  %v9036_v12 = vadd.f32 %v16862_v42, %v8005_v17 }
 0xf56   : > { %v6408_v21 = vpop.permute.xlu1 %6407  ;;  %v6420_v31 = vpop.permute.xlu0 %6419 }
 0xf57   : > { %10057 = vst [vmem:[%s12116_s18 + $0x1a98] sm:$0xff] %v9033_v38  ;;  %v8004_v24 = vmul.f32 %v16758_v39, %v6408_v21  ;;  %10060 = vst [vmem:[%s12116_s18 + $0x1ab0] sm:$0xff] %v9036_v12  ;;  %v8007_v0 = vmul.f32 %v16762_v41, %v6420_v31  ;;  %v17090_v12 = vld [vmem:[#allocation3 + $0x50] sm:$0xff] }
 0xf58   : > { %6648 = vbcast.lane.b32.xlu1 %v17912_v20, 376  ;;  %6663 = vbcast.lane.b32.xlu0 %v17913_v18, 272 }
 0xf59   : > { %v9035_v61 = vadd.f32 %v16862_v42, %v8004_v24  ;;  %v9038_v29 = vadd.f32 %v16862_v42, %v8007_v0 }
 0xf5a   : > { %v6416_v58 = vpop.permute.xlu1 %6415  ;;  %v6428_v26 = vpop.permute.xlu0 %6427 }
 0xf5b   : > { %10059 = vst [vmem:[%s12116_s18 + $0x1aa8] sm:$0xff] %v9035_v61  ;;  %v8006_v22 = vmul.f32 %v16770_v60, %v6416_v58  ;;  %10062 = vst [vmem:[%s12116_s18 + $0x1ac0] sm:$0xff] %v9038_v29  ;;  %v8009_v57 = vmul.f32 %v16774_v5, %v6428_v26  ;;  %v17098_v61 = vld [vmem:[#allocation3 + $0x18] sm:$0xff] }
 0xf5c   : > { %6659 = vbcast.lane.b32.xlu1 %v17913_v18, 264  ;;  %6671 = vbcast.lane.b32.xlu0 %v17913_v18, 288 }
 0xf5d   : > { %v9037_v20 = vadd.f32 %v16862_v42, %v8006_v22  ;;  %v9040_v63 = vadd.f32 %v16862_v42, %v8009_v57  ;;  %v17102_v22 = vld [vmem:[#allocation3 + $0x30] sm:$0xff] }
 0xf5e   : > { %v6424_v28 = vpop.permute.xlu1 %6423  ;;  %v6436_v43 = vpop.permute.xlu0 %6435 }
 0xf5f   : > { %10061 = vst [vmem:[%s12116_s18 + $0x1ab8] sm:$0xff] %v9037_v20  ;;  %v8008_v4 = vmul.f32 %v16782_v27, %v6424_v28  ;;  %10064 = vst [vmem:[%s12116_s18 + $0x1ad0] sm:$0xff] %v9040_v63  ;;  %v8011_v30 = vmul.f32 %v16786_v54, %v6436_v43  ;;  %v17914_v20 = vld [vmem:[#allocation59_spill] sm:$0xff] }
 0xf60   : > { %6667 = vbcast.lane.b32.xlu1 %v17913_v18, 280  ;;  %6679 = vbcast.lane.b32.xlu0 %v17913_v18, 304 }
 0xf61   : > { %v9039_v6 = vadd.f32 %v16862_v42, %v8008_v4  ;;  %v9042_v62 = vadd.f32 %v16862_v42, %v8011_v30  ;;  %v17110_v4 = vld [vmem:[#allocation3 + $0x68] sm:$0xff] }
 0xf62   : > { %v6432_v48 = vpop.permute.xlu1 %6431  ;;  %v6444_v33 = vpop.permute.xlu0 %6443 }
 0xf63   : > { %10063 = vst [vmem:[%s12116_s18 + $0x1ac8] sm:$0xff] %v9039_v6  ;;  %v8010_v51 = vmul.f32 %v16794_v8, %v6432_v48  ;;  %10066 = vst [vmem:[%s12116_s18 + $0x1ae0] sm:$0xff] %v9042_v62  ;;  %v8013_v1 = vmul.f32 %v16798_v25, %v6444_v33  ;;  %v17114_v6 = vld [vmem:[#allocation3 + $0x80] sm:$0xff] }
 0xf64   : > { %6675 = vbcast.lane.b32.xlu1 %v17913_v18, 296  ;;  %6687 = vbcast.lane.b32.xlu0 %v17913_v18, 320 }
 0xf65   : > { %v9041_v3 = vadd.f32 %v16862_v42, %v8010_v51  ;;  %v9044_v55 = vadd.f32 %v16862_v42, %v8013_v1  ;;  %v17122_v1 = vld [vmem:[#allocation3 + $0x48] sm:$0xff] }
 0xf66   : > { %v6440_v15 = vpop.permute.xlu1 %6439  ;;  %v6455_v32 = vpop.permute.xlu0 %6454 }
 0xf67   : > { %10065 = vst [vmem:[%s12116_s18 + $0x1ad8] sm:$0xff] %v9041_v3  ;;  %v8012_v23 = vmul.f32 %v16806_v47, %v6440_v15  ;;  %10068 = vst [vmem:[%s12116_s18 + $0x1af0] sm:$0xff] %v9044_v55  ;;  %v8015_v36 = vmul.f32 %v16642_v49, %v6455_v32  ;;  %v17126_v15 = vld [vmem:[#allocation3 + $0xe8] sm:$0xff] }
 0xf68   : > { %6683 = vbcast.lane.b32.xlu1 %v17913_v18, 312  ;;  %6695 = vbcast.lane.b32.xlu0 %v17913_v18, 336 }
 0xf69   : > { %v9043_v14 = vadd.f32 %v16862_v42, %v8012_v23  ;;  %v9046_v56 = vadd.f32 %v16862_v42, %v8015_v36 }
 0xf6a   : > { %v6448_v19 = vpop.permute.xlu1 %6447  ;;  %v6463_v45 = vpop.permute.xlu0 %6462 }
 0xf6b   : > { %10067 = vst [vmem:[%s12116_s18 + $0x1ae8] sm:$0xff] %v9043_v14  ;;  %v8014_v40 = vmul.f32 %v16816_v9, %v6448_v19  ;;  %10070 = vst [vmem:[%s12116_s18 + $0x1b00] sm:$0xff] %v9046_v56  ;;  %v8017_v49 = vmul.f32 %v17078_v52, %v6463_v45  ;;  %v17134_v14 = vld [vmem:[#allocation3 + $0x88] sm:$0xff] }
 0xf6c   : > { %6691 = vbcast.lane.b32.xlu1 %v17913_v18, 328  ;;  %6703 = vbcast.lane.b32.xlu0 %v17913_v18, 352 }
 0xf6d   : > { %v9045_v35 = vadd.f32 %v16862_v42, %v8014_v40  ;;  %v9048_v34 = vadd.f32 %v16862_v42, %v8017_v49  ;;  %v17138_v40 = vld [vmem:[#allocation3 + $0x60] sm:$0xff] }
 0xf6e   : > { %v6459_v7 = vpop.permute.xlu1 %6458  ;;  %v6471_v38 = vpop.permute.xlu0 %6470 }
 0xf6f   : > { %10069 = vst [vmem:[%s12116_s18 + $0x1af8] sm:$0xff] %v9045_v35  ;;  %v8016_v17 = vmul.f32 %v17086_v44, %v6459_v7  ;;  %10072 = vst [vmem:[%s12116_s18 + $0x1b10] sm:$0xff] %v9048_v34  ;;  %v8019_v21 = vmul.f32 %v17090_v12, %v6471_v38 }
 0xf70   : > { %6699 = vbcast.lane.b32.xlu1 %v17913_v18, 344  ;;  %6711 = vbcast.lane.b32.xlu0 %v17913_v18, 368 }
 0xf71   : > { %v9047_v24 = vadd.f32 %v16862_v42, %v8016_v17  ;;  %v9050_v31 = vadd.f32 %v16862_v42, %v8019_v21 }
 0xf72   : > { %v6467_v0 = vpop.permute.xlu1 %6466  ;;  %v6479_v58 = vpop.permute.xlu0 %6478 }
 0xf73   : > { %10071 = vst [vmem:[%s12116_s18 + $0x1b08] sm:$0xff] %v9047_v24  ;;  %v8018_v29 = vmul.f32 %v17098_v61, %v6467_v0  ;;  %10074 = vst [vmem:[%s12116_s18 + $0x1b20] sm:$0xff] %v9050_v31  ;;  %v8021_v26 = vmul.f32 %v17102_v22, %v6479_v58 }
 0xf74   : > { %6707 = vbcast.lane.b32.xlu1 %v17913_v18, 360  ;;  %6722 = vbcast.lane.b32.xlu0 %v17914_v20, 256 }
 0xf75   : > { %v9049_v57 = vadd.f32 %v16862_v42, %v8018_v29  ;;  %v9052_v63 = vadd.f32 %v16862_v42, %v8021_v26 }
 0xf76   : > { %v6475_v28 = vpop.permute.xlu1 %6474  ;;  %v6487_v30 = vpop.permute.xlu0 %6486 }
 0xf77   : > { %10073 = vst [vmem:[%s12116_s18 + $0x1b18] sm:$0xff] %v9049_v57  ;;  %v8020_v43 = vmul.f32 %v17110_v4, %v6475_v28  ;;  %10076 = vst [vmem:[%s12116_s18 + $0x1b30] sm:$0xff] %v9052_v63  ;;  %v8023_v62 = vmul.f32 %v17114_v6, %v6487_v30 }
 0xf78   : > { %6715 = vbcast.lane.b32.xlu1 %v17913_v18, 376  ;;  %6730 = vbcast.lane.b32.xlu0 %v17914_v20, 272 }
 0xf79   : > { %v9051_v48 = vadd.f32 %v16862_v42, %v8020_v43  ;;  %v9054_v51 = vadd.f32 %v16862_v42, %v8023_v62 }
 0xf7a   : > { %v6483_v33 = vpop.permute.xlu1 %6482  ;;  %v6495_v55 = vpop.permute.xlu0 %6494 }
 0xf7b   : > { %10075 = vst [vmem:[%s12116_s18 + $0x1b28] sm:$0xff] %v9051_v48  ;;  %v8022_v3 = vmul.f32 %v17122_v1, %v6483_v33  ;;  %10078 = vst [vmem:[%s12116_s18 + $0x1b40] sm:$0xff] %v9054_v51  ;;  %v8025_v18 = vmul.f32 %v17126_v15, %v6495_v55  ;;  %v17915_v55 = vld [vmem:[#allocation60_spill] sm:$0xff] }
 0xf7c   : > { %6726 = vbcast.lane.b32.xlu1 %v17914_v20, 264  ;;  %6738 = vbcast.lane.b32.xlu0 %v17914_v20, 288 }
 0xf7d   : > { %v9053_v23 = vadd.f32 %v16862_v42, %v8022_v3  ;;  %v9056_v32 = vadd.f32 %v16862_v42, %v8025_v18 }
 0xf7e   : > { %v6491_v36 = vpop.permute.xlu1 %6490  ;;  %v6503_v19 = vpop.permute.xlu0 %6502 }
 0xf7f   : > { %10077 = vst [vmem:[%s12116_s18 + $0x1b38] sm:$0xff] %v9053_v23  ;;  %v8024_v56 = vmul.f32 %v17134_v14, %v6491_v36  ;;  %10080 = vst [vmem:[%s12116_s18 + $0x1b50] sm:$0xff] %v9056_v32  ;;  %v8027_v45 = vmul.f32 %v17138_v40, %v6503_v19 }
 0xf80   : > { %6734 = vbcast.lane.b32.xlu1 %v17914_v20, 280  ;;  %6746 = vbcast.lane.b32.xlu0 %v17914_v20, 304 }
 0xf81   : > { %v9055_v49 = vadd.f32 %v16862_v42, %v8024_v56  ;;  %v9058_v35 = vadd.f32 %v16862_v42, %v8027_v45 }
 0xf82   : > { %v6499_v34 = vpop.permute.xlu1 %6498  ;;  %v6511_v17 = vpop.permute.xlu0 %6510 }
 0xf83   : > { %10079 = vst [vmem:[%s12116_s18 + $0x1b48] sm:$0xff] %v9055_v49  ;;  %v8026_v7 = vmul.f32 %v16698_v50, %v6499_v34  ;;  %10082 = vst [vmem:[%s12116_s18 + $0x1b60] sm:$0xff] %v9058_v35  ;;  %v8029_v38 = vmul.f32 %v16702_v13, %v6511_v17 }
 0xf84   : > { %6742 = vbcast.lane.b32.xlu1 %v17914_v20, 296  ;;  %6754 = vbcast.lane.b32.xlu0 %v17914_v20, 320 }
 0xf85   : > { %v9057_v21 = vadd.f32 %v16862_v42, %v8026_v7  ;;  %v9060_v24 = vadd.f32 %v16862_v42, %v8029_v38 }
 0xf86   : > { %v6507_v31 = vpop.permute.xlu1 %6506  ;;  %v6522_v29 = vpop.permute.xlu0 %6521 }
 0xf87   : > { %10081 = vst [vmem:[%s12116_s18 + $0x1b58] sm:$0xff] %v9057_v21  ;;  %v8028_v0 = vmul.f32 %v16710_v16, %v6507_v31  ;;  %10084 = vst [vmem:[%s12116_s18 + $0x1b70] sm:$0xff] %v9060_v24  ;;  %v8031_v50 = vmul.f32 %v16714_v10, %v6522_v29 }
 0xf88   : > { %6750 = vbcast.lane.b32.xlu1 %v17914_v20, 312  ;;  %6762 = vbcast.lane.b32.xlu0 %v17914_v20, 336 }
 0xf89   : > { %v9059_v13 = vadd.f32 %v16862_v42, %v8028_v0  ;;  %v9062_v58 = vadd.f32 %v16862_v42, %v8031_v50 }
 0xf8a   : > { %v6515_v26 = vpop.permute.xlu1 %6514  ;;  %v6530_v63 = vpop.permute.xlu0 %6529 }
 0xf8b   : > { %10083 = vst [vmem:[%s12116_s18 + $0x1b68] sm:$0xff] %v9059_v13  ;;  %v8030_v57 = vmul.f32 %v16722_v2, %v6515_v26  ;;  %10086 = vst [vmem:[%s12116_s18 + $0x1b80] sm:$0xff] %v9062_v58  ;;  %v8033_v16 = vmul.f32 %v16726_v59, %v6530_v63 }
 0xf8c   : > { %6758 = vbcast.lane.b32.xlu1 %v17914_v20, 328  ;;  %6770 = vbcast.lane.b32.xlu0 %v17914_v20, 352 }
 0xf8d   : > { %v9061_v10 = vadd.f32 %v16862_v42, %v8030_v57  ;;  %v9064_v28 = vadd.f32 %v16862_v42, %v8033_v16 }
 0xf8e   : > { %v6526_v43 = vpop.permute.xlu1 %6525  ;;  %v6538_v62 = vpop.permute.xlu0 %6537 }
 0xf8f   : > { %10085 = vst [vmem:[%s12116_s18 + $0x1b78] sm:$0xff] %v9061_v10  ;;  %v8032_v30 = vmul.f32 %v16734_v37, %v6526_v43  ;;  %10088 = vst [vmem:[%s12116_s18 + $0x1b90] sm:$0xff] %v9064_v28  ;;  %v8035_v2 = vmul.f32 %v16738_v53, %v6538_v62 }
 0xf90   : > { %6766 = vbcast.lane.b32.xlu1 %v17914_v20, 344  ;;  %6778 = vbcast.lane.b32.xlu0 %v17914_v20, 368 }
 0xf91   : > { %v9063_v59 = vadd.f32 %v16862_v42, %v8032_v30  ;;  %v9066_v48 = vadd.f32 %v16862_v42, %v8035_v2 }
 0xf92   : > { %v6534_v51 = vpop.permute.xlu1 %6533  ;;  %v6546_v3 = vpop.permute.xlu0 %6545 }
 0xf93   : > { %10087 = vst [vmem:[%s12116_s18 + $0x1b88] sm:$0xff] %v9063_v59  ;;  %v8034_v33 = vmul.f32 %v16746_v46, %v6534_v51  ;;  %10090 = vst [vmem:[%s12116_s18 + $0x1ba0] sm:$0xff] %v9066_v48  ;;  %v8037_v37 = vmul.f32 %v16750_v11, %v6546_v3 }
 0xf94   : > { %6774 = vbcast.lane.b32.xlu1 %v17914_v20, 360  ;;  %6789 = vbcast.lane.b32.xlu0 %v17915_v55, 256 }
 0xf95   : > { %v9065_v53 = vadd.f32 %v16862_v42, %v8034_v33  ;;  %v9068_v18 = vadd.f32 %v16862_v42, %v8037_v37  ;;  %v17916_v37 = vld [vmem:[#allocation61_spill] sm:$0xff] }
 0xf96   : > { %v6542_v23 = vpop.permute.xlu1 %6541  ;;  %v6554_v36 = vpop.permute.xlu0 %6553 }
 0xf97   : > { %10089 = vst [vmem:[%s12116_s18 + $0x1b98] sm:$0xff] %v9065_v53  ;;  %v8036_v32 = vmul.f32 %v16758_v39, %v6542_v23  ;;  %10092 = vst [vmem:[%s12116_s18 + $0x1bb0] sm:$0xff] %v9068_v18  ;;  %v8039_v46 = vmul.f32 %v16762_v41, %v6554_v36 }
 0xf98   : > { %6782 = vbcast.lane.b32.xlu1 %v17914_v20, 376  ;;  %6797 = vbcast.lane.b32.xlu0 %v17915_v55, 272 }
 0xf99   : > { %v9067_v11 = vadd.f32 %v16862_v42, %v8036_v32  ;;  %v9070_v56 = vadd.f32 %v16862_v42, %v8039_v46 }
 0xf9a   : > { %v6550_v19 = vpop.permute.xlu1 %6549  ;;  %v6562_v49 = vpop.permute.xlu0 %6561 }
 0xf9b   : > { %10091 = vst [vmem:[%s12116_s18 + $0x1ba8] sm:$0xff] %v9067_v11  ;;  %v8038_v45 = vmul.f32 %v16770_v60, %v6550_v19  ;;  %10094 = vst [vmem:[%s12116_s18 + $0x1bc0] sm:$0xff] %v9070_v56  ;;  %v8041_v39 = vmul.f32 %v16774_v5, %v6562_v49 }
 0xf9c   : > { %6793 = vbcast.lane.b32.xlu1 %v17915_v55, 264  ;;  %6805 = vbcast.lane.b32.xlu0 %v17915_v55, 288 }
 0xf9d   : > { %v9069_v41 = vadd.f32 %v16862_v42, %v8038_v45  ;;  %v9072_v20 = vadd.f32 %v16862_v42, %v8041_v39 }
 0xf9e   : > { %v6558_v35 = vpop.permute.xlu1 %6557  ;;  %v6570_v7 = vpop.permute.xlu0 %6569 }
 0xf9f   : > { %10093 = vst [vmem:[%s12116_s18 + $0x1bb8] sm:$0xff] %v9069_v41  ;;  %v8040_v34 = vmul.f32 %v16782_v27, %v6558_v35  ;;  %10096 = vst [vmem:[%s12116_s18 + $0x1bd0] sm:$0xff] %v9072_v20  ;;  %v8043_v60 = vmul.f32 %v16786_v54, %v6570_v7 }
 0xfa0   : > { %6801 = vbcast.lane.b32.xlu1 %v17915_v55, 280  ;;  %6813 = vbcast.lane.b32.xlu0 %v17915_v55, 304 }
 0xfa1   : > { %v9071_v5 = vadd.f32 %v16862_v42, %v8040_v34  ;;  %v9074_v17 = vadd.f32 %v16862_v42, %v8043_v60 }
 0xfa2   : > { %v6566_v38 = vpop.permute.xlu1 %6565  ;;  %v6578_v24 = vpop.permute.xlu0 %6577 }
 0xfa3   : > { %10095 = vst [vmem:[%s12116_s18 + $0x1bc8] sm:$0xff] %v9071_v5  ;;  %v8042_v21 = vmul.f32 %v16794_v8, %v6566_v38  ;;  %10098 = vst [vmem:[%s12116_s18 + $0x1be0] sm:$0xff] %v9074_v17  ;;  %v8045_v27 = vmul.f32 %v16798_v25, %v6578_v24  ;;  %v17220_v8 = vld [vmem:[#allocation3 + $0xb0] sm:$0xff]  ;;  %v17276_v17 = vld [vmem:[#allocation3 + $0xb8] sm:$0xff] }
 0xfa4   : > { %6809 = vbcast.lane.b32.xlu1 %v17915_v55, 296  ;;  %6821 = vbcast.lane.b32.xlu0 %v17915_v55, 320  ;;  %v17280_v24 = vld [vmem:[#allocation3 + $0x8] sm:$0xff] }
 0xfa5   : > { %v9073_v54 = vadd.f32 %v16862_v42, %v8042_v21  ;;  %v9076_v31 = vadd.f32 %v16862_v42, %v8045_v27 }
 0xfa6   : > { %v6574_v0 = vpop.permute.xlu1 %6573  ;;  %v6589_v50 = vpop.permute.xlu0 %6588 }
 0xfa7   : > { %10097 = vst [vmem:[%s12116_s18 + $0x1bd8] sm:$0xff] %v9073_v54  ;;  %v8044_v29 = vmul.f32 %v16806_v47, %v6574_v0  ;;  %10100 = vst [vmem:[%s12116_s18 + $0x1bf0] sm:$0xff] %v9076_v31  ;;  %v8047_v25 = vmul.f32 %v17220_v8, %v6589_v50 }
 0xfa8   : > { %6817 = vbcast.lane.b32.xlu1 %v17915_v55, 312  ;;  %6829 = vbcast.lane.b32.xlu0 %v17915_v55, 336 }
 0xfa9   : > { %v9075_v13 = vadd.f32 %v16862_v42, %v8044_v29  ;;  %v9078_v58 = vadd.f32 %v16862_v42, %v8047_v25  ;;  %v17288_v29 = vld [vmem:[#allocation3 + $0xf0] sm:$0xff] }
 0xfaa   : > { %v6582_v26 = vpop.permute.xlu1 %6581  ;;  %v6597_v57 = vpop.permute.xlu0 %6596 }
 0xfab   : > { %10099 = vst [vmem:[%s12116_s18 + $0x1be8] sm:$0xff] %v9075_v13  ;;  %v8046_v47 = vmul.f32 %v16816_v9, %v6582_v26  ;;  %10102 = vst [vmem:[%s12116_s18 + $0x1c00] sm:$0xff] %v9078_v58  ;;  %v8049_v63 = vmul.f32 %v17078_v52, %v6597_v57  ;;  %v17292_v13 = vld [vmem:[#allocation3 + $0x38] sm:$0xff] }
 0xfac   : > { %6825 = vbcast.lane.b32.xlu1 %v17915_v55, 328  ;;  %6837 = vbcast.lane.b32.xlu0 %v17915_v55, 352 }
 0xfad   : > { %v9077_v16 = vadd.f32 %v16862_v42, %v8046_v47  ;;  %v9080_v10 = vadd.f32 %v16862_v42, %v8049_v63  ;;  %v17300_v63 = vld [vmem:[#allocation3 + $0x78] sm:$0xff] }
 0xfae   : > { %v6593_v28 = vpop.permute.xlu1 %6592  ;;  %v6605_v30 = vpop.permute.xlu0 %6604 }
 0xfaf   : > { %10101 = vst [vmem:[%s12116_s18 + $0x1bf8] sm:$0xff] %v9077_v16  ;;  %v8048_v43 = vmul.f32 %v17086_v44, %v6593_v28  ;;  %10104 = vst [vmem:[%s12116_s18 + $0x1c10] sm:$0xff] %v9080_v10  ;;  %v8051_v9 = vmul.f32 %v17090_v12, %v6605_v30  ;;  %v17304_v28 = vld [vmem:[#allocation3 + $0x40] sm:$0xff] }
 0xfb0   : > { %6833 = vbcast.lane.b32.xlu1 %v17915_v55, 344  ;;  %6845 = vbcast.lane.b32.xlu0 %v17915_v55, 368 }
 0xfb1   : > { %v9079_v62 = vadd.f32 %v16862_v42, %v8048_v43  ;;  %v9082_v2 = vadd.f32 %v16862_v42, %v8051_v9  ;;  %v17310_v9 = vld [vmem:[#allocation19] ss:$0 sm:$0xff] }
 0xfb2   : > { %v6601_v59 = vpop.permute.xlu1 %6600  ;;  %v6613_v51 = vpop.permute.xlu0 %6612 }
 0xfb3   : > { %10103 = vst [vmem:[%s12116_s18 + $0x1c08] sm:$0xff] %v9079_v62  ;;  %v8050_v48 = vmul.f32 %v17098_v61, %v6601_v59  ;;  %10106 = vst [vmem:[%s12116_s18 + $0x1c20] sm:$0xff] %v9082_v2  ;;  %v8053_v33 = vmul.f32 %v17102_v22, %v6613_v51  ;;  %v17314_v59 = vld [vmem:[#allocation3 + $0x58] sm:$0xff] }
 0xfb4   : > { %6841 = vbcast.lane.b32.xlu1 %v17915_v55, 360  ;;  %6856 = vbcast.lane.b32.xlu0 %v17916_v37, 256 }
 0xfb5   : > { %v9081_v3 = vadd.f32 %v16862_v42, %v8050_v48  ;;  %v9084_v53 = vadd.f32 %v16862_v42, %v8053_v33  ;;  %v17318_v33 = vld [vmem:[#allocation3 + $0xe0] sm:$0xff] }
 0xfb6   : > { %v6609_v18 = vpop.permute.xlu1 %6608  ;;  %v6621_v32 = vpop.permute.xlu0 %6620 }
 0xfb7   : > { %10105 = vst [vmem:[%s12116_s18 + $0x1c18] sm:$0xff] %v9081_v3  ;;  %v8052_v23 = vmul.f32 %v17110_v4, %v6609_v18  ;;  %10108 = vst [vmem:[%s12116_s18 + $0x1c30] sm:$0xff] %v9084_v53  ;;  %v8055_v36 = vmul.f32 %v17114_v6, %v6621_v32 }
 0xfb8   : > { %6849 = vbcast.lane.b32.xlu1 %v17915_v55, 376  ;;  %6864 = vbcast.lane.b32.xlu0 %v17916_v37, 272 }
 0xfb9   : > { %v9083_v46 = vadd.f32 %v16862_v42, %v8052_v23  ;;  %v9086_v11 = vadd.f32 %v16862_v42, %v8055_v36  ;;  %v17326_v23 = vld [vmem:[#allocation3 + $0xc8] sm:$0xff] }
 0xfba   : > { %v6617_v56 = vpop.permute.xlu1 %6616  ;;  %v6629_v45 = vpop.permute.xlu0 %6628 }
 0xfbb   : > { %10107 = vst [vmem:[%s12116_s18 + $0x1c28] sm:$0xff] %v9083_v46  ;;  %v8054_v19 = vmul.f32 %v17122_v1, %v6617_v56  ;;  %10110 = vst [vmem:[%s12116_s18 + $0x1c40] sm:$0xff] %v9086_v11  ;;  %v8057_v49 = vmul.f32 %v17126_v15, %v6629_v45  ;;  %v17330_v46 = vld [vmem:[#allocation3 + $0x70] sm:$0xff] }
 0xfbc   : > { %6860 = vbcast.lane.b32.xlu1 %v17916_v37, 264  ;;  %6872 = vbcast.lane.b32.xlu0 %v17916_v37, 288 }
 0xfbd   : > { %v9085_v55 = vadd.f32 %v16862_v42, %v8054_v19  ;;  %v9088_v39 = vadd.f32 %v16862_v42, %v8057_v49  ;;  %v17917_v19 = vld [vmem:[#allocation62_spill] sm:$0xff] }
 0xfbe   : > { %v6625_v41 = vpop.permute.xlu1 %6624  ;;  %v6637_v35 = vpop.permute.xlu0 %6636 }
 0xfbf   : > { %10109 = vst [vmem:[%s12116_s18 + $0x1c38] sm:$0xff] %v9085_v55  ;;  %v8056_v20 = vmul.f32 %v17134_v14, %v6625_v41  ;;  %10112 = vst [vmem:[%s12116_s18 + $0x1c50] sm:$0xff] %v9088_v39  ;;  %v8059_v34 = vmul.f32 %v17138_v40, %v6637_v35  ;;  %v17338_v55 = vld [vmem:[#allocation3 + $0x90] sm:$0xff] }
 0xfc0   : > { %6868 = vbcast.lane.b32.xlu1 %v17916_v37, 280  ;;  %6880 = vbcast.lane.b32.xlu0 %v17916_v37, 304 }
 0xfc1   : > { %v9087_v7 = vadd.f32 %v16862_v42, %v8056_v20  ;;  %v9090_v60 = vadd.f32 %v16862_v42, %v8059_v34  ;;  %v17342_v20 = vld [vmem:[#allocation3 + $0xa8] sm:$0xff] }
 0xfc2   : > { %v6633_v5 = vpop.permute.xlu1 %6632  ;;  %v6645_v21 = vpop.permute.xlu0 %6644 }
 0xfc3   : > { %10111 = vst [vmem:[%s12116_s18 + $0x1c48] sm:$0xff] %v9087_v7  ;;  %v8058_v38 = vmul.f32 %v17276_v17, %v6633_v5  ;;  %10114 = vst [vmem:[%s12116_s18 + $0x1c60] sm:$0xff] %v9090_v60  ;;  %v8061_v27 = vmul.f32 %v17280_v24, %v6645_v21  ;;  %v17350_v5 = vld [vmem:[#allocation3 + $0xc0] sm:$0xff] }
 0xfc4   : > { %6876 = vbcast.lane.b32.xlu1 %v17916_v37, 296  ;;  %6888 = vbcast.lane.b32.xlu0 %v17916_v37, 320 }
 0xfc5   : > { %v9089_v54 = vadd.f32 %v16862_v42, %v8058_v38  ;;  %v9092_v31 = vadd.f32 %v16862_v42, %v8061_v27  ;;  %v17354_v27 = vld [vmem:[#allocation3 + $0x10] sm:$0xff] }
 0xfc6   : > { %v6641_v0 = vpop.permute.xlu1 %6640  ;;  %v6656_v25 = vpop.permute.xlu0 %6655 }
 0xfc7   : > { %10113 = vst [vmem:[%s12116_s18 + $0x1c58] sm:$0xff] %v9089_v54  ;;  %v8060_v50 = vmul.f32 %v17288_v29, %v6641_v0  ;;  %10116 = vst [vmem:[%s12116_s18 + $0x1c70] sm:$0xff] %v9092_v31  ;;  %v8063_v58 = vmul.f32 %v17292_v13, %v6656_v25 }
 0xfc8   : > { %6884 = vbcast.lane.b32.xlu1 %v17916_v37, 312  ;;  %6896 = vbcast.lane.b32.xlu0 %v17916_v37, 336 }
 0xfc9   : > { %v9091_v26 = vadd.f32 %v16862_v42, %v8060_v50  ;;  %v9094_v47 = vadd.f32 %v16862_v42, %v8063_v58  ;;  %v17362_v50 = vld [vmem:[#allocation3 + $0xd0] sm:$0xff] }
 0xfca   : > { %v6649_v57 = vpop.permute.xlu1 %6648  ;;  %v6664_v10 = vpop.permute.xlu0 %6663 }
 0xfcb   : > { %10115 = vst [vmem:[%s12116_s18 + $0x1c68] sm:$0xff] %v9091_v26  ;;  %v8062_v16 = vmul.f32 %v17300_v63, %v6649_v57  ;;  %10118 = vst [vmem:[%s12116_s18 + $0x1c80] sm:$0xff] %v9094_v47  ;;  %v8065_v43 = vmul.f32 %v17304_v28, %v6664_v10  ;;  %v17366_v26 = vld [vmem:[#allocation3 + $0xa0] sm:$0xff] }
 0xfcc   : > { %6892 = vbcast.lane.b32.xlu1 %v17916_v37, 328  ;;  %6904 = vbcast.lane.b32.xlu0 %v17916_v37, 352 }
 0xfcd   : > { %v9093_v30 = vadd.f32 %v16862_v42, %v8062_v16  ;;  %v9096_v62 = vadd.f32 %v17310_v9, %v8065_v43  ;;  %v17374_v43 = vld [vmem:[#allocation3 + $0x28] sm:$0xff] }
 0xfce   : > { %v6660_v2 = vpop.permute.xlu1 %6659  ;;  %v6672_v51 = vpop.permute.xlu0 %6671 }
 0xfcf   : > { %10117 = vst [vmem:[%s12116_s18 + $0x1c78] sm:$0xff] %v9093_v30  ;;  %v8064_v48 = vmul.f32 %v17314_v59, %v6660_v2  ;;  %10120 = vst [vmem:[%s12116_s18 + $0x1c90] sm:$0xff] %v9096_v62  ;;  %v8067_v42 = vmul.f32 %v17318_v33, %v6672_v51  ;;  %v17378_v2 = vld [vmem:[#allocation3 + $0x20] sm:$0xff] }
 0xfd0   : > { %6900 = vbcast.lane.b32.xlu1 %v17916_v37, 344  ;;  %6912 = vbcast.lane.b32.xlu0 %v17916_v37, 368 }
 0xfd1   : > { %v9095_v3 = vadd.f32 %v17310_v9, %v8064_v48  ;;  %v9098_v53 = vadd.f32 %v17310_v9, %v8067_v42 }
 0xfd2   : > { %v6668_v18 = vpop.permute.xlu1 %6667  ;;  %v6680_v36 = vpop.permute.xlu0 %6679 }
 0xfd3   : > { %10119 = vst [vmem:[%s12116_s18 + $0x1c88] sm:$0xff] %v9095_v3  ;;  %v8066_v32 = vmul.f32 %v17326_v23, %v6668_v18  ;;  %10122 = vst [vmem:[%s12116_s18 + $0x1ca0] sm:$0xff] %v9098_v53  ;;  %v8069_v11 = vmul.f32 %v17330_v46, %v6680_v36  ;;  %v17386_v53 = vld [vmem:[#allocation3 + $0xf8] sm:$0xff] }
 0xfd4   : > { %6908 = vbcast.lane.b32.xlu1 %v17916_v37, 360  ;;  %6923 = vbcast.lane.b32.xlu0 %v17917_v19, 256 }
 0xfd5   : > { %v9097_v56 = vadd.f32 %v17310_v9, %v8066_v32  ;;  %v9100_v45 = vadd.f32 %v17310_v9, %v8069_v11 }
 0xfd6   : > { %v6676_v49 = vpop.permute.xlu1 %6675  ;;  %v6688_v41 = vpop.permute.xlu0 %6687 }
 0xfd7   : > { %10121 = vst [vmem:[%s12116_s18 + $0x1c98] sm:$0xff] %v9097_v56  ;;  %v8068_v39 = vmul.f32 %v17338_v55, %v6676_v49  ;;  %10124 = vst [vmem:[%s12116_s18 + $0x1cb0] sm:$0xff] %v9100_v45  ;;  %v8071_v35 = vmul.f32 %v17342_v20, %v6688_v41  ;;  %v17396_v49 = vld [vmem:[#allocation3 + $0x98] sm:$0xff] }
 0xfd8   : > { %6916 = vbcast.lane.b32.xlu1 %v17916_v37, 376  ;;  %6931 = vbcast.lane.b32.xlu0 %v17917_v19, 272 }
 0xfd9   : > { %v9099_v34 = vadd.f32 %v17310_v9, %v8068_v39  ;;  %v9102_v7 = vadd.f32 %v17310_v9, %v8071_v35 }
 0xfda   : > { %v6684_v60 = vpop.permute.xlu1 %6683  ;;  %v6696_v21 = vpop.permute.xlu0 %6695 }
 0xfdb   : > { %10123 = vst [vmem:[%s12116_s18 + $0x1ca8] sm:$0xff] %v9099_v34  ;;  %v8070_v38 = vmul.f32 %v17350_v5, %v6684_v60  ;;  %10126 = vst [vmem:[%s12116_s18 + $0x1cc0] sm:$0xff] %v9102_v7  ;;  %v8073_v37 = vmul.f32 %v17354_v27, %v6696_v21 }
 0xfdc   : > { %6927 = vbcast.lane.b32.xlu1 %v17917_v19, 264  ;;  %6939 = vbcast.lane.b32.xlu0 %v17917_v19, 288 }
 0xfdd   : > { %v9101_v54 = vadd.f32 %v17310_v9, %v8070_v38  ;;  %v9104_v31 = vadd.f32 %v17310_v9, %v8073_v37 }
 0xfde   : > { %v6692_v0 = vpop.permute.xlu1 %6691  ;;  %v6704_v58 = vpop.permute.xlu0 %6703 }
 0xfdf   : > { %10125 = vst [vmem:[%s12116_s18 + $0x1cb8] sm:$0xff] %v9101_v54  ;;  %v8072_v25 = vmul.f32 %v17362_v50, %v6692_v0  ;;  %10128 = vst [vmem:[%s12116_s18 + $0x1cd0] sm:$0xff] %v9104_v31  ;;  %v8075_v47 = vmul.f32 %v17366_v26, %v6704_v58 }
 0xfe0   : > { %6935 = vbcast.lane.b32.xlu1 %v17917_v19, 280  ;;  %6947 = vbcast.lane.b32.xlu0 %v17917_v19, 304 }
 0xfe1   : > { %v9103_v57 = vadd.f32 %v17310_v9, %v8072_v25  ;;  %v9106_v16 = vadd.f32 %v17310_v9, %v8075_v47 }
 0xfe2   : > { %v6700_v10 = vpop.permute.xlu1 %6699  ;;  %v6712_v62 = vpop.permute.xlu0 %6711 }
 0xfe3   : > { %10127 = vst [vmem:[%s12116_s18 + $0x1cc8] sm:$0xff] %v9103_v57  ;;  %v8074_v30 = vmul.f32 %v17374_v43, %v6700_v10  ;;  %10130 = vst [vmem:[%s12116_s18 + $0x1ce0] sm:$0xff] %v9106_v16  ;;  %v8077_v48 = vmul.f32 %v17378_v2, %v6712_v62  ;;  %v17918_v16 = vld [vmem:[#allocation63_spill] sm:$0xff] }
 0xfe4   : > { %6943 = vbcast.lane.b32.xlu1 %v17917_v19, 296  ;;  %6955 = vbcast.lane.b32.xlu0 %v17917_v19, 320 }
 0xfe5   : > { %v9105_v51 = vadd.f32 %v17310_v9, %v8074_v30  ;;  %v9108_v42 = vadd.f32 %v17310_v9, %v8077_v48 }
 0xfe6   : > { %v6708_v3 = vpop.permute.xlu1 %6707  ;;  %v6723_v32 = vpop.permute.xlu0 %6722 }
 0xfe7   : > { %10129 = vst [vmem:[%s12116_s18 + $0x1cd8] sm:$0xff] %v9105_v51  ;;  %v8076_v18 = vmul.f32 %v17386_v53, %v6708_v3  ;;  %10132 = vst [vmem:[%s12116_s18 + $0x1cf0] sm:$0xff] %v9108_v42  ;;  %v8079_v36 = vmul.f32 %v17220_v8, %v6723_v32 }
 0xfe8   : > { %6951 = vbcast.lane.b32.xlu1 %v17917_v19, 312  ;;  %6963 = vbcast.lane.b32.xlu0 %v17917_v19, 336 }
 0xfe9   : > { %v9107_v11 = vadd.f32 %v17310_v9, %v8076_v18  ;;  %v9110_v56 = vadd.f32 %v17310_v9, %v8079_v36 }
 0xfea   : > { %v6716_v45 = vpop.permute.xlu1 %6715  ;;  %v6731_v41 = vpop.permute.xlu0 %6730 }
 0xfeb   : > { %10131 = vst [vmem:[%s12116_s18 + $0x1ce8] sm:$0xff] %v9107_v11  ;;  %v8078_v39 = vmul.f32 %v17396_v49, %v6716_v45  ;;  %10134 = vst [vmem:[%s12116_s18 + $0x1d00] sm:$0xff] %v9110_v56  ;;  %v8081_v35 = vmul.f32 %v17078_v52, %v6731_v41 }
 0xfec   : > { %6959 = vbcast.lane.b32.xlu1 %v17917_v19, 328  ;;  %6971 = vbcast.lane.b32.xlu0 %v17917_v19, 352 }
 0xfed   : > { %v9109_v34 = vadd.f32 %v17310_v9, %v8078_v39  ;;  %v9112_v7 = vadd.f32 %v17310_v9, %v8081_v35 }
 0xfee   : > { %v6727_v60 = vpop.permute.xlu1 %6726  ;;  %v6739_v21 = vpop.permute.xlu0 %6738 }
 0xfef   : > { %10133 = vst [vmem:[%s12116_s18 + $0x1cf8] sm:$0xff] %v9109_v34  ;;  %v8080_v38 = vmul.f32 %v17086_v44, %v6727_v60  ;;  %10136 = vst [vmem:[%s12116_s18 + $0x1d10] sm:$0xff] %v9112_v7  ;;  %v8083_v37 = vmul.f32 %v17090_v12, %v6739_v21 }
 0xff0   : > { %6967 = vbcast.lane.b32.xlu1 %v17917_v19, 344  ;;  %6979 = vbcast.lane.b32.xlu0 %v17917_v19, 368 }
 0xff1   : > { %v9111_v54 = vadd.f32 %v17310_v9, %v8080_v38  ;;  %v9114_v31 = vadd.f32 %v17310_v9, %v8083_v37 }
 0xff2   : > { %v6735_v0 = vpop.permute.xlu1 %6734  ;;  %v6747_v58 = vpop.permute.xlu0 %6746 }
 0xff3   : > { %10135 = vst [vmem:[%s12116_s18 + $0x1d08] sm:$0xff] %v9111_v54  ;;  %v8082_v25 = vmul.f32 %v17098_v61, %v6735_v0  ;;  %10138 = vst [vmem:[%s12116_s18 + $0x1d20] sm:$0xff] %v9114_v31  ;;  %v8085_v47 = vmul.f32 %v17102_v22, %v6747_v58 }
 0xff4   : > { %6975 = vbcast.lane.b32.xlu1 %v17917_v19, 360  ;;  %6990 = vbcast.lane.b32.xlu0 %v17918_v16, 256 }
 0xff5   : > { %v9113_v57 = vadd.f32 %v17310_v9, %v8082_v25  ;;  %v9116_v10 = vadd.f32 %v17310_v9, %v8085_v47 }
 0xff6   : > { %v6743_v30 = vpop.permute.xlu1 %6742  ;;  %v6755_v48 = vpop.permute.xlu0 %6754 }
 0xff7   : > { %10137 = vst [vmem:[%s12116_s18 + $0x1d18] sm:$0xff] %v9113_v57  ;;  %v8084_v62 = vmul.f32 %v17110_v4, %v6743_v30  ;;  %10140 = vst [vmem:[%s12116_s18 + $0x1d30] sm:$0xff] %v9116_v10  ;;  %v8087_v51 = vmul.f32 %v17114_v6, %v6755_v48 }
 0xff8   : > { %6983 = vbcast.lane.b32.xlu1 %v17917_v19, 376  ;;  %6998 = vbcast.lane.b32.xlu0 %v17918_v16, 272 }
 0xff9   : > { %v9115_v42 = vadd.f32 %v17310_v9, %v8084_v62  ;;  %v9118_v3 = vadd.f32 %v17310_v9, %v8087_v51 }
 0xffa   : > { %v6751_v18 = vpop.permute.xlu1 %6750  ;;  %v6763_v36 = vpop.permute.xlu0 %6762 }
 0xffb   : > { %10139 = vst [vmem:[%s12116_s18 + $0x1d28] sm:$0xff] %v9115_v42  ;;  %v8086_v32 = vmul.f32 %v17122_v1, %v6751_v18  ;;  %10142 = vst [vmem:[%s12116_s18 + $0x1d40] sm:$0xff] %v9118_v3  ;;  %v8089_v11 = vmul.f32 %v17126_v15, %v6763_v36 }
 0xffc   : > { %6994 = vbcast.lane.b32.xlu1 %v17918_v16, 264  ;;  %7006 = vbcast.lane.b32.xlu0 %v17918_v16, 288 }
 0xffd   : > { %v9117_v19 = vadd.f32 %v17310_v9, %v8086_v32  ;;  %v9120_v56 = vadd.f32 %v17310_v9, %v8089_v11 }
 0xffe   : > { %v6759_v45 = vpop.permute.xlu1 %6758  ;;  %v6771_v41 = vpop.permute.xlu0 %6770 }
 0xfff   : > { %10141 = vst [vmem:[%s12116_s18 + $0x1d38] sm:$0xff] %v9117_v19  ;;  %v8088_v39 = vmul.f32 %v17134_v14, %v6759_v45  ;;  %10144 = vst [vmem:[%s12116_s18 + $0x1d50] sm:$0xff] %v9120_v56  ;;  %v8091_v35 = vmul.f32 %v17138_v40, %v6771_v41 }
0x1000   : > { %7002 = vbcast.lane.b32.xlu1 %v17918_v16, 280  ;;  %7014 = vbcast.lane.b32.xlu0 %v17918_v16, 304 }
0x1001   : > { %v9119_v34 = vadd.f32 %v17310_v9, %v8088_v39  ;;  %v9122_v7 = vadd.f32 %v17310_v9, %v8091_v35 }
0x1002   : > { %v6767_v60 = vpop.permute.xlu1 %6766  ;;  %v6779_v21 = vpop.permute.xlu0 %6778 }
0x1003   : > { %10143 = vst [vmem:[%s12116_s18 + $0x1d48] sm:$0xff] %v9119_v34  ;;  %v8090_v38 = vmul.f32 %v17276_v17, %v6767_v60  ;;  %10146 = vst [vmem:[%s12116_s18 + $0x1d60] sm:$0xff] %v9122_v7  ;;  %v8093_v37 = vmul.f32 %v17280_v24, %v6779_v21  ;;  %v17919_v7 = vld [vmem:[#allocation64_spill] sm:$0xff] }
0x1004   : > { %7010 = vbcast.lane.b32.xlu1 %v17918_v16, 296  ;;  %7022 = vbcast.lane.b32.xlu0 %v17918_v16, 320 }
0x1005   : > { %v9121_v54 = vadd.f32 %v17310_v9, %v8090_v38  ;;  %v9124_v31 = vadd.f32 %v17310_v9, %v8093_v37 }
0x1006   : > { %v6775_v0 = vpop.permute.xlu1 %6774  ;;  %v6790_v58 = vpop.permute.xlu0 %6789 }
0x1007   : > { %10145 = vst [vmem:[%s12116_s18 + $0x1d58] sm:$0xff] %v9121_v54  ;;  %v8092_v25 = vmul.f32 %v17288_v29, %v6775_v0  ;;  %10148 = vst [vmem:[%s12116_s18 + $0x1d70] sm:$0xff] %v9124_v31  ;;  %v8095_v47 = vmul.f32 %v17292_v13, %v6790_v58 }
0x1008   : > { %7018 = vbcast.lane.b32.xlu1 %v17918_v16, 312  ;;  %7030 = vbcast.lane.b32.xlu0 %v17918_v16, 336 }
0x1009   : > { %v9123_v57 = vadd.f32 %v17310_v9, %v8092_v25  ;;  %v9126_v10 = vadd.f32 %v17310_v9, %v8095_v47 }
0x100a   : > { %v6783_v30 = vpop.permute.xlu1 %6782  ;;  %v6798_v48 = vpop.permute.xlu0 %6797 }
0x100b   : > { %10147 = vst [vmem:[%s12116_s18 + $0x1d68] sm:$0xff] %v9123_v57  ;;  %v8094_v62 = vmul.f32 %v17300_v63, %v6783_v30  ;;  %10150 = vst [vmem:[%s12116_s18 + $0x1d80] sm:$0xff] %v9126_v10  ;;  %v8097_v51 = vmul.f32 %v17304_v28, %v6798_v48 }
0x100c   : > { %7026 = vbcast.lane.b32.xlu1 %v17918_v16, 328  ;;  %7038 = vbcast.lane.b32.xlu0 %v17918_v16, 352 }
0x100d   : > { %v9125_v42 = vadd.f32 %v17310_v9, %v8094_v62  ;;  %v9128_v3 = vadd.f32 %v17310_v9, %v8097_v51 }
0x100e   : > { %v6794_v18 = vpop.permute.xlu1 %6793  ;;  %v6806_v36 = vpop.permute.xlu0 %6805 }
0x100f   : > { %10149 = vst [vmem:[%s12116_s18 + $0x1d78] sm:$0xff] %v9125_v42  ;;  %v8096_v32 = vmul.f32 %v17314_v59, %v6794_v18  ;;  %10152 = vst [vmem:[%s12116_s18 + $0x1d90] sm:$0xff] %v9128_v3  ;;  %v8099_v11 = vmul.f32 %v17318_v33, %v6806_v36 }
0x1010   : > { %7034 = vbcast.lane.b32.xlu1 %v17918_v16, 344  ;;  %7046 = vbcast.lane.b32.xlu0 %v17918_v16, 368 }
0x1011   : > { %v9127_v19 = vadd.f32 %v17310_v9, %v8096_v32  ;;  %v9130_v56 = vadd.f32 %v17310_v9, %v8099_v11 }
0x1012   : > { %v6802_v45 = vpop.permute.xlu1 %6801  ;;  %v6814_v41 = vpop.permute.xlu0 %6813 }
0x1013   : > { %10151 = vst [vmem:[%s12116_s18 + $0x1d88] sm:$0xff] %v9127_v19  ;;  %v8098_v39 = vmul.f32 %v17326_v23, %v6802_v45  ;;  %10154 = vst [vmem:[%s12116_s18 + $0x1da0] sm:$0xff] %v9130_v56  ;;  %v8101_v35 = vmul.f32 %v17330_v46, %v6814_v41 }
0x1014   : > { %7042 = vbcast.lane.b32.xlu1 %v17918_v16, 360  ;;  %7057 = vbcast.lane.b32.xlu0 %v17919_v7, 256 }
0x1015   : > { %v9129_v34 = vadd.f32 %v17310_v9, %v8098_v39  ;;  %v9132_v60 = vadd.f32 %v17310_v9, %v8101_v35 }
0x1016   : > { %v6810_v38 = vpop.permute.xlu1 %6809  ;;  %v6822_v37 = vpop.permute.xlu0 %6821 }
0x1017   : > { %10153 = vst [vmem:[%s12116_s18 + $0x1d98] sm:$0xff] %v9129_v34  ;;  %v8100_v21 = vmul.f32 %v17338_v55, %v6810_v38  ;;  %10156 = vst [vmem:[%s12116_s18 + $0x1db0] sm:$0xff] %v9132_v60  ;;  %v8103_v54 = vmul.f32 %v17342_v20, %v6822_v37 }
0x1018   : > { %7050 = vbcast.lane.b32.xlu1 %v17918_v16, 376  ;;  %7065 = vbcast.lane.b32.xlu0 %v17919_v7, 272 }
0x1019   : > { %v9131_v31 = vadd.f32 %v17310_v9, %v8100_v21  ;;  %v9134_v0 = vadd.f32 %v17310_v9, %v8103_v54 }
0x101a   : > { %v6818_v25 = vpop.permute.xlu1 %6817  ;;  %v6830_v47 = vpop.permute.xlu0 %6829 }
0x101b   : > { %10155 = vst [vmem:[%s12116_s18 + $0x1da8] sm:$0xff] %v9131_v31  ;;  %v8102_v58 = vmul.f32 %v17350_v5, %v6818_v25  ;;  %10158 = vst [vmem:[%s12116_s18 + $0x1dc0] sm:$0xff] %v9134_v0  ;;  %v8105_v57 = vmul.f32 %v17354_v27, %v6830_v47 }
0x101c   : > { %7061 = vbcast.lane.b32.xlu1 %v17919_v7, 264  ;;  %7073 = vbcast.lane.b32.xlu0 %v17919_v7, 288 }
0x101d   : > { %v9133_v16 = vadd.f32 %v17310_v9, %v8102_v58  ;;  %v9136_v10 = vadd.f32 %v17310_v9, %v8105_v57 }
0x101e   : > { %v6826_v30 = vpop.permute.xlu1 %6825  ;;  %v6838_v48 = vpop.permute.xlu0 %6837 }
0x101f   : > { %10157 = vst [vmem:[%s12116_s18 + $0x1db8] sm:$0xff] %v9133_v16  ;;  %v8104_v62 = vmul.f32 %v17362_v50, %v6826_v30  ;;  %10160 = vst [vmem:[%s12116_s18 + $0x1dd0] sm:$0xff] %v9136_v10  ;;  %v8107_v51 = vmul.f32 %v17366_v26, %v6838_v48 }
0x1020   : > { %7069 = vbcast.lane.b32.xlu1 %v17919_v7, 280  ;;  %7081 = vbcast.lane.b32.xlu0 %v17919_v7, 304 }
0x1021   : > { %v9135_v42 = vadd.f32 %v17310_v9, %v8104_v62  ;;  %v9138_v3 = vadd.f32 %v17310_v9, %v8107_v51 }
0x1022   : > { %v6834_v18 = vpop.permute.xlu1 %6833  ;;  %v6846_v36 = vpop.permute.xlu0 %6845 }
0x1023   : > { %10159 = vst [vmem:[%s12116_s18 + $0x1dc8] sm:$0xff] %v9135_v42  ;;  %v8106_v32 = vmul.f32 %v17374_v43, %v6834_v18  ;;  %10162 = vst [vmem:[%s12116_s18 + $0x1de0] sm:$0xff] %v9138_v3  ;;  %v8109_v11 = vmul.f32 %v17378_v2, %v6846_v36 }
0x1024   : > { %7077 = vbcast.lane.b32.xlu1 %v17919_v7, 296  ;;  %7089 = vbcast.lane.b32.xlu0 %v17919_v7, 320 }
0x1025   : > { %v9137_v19 = vadd.f32 %v17310_v9, %v8106_v32  ;;  %v9140_v56 = vadd.f32 %v17310_v9, %v8109_v11 }
0x1026   : > { %v6842_v45 = vpop.permute.xlu1 %6841  ;;  %v6857_v41 = vpop.permute.xlu0 %6856 }
0x1027   : > { %10161 = vst [vmem:[%s12116_s18 + $0x1dd8] sm:$0xff] %v9137_v19  ;;  %v8108_v39 = vmul.f32 %v17386_v53, %v6842_v45  ;;  %10164 = vst [vmem:[%s12116_s18 + $0x1df0] sm:$0xff] %v9140_v56  ;;  %v8111_v35 = vmul.f32 %v17220_v8, %v6857_v41 }
0x1028   : > { %7085 = vbcast.lane.b32.xlu1 %v17919_v7, 312  ;;  %7097 = vbcast.lane.b32.xlu0 %v17919_v7, 336 }
0x1029   : > { %v9139_v34 = vadd.f32 %v17310_v9, %v8108_v39  ;;  %v9142_v60 = vadd.f32 %v17310_v9, %v8111_v35 }
0x102a   : > { %v6850_v38 = vpop.permute.xlu1 %6849  ;;  %v6865_v37 = vpop.permute.xlu0 %6864 }
0x102b   : > { %10163 = vst [vmem:[%s12116_s18 + $0x1de8] sm:$0xff] %v9139_v34  ;;  %v8110_v21 = vmul.f32 %v17396_v49, %v6850_v38  ;;  %10166 = vst [vmem:[%s12116_s18 + $0x1e00] sm:$0xff] %v9142_v60  ;;  %v8113_v54 = vmul.f32 %v17078_v52, %v6865_v37 }
0x102c   : > { %7093 = vbcast.lane.b32.xlu1 %v17919_v7, 328  ;;  %7105 = vbcast.lane.b32.xlu0 %v17919_v7, 352 }
0x102d   : > { %v9141_v31 = vadd.f32 %v17310_v9, %v8110_v21  ;;  %v9144_v0 = vadd.f32 %v17310_v9, %v8113_v54 }
0x102e   : > { %v6861_v25 = vpop.permute.xlu1 %6860  ;;  %v6873_v47 = vpop.permute.xlu0 %6872 }
0x102f   : > { %10165 = vst [vmem:[%s12116_s18 + $0x1df8] sm:$0xff] %v9141_v31  ;;  %v8112_v58 = vmul.f32 %v17086_v44, %v6861_v25  ;;  %10168 = vst [vmem:[%s12116_s18 + $0x1e10] sm:$0xff] %v9144_v0  ;;  %v8115_v57 = vmul.f32 %v17090_v12, %v6873_v47 }
0x1030   : > { %7101 = vbcast.lane.b32.xlu1 %v17919_v7, 344  ;;  %7113 = vbcast.lane.b32.xlu0 %v17919_v7, 368 }
0x1031   : > { %v9143_v52 = vadd.f32 %v17310_v9, %v8112_v58  ;;  %v9146_v16 = vadd.f32 %v17310_v9, %v8115_v57 }
0x1032   : > { %v6869_v10 = vpop.permute.xlu1 %6868  ;;  %v6881_v62 = vpop.permute.xlu0 %6880 }
0x1033   : > { %10167 = vst [vmem:[%s12116_s18 + $0x1e08] sm:$0xff] %v9143_v52  ;;  %v8114_v30 = vmul.f32 %v17098_v61, %v6869_v10  ;;  %10170 = vst [vmem:[%s12116_s18 + $0x1e20] sm:$0xff] %v9146_v16  ;;  %v8117_v44 = vmul.f32 %v17102_v22, %v6881_v62 }
0x1034   : > { %7109 = vbcast.lane.b32.xlu1 %v17919_v7, 360 }
0x1035   : > { %v9145_v12 = vadd.f32 %v17310_v9, %v8114_v30  ;;  %v9148_v48 = vadd.f32 %v17310_v9, %v8117_v44 }
0x1036   : > { %v6877_v51 = vpop.permute.xlu1 %6876  ;;  %v6889_v3 = vpop.permute.xlu0 %6888 }
0x1037   : > { %10169 = vst [vmem:[%s12116_s18 + $0x1e18] sm:$0xff] %v9145_v12  ;;  %v8116_v42 = vmul.f32 %v17110_v4, %v6877_v51  ;;  %10172 = vst [vmem:[%s12116_s18 + $0x1e30] sm:$0xff] %v9148_v48  ;;  %v8119_v61 = vmul.f32 %v17114_v6, %v6889_v3 }
0x1038   : > { %7117 = vbcast.lane.b32.xlu1 %v17919_v7, 376 }
0x1039   : > { %v9147_v22 = vadd.f32 %v17310_v9, %v8116_v42  ;;  %v9150_v18 = vadd.f32 %v17310_v9, %v8119_v61 }
0x103a   : > { %v6885_v32 = vpop.permute.xlu1 %6884  ;;  %v6897_v11 = vpop.permute.xlu0 %6896 }
0x103b   : > { %10171 = vst [vmem:[%s12116_s18 + $0x1e28] sm:$0xff] %v9147_v22  ;;  %v8118_v36 = vmul.f32 %v17122_v1, %v6885_v32  ;;  %10174 = vst [vmem:[%s12116_s18 + $0x1e40] sm:$0xff] %v9150_v18  ;;  %v8121_v4 = vmul.f32 %v17126_v15, %v6897_v11 }
0x103d   : > { %v9149_v19 = vadd.f32 %v17310_v9, %v8118_v36  ;;  %v9152_v6 = vadd.f32 %v17310_v9, %v8121_v4 }
0x103e   : > { %v6893_v56 = vpop.permute.xlu1 %6892  ;;  %v6905_v45 = vpop.permute.xlu0 %6904 }
0x103f   : > { %10173 = vst [vmem:[%s12116_s18 + $0x1e38] sm:$0xff] %v9149_v19  ;;  %v8120_v7 = vmul.f32 %v17134_v14, %v6893_v56  ;;  %10176 = vst [vmem:[%s12116_s18 + $0x1e50] sm:$0xff] %v9152_v6  ;;  %v8123_v39 = vmul.f32 %v17138_v40, %v6905_v45 }
0x1041   : > { %v9151_v1 = vadd.f32 %v17310_v9, %v8120_v7  ;;  %v9154_v41 = vadd.f32 %v17310_v9, %v8123_v39 }
0x1042   : > { %v6901_v35 = vpop.permute.xlu1 %6900  ;;  %v6913_v34 = vpop.permute.xlu0 %6912 }
0x1043   : > { %10175 = vst [vmem:[%s12116_s18 + $0x1e48] sm:$0xff] %v9151_v1  ;;  %v8122_v15 = vmul.f32 %v17276_v17, %v6901_v35  ;;  %10178 = vst [vmem:[%s12116_s18 + $0x1e60] sm:$0xff] %v9154_v41  ;;  %v8125_v60 = vmul.f32 %v17280_v24, %v6913_v34 }
0x1045   : > { %v9153_v14 = vadd.f32 %v17310_v9, %v8122_v15  ;;  %v9156_v38 = vadd.f32 %v17310_v9, %v8125_v60 }
0x1046   : > { %v6909_v21 = vpop.permute.xlu1 %6908  ;;  %v6924_v37 = vpop.permute.xlu0 %6923 }
0x1047   : > { %10177 = vst [vmem:[%s12116_s18 + $0x1e58] sm:$0xff] %v9153_v14  ;;  %v8124_v40 = vmul.f32 %v17288_v29, %v6909_v21  ;;  %10180 = vst [vmem:[%s12116_s18 + $0x1e70] sm:$0xff] %v9156_v38  ;;  %v8127_v54 = vmul.f32 %v17292_v13, %v6924_v37 }
0x1049   : > { %v9155_v31 = vadd.f32 %v17310_v9, %v8124_v40  ;;  %v9158_v0 = vadd.f32 %v17310_v9, %v8127_v54 }
0x104a   : > { %v6917_v25 = vpop.permute.xlu1 %6916  ;;  %v6932_v47 = vpop.permute.xlu0 %6931 }
0x104b   : > { %10179 = vst [vmem:[%s12116_s18 + $0x1e68] sm:$0xff] %v9155_v31  ;;  %v8126_v58 = vmul.f32 %v17300_v63, %v6917_v25  ;;  %10182 = vst [vmem:[%s12116_s18 + $0x1e80] sm:$0xff] %v9158_v0  ;;  %v8129_v57 = vmul.f32 %v17304_v28, %v6932_v47 }
0x104d   : > { %v9157_v52 = vadd.f32 %v17310_v9, %v8126_v58  ;;  %v9160_v16 = vadd.f32 %v17310_v9, %v8129_v57 }
0x104e   : > { %v6928_v10 = vpop.permute.xlu1 %6927  ;;  %v6940_v62 = vpop.permute.xlu0 %6939 }
0x104f   : > { %10181 = vst [vmem:[%s12116_s18 + $0x1e78] sm:$0xff] %v9157_v52  ;;  %v8128_v30 = vmul.f32 %v17314_v59, %v6928_v10  ;;  %10184 = vst [vmem:[%s12116_s18 + $0x1e90] sm:$0xff] %v9160_v16  ;;  %v8131_v44 = vmul.f32 %v17318_v33, %v6940_v62 }
0x1051   : > { %v9159_v12 = vadd.f32 %v17310_v9, %v8128_v30  ;;  %v9162_v48 = vadd.f32 %v17310_v9, %v8131_v44  ;;  %v11492_v44 = vld [vmem:[#allocation3 + $0xd8] sm:$0xff] }
0x1052   : > { %v6936_v51 = vpop.permute.xlu1 %6935  ;;  %v6948_v3 = vpop.permute.xlu0 %6947 }
0x1053   : > { %10183 = vst [vmem:[%s12116_s18 + $0x1e88] sm:$0xff] %v9159_v12  ;;  %v8130_v42 = vmul.f32 %v17326_v23, %v6936_v51  ;;  %10186 = vst [vmem:[%s12116_s18 + $0x1ea0] sm:$0xff] %v9162_v48  ;;  %v8133_v61 = vmul.f32 %v17330_v46, %v6948_v3 }
0x1055   : > { %v9161_v22 = vadd.f32 %v17310_v9, %v8130_v42  ;;  %v9164_v18 = vadd.f32 %v17310_v9, %v8133_v61  ;;  %v11493_v42 = vld [vmem:[#allocation3] sm:$0xff] }
0x1056   : > { %v6944_v32 = vpop.permute.xlu1 %6943  ;;  %v6956_v11 = vpop.permute.xlu0 %6955 }
0x1057   : > { %10185 = vst [vmem:[%s12116_s18 + $0x1e98] sm:$0xff] %v9161_v22  ;;  %v8132_v36 = vmul.f32 %v17338_v55, %v6944_v32  ;;  %10188 = vst [vmem:[%s12116_s18 + $0x1eb0] sm:$0xff] %v9164_v18  ;;  %v8135_v4 = vmul.f32 %v17342_v20, %v6956_v11  ;;  %v11494_v22 = vld [vmem:[#allocation3 + $0x50] sm:$0xff] }
0x1059   : > { %v9163_v19 = vadd.f32 %v17310_v9, %v8132_v36  ;;  %v9166_v6 = vadd.f32 %v17310_v9, %v8135_v4  ;;  %v11495_v4 = vld [vmem:[#allocation3 + $0x18] sm:$0xff] }
0x105a   : > { %v6952_v56 = vpop.permute.xlu1 %6951  ;;  %v6964_v45 = vpop.permute.xlu0 %6963 }
0x105b   : > { %10187 = vst [vmem:[%s12116_s18 + $0x1ea8] sm:$0xff] %v9163_v19  ;;  %v8134_v7 = vmul.f32 %v17350_v5, %v6952_v56  ;;  %10190 = vst [vmem:[%s12116_s18 + $0x1ec0] sm:$0xff] %v9166_v6  ;;  %v8137_v39 = vmul.f32 %v17354_v27, %v6964_v45  ;;  %v11496_v56 = vld [vmem:[#allocation3 + $0x30] sm:$0xff] }
0x105d   : > { %v9165_v1 = vadd.f32 %v17310_v9, %v8134_v7  ;;  %v9168_v41 = vadd.f32 %v17310_v9, %v8137_v39 }
0x105e   : > { %v6960_v35 = vpop.permute.xlu1 %6959  ;;  %v6972_v34 = vpop.permute.xlu0 %6971 }
0x105f   : > { %10189 = vst [vmem:[%s12116_s18 + $0x1eb8] sm:$0xff] %v9165_v1  ;;  %v8136_v15 = vmul.f32 %v17362_v50, %v6960_v35  ;;  %10192 = vst [vmem:[%s12116_s18 + $0x1ed0] sm:$0xff] %v9168_v41  ;;  %v8139_v60 = vmul.f32 %v17366_v26, %v6972_v34  ;;  %v11497_v41 = vld [vmem:[#allocation3 + $0x68] sm:$0xff]  ;;  %v11498_v34 = vld [vmem:[#allocation3 + $0x80] sm:$0xff] }
0x1061   : > { %v9167_v14 = vadd.f32 %v17310_v9, %v8136_v15  ;;  %v9170_v38 = vadd.f32 %v17310_v9, %v8139_v60 }
0x1062   : > { %v6968_v21 = vpop.permute.xlu1 %6967  ;;  %v6980_v37 = vpop.permute.xlu0 %6979 }
0x1063   : > { %10191 = vst [vmem:[%s12116_s18 + $0x1ec8] sm:$0xff] %v9167_v14  ;;  %v8138_v40 = vmul.f32 %v17374_v43, %v6968_v21  ;;  %10194 = vst [vmem:[%s12116_s18 + $0x1ee0] sm:$0xff] %v9170_v38  ;;  %v8141_v54 = vmul.f32 %v17378_v2, %v6980_v37 }
0x1065   : > { %v9169_v31 = vadd.f32 %v17310_v9, %v8138_v40  ;;  %v9172_v0 = vadd.f32 %v17310_v9, %v8141_v54  ;;  %v11499_v40 = vld [vmem:[#allocation3 + $0x48] sm:$0xff] }
0x1066   : > { %v6976_v25 = vpop.permute.xlu1 %6975  ;;  %v6991_v47 = vpop.permute.xlu0 %6990 }
0x1067   : > { %10193 = vst [vmem:[%s12116_s18 + $0x1ed8] sm:$0xff] %v9169_v31  ;;  %v8140_v58 = vmul.f32 %v17386_v53, %v6976_v25  ;;  %10196 = vst [vmem:[%s12116_s18 + $0x1ef0] sm:$0xff] %v9172_v0  ;;  %v8143_v57 = vmul.f32 %v17220_v8, %v6991_v47  ;;  %v11500_v31 = vld [vmem:[#allocation3 + $0xe8] sm:$0xff] }
0x1069   : > { %v9171_v52 = vadd.f32 %v17310_v9, %v8140_v58  ;;  %v9174_v16 = vadd.f32 %v17310_v9, %v8143_v57  ;;  %v11501_v57 = vld [vmem:[#allocation3 + $0x88] sm:$0xff] }
0x106a   : > { %v6984_v10 = vpop.permute.xlu1 %6983  ;;  %v6999_v62 = vpop.permute.xlu0 %6998 }
0x106b   : > { %10195 = vst [vmem:[%s12116_s18 + $0x1ee8] sm:$0xff] %v9171_v52  ;;  %v8142_v30 = vmul.f32 %v17396_v49, %v6984_v10  ;;  %10198 = vst [vmem:[%s12116_s18 + $0x1f00] sm:$0xff] %v9174_v16  ;;  %v8145_v12 = vmul.f32 %v11492_v44, %v6999_v62  ;;  %v11502_v10 = vld [vmem:[#allocation3 + $0x60] sm:$0xff] }
0x106d   : > { %v9173_v48 = vadd.f32 %v17310_v9, %v8142_v30  ;;  %v9176_v51 = vadd.f32 %v17310_v9, %v8145_v12 }
0x106e   : > { %v6995_v8 = vpop.permute.xlu1 %6994  ;;  %v7007_v61 = vpop.permute.xlu0 %7006 }
0x106f   : > { %10197 = vst [vmem:[%s12116_s18 + $0x1ef8] sm:$0xff] %v9173_v48  ;;  %v8144_v3 = vmul.f32 %v11493_v42, %v6995_v8  ;;  %10200 = vst [vmem:[%s12116_s18 + $0x1f10] sm:$0xff] %v9176_v51  ;;  %v8147_v18 = vmul.f32 %v11494_v22, %v7007_v61 }
0x1071   : > { %v9175_v32 = vadd.f32 %v17310_v9, %v8144_v3  ;;  %v9178_v36 = vadd.f32 %v17310_v9, %v8147_v18 }
0x1072   : > { %v7003_v11 = vpop.permute.xlu1 %7002  ;;  %v7015_v6 = vpop.permute.xlu0 %7014 }
0x1073   : > { %10199 = vst [vmem:[%s12116_s18 + $0x1f08] sm:$0xff] %v9175_v32  ;;  %v8146_v19 = vmul.f32 %v11495_v4, %v7003_v11  ;;  %10202 = vst [vmem:[%s12116_s18 + $0x1f20] sm:$0xff] %v9178_v36  ;;  %v8149_v7 = vmul.f32 %v11496_v56, %v7015_v6 }
0x1075   : > { %v9177_v45 = vadd.f32 %v17310_v9, %v8146_v19  ;;  %v9180_v39 = vadd.f32 %v17310_v9, %v8149_v7 }
0x1076   : > { %v7011_v1 = vpop.permute.xlu1 %7010  ;;  %v7023_v15 = vpop.permute.xlu0 %7022 }
0x1077   : > { %10201 = vst [vmem:[%s12116_s18 + $0x1f18] sm:$0xff] %v9177_v45  ;;  %v8148_v35 = vmul.f32 %v11497_v41, %v7011_v1  ;;  %10204 = vst [vmem:[%s12116_s18 + $0x1f30] sm:$0xff] %v9180_v39  ;;  %v8151_v60 = vmul.f32 %v11498_v34, %v7023_v15 }
0x1079   : > { %v9179_v14 = vadd.f32 %v17310_v9, %v8148_v35  ;;  %v9182_v38 = vadd.f32 %v17310_v9, %v8151_v60 }
0x107a   : > { %v7019_v21 = vpop.permute.xlu1 %7018  ;;  %v7031_v54 = vpop.permute.xlu0 %7030 }
0x107b   : > { %10203 = vst [vmem:[%s12116_s18 + $0x1f28] sm:$0xff] %v9179_v14  ;;  %v8150_v37 = vmul.f32 %v11499_v40, %v7019_v21  ;;  %10206 = vst [vmem:[%s12116_s18 + $0x1f40] sm:$0xff] %v9182_v38  ;;  %v8153_v0 = vmul.f32 %v11500_v31, %v7031_v54 }
0x107d   : > { %v9181_v25 = vadd.f32 %v17310_v9, %v8150_v37  ;;  %v9184_v58 = vadd.f32 %v17310_v9, %v8153_v0 }
0x107e   : > { %v7027_v47 = vpop.permute.xlu1 %7026  ;;  %v7039_v16 = vpop.permute.xlu0 %7038 }
0x107f   : > { %10205 = vst [vmem:[%s12116_s18 + $0x1f38] sm:$0xff] %v9181_v25  ;;  %v8152_v52 = vmul.f32 %v11501_v57, %v7027_v47  ;;  %10208 = vst [vmem:[%s12116_s18 + $0x1f50] sm:$0xff] %v9184_v58  ;;  %v8155_v30 = vmul.f32 %v11502_v10, %v7039_v16 }
0x1081   : > { %v9183_v62 = vadd.f32 %v17310_v9, %v8152_v52  ;;  %v9186_v44 = vadd.f32 %v17310_v9, %v8155_v30 }
0x1082   : > { %v7035_v12 = vpop.permute.xlu1 %7034  ;;  %v7047_v51 = vpop.permute.xlu0 %7046 }
0x1083   : > { %10207 = vst [vmem:[%s12116_s18 + $0x1f48] sm:$0xff] %v9183_v62  ;;  %v8154_v48 = vmul.f32 %v17276_v17, %v7035_v12  ;;  %10210 = vst [vmem:[%s12116_s18 + $0x1f60] sm:$0xff] %v9186_v44  ;;  %v8157_v8 = vmul.f32 %v17280_v24, %v7047_v51 }
0x1085   : > { %v9185_v42 = vadd.f32 %v17310_v9, %v8154_v48  ;;  %v9188_v3 = vadd.f32 %v17310_v9, %v8157_v8 }
0x1086   : > { %v7043_v61 = vpop.permute.xlu1 %7042  ;;  %v7058_v18 = vpop.permute.xlu0 %7057 }
0x1087   : > { %10209 = vst [vmem:[%s12116_s18 + $0x1f58] sm:$0xff] %v9185_v42  ;;  %v8156_v22 = vmul.f32 %v17288_v29, %v7043_v61  ;;  %10212 = vst [vmem:[%s12116_s18 + $0x1f70] sm:$0xff] %v9188_v3  ;;  %v8159_v32 = vmul.f32 %v17292_v13, %v7058_v18 }
0x1089   : > { %v9187_v17 = vadd.f32 %v17310_v9, %v8156_v22  ;;  %v9190_v36 = vadd.f32 %v17310_v9, %v8159_v32 }
0x108a   : > { %v7051_v11 = vpop.permute.xlu1 %7050  ;;  %v7066_v4 = vpop.permute.xlu0 %7065 }
0x108b   : > { %10211 = vst [vmem:[%s12116_s18 + $0x1f68] sm:$0xff] %v9187_v17  ;;  %v8158_v24 = vmul.f32 %v17300_v63, %v7051_v11  ;;  %10214 = vst [vmem:[%s12116_s18 + $0x1f80] sm:$0xff] %v9190_v36  ;;  %v8161_v19 = vmul.f32 %v17304_v28, %v7066_v4 }
0x108d   : > { %v9189_v29 = vadd.f32 %v17310_v9, %v8158_v24  ;;  %v9192_v6 = vadd.f32 %v17310_v9, %v8161_v19 }
0x108e   : > { %v7062_v56 = vpop.permute.xlu1 %7061  ;;  %v7074_v7 = vpop.permute.xlu0 %7073 }
0x108f   : > { %10213 = vst [vmem:[%s12116_s18 + $0x1f78] sm:$0xff] %v9189_v29  ;;  %v8160_v13 = vmul.f32 %v17314_v59, %v7062_v56  ;;  %10216 = vst [vmem:[%s12116_s18 + $0x1f90] sm:$0xff] %v9192_v6  ;;  %v8163_v45 = vmul.f32 %v17318_v33, %v7074_v7 }
0x1091   : > { %v9191_v63 = vadd.f32 %v17310_v9, %v8160_v13  ;;  %v9194_v39 = vadd.f32 %v17310_v9, %v8163_v45 }
0x1092   : > { %v7070_v1 = vpop.permute.xlu1 %7069  ;;  %v7082_v41 = vpop.permute.xlu0 %7081 }
0x1093   : > { %10215 = vst [vmem:[%s12116_s18 + $0x1f88] sm:$0xff] %v9191_v63  ;;  %v8162_v28 = vmul.f32 %v17326_v23, %v7070_v1  ;;  %10218 = vst [vmem:[%s12116_s18 + $0x1fa0] sm:$0xff] %v9194_v39  ;;  %v8165_v35 = vmul.f32 %v17330_v46, %v7082_v41 }
0x1095   : > { %v9193_v59 = vadd.f32 %v17310_v9, %v8162_v28  ;;  %v9196_v15 = vadd.f32 %v17310_v9, %v8165_v35 }
0x1096   : > { %v7078_v34 = vpop.permute.xlu1 %7077  ;;  %v7090_v60 = vpop.permute.xlu0 %7089 }
0x1097   : > { %10217 = vst [vmem:[%s12116_s18 + $0x1f98] sm:$0xff] %v9193_v59  ;;  %v8164_v33 = vmul.f32 %v17338_v55, %v7078_v34  ;;  %10220 = vst [vmem:[%s12116_s18 + $0x1fb0] sm:$0xff] %v9196_v15  ;;  %v8167_v14 = vmul.f32 %v17342_v20, %v7090_v60 }
0x1099   : > { %v9195_v23 = vadd.f32 %v17310_v9, %v8164_v33  ;;  %v9198_v38 = vadd.f32 %v17310_v9, %v8167_v14 }
0x109a   : > { %v7086_v21 = vpop.permute.xlu1 %7085  ;;  %v7098_v40 = vpop.permute.xlu0 %7097 }
0x109b   : > { %10219 = vst [vmem:[%s12116_s18 + $0x1fa8] sm:$0xff] %v9195_v23  ;;  %v8166_v46 = vmul.f32 %v17350_v5, %v7086_v21  ;;  %10222 = vst [vmem:[%s12116_s18 + $0x1fc0] sm:$0xff] %v9198_v38  ;;  %v8169_v37 = vmul.f32 %v17354_v27, %v7098_v40 }
0x109d   : > { %v9197_v55 = vadd.f32 %v17310_v9, %v8166_v46  ;;  %v9200_v54 = vadd.f32 %v17310_v9, %v8169_v37 }
0x109e   : > { %v7094_v31 = vpop.permute.xlu1 %7093  ;;  %v7106_v0 = vpop.permute.xlu0 %7105 }
0x109f   : > { %10221 = vst [vmem:[%s12116_s18 + $0x1fb8] sm:$0xff] %v9197_v55  ;;  %v8168_v20 = vmul.f32 %v17362_v50, %v7094_v31  ;;  %10224 = vst [vmem:[%s12116_s18 + $0x1fd0] sm:$0xff] %v9200_v54  ;;  %v8171_v25 = vmul.f32 %v17366_v26, %v7106_v0 }
0x10a1   : > { %v9199_v5 = vadd.f32 %v17310_v9, %v8168_v20  ;;  %v9202_v27 = vadd.f32 %v17310_v9, %v8171_v25 }
0x10a2   : > { %v7102_v58 = vpop.permute.xlu1 %7101  ;;  %v7114_v57 = vpop.permute.xlu0 %7113 }
0x10a3   : > { %10223 = vst [vmem:[%s12116_s18 + $0x1fc8] sm:$0xff] %v9199_v5  ;;  %v8170_v47 = vmul.f32 %v17374_v43, %v7102_v58  ;;  %10226 = vst [vmem:[%s12116_s18 + $0x1fe0] sm:$0xff] %v9202_v27  ;;  %v8173_v50 = vmul.f32 %v17378_v2, %v7114_v57 }
0x10a5   : > { %v9201_v52 = vadd.f32 %v17310_v9, %v8170_v47  ;;  %v9204_v26 = vadd.f32 %v17310_v9, %v8173_v50 }
0x10a6   : > { %v7110_v16 = vpop.permute.xlu1 %7109 }
0x10a7   : > { %10225 = vst [vmem:[%s12116_s18 + $0x1fd8] sm:$0xff] %v9201_v52  ;;  %v8172_v10 = vmul.f32 %v17386_v53, %v7110_v16  ;;  %10228 = vst [vmem:[%s12116_s18 + $0x1ff0] sm:$0xff] %v9204_v26 }
0x10a9   : > { %v9203_v30 = vadd.f32 %v17310_v9, %v8172_v10 }
0x10aa   : > { %v7118_v43 = vpop.permute.xlu1 %7117 }
0x10ab   : > { %10227 = vst [vmem:[%s12116_s18 + $0x1fe8] sm:$0xff] %v9203_v30  ;;  %v8174_v2 = vmul.f32 %v17396_v49, %v7118_v43 }
0x10ad   : > { %v9205_v53 = vadd.f32 %v17310_v9, %v8174_v2 }
0x10af   : > { %10229 = vst [vmem:[%s12116_s18 + $0x1ff8] sm:$0xff] %v9205_v53 }
0x10b0   : > { %11776 = shalt.err (!%p11773_p1)
}
0x10b1   : > { %s11777_s1 = scalar_lea.hbm %s17717_s30, 131072  ;;  %s11781_s20 = scalar_lea.hbm %s17777_s12, 1048576 }
0x10b2   : > { %p11778_p4 = scmp.ne.s32.totalorder %s17717_s30, %s11777_s1  ;;  %p11782_p3 = scmp.lt.s32.totalorder %s17717_s30, %s17777_s12 }
0x10b3   : > { %p11783_p7 = scmp.lt.s32.totalorder %s11781_s20, %s11777_s1 }
0x10b4   : > { %p11779_p2 = pnand %p11778_p4, %p17920_p10 }
0x10b5   : > { %p11784_p8 = por %p11783_p7, %p11782_p3 }
0x10b6   : > { %p11780_p9 = pneg %p11779_p2 }
0x10b8   : > { %p11785_p12 = pnand %p11784_p8, %p11780_p9 }
0x10ba   : > { %11788 = shalt.err (!%p11785_p12)
}
0x10bb   : > { %s11870_s19 = smov 128   ;;  %s11871_s17 = smov 8  }
0x10bc   : > { %10867 = dma.vmem_to_hbm [thread:$0]  (%p17920_p10), %s17719_s27, 131072, %s17717_s30, %s17725_s25, %s11870_s19, %s11870_s19, %s11871_s17  }
0x10bd PF: > { %s17921_s2 = sld [smem:[#allocation32_spill]]  ;;  %p10924_p0 = scmp.ge.s32.totalorder %s11847_s24, 2 }
0x10be   : > { %s10260_s23 = sand.u32 1, %s11835_s21  }
0x10bf   : > { %s10261_s28 = scalar_lea.sflag [#allocation6], %s10260_s23 }
0x10c3   : > { %p17922_p5 = scmp.ne.s32.totalorder %s17921_s2, 0 }
0x10c5   : > { %p10901_p6 = pnand %p10924_p0, %p17922_p5 }
0x10c7   : > { %p10902_p11 = pneg %p10901_p6 }
0x10c9   : > { %11830 = dma.done.wait (%p10902_p11), %s10261_s28, 131072  }
0x10ca   : > { %11832 = vsyncadd (%p10902_p11), %s10261_s28, 4294836224  ;;  %s17923_s24 = sld [smem:[#allocation30_spill]]  ;;  %s17926_s21 = smov %s11839_s22 }
0x10cb   : > { %s17924_s26 = sld [smem:[#allocation29_spill]] }
0x10cc   : > { %s17925_s23 = sld [smem:[#allocation31_spill]] }
0x10d0   : > { %p28_p13 = scmp.ge.s32.totalorder %s17923_s24, 10  }
0x10d1   : > { %s17927_s22 = smov %s17924_s26 }
0x10d2   :  { %30 = sbr.rel (!%p28_p13) target bundleno = 13 (0xd), region = 146 }
0x10d7   :  { %10266 = vsyncpa [#allocation5], 1 }
0x10d8   :  { %10268 = vsyncpa [#allocation5 + $0x1], 1 }
0x10d9   :  { %10269 = vsyncpa [#allocation8], 1 }
0x10da   :  { %10270 = vsyncpa [#allocation11], 1 }
0x10db   :  { %10271 = vsyncpa [#allocation14], 1 }
0x10dc   :  { %10272 = vsyncpa [#allocation17], 1 }
0x10dd   :  { %10273 = vsyncpa [#allocation20], 1 }
0x10de   :  { %10274 = vsyncpa [#allocation6], 1 }
0x10df   :  { %10276 = vsyncpa [#allocation6 + $0x1], 1 }

</bundles_post_ra>
